<compile_context>
chip_gen: v7x
topology: tpu7x:2x2x1
jax: 0.10.0
libtpu: 0.0.40
codegen_flags: <defaults>
</compile_context>

<pallas_src>
import functools

import jax
import jax.numpy as jnp
from jax import lax
from jax.experimental import pallas as pl
from jax.experimental.pallas import tpu as pltpu

EMB = 32        # model_config['EMBEDDING_SIZE']
HID = 64        # model_config['HIDDEN_SIZE']
CONV_C = 16     # synthetic backbone conv channels
C_PAD = 128     # lane-dense channel padding for the backbone activation
K_IN = 8        # input channels padded 3 -> 8 (sublane aligned contraction)
BN_EPS = 1e-5
COS_EPS = 1e-8


# ---------------------------------------------------------------------------
# Kernel 1: in-kernel 3x3 conv (9 shifted matmuls) + BN2d(train) + ReLU + GAP,
# one grid step per view.
# ---------------------------------------------------------------------------
def _backbone_kernel(x_ref, w_ref, bnp_ref, pooled_ref, *, H, W):
    # x_ref:      (B, H+2, W+2, K_IN)   padded NHWC input for this view (f32)
    # w_ref:      (9, K_IN, C_PAD)      per-offset conv weights (zero padded)
    # bnp_ref:    (3, C_PAD)            rows = [conv bias, bn gamma, bn beta]
    # pooled_ref: (1, B, C_PAD)         per-image GAP output (lane dense)
    B = x_ref.shape[0]
    hw = H * W
    m = B * hw

    # 3x3 conv as 9 shifted accumulating matmuls; input is read from HBM once.
    acc = jnp.zeros((m, C_PAD), jnp.float32)
    for k in range(9):
        di, dj = k // 3, k % 3
        xs = x_ref[:, di:di + H, dj:dj + W, :].reshape(m, K_IN)
        acc = acc + jnp.dot(xs, w_ref[k], preferred_element_type=jnp.float32)
    y = acc + bnp_ref[0:1, :]                              # conv bias

    # train-mode BatchNorm2d: exact stats over the whole view (B*H*W rows).
    mu = jnp.mean(y, axis=0, keepdims=True)
    var = jnp.maximum(jnp.mean((y - mu) * (y - mu), axis=0, keepdims=True), 0.0)
    yn = (y - mu) * lax.rsqrt(var + BN_EPS)
    yn = jnp.maximum(yn * bnp_ref[1:2, :] + bnp_ref[2:3, :], 0.0)

    # global average pool per image; single lane-dense unmasked store.
    pooled_ref[0] = jnp.mean(yn.reshape(B, hw, C_PAD), axis=1)


def backbone_pooled(x_both, p):
    # x_both: (2*B, C_in, H, W) NCHW, view-1 images first.
    BB, C, H, W = x_both.shape
    B = BB // 2

    # One cheap layout pass on the host: NCHW -> NHWC, spatial pad 1, C_in->8.
    xh = jnp.transpose(x_both, (0, 2, 3, 1))                       # (2B,H,W,C)
    xh = jnp.pad(xh, ((0, 0), (1, 1), (1, 1), (0, K_IN - C)))      # (2B,H+2,W+2,8)

    # conv weights (C_out, C_in, 3, 3) -> (9, K_IN, C_PAD), offset-major rows.
    w = jnp.transpose(p['conv_w'], (2, 3, 1, 0)).reshape(9, C, CONV_C)
    w = jnp.pad(w, ((0, 0), (0, K_IN - C), (0, C_PAD - CONV_C)))
    bnp = jnp.stack([p['conv_b'], p['bn_g'], p['bn_b']], axis=0)    # (3, C_out)
    bnp = jnp.pad(bnp, ((0, 0), (0, C_PAD - CONV_C)))               # (3, C_PAD)

    kernel = functools.partial(_backbone_kernel, H=H, W=W)
    return pl.pallas_call(
        kernel,
        out_shape=jax.ShapeDtypeStruct((2, B, C_PAD), jnp.float32),
        grid_spec=pltpu.PrefetchScalarGridSpec(
            num_scalar_prefetch=0,
            grid=(2,),                                   # one step per view
            in_specs=[
                pl.BlockSpec((B, H + 2, W + 2, K_IN), lambda v: (v, 0, 0, 0)),
                pl.BlockSpec((9, K_IN, C_PAD), lambda v: (0, 0, 0)),
                pl.BlockSpec((3, C_PAD), lambda v: (0, 0)),
            ],
            out_specs=pl.BlockSpec((1, B, C_PAD), lambda v: (v, 0, 0)),
        ),
        compiler_params=pltpu.CompilerParams(
            dimension_semantics=("parallel",)),          # views -> 2 TCs on v7x
    )(xh, w, bnp)                                        # (2, B, C_PAD)


# ---------------------------------------------------------------------------
# Kernel 2: fused post-GAP head (fc + projector + predictor + gaussian heads)
# for BOTH views plus all loss math, single ungridded launch.
# ---------------------------------------------------------------------------
def _row_cos(a, b):
    dot = jnp.sum(a * b, axis=-1, keepdims=True)
    na = jnp.sqrt(jnp.sum(a * a, axis=-1, keepdims=True))
    nb = jnp.sqrt(jnp.sum(b * b, axis=-1, keepdims=True))
    return dot / jnp.maximum(na * nb, COS_EPS)            # (B, 1)


def _gaussian_mean_loss(m, half):
    n = m.shape[0]
    norm = jnp.sqrt(jnp.sum(m * m, axis=-1, keepdims=True))
    mn = m / jnp.maximum(norm, COS_EPS)
    cs = lax.dot_general(mn, mn, (((1,), (1,)), ((), ())),
                         preferred_element_type=jnp.float32)    # (n, n)
    row = lax.broadcasted_iota(jnp.int32, (n, n), 0)
    col = lax.broadcasted_iota(jnp.int32, (n, n), 1)
    cs = jnp.where(row == col, -9e15, cs)                  # mask self-similarity
    pos_mask = col == ((row + half) % n)                   # eye rolled by n//2
    pos = jnp.sum(jnp.where(pos_mask, cs, 0.0), axis=-1, keepdims=True)
    mx = jnp.max(cs, axis=-1, keepdims=True)
    lse = mx + jnp.log(jnp.sum(jnp.exp(cs - mx), axis=-1, keepdims=True))
    nll = -pos + lse
    return jnp.sum(nll, axis=0, keepdims=True) / n         # (1, 1)


def _iso_kl(mean, log_var):
    t = 1.0 + log_var - mean * mean - jnp.exp(log_var)
    s = jnp.sum(jnp.sum(t, axis=-1, keepdims=True), axis=0, keepdims=True)
    return -0.5 * s                                        # (1, 1)


def _head_loss_kernel(pooled_ref, fcw_ref, wemb_ref, qw1_ref, qw2_ref, vecs_ref,
                      z1_ref, p1_ref, loss_ref):
    B = z1_ref.shape[0]
    vecs = vecs_ref[...]
    fc_b    = vecs[0:1, :EMB]
    proj_g  = vecs[1:2, :EMB]
    proj_b  = vecs[2:3, :EMB]
    proj_b2 = vecs[3:4, :EMB]
    pred_g  = vecs[4:5, :HID]
    pred_b  = vecs[5:6, :HID]
    pred_b2 = vecs[6:7, :EMB]
    g_bias  = jnp.concatenate([vecs[7:8, :EMB], vecs[8:9, :EMB]], axis=1)  # (1,2E)

    proj_w1 = wemb_ref[0]
    proj_w2 = wemb_ref[1]
    g_w = jnp.concatenate([wemb_ref[2], wemb_ref[3]], axis=1)              # (E,2E)
    fcw, qw1, qw2 = fcw_ref[...], qw1_ref[...], qw2_ref[...]

    def mm(a, b):
        return jnp.dot(a, b, preferred_element_type=jnp.float32)

    def bn_relu(y, g, b):                                  # train-mode BN1d, per view
        mu = jnp.mean(y, axis=0, keepdims=True)
        var = jnp.maximum(jnp.mean((y - mu) * (y - mu), axis=0, keepdims=True), 0.0)
        yn = (y - mu) * lax.rsqrt(var + BN_EPS)
        return jnp.maximum(yn * g + b, 0.0)

    def enc_head(f):                                       # backbone fc + projector
        h = mm(f, fcw) + fc_b
        h = bn_relu(mm(h, proj_w1), proj_g, proj_b)
        return mm(h, proj_w2) + proj_b2

    def pred(z):                                           # predictor MLP
        h = bn_relu(mm(z, qw1), pred_g, pred_b)
        return mm(h, qw2) + pred_b2

    z1 = enc_head(pooled_ref[0])
    z2 = enc_head(pooled_ref[1])
    p1 = pred(z1)
    p2 = pred(z2)

    # all 8 gaussian mean / log-var matmuls fused into one (4B,E) @ (E,2E)
    feats = jnp.concatenate([p1, p2, z1, z2], axis=0)
    g_out = mm(feats, g_w) + g_bias
    p1m, p1v = g_out[0:B, :EMB], g_out[0:B, EMB:]
    p2m, p2v = g_out[B:2 * B, :EMB], g_out[B:2 * B, EMB:]
    z1m = g_out[2 * B:3 * B, :EMB]
    z2m = g_out[3 * B:4 * B, :EMB]

    # contrastive (cosine) loss; .detach() is a no-op in the forward pass
    c1 = jnp.sum(_row_cos(p1, z2), axis=0, keepdims=True) / B
    c2 = jnp.sum(_row_cos(p2, z1), axis=0, keepdims=True) / B
    contrastive = -(c1 + c2) * 0.5
    # gaussian mean (pairwise-cos NLL) loss
    ma = jnp.concatenate([p1m, z2m], axis=0)
    mb = jnp.concatenate([p2m, z1m], axis=0)
    gau = _gaussian_mean_loss(ma, B) + _gaussian_mean_loss(mb, B)
    # iso-KL
    kl = 0.001 * _iso_kl(p1m, p1v) + 0.001 * _iso_kl(p2m, p2v)
    loss = contrastive + gau + kl

    z1_ref[...] = z1
    p1_ref[...] = p1
    # pack the four scalars into one lane-dense 128-wide row
    lane = lax.broadcasted_iota(jnp.int32, (1, 128), 1)
    loss_ref[...] = (jnp.where(lane == 0, loss, 0.0)
                     + jnp.where(lane == 1, contrastive, 0.0)
                     + jnp.where(lane == 2, gau, 0.0)
                     + jnp.where(lane == 3, kl, 0.0))


def head_and_loss(pooled, p):
    B = pooled.shape[1]
    vmem = pl.BlockSpec(memory_space=pltpu.MemorySpace.VMEM)

    fcw = jnp.pad(p['bb_fc_w'], ((0, C_PAD - CONV_C), (0, 0)))      # (128, EMB)
    wemb = jnp.stack([p['proj_w1'], p['proj_w2'], p['gm_w'], p['gv_w']], axis=0)

    def row(v):
        return jnp.pad(v, (0, 128 - v.shape[0]))
    vecs = jnp.stack([row(p['bb_fc_b']), row(p['proj_g1']), row(p['proj_b1']),
                      row(p['proj_bias2']), row(p['pred_g1']), row(p['pred_b1']),
                      row(p['pred_bias2']), row(p['gm_b']), row(p['gv_b'])],
                     axis=0)                                        # (9, 128)

    out_shape = (jax.ShapeDtypeStruct((B, EMB), jnp.float32),
                 jax.ShapeDtypeStruct((B, EMB), jnp.float32),
                 jax.ShapeDtypeStruct((1, 128), jnp.float32))
    return pl.pallas_call(
        _head_loss_kernel,
        out_shape=out_shape,
        in_specs=[vmem] * 6,
        out_specs=(vmem, vmem, vmem),
    )(pooled, fcw, wemb, p['pred_w1'], p['pred_w2'], vecs)


# ---------------------------------------------------------------------------
# Parameters (deterministic, synthetic)
# ---------------------------------------------------------------------------
def init_params(key):
    ks = jax.random.split(key, 8)

    def lin(k, fan_in, fan_out):
        lim = 1.0 / jnp.sqrt(float(fan_in))
        return jax.random.uniform(k, (fan_in, fan_out), jnp.float32, -lim, lim)

    p = {}
    # backbone (synthetic stand-in for ModelBase/resnet18)
    lim = 1.0 / jnp.sqrt(27.0)
    p['conv_w'] = jax.random.uniform(ks[0], (CONV_C, 3, 3, 3), jnp.float32, -lim, lim)
    p['conv_b'] = jnp.zeros((CONV_C,), jnp.float32)
    p['bn_g'] = jnp.ones((CONV_C,), jnp.float32)
    p['bn_b'] = jnp.zeros((CONV_C,), jnp.float32)
    p['bb_fc_w'] = lin(ks[1], CONV_C, EMB)
    p['bb_fc_b'] = jnp.zeros((EMB,), jnp.float32)
    # projector MLP(dim, dim): Linear(no bias) + BN1d + ReLU + Linear
    p['proj_w1'] = lin(ks[2], EMB, EMB)
    p['proj_g1'] = jnp.ones((EMB,), jnp.float32)
    p['proj_b1'] = jnp.zeros((EMB,), jnp.float32)
    p['proj_w2'] = lin(ks[3], EMB, EMB)
    p['proj_bias2'] = jnp.zeros((EMB,), jnp.float32)
    # predictor: Linear(EMB->HID, no bias) + BN1d(HID) + ReLU + Linear(HID->EMB)
    p['pred_w1'] = lin(ks[4], EMB, HID)
    p['pred_g1'] = jnp.ones((HID,), jnp.float32)
    p['pred_b1'] = jnp.zeros((HID,), jnp.float32)
    p['pred_w2'] = lin(ks[5], HID, EMB)
    p['pred_bias2'] = jnp.zeros((EMB,), jnp.float32)
    # GaussianProjection: mean head + log-var head
    p['gm_w'] = lin(ks[6], EMB, EMB)
    p['gm_b'] = jnp.zeros((EMB,), jnp.float32)
    p['gv_w'] = lin(ks[7], EMB, EMB)
    p['gv_b'] = jnp.zeros((EMB,), jnp.float32)
    return p


# ---------------------------------------------------------------------------
# Forward
# ---------------------------------------------------------------------------
def forward(x1, x2, p):
    x_both = jnp.concatenate([x1, x2], axis=0)           # per-view BN handled in-kernel
    pooled = backbone_pooled(x_both, p)                  # (2, B, 128) lane-dense
    z1, p1, losses = head_and_loss(pooled, p)
    loss = losses[0, 0]
    return (z1, p1), loss, [losses[0, 1], losses[0, 2], losses[0, 3]]


if __name__ == "__main__":
    key = jax.random.PRNGKey(0)
    kp, k1, k2 = jax.random.split(key, 3)
    params = init_params(kp)
    x1 = jax.random.normal(k1, (4, 3, 16, 16), jnp.float32)
    x2 = jax.random.normal(k2, (4, 3, 16, 16), jnp.float32)
    (z1, p1), loss, parts = jax.jit(forward)(x1, x2, params)
    jax.block_until_ready((z1, p1, loss, parts))
    print("KERNEL_OK")
</pallas_src>

<mosaic_0001>
module attributes {stable_mosaic.version = 11 : i64} {
  func.func @_backbone_kernel(%arg0: i32, %arg1: memref<4x18x18x8xf32, #tpu.memory_space<vmem>>, %arg2: memref<9x8x128xf32, #tpu.memory_space<vmem>>, %arg3: memref<3x128xf32, #tpu.memory_space<vmem>>, %arg4: memref<1x4x128xf32, #tpu.memory_space<vmem>>) attributes {dimension_semantics = [#tpu.dimension_semantics<parallel>], iteration_bounds = array<i64: 2>, scalar_prefetch = 0 : i64, scratch_operands = 0 : i64, tpu.core_type = #tpu.core_type<tc>, window_params = [{transform_indices = @transform_0, window_bounds = array<i64: 4, 18, 18, 8>}, {pipeline_mode = #tpu.pipeline_mode<synchronous>, transform_indices = @transform_1, window_bounds = array<i64: 9, 8, 128>}, {pipeline_mode = #tpu.pipeline_mode<synchronous>, transform_indices = @transform_2, window_bounds = array<i64: 3, 128>}, {transform_indices = @transform_3, window_bounds = array<i64: 1, 4, 128>}]} {
    %cst = arith.constant 0.000000e+00 : f32
    %0 = vector.broadcast %cst : f32 to vector<1024x128xf32>
    %c0 = arith.constant 0 : index
    %c0_0 = arith.constant 0 : index
    %c0_1 = arith.constant 0 : index
    %c0_2 = arith.constant 0 : index
    %1 = vector.load %arg1[%c0, %c0_0, %c0_1, %c0_2] : memref<4x18x18x8xf32, #tpu.memory_space<vmem>>, vector<4x16x16x8xf32>
    %2 = vector.shape_cast %1 : vector<4x16x16x8xf32> to vector<1024x8xf32>
    %c0_3 = arith.constant 0 : index
    %c0_4 = arith.constant 0 : index
    %c0_5 = arith.constant 0 : index
    %3 = vector.load %arg2[%c0_3, %c0_4, %c0_5] : memref<9x8x128xf32, #tpu.memory_space<vmem>>, vector<1x8x128xf32>
    %4 = vector.shape_cast %3 : vector<1x8x128xf32> to vector<8x128xf32>
    %cst_6 = arith.constant dense<0.000000e+00> : vector<1024x128xf32>
    %5 = tpu.matmul %2, %4, %cst_6 {dimension_numbers = #tpu.dot_dimension_numbers<[1], [0], [0], [1], [0, 0, 1, 1], [], []>} : vector<1024x8xf32>, vector<8x128xf32>, vector<1024x128xf32> -> vector<1024x128xf32>
    %6 = arith.addf %0, %5 : vector<1024x128xf32>
    %c0_7 = arith.constant 0 : index
    %c0_8 = arith.constant 0 : index
    %c1 = arith.constant 1 : index
    %c0_9 = arith.constant 0 : index
    %7 = vector.load %arg1[%c0_7, %c0_8, %c1, %c0_9] : memref<4x18x18x8xf32, #tpu.memory_space<vmem>>, vector<4x16x16x8xf32>
    %8 = vector.shape_cast %7 : vector<4x16x16x8xf32> to vector<1024x8xf32>
    %c1_10 = arith.constant 1 : index
    %c0_11 = arith.constant 0 : index
    %c0_12 = arith.constant 0 : index
    %9 = vector.load %arg2[%c1_10, %c0_11, %c0_12] : memref<9x8x128xf32, #tpu.memory_space<vmem>>, vector<1x8x128xf32>
    %10 = vector.shape_cast %9 : vector<1x8x128xf32> to vector<8x128xf32>
    %cst_13 = arith.constant dense<0.000000e+00> : vector<1024x128xf32>
    %11 = tpu.matmul %8, %10, %cst_13 {dimension_numbers = #tpu.dot_dimension_numbers<[1], [0], [0], [1], [0, 0, 1, 1], [], []>} : vector<1024x8xf32>, vector<8x128xf32>, vector<1024x128xf32> -> vector<1024x128xf32>
    %12 = arith.addf %6, %11 : vector<1024x128xf32>
    %c0_14 = arith.constant 0 : index
    %c0_15 = arith.constant 0 : index
    %c2 = arith.constant 2 : index
    %c0_16 = arith.constant 0 : index
    %13 = vector.load %arg1[%c0_14, %c0_15, %c2, %c0_16] : memref<4x18x18x8xf32, #tpu.memory_space<vmem>>, vector<4x16x16x8xf32>
    %14 = vector.shape_cast %13 : vector<4x16x16x8xf32> to vector<1024x8xf32>
    %c2_17 = arith.constant 2 : index
    %c0_18 = arith.constant 0 : index
    %c0_19 = arith.constant 0 : index
    %15 = vector.load %arg2[%c2_17, %c0_18, %c0_19] : memref<9x8x128xf32, #tpu.memory_space<vmem>>, vector<1x8x128xf32>
    %16 = vector.shape_cast %15 : vector<1x8x128xf32> to vector<8x128xf32>
    %cst_20 = arith.constant dense<0.000000e+00> : vector<1024x128xf32>
    %17 = tpu.matmul %14, %16, %cst_20 {dimension_numbers = #tpu.dot_dimension_numbers<[1], [0], [0], [1], [0, 0, 1, 1], [], []>} : vector<1024x8xf32>, vector<8x128xf32>, vector<1024x128xf32> -> vector<1024x128xf32>
    %18 = arith.addf %12, %17 : vector<1024x128xf32>
    %c0_21 = arith.constant 0 : index
    %c1_22 = arith.constant 1 : index
    %c0_23 = arith.constant 0 : index
    %c0_24 = arith.constant 0 : index
    %19 = vector.load %arg1[%c0_21, %c1_22, %c0_23, %c0_24] : memref<4x18x18x8xf32, #tpu.memory_space<vmem>>, vector<4x16x16x8xf32>
    %20 = vector.shape_cast %19 : vector<4x16x16x8xf32> to vector<1024x8xf32>
    %c3 = arith.constant 3 : index
    %c0_25 = arith.constant 0 : index
    %c0_26 = arith.constant 0 : index
    %21 = vector.load %arg2[%c3, %c0_25, %c0_26] : memref<9x8x128xf32, #tpu.memory_space<vmem>>, vector<1x8x128xf32>
    %22 = vector.shape_cast %21 : vector<1x8x128xf32> to vector<8x128xf32>
    %cst_27 = arith.constant dense<0.000000e+00> : vector<1024x128xf32>
    %23 = tpu.matmul %20, %22, %cst_27 {dimension_numbers = #tpu.dot_dimension_numbers<[1], [0], [0], [1], [0, 0, 1, 1], [], []>} : vector<1024x8xf32>, vector<8x128xf32>, vector<1024x128xf32> -> vector<1024x128xf32>
    %24 = arith.addf %18, %23 : vector<1024x128xf32>
    %c0_28 = arith.constant 0 : index
    %c1_29 = arith.constant 1 : index
    %c1_30 = arith.constant 1 : index
    %c0_31 = arith.constant 0 : index
    %25 = vector.load %arg1[%c0_28, %c1_29, %c1_30, %c0_31] : memref<4x18x18x8xf32, #tpu.memory_space<vmem>>, vector<4x16x16x8xf32>
    %26 = vector.shape_cast %25 : vector<4x16x16x8xf32> to vector<1024x8xf32>
    %c4 = arith.constant 4 : index
    %c0_32 = arith.constant 0 : index
    %c0_33 = arith.constant 0 : index
    %27 = vector.load %arg2[%c4, %c0_32, %c0_33] : memref<9x8x128xf32, #tpu.memory_space<vmem>>, vector<1x8x128xf32>
    %28 = vector.shape_cast %27 : vector<1x8x128xf32> to vector<8x128xf32>
    %cst_34 = arith.constant dense<0.000000e+00> : vector<1024x128xf32>
    %29 = tpu.matmul %26, %28, %cst_34 {dimension_numbers = #tpu.dot_dimension_numbers<[1], [0], [0], [1], [0, 0, 1, 1], [], []>} : vector<1024x8xf32>, vector<8x128xf32>, vector<1024x128xf32> -> vector<1024x128xf32>
    %30 = arith.addf %24, %29 : vector<1024x128xf32>
    %c0_35 = arith.constant 0 : index
    %c1_36 = arith.constant 1 : index
    %c2_37 = arith.constant 2 : index
    %c0_38 = arith.constant 0 : index
    %31 = vector.load %arg1[%c0_35, %c1_36, %c2_37, %c0_38] : memref<4x18x18x8xf32, #tpu.memory_space<vmem>>, vector<4x16x16x8xf32>
    %32 = vector.shape_cast %31 : vector<4x16x16x8xf32> to vector<1024x8xf32>
    %c5 = arith.constant 5 : index
    %c0_39 = arith.constant 0 : index
    %c0_40 = arith.constant 0 : index
    %33 = vector.load %arg2[%c5, %c0_39, %c0_40] : memref<9x8x128xf32, #tpu.memory_space<vmem>>, vector<1x8x128xf32>
    %34 = vector.shape_cast %33 : vector<1x8x128xf32> to vector<8x128xf32>
    %cst_41 = arith.constant dense<0.000000e+00> : vector<1024x128xf32>
    %35 = tpu.matmul %32, %34, %cst_41 {dimension_numbers = #tpu.dot_dimension_numbers<[1], [0], [0], [1], [0, 0, 1, 1], [], []>} : vector<1024x8xf32>, vector<8x128xf32>, vector<1024x128xf32> -> vector<1024x128xf32>
    %36 = arith.addf %30, %35 : vector<1024x128xf32>
    %c0_42 = arith.constant 0 : index
    %c2_43 = arith.constant 2 : index
    %c0_44 = arith.constant 0 : index
    %c0_45 = arith.constant 0 : index
    %37 = vector.load %arg1[%c0_42, %c2_43, %c0_44, %c0_45] : memref<4x18x18x8xf32, #tpu.memory_space<vmem>>, vector<4x16x16x8xf32>
    %38 = vector.shape_cast %37 : vector<4x16x16x8xf32> to vector<1024x8xf32>
    %c6 = arith.constant 6 : index
    %c0_46 = arith.constant 0 : index
    %c0_47 = arith.constant 0 : index
    %39 = vector.load %arg2[%c6, %c0_46, %c0_47] : memref<9x8x128xf32, #tpu.memory_space<vmem>>, vector<1x8x128xf32>
    %40 = vector.shape_cast %39 : vector<1x8x128xf32> to vector<8x128xf32>
    %cst_48 = arith.constant dense<0.000000e+00> : vector<1024x128xf32>
    %41 = tpu.matmul %38, %40, %cst_48 {dimension_numbers = #tpu.dot_dimension_numbers<[1], [0], [0], [1], [0, 0, 1, 1], [], []>} : vector<1024x8xf32>, vector<8x128xf32>, vector<1024x128xf32> -> vector<1024x128xf32>
    %42 = arith.addf %36, %41 : vector<1024x128xf32>
    %c0_49 = arith.constant 0 : index
    %c2_50 = arith.constant 2 : index
    %c1_51 = arith.constant 1 : index
    %c0_52 = arith.constant 0 : index
    %43 = vector.load %arg1[%c0_49, %c2_50, %c1_51, %c0_52] : memref<4x18x18x8xf32, #tpu.memory_space<vmem>>, vector<4x16x16x8xf32>
    %44 = vector.shape_cast %43 : vector<4x16x16x8xf32> to vector<1024x8xf32>
    %c7 = arith.constant 7 : index
    %c0_53 = arith.constant 0 : index
    %c0_54 = arith.constant 0 : index
    %45 = vector.load %arg2[%c7, %c0_53, %c0_54] : memref<9x8x128xf32, #tpu.memory_space<vmem>>, vector<1x8x128xf32>
    %46 = vector.shape_cast %45 : vector<1x8x128xf32> to vector<8x128xf32>
    %cst_55 = arith.constant dense<0.000000e+00> : vector<1024x128xf32>
    %47 = tpu.matmul %44, %46, %cst_55 {dimension_numbers = #tpu.dot_dimension_numbers<[1], [0], [0], [1], [0, 0, 1, 1], [], []>} : vector<1024x8xf32>, vector<8x128xf32>, vector<1024x128xf32> -> vector<1024x128xf32>
    %48 = arith.addf %42, %47 : vector<1024x128xf32>
    %c0_56 = arith.constant 0 : index
    %c2_57 = arith.constant 2 : index
    %c2_58 = arith.constant 2 : index
    %c0_59 = arith.constant 0 : index
    %49 = vector.load %arg1[%c0_56, %c2_57, %c2_58, %c0_59] : memref<4x18x18x8xf32, #tpu.memory_space<vmem>>, vector<4x16x16x8xf32>
    %50 = vector.shape_cast %49 : vector<4x16x16x8xf32> to vector<1024x8xf32>
    %c8 = arith.constant 8 : index
    %c0_60 = arith.constant 0 : index
    %c0_61 = arith.constant 0 : index
    %51 = vector.load %arg2[%c8, %c0_60, %c0_61] : memref<9x8x128xf32, #tpu.memory_space<vmem>>, vector<1x8x128xf32>
    %52 = vector.shape_cast %51 : vector<1x8x128xf32> to vector<8x128xf32>
    %cst_62 = arith.constant dense<0.000000e+00> : vector<1024x128xf32>
    %53 = tpu.matmul %50, %52, %cst_62 {dimension_numbers = #tpu.dot_dimension_numbers<[1], [0], [0], [1], [0, 0, 1, 1], [], []>} : vector<1024x8xf32>, vector<8x128xf32>, vector<1024x128xf32> -> vector<1024x128xf32>
    %54 = arith.addf %48, %53 : vector<1024x128xf32>
    %c0_63 = arith.constant 0 : index
    %c0_64 = arith.constant 0 : index
    %55 = vector.load %arg3[%c0_63, %c0_64] : memref<3x128xf32, #tpu.memory_space<vmem>>, vector<1x128xf32>
    %56 = vector.broadcast %55 : vector<1x128xf32> to vector<1024x128xf32>
    %57 = arith.addf %54, %56 : vector<1024x128xf32>
    %cst_65 = arith.constant dense<0.000000e+00> : vector<128xf32>
    %58 = vector.multi_reduction <add>, %57, %cst_65 [0] : vector<1024x128xf32> to vector<128xf32>
    %59 = vector.shape_cast %58 : vector<128xf32> to vector<1x128xf32>
    %cst_66 = arith.constant 1.024000e+03 : f32
    %60 = vector.broadcast %cst_66 : f32 to vector<1x128xf32>
    %61 = arith.divf %59, %60 : vector<1x128xf32>
    %62 = vector.broadcast %61 : vector<1x128xf32> to vector<1024x128xf32>
    %63 = arith.subf %57, %62 : vector<1024x128xf32>
    %64 = vector.broadcast %61 : vector<1x128xf32> to vector<1024x128xf32>
    %65 = arith.subf %57, %64 : vector<1024x128xf32>
    %66 = arith.mulf %63, %65 : vector<1024x128xf32>
    %cst_67 = arith.constant dense<0.000000e+00> : vector<128xf32>
    %67 = vector.multi_reduction <add>, %66, %cst_67 [0] : vector<1024x128xf32> to vector<128xf32>
    %68 = vector.shape_cast %67 : vector<128xf32> to vector<1x128xf32>
    %cst_68 = arith.constant 1.024000e+03 : f32
    %69 = vector.broadcast %cst_68 : f32 to vector<1x128xf32>
    %70 = arith.divf %68, %69 : vector<1x128xf32>
    %cst_69 = arith.constant 0.000000e+00 : f32
    %71 = vector.broadcast %cst_69 : f32 to vector<1x128xf32>
    %72 = arith.maximumf %70, %71 : vector<1x128xf32>
    %73 = vector.broadcast %61 : vector<1x128xf32> to vector<1024x128xf32>
    %74 = arith.subf %57, %73 : vector<1024x128xf32>
    %cst_70 = arith.constant 9.99999974E-6 : f32
    %75 = vector.broadcast %cst_70 : f32 to vector<1x128xf32>
    %76 = arith.addf %72, %75 : vector<1x128xf32>
    %77 = math.rsqrt %76 : vector<1x128xf32>
    %78 = vector.broadcast %77 : vector<1x128xf32> to vector<1024x128xf32>
    %79 = arith.mulf %74, %78 : vector<1024x128xf32>
    %c1_71 = arith.constant 1 : index
    %c0_72 = arith.constant 0 : index
    %80 = vector.load %arg3[%c1_71, %c0_72] : memref<3x128xf32, #tpu.memory_space<vmem>>, vector<1x128xf32>
    %81 = vector.broadcast %80 : vector<1x128xf32> to vector<1024x128xf32>
    %82 = arith.mulf %79, %81 : vector<1024x128xf32>
    %c2_73 = arith.constant 2 : index
    %c0_74 = arith.constant 0 : index
    %83 = vector.load %arg3[%c2_73, %c0_74] : memref<3x128xf32, #tpu.memory_space<vmem>>, vector<1x128xf32>
    %84 = vector.broadcast %83 : vector<1x128xf32> to vector<1024x128xf32>
    %85 = arith.addf %82, %84 : vector<1024x128xf32>
    %cst_75 = arith.constant 0.000000e+00 : f32
    %86 = vector.broadcast %cst_75 : f32 to vector<1024x128xf32>
    %87 = arith.maximumf %85, %86 : vector<1024x128xf32>
    %88 = vector.shape_cast %87 : vector<1024x128xf32> to vector<4x256x128xf32>
    %cst_76 = arith.constant dense<0.000000e+00> : vector<4x128xf32>
    %89 = vector.multi_reduction <add>, %88, %cst_76 [1] : vector<4x256x128xf32> to vector<4x128xf32>
    %cst_77 = arith.constant 2.560000e+02 : f32
    %90 = vector.broadcast %cst_77 : f32 to vector<4x128xf32>
    %91 = arith.divf %89, %90 : vector<4x128xf32>
    %c0_78 = arith.constant 0 : index
    %c0_79 = arith.constant 0 : index
    %c0_80 = arith.constant 0 : index
    %92 = vector.load %arg4[%c0_78, %c0_79, %c0_80] : memref<1x4x128xf32, #tpu.memory_space<vmem>>, vector<1x4x128xf32>
    %93 = vector.shape_cast %92 : vector<1x4x128xf32> to vector<4x128xf32>
    %94 = vector.shape_cast %91 : vector<4x128xf32> to vector<1x4x128xf32>
    tpu.vector_store %arg4[%c0_78, %c0_79, %c0_80], %94 {strides = array<i32>} : memref<1x4x128xf32, #tpu.memory_space<vmem>>, vector<1x4x128xf32>,
    return
  }
  func.func @transform_0(%arg0: i32) -> (i32, i32, i32, i32) {
    %c0_i32 = arith.constant 0 : i32
    %c0_i32_0 = arith.constant 0 : i32
    %c0_i32_1 = arith.constant 0 : i32
    %c0_i32_2 = arith.constant 0 : i32
    return %arg0, %c0_i32, %c0_i32_0, %c0_i32_1 : i32, i32, i32, i32
  }
  func.func @transform_1(%arg0: i32) -> (i32, i32, i32) {
    %c0_i32 = arith.constant 0 : i32
    %c0_i32_0 = arith.constant 0 : i32
    %c0_i32_1 = arith.constant 0 : i32
    %c0_i32_2 = arith.constant 0 : i32
    return %c0_i32, %c0_i32_0, %c0_i32_1 : i32, i32, i32
  }
  func.func @transform_2(%arg0: i32) -> (i32, i32) {
    %c0_i32 = arith.constant 0 : i32
    %c0_i32_0 = arith.constant 0 : i32
    %c0_i32_1 = arith.constant 0 : i32
    return %c0_i32, %c0_i32_0 : i32, i32
  }
  func.func @transform_3(%arg0: i32) -> (i32, i32, i32) {
    %c0_i32 = arith.constant 0 : i32
    %c0_i32_0 = arith.constant 0 : i32
    %c0_i32_1 = arith.constant 0 : i32
    return %arg0, %c0_i32, %c0_i32_0 : i32, i32, i32
  }
}

module attributes {stable_mosaic.version = 11 : i64} {
  func.func @_head_loss_kernel(%arg0: memref<2x4x128xf32, #tpu.memory_space<vmem>>, %arg1: memref<128x32xf32, #tpu.memory_space<vmem>>, %arg2: memref<4x32x32xf32, #tpu.memory_space<vmem>>, %arg3: memref<32x64xf32, #tpu.memory_space<vmem>>, %arg4: memref<64x32xf32, #tpu.memory_space<vmem>>, %arg5: memref<9x128xf32, #tpu.memory_space<vmem>>, %arg6: memref<4x32xf32, #tpu.memory_space<vmem>>, %arg7: memref<4x32xf32, #tpu.memory_space<vmem>>, %arg8: memref<1x128xf32, #tpu.memory_space<vmem>>) attributes {dimension_semantics = [], scalar_prefetch = 0 : i64, scratch_operands = 0 : i64, tpu.core_type = #tpu.core_type<tc>} {
    %c0 = arith.constant 0 : index
    %c0_0 = arith.constant 0 : index
    %0 = vector.load %arg5[%c0, %c0_0] : memref<9x128xf32, #tpu.memory_space<vmem>>, vector<9x128xf32>
    %1 = vector.extract_strided_slice %0 {offsets = [0, 0], sizes = [1, 32], strides = [1, 1]} : vector<9x128xf32> to vector<1x32xf32>
    %2 = vector.extract_strided_slice %0 {offsets = [1, 0], sizes = [1, 32], strides = [1, 1]} : vector<9x128xf32> to vector<1x32xf32>
    %3 = vector.extract_strided_slice %0 {offsets = [2, 0], sizes = [1, 32], strides = [1, 1]} : vector<9x128xf32> to vector<1x32xf32>
    %4 = vector.extract_strided_slice %0 {offsets = [3, 0], sizes = [1, 32], strides = [1, 1]} : vector<9x128xf32> to vector<1x32xf32>
    %5 = vector.extract_strided_slice %0 {offsets = [4, 0], sizes = [1, 64], strides = [1, 1]} : vector<9x128xf32> to vector<1x64xf32>
    %6 = vector.extract_strided_slice %0 {offsets = [5, 0], sizes = [1, 64], strides = [1, 1]} : vector<9x128xf32> to vector<1x64xf32>
    %7 = vector.extract_strided_slice %0 {offsets = [6, 0], sizes = [1, 32], strides = [1, 1]} : vector<9x128xf32> to vector<1x32xf32>
    %8 = vector.extract_strided_slice %0 {offsets = [7, 0], sizes = [1, 32], strides = [1, 1]} : vector<9x128xf32> to vector<1x32xf32>
    %9 = vector.extract_strided_slice %0 {offsets = [8, 0], sizes = [1, 32], strides = [1, 1]} : vector<9x128xf32> to vector<1x32xf32>
    %10 = tpu.concatenate %8, %9 in 1 : vector<1x32xf32>, vector<1x32xf32> -> vector<1x64xf32>
    %c0_1 = arith.constant 0 : index
    %c0_2 = arith.constant 0 : index
    %c0_3 = arith.constant 0 : index
    %11 = vector.load %arg2[%c0_1, %c0_2, %c0_3] : memref<4x32x32xf32, #tpu.memory_space<vmem>>, vector<1x32x32xf32>
    %12 = vector.shape_cast %11 : vector<1x32x32xf32> to vector<32x32xf32>
    %c1 = arith.constant 1 : index
    %c0_4 = arith.constant 0 : index
    %c0_5 = arith.constant 0 : index
    %13 = vector.load %arg2[%c1, %c0_4, %c0_5] : memref<4x32x32xf32, #tpu.memory_space<vmem>>, vector<1x32x32xf32>
    %14 = vector.shape_cast %13 : vector<1x32x32xf32> to vector<32x32xf32>
    %c2 = arith.constant 2 : index
    %c0_6 = arith.constant 0 : index
    %c0_7 = arith.constant 0 : index
    %15 = vector.load %arg2[%c2, %c0_6, %c0_7] : memref<4x32x32xf32, #tpu.memory_space<vmem>>, vector<1x32x32xf32>
    %16 = vector.shape_cast %15 : vector<1x32x32xf32> to vector<32x32xf32>
    %c3 = arith.constant 3 : index
    %c0_8 = arith.constant 0 : index
    %c0_9 = arith.constant 0 : index
    %17 = vector.load %arg2[%c3, %c0_8, %c0_9] : memref<4x32x32xf32, #tpu.memory_space<vmem>>, vector<1x32x32xf32>
    %18 = vector.shape_cast %17 : vector<1x32x32xf32> to vector<32x32xf32>
    %19 = tpu.concatenate %16, %18 in 1 : vector<32x32xf32>, vector<32x32xf32> -> vector<32x64xf32>
    %c0_10 = arith.constant 0 : index
    %c0_11 = arith.constant 0 : index
    %20 = vector.load %arg1[%c0_10, %c0_11] : memref<128x32xf32, #tpu.memory_space<vmem>>, vector<128x32xf32>
    %c0_12 = arith.constant 0 : index
    %c0_13 = arith.constant 0 : index
    %21 = vector.load %arg3[%c0_12, %c0_13] : memref<32x64xf32, #tpu.memory_space<vmem>>, vector<32x64xf32>
    %c0_14 = arith.constant 0 : index
    %c0_15 = arith.constant 0 : index
    %22 = vector.load %arg4[%c0_14, %c0_15] : memref<64x32xf32, #tpu.memory_space<vmem>>, vector<64x32xf32>
    %c0_16 = arith.constant 0 : index
    %c0_17 = arith.constant 0 : index
    %c0_18 = arith.constant 0 : index
    %23 = vector.load %arg0[%c0_16, %c0_17, %c0_18] : memref<2x4x128xf32, #tpu.memory_space<vmem>>, vector<1x4x128xf32>
    %24 = vector.shape_cast %23 : vector<1x4x128xf32> to vector<4x128xf32>
    %cst = arith.constant dense<0.000000e+00> : vector<4x32xf32>
    %25 = tpu.matmul %24, %20, %cst {dimension_numbers = #tpu.dot_dimension_numbers<[1], [0], [0], [1], [0, 0, 1, 1], [], []>} : vector<4x128xf32>, vector<128x32xf32>, vector<4x32xf32> -> vector<4x32xf32>
    %26 = vector.broadcast %1 : vector<1x32xf32> to vector<4x32xf32>
    %27 = arith.addf %25, %26 : vector<4x32xf32>
    %cst_19 = arith.constant dense<0.000000e+00> : vector<4x32xf32>
    %28 = tpu.matmul %27, %12, %cst_19 {dimension_numbers = #tpu.dot_dimension_numbers<[1], [0], [0], [1], [0, 0, 1, 1], [], []>} : vector<4x32xf32>, vector<32x32xf32>, vector<4x32xf32> -> vector<4x32xf32>
    %cst_20 = arith.constant dense<0.000000e+00> : vector<32xf32>
    %29 = vector.multi_reduction <add>, %28, %cst_20 [0] : vector<4x32xf32> to vector<32xf32>
    %30 = vector.shape_cast %29 : vector<32xf32> to vector<1x32xf32>
    %cst_21 = arith.constant 4.000000e+00 : f32
    %31 = vector.broadcast %cst_21 : f32 to vector<1x32xf32>
    %32 = arith.divf %30, %31 : vector<1x32xf32>
    %33 = vector.broadcast %32 : vector<1x32xf32> to vector<4x32xf32>
    %34 = arith.subf %28, %33 : vector<4x32xf32>
    %35 = vector.broadcast %32 : vector<1x32xf32> to vector<4x32xf32>
    %36 = arith.subf %28, %35 : vector<4x32xf32>
    %37 = arith.mulf %34, %36 : vector<4x32xf32>
    %cst_22 = arith.constant dense<0.000000e+00> : vector<32xf32>
    %38 = vector.multi_reduction <add>, %37, %cst_22 [0] : vector<4x32xf32> to vector<32xf32>
    %39 = vector.shape_cast %38 : vector<32xf32> to vector<1x32xf32>
    %cst_23 = arith.constant 4.000000e+00 : f32
    %40 = vector.broadcast %cst_23 : f32 to vector<1x32xf32>
    %41 = arith.divf %39, %40 : vector<1x32xf32>
    %cst_24 = arith.constant 0.000000e+00 : f32
    %42 = vector.broadcast %cst_24 : f32 to vector<1x32xf32>
    %43 = arith.maximumf %41, %42 : vector<1x32xf32>
    %44 = vector.broadcast %32 : vector<1x32xf32> to vector<4x32xf32>
    %45 = arith.subf %28, %44 : vector<4x32xf32>
    %cst_25 = arith.constant 9.99999974E-6 : f32
    %46 = vector.broadcast %cst_25 : f32 to vector<1x32xf32>
    %47 = arith.addf %43, %46 : vector<1x32xf32>
    %48 = math.rsqrt %47 : vector<1x32xf32>
    %49 = vector.broadcast %48 : vector<1x32xf32> to vector<4x32xf32>
    %50 = arith.mulf %45, %49 : vector<4x32xf32>
    %51 = vector.broadcast %2 : vector<1x32xf32> to vector<4x32xf32>
    %52 = arith.mulf %50, %51 : vector<4x32xf32>
    %53 = vector.broadcast %3 : vector<1x32xf32> to vector<4x32xf32>
    %54 = arith.addf %52, %53 : vector<4x32xf32>
    %cst_26 = arith.constant 0.000000e+00 : f32
    %55 = vector.broadcast %cst_26 : f32 to vector<4x32xf32>
    %56 = arith.maximumf %54, %55 : vector<4x32xf32>
    %cst_27 = arith.constant dense<0.000000e+00> : vector<4x32xf32>
    %57 = tpu.matmul %56, %14, %cst_27 {dimension_numbers = #tpu.dot_dimension_numbers<[1], [0], [0], [1], [0, 0, 1, 1], [], []>} : vector<4x32xf32>, vector<32x32xf32>, vector<4x32xf32> -> vector<4x32xf32>
    %58 = vector.broadcast %4 : vector<1x32xf32> to vector<4x32xf32>
    %59 = arith.addf %57, %58 : vector<4x32xf32>
    %c1_28 = arith.constant 1 : index
    %c0_29 = arith.constant 0 : index
    %c0_30 = arith.constant 0 : index
    %60 = vector.load %arg0[%c1_28, %c0_29, %c0_30] : memref<2x4x128xf32, #tpu.memory_space<vmem>>, vector<1x4x128xf32>
    %61 = vector.shape_cast %60 : vector<1x4x128xf32> to vector<4x128xf32>
    %cst_31 = arith.constant dense<0.000000e+00> : vector<4x32xf32>
    %62 = tpu.matmul %61, %20, %cst_31 {dimension_numbers = #tpu.dot_dimension_numbers<[1], [0], [0], [1], [0, 0, 1, 1], [], []>} : vector<4x128xf32>, vector<128x32xf32>, vector<4x32xf32> -> vector<4x32xf32>
    %63 = vector.broadcast %1 : vector<1x32xf32> to vector<4x32xf32>
    %64 = arith.addf %62, %63 : vector<4x32xf32>
    %cst_32 = arith.constant dense<0.000000e+00> : vector<4x32xf32>
    %65 = tpu.matmul %64, %12, %cst_32 {dimension_numbers = #tpu.dot_dimension_numbers<[1], [0], [0], [1], [0, 0, 1, 1], [], []>} : vector<4x32xf32>, vector<32x32xf32>, vector<4x32xf32> -> vector<4x32xf32>
    %cst_33 = arith.constant dense<0.000000e+00> : vector<32xf32>
    %66 = vector.multi_reduction <add>, %65, %cst_33 [0] : vector<4x32xf32> to vector<32xf32>
    %67 = vector.shape_cast %66 : vector<32xf32> to vector<1x32xf32>
    %cst_34 = arith.constant 4.000000e+00 : f32
    %68 = vector.broadcast %cst_34 : f32 to vector<1x32xf32>
    %69 = arith.divf %67, %68 : vector<1x32xf32>
    %70 = vector.broadcast %69 : vector<1x32xf32> to vector<4x32xf32>
    %71 = arith.subf %65, %70 : vector<4x32xf32>
    %72 = vector.broadcast %69 : vector<1x32xf32> to vector<4x32xf32>
    %73 = arith.subf %65, %72 : vector<4x32xf32>
    %74 = arith.mulf %71, %73 : vector<4x32xf32>
    %cst_35 = arith.constant dense<0.000000e+00> : vector<32xf32>
    %75 = vector.multi_reduction <add>, %74, %cst_35 [0] : vector<4x32xf32> to vector<32xf32>
    %76 = vector.shape_cast %75 : vector<32xf32> to vector<1x32xf32>
    %cst_36 = arith.constant 4.000000e+00 : f32
    %77 = vector.broadcast %cst_36 : f32 to vector<1x32xf32>
    %78 = arith.divf %76, %77 : vector<1x32xf32>
    %cst_37 = arith.constant 0.000000e+00 : f32
    %79 = vector.broadcast %cst_37 : f32 to vector<1x32xf32>
    %80 = arith.maximumf %78, %79 : vector<1x32xf32>
    %81 = vector.broadcast %69 : vector<1x32xf32> to vector<4x32xf32>
    %82 = arith.subf %65, %81 : vector<4x32xf32>
    %cst_38 = arith.constant 9.99999974E-6 : f32
    %83 = vector.broadcast %cst_38 : f32 to vector<1x32xf32>
    %84 = arith.addf %80, %83 : vector<1x32xf32>
    %85 = math.rsqrt %84 : vector<1x32xf32>
    %86 = vector.broadcast %85 : vector<1x32xf32> to vector<4x32xf32>
    %87 = arith.mulf %82, %86 : vector<4x32xf32>
    %88 = vector.broadcast %2 : vector<1x32xf32> to vector<4x32xf32>
    %89 = arith.mulf %87, %88 : vector<4x32xf32>
    %90 = vector.broadcast %3 : vector<1x32xf32> to vector<4x32xf32>
    %91 = arith.addf %89, %90 : vector<4x32xf32>
    %cst_39 = arith.constant 0.000000e+00 : f32
    %92 = vector.broadcast %cst_39 : f32 to vector<4x32xf32>
    %93 = arith.maximumf %91, %92 : vector<4x32xf32>
    %cst_40 = arith.constant dense<0.000000e+00> : vector<4x32xf32>
    %94 = tpu.matmul %93, %14, %cst_40 {dimension_numbers = #tpu.dot_dimension_numbers<[1], [0], [0], [1], [0, 0, 1, 1], [], []>} : vector<4x32xf32>, vector<32x32xf32>, vector<4x32xf32> -> vector<4x32xf32>
    %95 = vector.broadcast %4 : vector<1x32xf32> to vector<4x32xf32>
    %96 = arith.addf %94, %95 : vector<4x32xf32>
    %cst_41 = arith.constant dense<0.000000e+00> : vector<4x64xf32>
    %97 = tpu.matmul %59, %21, %cst_41 {dimension_numbers = #tpu.dot_dimension_numbers<[1], [0], [0], [1], [0, 0, 1, 1], [], []>} : vector<4x32xf32>, vector<32x64xf32>, vector<4x64xf32> -> vector<4x64xf32>
    %cst_42 = arith.constant dense<0.000000e+00> : vector<64xf32>
    %98 = vector.multi_reduction <add>, %97, %cst_42 [0] : vector<4x64xf32> to vector<64xf32>
    %99 = vector.shape_cast %98 : vector<64xf32> to vector<1x64xf32>
    %cst_43 = arith.constant 4.000000e+00 : f32
    %100 = vector.broadcast %cst_43 : f32 to vector<1x64xf32>
    %101 = arith.divf %99, %100 : vector<1x64xf32>
    %102 = vector.broadcast %101 : vector<1x64xf32> to vector<4x64xf32>
    %103 = arith.subf %97, %102 : vector<4x64xf32>
    %104 = vector.broadcast %101 : vector<1x64xf32> to vector<4x64xf32>
    %105 = arith.subf %97, %104 : vector<4x64xf32>
    %106 = arith.mulf %103, %105 : vector<4x64xf32>
    %cst_44 = arith.constant dense<0.000000e+00> : vector<64xf32>
    %107 = vector.multi_reduction <add>, %106, %cst_44 [0] : vector<4x64xf32> to vector<64xf32>
    %108 = vector.shape_cast %107 : vector<64xf32> to vector<1x64xf32>
    %cst_45 = arith.constant 4.000000e+00 : f32
    %109 = vector.broadcast %cst_45 : f32 to vector<1x64xf32>
    %110 = arith.divf %108, %109 : vector<1x64xf32>
    %cst_46 = arith.constant 0.000000e+00 : f32
    %111 = vector.broadcast %cst_46 : f32 to vector<1x64xf32>
    %112 = arith.maximumf %110, %111 : vector<1x64xf32>
    %113 = vector.broadcast %101 : vector<1x64xf32> to vector<4x64xf32>
    %114 = arith.subf %97, %113 : vector<4x64xf32>
    %cst_47 = arith.constant 9.99999974E-6 : f32
    %115 = vector.broadcast %cst_47 : f32 to vector<1x64xf32>
    %116 = arith.addf %112, %115 : vector<1x64xf32>
    %117 = math.rsqrt %116 : vector<1x64xf32>
    %118 = vector.broadcast %117 : vector<1x64xf32> to vector<4x64xf32>
    %119 = arith.mulf %114, %118 : vector<4x64xf32>
    %120 = vector.broadcast %5 : vector<1x64xf32> to vector<4x64xf32>
    %121 = arith.mulf %119, %120 : vector<4x64xf32>
    %122 = vector.broadcast %6 : vector<1x64xf32> to vector<4x64xf32>
    %123 = arith.addf %121, %122 : vector<4x64xf32>
    %cst_48 = arith.constant 0.000000e+00 : f32
    %124 = vector.broadcast %cst_48 : f32 to vector<4x64xf32>
    %125 = arith.maximumf %123, %124 : vector<4x64xf32>
    %cst_49 = arith.constant dense<0.000000e+00> : vector<4x32xf32>
    %126 = tpu.matmul %125, %22, %cst_49 {dimension_numbers = #tpu.dot_dimension_numbers<[1], [0], [0], [1], [0, 0, 1, 1], [], []>} : vector<4x64xf32>, vector<64x32xf32>, vector<4x32xf32> -> vector<4x32xf32>
    %127 = vector.broadcast %7 : vector<1x32xf32> to vector<4x32xf32>
    %128 = arith.addf %126, %127 : vector<4x32xf32>
    %cst_50 = arith.constant dense<0.000000e+00> : vector<4x64xf32>
    %129 = tpu.matmul %96, %21, %cst_50 {dimension_numbers = #tpu.dot_dimension_numbers<[1], [0], [0], [1], [0, 0, 1, 1], [], []>} : vector<4x32xf32>, vector<32x64xf32>, vector<4x64xf32> -> vector<4x64xf32>
    %cst_51 = arith.constant dense<0.000000e+00> : vector<64xf32>
    %130 = vector.multi_reduction <add>, %129, %cst_51 [0] : vector<4x64xf32> to vector<64xf32>
    %131 = vector.shape_cast %130 : vector<64xf32> to vector<1x64xf32>
    %cst_52 = arith.constant 4.000000e+00 : f32
    %132 = vector.broadcast %cst_52 : f32 to vector<1x64xf32>
    %133 = arith.divf %131, %132 : vector<1x64xf32>
    %134 = vector.broadcast %133 : vector<1x64xf32> to vector<4x64xf32>
    %135 = arith.subf %129, %134 : vector<4x64xf32>
    %136 = vector.broadcast %133 : vector<1x64xf32> to vector<4x64xf32>
    %137 = arith.subf %129, %136 : vector<4x64xf32>
    %138 = arith.mulf %135, %137 : vector<4x64xf32>
    %cst_53 = arith.constant dense<0.000000e+00> : vector<64xf32>
    %139 = vector.multi_reduction <add>, %138, %cst_53 [0] : vector<4x64xf32> to vector<64xf32>
    %140 = vector.shape_cast %139 : vector<64xf32> to vector<1x64xf32>
    %cst_54 = arith.constant 4.000000e+00 : f32
    %141 = vector.broadcast %cst_54 : f32 to vector<1x64xf32>
    %142 = arith.divf %140, %141 : vector<1x64xf32>
    %cst_55 = arith.constant 0.000000e+00 : f32
    %143 = vector.broadcast %cst_55 : f32 to vector<1x64xf32>
    %144 = arith.maximumf %142, %143 : vector<1x64xf32>
    %145 = vector.broadcast %133 : vector<1x64xf32> to vector<4x64xf32>
    %146 = arith.subf %129, %145 : vector<4x64xf32>
    %cst_56 = arith.constant 9.99999974E-6 : f32
    %147 = vector.broadcast %cst_56 : f32 to vector<1x64xf32>
    %148 = arith.addf %144, %147 : vector<1x64xf32>
    %149 = math.rsqrt %148 : vector<1x64xf32>
    %150 = vector.broadcast %149 : vector<1x64xf32> to vector<4x64xf32>
    %151 = arith.mulf %146, %150 : vector<4x64xf32>
    %152 = vector.broadcast %5 : vector<1x64xf32> to vector<4x64xf32>
    %153 = arith.mulf %151, %152 : vector<4x64xf32>
    %154 = vector.broadcast %6 : vector<1x64xf32> to vector<4x64xf32>
    %155 = arith.addf %153, %154 : vector<4x64xf32>
    %cst_57 = arith.constant 0.000000e+00 : f32
    %156 = vector.broadcast %cst_57 : f32 to vector<4x64xf32>
    %157 = arith.maximumf %155, %156 : vector<4x64xf32>
    %cst_58 = arith.constant dense<0.000000e+00> : vector<4x32xf32>
    %158 = tpu.matmul %157, %22, %cst_58 {dimension_numbers = #tpu.dot_dimension_numbers<[1], [0], [0], [1], [0, 0, 1, 1], [], []>} : vector<4x64xf32>, vector<64x32xf32>, vector<4x32xf32> -> vector<4x32xf32>
    %159 = vector.broadcast %7 : vector<1x32xf32> to vector<4x32xf32>
    %160 = arith.addf %158, %159 : vector<4x32xf32>
    %161 = tpu.concatenate %128, %160, %59, %96 in 0 : vector<4x32xf32>, vector<4x32xf32>, vector<4x32xf32>, vector<4x32xf32> -> vector<16x32xf32>
    %cst_59 = arith.constant dense<0.000000e+00> : vector<16x64xf32>
    %162 = tpu.matmul %161, %19, %cst_59 {dimension_numbers = #tpu.dot_dimension_numbers<[1], [0], [0], [1], [0, 0, 1, 1], [], []>} : vector<16x32xf32>, vector<32x64xf32>, vector<16x64xf32> -> vector<16x64xf32>
    %163 = vector.broadcast %10 : vector<1x64xf32> to vector<16x64xf32>
    %164 = arith.addf %162, %163 : vector<16x64xf32>
    %165 = vector.extract_strided_slice %164 {offsets = [0, 0], sizes = [4, 32], strides = [1, 1]} : vector<16x64xf32> to vector<4x32xf32>
    %166 = vector.extract_strided_slice %164 {offsets = [0, 32], sizes = [4, 32], strides = [1, 1]} : vector<16x64xf32> to vector<4x32xf32>
    %167 = vector.extract_strided_slice %164 {offsets = [4, 0], sizes = [4, 32], strides = [1, 1]} : vector<16x64xf32> to vector<4x32xf32>
    %168 = vector.extract_strided_slice %164 {offsets = [4, 32], sizes = [4, 32], strides = [1, 1]} : vector<16x64xf32> to vector<4x32xf32>
    %169 = vector.extract_strided_slice %164 {offsets = [8, 0], sizes = [4, 32], strides = [1, 1]} : vector<16x64xf32> to vector<4x32xf32>
    %170 = vector.extract_strided_slice %164 {offsets = [12, 0], sizes = [4, 32], strides = [1, 1]} : vector<16x64xf32> to vector<4x32xf32>
    %171 = arith.mulf %128, %96 : vector<4x32xf32>
    %cst_60 = arith.constant dense<0.000000e+00> : vector<4xf32>
    %172 = vector.multi_reduction <add>, %171, %cst_60 [1] : vector<4x32xf32> to vector<4xf32>
    %173 = vector.shape_cast %172 : vector<4xf32> to vector<4x1xf32>
    %174 = arith.mulf %128, %128 : vector<4x32xf32>
    %cst_61 = arith.constant dense<0.000000e+00> : vector<4xf32>
    %175 = vector.multi_reduction <add>, %174, %cst_61 [1] : vector<4x32xf32> to vector<4xf32>
    %176 = vector.shape_cast %175 : vector<4xf32> to vector<4x1xf32>
    %177 = math.sqrt %176 : vector<4x1xf32>
    %178 = arith.mulf %96, %96 : vector<4x32xf32>
    %cst_62 = arith.constant dense<0.000000e+00> : vector<4xf32>
    %179 = vector.multi_reduction <add>, %178, %cst_62 [1] : vector<4x32xf32> to vector<4xf32>
    %180 = vector.shape_cast %179 : vector<4xf32> to vector<4x1xf32>
    %181 = math.sqrt %180 : vector<4x1xf32>
    %182 = arith.mulf %177, %181 : vector<4x1xf32>
    %cst_63 = arith.constant 9.99999993E-9 : f32
    %183 = vector.broadcast %cst_63 : f32 to vector<4x1xf32>
    %184 = arith.maximumf %182, %183 : vector<4x1xf32>
    %185 = arith.divf %173, %184 : vector<4x1xf32>
    %cst_64 = arith.constant dense<0.000000e+00> : vector<1xf32>
    %186 = vector.multi_reduction <add>, %185, %cst_64 [0] : vector<4x1xf32> to vector<1xf32>
    %187 = vector.shape_cast %186 : vector<1xf32> to vector<1x1xf32>
    %cst_65 = arith.constant 4.000000e+00 : f32
    %188 = vector.broadcast %cst_65 : f32 to vector<1x1xf32>
    %189 = arith.divf %187, %188 : vector<1x1xf32>
    %190 = arith.mulf %160, %59 : vector<4x32xf32>
    %cst_66 = arith.constant dense<0.000000e+00> : vector<4xf32>
    %191 = vector.multi_reduction <add>, %190, %cst_66 [1] : vector<4x32xf32> to vector<4xf32>
    %192 = vector.shape_cast %191 : vector<4xf32> to vector<4x1xf32>
    %193 = arith.mulf %160, %160 : vector<4x32xf32>
    %cst_67 = arith.constant dense<0.000000e+00> : vector<4xf32>
    %194 = vector.multi_reduction <add>, %193, %cst_67 [1] : vector<4x32xf32> to vector<4xf32>
    %195 = vector.shape_cast %194 : vector<4xf32> to vector<4x1xf32>
    %196 = math.sqrt %195 : vector<4x1xf32>
    %197 = arith.mulf %59, %59 : vector<4x32xf32>
    %cst_68 = arith.constant dense<0.000000e+00> : vector<4xf32>
    %198 = vector.multi_reduction <add>, %197, %cst_68 [1] : vector<4x32xf32> to vector<4xf32>
    %199 = vector.shape_cast %198 : vector<4xf32> to vector<4x1xf32>
    %200 = math.sqrt %199 : vector<4x1xf32>
    %201 = arith.mulf %196, %200 : vector<4x1xf32>
    %cst_69 = arith.constant 9.99999993E-9 : f32
    %202 = vector.broadcast %cst_69 : f32 to vector<4x1xf32>
    %203 = arith.maximumf %201, %202 : vector<4x1xf32>
    %204 = arith.divf %192, %203 : vector<4x1xf32>
    %cst_70 = arith.constant dense<0.000000e+00> : vector<1xf32>
    %205 = vector.multi_reduction <add>, %204, %cst_70 [0] : vector<4x1xf32> to vector<1xf32>
    %206 = vector.shape_cast %205 : vector<1xf32> to vector<1x1xf32>
    %cst_71 = arith.constant 4.000000e+00 : f32
    %207 = vector.broadcast %cst_71 : f32 to vector<1x1xf32>
    %208 = arith.divf %206, %207 : vector<1x1xf32>
    %209 = arith.addf %189, %208 : vector<1x1xf32>
    %cst_72 = arith.constant 0.000000e+00 : f32
    %210 = vector.broadcast %cst_72 : f32 to vector<1x1xf32>
    %211 = arith.subf %210, %209 : vector<1x1xf32>
    %cst_73 = arith.constant 5.000000e-01 : f32
    %212 = vector.broadcast %cst_73 : f32 to vector<1x1xf32>
    %213 = arith.mulf %211, %212 : vector<1x1xf32>
    %214 = tpu.concatenate %165, %170 in 0 : vector<4x32xf32>, vector<4x32xf32> -> vector<8x32xf32>
    %215 = tpu.concatenate %167, %169 in 0 : vector<4x32xf32>, vector<4x32xf32> -> vector<8x32xf32>
    %216 = arith.mulf %214, %214 : vector<8x32xf32>
    %cst_74 = arith.constant dense<0.000000e+00> : vector<8xf32>
    %217 = vector.multi_reduction <add>, %216, %cst_74 [1] : vector<8x32xf32> to vector<8xf32>
    %218 = vector.shape_cast %217 : vector<8xf32> to vector<8x1xf32>
    %219 = math.sqrt %218 : vector<8x1xf32>
    %cst_75 = arith.constant 9.99999993E-9 : f32
    %220 = vector.broadcast %cst_75 : f32 to vector<8x1xf32>
    %221 = arith.maximumf %219, %220 : vector<8x1xf32>
    %222 = vector.broadcast %221 : vector<8x1xf32> to vector<8x32xf32>
    %223 = arith.divf %214, %222 : vector<8x32xf32>
    %cst_76 = arith.constant dense<0.000000e+00> : vector<8x8xf32>
    %224 = tpu.matmul %223, %223, %cst_76 {dimension_numbers = #tpu.dot_dimension_numbers<[1], [1], [0], [0], [0, 0, 1, 0], [], []>} : vector<8x32xf32>, vector<8x32xf32>, vector<8x8xf32> -> vector<8x8xf32>
    %225 = tpu.iota {dimensions = array<i32: 0>} : vector<8x8xi32>
    %226 = tpu.iota {dimensions = array<i32: 1>} : vector<8x8xi32>
    %227 = arith.cmpi eq, %225, %226 : vector<8x8xi32>
    %cst_77 = arith.constant -9.000000e+15 : f32
    %228 = vector.broadcast %cst_77 : f32 to vector<8x8xf32>
    %229 = arith.select %227, %228, %224 : vector<8x8xi1>, vector<8x8xf32>
    %c4_i32 = arith.constant 4 : i32
    %230 = vector.broadcast %c4_i32 : i32 to vector<8x8xi32>
    %231 = arith.addi %225, %230 : vector<8x8xi32>
    %c8_i32 = arith.constant 8 : i32
    %c0_i32 = arith.constant 0 : i32
    %232 = arith.cmpi eq, %c8_i32, %c0_i32 : i32
    %c1_i32 = arith.constant 1 : i32
    %233 = arith.select %232, %c1_i32, %c8_i32 : i32
    %234 = vector.broadcast %233 : i32 to vector<8x8xi32>
    %235 = arith.remsi %231, %234 : vector<8x8xi32>
    %c0_i32_78 = arith.constant 0 : i32
    %236 = vector.broadcast %c0_i32_78 : i32 to vector<8x8xi32>
    %237 = arith.cmpi ne, %235, %236 : vector<8x8xi32>
    %c0_i32_79 = arith.constant 0 : i32
    %238 = vector.broadcast %c0_i32_79 : i32 to vector<8x8xi32>
    %239 = arith.cmpi slt, %235, %238 : vector<8x8xi32>
    %c0_i32_80 = arith.constant 0 : i32
    %240 = arith.cmpi slt, %233, %c0_i32_80 : i32
    %241 = vector.broadcast %240 : i1 to vector<8x8xi1>
    %242 = vector.broadcast %241 : vector<8x8xi1> to vector<8x8xi1>
    %243 = arith.xori %239, %242 : vector<8x8xi1>
    %244 = arith.andi %243, %237 : vector<8x8xi1>
    %245 = vector.broadcast %233 : i32 to vector<8x8xi32>
    %246 = arith.addi %235, %245 : vector<8x8xi32>
    %247 = arith.select %244, %246, %235 : vector<8x8xi1>, vector<8x8xi32>
    %248 = arith.cmpi eq, %226, %247 : vector<8x8xi32>
    %cst_81 = arith.constant 0.000000e+00 : f32
    %249 = vector.broadcast %cst_81 : f32 to vector<8x8xf32>
    %250 = arith.select %248, %229, %249 : vector<8x8xi1>, vector<8x8xf32>
    %cst_82 = arith.constant dense<0.000000e+00> : vector<8xf32>
    %251 = vector.multi_reduction <add>, %250, %cst_82 [1] : vector<8x8xf32> to vector<8xf32>
    %252 = vector.shape_cast %251 : vector<8xf32> to vector<8x1xf32>
    %cst_83 = arith.constant dense<0xFF800000> : vector<8xf32>
    %253 = vector.multi_reduction <maximumf>, %229, %cst_83 [1] : vector<8x8xf32> to vector<8xf32>
    %254 = vector.shape_cast %253 : vector<8xf32> to vector<8x1xf32>
    %255 = vector.broadcast %254 : vector<8x1xf32> to vector<8x8xf32>
    %256 = arith.subf %229, %255 : vector<8x8xf32>
    %257 = math.exp %256 : vector<8x8xf32>
    %cst_84 = arith.constant dense<0.000000e+00> : vector<8xf32>
    %258 = vector.multi_reduction <add>, %257, %cst_84 [1] : vector<8x8xf32> to vector<8xf32>
    %259 = vector.shape_cast %258 : vector<8xf32> to vector<8x1xf32>
    %260 = math.log %259 : vector<8x1xf32>
    %261 = arith.addf %254, %260 : vector<8x1xf32>
    %cst_85 = arith.constant 0.000000e+00 : f32
    %262 = vector.broadcast %cst_85 : f32 to vector<8x1xf32>
    %263 = arith.subf %262, %252 : vector<8x1xf32>
    %264 = arith.addf %263, %261 : vector<8x1xf32>
    %cst_86 = arith.constant dense<0.000000e+00> : vector<1xf32>
    %265 = vector.multi_reduction <add>, %264, %cst_86 [0] : vector<8x1xf32> to vector<1xf32>
    %266 = vector.shape_cast %265 : vector<1xf32> to vector<1x1xf32>
    %cst_87 = arith.constant 8.000000e+00 : f32
    %267 = vector.broadcast %cst_87 : f32 to vector<1x1xf32>
    %268 = arith.divf %266, %267 : vector<1x1xf32>
    %269 = arith.mulf %215, %215 : vector<8x32xf32>
    %cst_88 = arith.constant dense<0.000000e+00> : vector<8xf32>
    %270 = vector.multi_reduction <add>, %269, %cst_88 [1] : vector<8x32xf32> to vector<8xf32>
    %271 = vector.shape_cast %270 : vector<8xf32> to vector<8x1xf32>
    %272 = math.sqrt %271 : vector<8x1xf32>
    %cst_89 = arith.constant 9.99999993E-9 : f32
    %273 = vector.broadcast %cst_89 : f32 to vector<8x1xf32>
    %274 = arith.maximumf %272, %273 : vector<8x1xf32>
    %275 = vector.broadcast %274 : vector<8x1xf32> to vector<8x32xf32>
    %276 = arith.divf %215, %275 : vector<8x32xf32>
    %cst_90 = arith.constant dense<0.000000e+00> : vector<8x8xf32>
    %277 = tpu.matmul %276, %276, %cst_90 {dimension_numbers = #tpu.dot_dimension_numbers<[1], [1], [0], [0], [0, 0, 1, 0], [], []>} : vector<8x32xf32>, vector<8x32xf32>, vector<8x8xf32> -> vector<8x8xf32>
    %278 = tpu.iota {dimensions = array<i32: 0>} : vector<8x8xi32>
    %279 = tpu.iota {dimensions = array<i32: 1>} : vector<8x8xi32>
    %280 = arith.cmpi eq, %278, %279 : vector<8x8xi32>
    %cst_91 = arith.constant -9.000000e+15 : f32
    %281 = vector.broadcast %cst_91 : f32 to vector<8x8xf32>
    %282 = arith.select %280, %281, %277 : vector<8x8xi1>, vector<8x8xf32>
    %c4_i32_92 = arith.constant 4 : i32
    %283 = vector.broadcast %c4_i32_92 : i32 to vector<8x8xi32>
    %284 = arith.addi %278, %283 : vector<8x8xi32>
    %c8_i32_93 = arith.constant 8 : i32
    %c0_i32_94 = arith.constant 0 : i32
    %285 = arith.cmpi eq, %c8_i32_93, %c0_i32_94 : i32
    %c1_i32_95 = arith.constant 1 : i32
    %286 = arith.select %285, %c1_i32_95, %c8_i32_93 : i32
    %287 = vector.broadcast %286 : i32 to vector<8x8xi32>
    %288 = arith.remsi %284, %287 : vector<8x8xi32>
    %c0_i32_96 = arith.constant 0 : i32
    %289 = vector.broadcast %c0_i32_96 : i32 to vector<8x8xi32>
    %290 = arith.cmpi ne, %288, %289 : vector<8x8xi32>
    %c0_i32_97 = arith.constant 0 : i32
    %291 = vector.broadcast %c0_i32_97 : i32 to vector<8x8xi32>
    %292 = arith.cmpi slt, %288, %291 : vector<8x8xi32>
    %c0_i32_98 = arith.constant 0 : i32
    %293 = arith.cmpi slt, %286, %c0_i32_98 : i32
    %294 = vector.broadcast %293 : i1 to vector<8x8xi1>
    %295 = vector.broadcast %294 : vector<8x8xi1> to vector<8x8xi1>
    %296 = arith.xori %292, %295 : vector<8x8xi1>
    %297 = arith.andi %296, %290 : vector<8x8xi1>
    %298 = vector.broadcast %286 : i32 to vector<8x8xi32>
    %299 = arith.addi %288, %298 : vector<8x8xi32>
    %300 = arith.select %297, %299, %288 : vector<8x8xi1>, vector<8x8xi32>
    %301 = arith.cmpi eq, %279, %300 : vector<8x8xi32>
    %cst_99 = arith.constant 0.000000e+00 : f32
    %302 = vector.broadcast %cst_99 : f32 to vector<8x8xf32>
    %303 = arith.select %301, %282, %302 : vector<8x8xi1>, vector<8x8xf32>
    %cst_100 = arith.constant dense<0.000000e+00> : vector<8xf32>
    %304 = vector.multi_reduction <add>, %303, %cst_100 [1] : vector<8x8xf32> to vector<8xf32>
    %305 = vector.shape_cast %304 : vector<8xf32> to vector<8x1xf32>
    %cst_101 = arith.constant dense<0xFF800000> : vector<8xf32>
    %306 = vector.multi_reduction <maximumf>, %282, %cst_101 [1] : vector<8x8xf32> to vector<8xf32>
    %307 = vector.shape_cast %306 : vector<8xf32> to vector<8x1xf32>
    %308 = vector.broadcast %307 : vector<8x1xf32> to vector<8x8xf32>
    %309 = arith.subf %282, %308 : vector<8x8xf32>
    %310 = math.exp %309 : vector<8x8xf32>
    %cst_102 = arith.constant dense<0.000000e+00> : vector<8xf32>
    %311 = vector.multi_reduction <add>, %310, %cst_102 [1] : vector<8x8xf32> to vector<8xf32>
    %312 = vector.shape_cast %311 : vector<8xf32> to vector<8x1xf32>
    %313 = math.log %312 : vector<8x1xf32>
    %314 = arith.addf %307, %313 : vector<8x1xf32>
    %cst_103 = arith.constant 0.000000e+00 : f32
    %315 = vector.broadcast %cst_103 : f32 to vector<8x1xf32>
    %316 = arith.subf %315, %305 : vector<8x1xf32>
    %317 = arith.addf %316, %314 : vector<8x1xf32>
    %cst_104 = arith.constant dense<0.000000e+00> : vector<1xf32>
    %318 = vector.multi_reduction <add>, %317, %cst_104 [0] : vector<8x1xf32> to vector<1xf32>
    %319 = vector.shape_cast %318 : vector<1xf32> to vector<1x1xf32>
    %cst_105 = arith.constant 8.000000e+00 : f32
    %320 = vector.broadcast %cst_105 : f32 to vector<1x1xf32>
    %321 = arith.divf %319, %320 : vector<1x1xf32>
    %322 = arith.addf %268, %321 : vector<1x1xf32>
    %cst_106 = arith.constant 1.000000e+00 : f32
    %323 = vector.broadcast %cst_106 : f32 to vector<4x32xf32>
    %324 = arith.addf %323, %166 : vector<4x32xf32>
    %325 = arith.mulf %165, %165 : vector<4x32xf32>
    %326 = arith.subf %324, %325 : vector<4x32xf32>
    %327 = math.exp %166 : vector<4x32xf32>
    %328 = arith.subf %326, %327 : vector<4x32xf32>
    %cst_107 = arith.constant dense<0.000000e+00> : vector<4xf32>
    %329 = vector.multi_reduction <add>, %328, %cst_107 [1] : vector<4x32xf32> to vector<4xf32>
    %330 = vector.shape_cast %329 : vector<4xf32> to vector<4x1xf32>
    %cst_108 = arith.constant dense<0.000000e+00> : vector<1xf32>
    %331 = vector.multi_reduction <add>, %330, %cst_108 [0] : vector<4x1xf32> to vector<1xf32>
    %332 = vector.shape_cast %331 : vector<1xf32> to vector<1x1xf32>
    %cst_109 = arith.constant -5.000000e-01 : f32
    %333 = vector.broadcast %cst_109 : f32 to vector<1x1xf32>
    %334 = arith.mulf %333, %332 : vector<1x1xf32>
    %cst_110 = arith.constant 1.000000e-03 : f32
    %335 = vector.broadcast %cst_110 : f32 to vector<1x1xf32>
    %336 = arith.mulf %335, %334 : vector<1x1xf32>
    %cst_111 = arith.constant 1.000000e+00 : f32
    %337 = vector.broadcast %cst_111 : f32 to vector<4x32xf32>
    %338 = arith.addf %337, %168 : vector<4x32xf32>
    %339 = arith.mulf %167, %167 : vector<4x32xf32>
    %340 = arith.subf %338, %339 : vector<4x32xf32>
    %341 = math.exp %168 : vector<4x32xf32>
    %342 = arith.subf %340, %341 : vector<4x32xf32>
    %cst_112 = arith.constant dense<0.000000e+00> : vector<4xf32>
    %343 = vector.multi_reduction <add>, %342, %cst_112 [1] : vector<4x32xf32> to vector<4xf32>
    %344 = vector.shape_cast %343 : vector<4xf32> to vector<4x1xf32>
    %cst_113 = arith.constant dense<0.000000e+00> : vector<1xf32>
    %345 = vector.multi_reduction <add>, %344, %cst_113 [0] : vector<4x1xf32> to vector<1xf32>
    %346 = vector.shape_cast %345 : vector<1xf32> to vector<1x1xf32>
    %cst_114 = arith.constant -5.000000e-01 : f32
    %347 = vector.broadcast %cst_114 : f32 to vector<1x1xf32>
    %348 = arith.mulf %347, %346 : vector<1x1xf32>
    %cst_115 = arith.constant 1.000000e-03 : f32
    %349 = vector.broadcast %cst_115 : f32 to vector<1x1xf32>
    %350 = arith.mulf %349, %348 : vector<1x1xf32>
    %351 = arith.addf %336, %350 : vector<1x1xf32>
    %352 = arith.addf %213, %322 : vector<1x1xf32>
    %353 = arith.addf %352, %351 : vector<1x1xf32>
    %c0_116 = arith.constant 0 : index
    %c0_117 = arith.constant 0 : index
    %354 = vector.load %arg6[%c0_116, %c0_117] : memref<4x32xf32, #tpu.memory_space<vmem>>, vector<4x32xf32>
    tpu.vector_store %arg6[%c0_116, %c0_117], %59 {strides = array<i32>} : memref<4x32xf32, #tpu.memory_space<vmem>>, vector<4x32xf32>,
    %c0_118 = arith.constant 0 : index
    %c0_119 = arith.constant 0 : index
    %355 = vector.load %arg7[%c0_118, %c0_119] : memref<4x32xf32, #tpu.memory_space<vmem>>, vector<4x32xf32>
    tpu.vector_store %arg7[%c0_118, %c0_119], %128 {strides = array<i32>} : memref<4x32xf32, #tpu.memory_space<vmem>>, vector<4x32xf32>,
    %356 = tpu.iota {dimensions = array<i32: 1>} : vector<1x128xi32>
    %c0_i32_120 = arith.constant 0 : i32
    %357 = vector.broadcast %c0_i32_120 : i32 to vector<1x128xi32>
    %358 = arith.cmpi eq, %356, %357 : vector<1x128xi32>
    %cst_121 = arith.constant 0.000000e+00 : f32
    %359 = vector.shape_cast %353 : vector<1x1xf32> to vector<1x1xf32>
    %360 = vector.broadcast %359 : vector<1x1xf32> to vector<1x128xf32>
    %361 = vector.broadcast %cst_121 : f32 to vector<1x128xf32>
    %362 = arith.select %358, %360, %361 : vector<1x128xi1>, vector<1x128xf32>
    %c1_i32_122 = arith.constant 1 : i32
    %363 = vector.broadcast %c1_i32_122 : i32 to vector<1x128xi32>
    %364 = arith.cmpi eq, %356, %363 : vector<1x128xi32>
    %cst_123 = arith.constant 0.000000e+00 : f32
    %365 = vector.shape_cast %213 : vector<1x1xf32> to vector<1x1xf32>
    %366 = vector.broadcast %365 : vector<1x1xf32> to vector<1x128xf32>
    %367 = vector.broadcast %cst_123 : f32 to vector<1x128xf32>
    %368 = arith.select %364, %366, %367 : vector<1x128xi1>, vector<1x128xf32>
    %369 = arith.addf %362, %368 : vector<1x128xf32>
    %c2_i32 = arith.constant 2 : i32
    %370 = vector.broadcast %c2_i32 : i32 to vector<1x128xi32>
    %371 = arith.cmpi eq, %356, %370 : vector<1x128xi32>
    %cst_124 = arith.constant 0.000000e+00 : f32
    %372 = vector.shape_cast %322 : vector<1x1xf32> to vector<1x1xf32>
    %373 = vector.broadcast %372 : vector<1x1xf32> to vector<1x128xf32>
    %374 = vector.broadcast %cst_124 : f32 to vector<1x128xf32>
    %375 = arith.select %371, %373, %374 : vector<1x128xi1>, vector<1x128xf32>
    %376 = arith.addf %369, %375 : vector<1x128xf32>
    %c3_i32 = arith.constant 3 : i32
    %377 = vector.broadcast %c3_i32 : i32 to vector<1x128xi32>
    %378 = arith.cmpi eq, %356, %377 : vector<1x128xi32>
    %cst_125 = arith.constant 0.000000e+00 : f32
    %379 = vector.shape_cast %351 : vector<1x1xf32> to vector<1x1xf32>
    %380 = vector.broadcast %379 : vector<1x1xf32> to vector<1x128xf32>
    %381 = vector.broadcast %cst_125 : f32 to vector<1x128xf32>
    %382 = arith.select %378, %380, %381 : vector<1x128xi1>, vector<1x128xf32>
    %383 = arith.addf %376, %382 : vector<1x128xf32>
    %c0_126 = arith.constant 0 : index
    %c0_127 = arith.constant 0 : index
    %384 = vector.load %arg8[%c0_126, %c0_127] : memref<1x128xf32, #tpu.memory_space<vmem>>, vector<1x128xf32>
    tpu.vector_store %arg8[%c0_126, %c0_127], %383 {strides = array<i32>} : memref<1x128xf32, #tpu.memory_space<vmem>>, vector<1x128xf32>,
    return
  }
}

</mosaic_0001>

<bundles_post_ra>
// kernel: forward.3
= control target key start
LH: loop header
LB: loop body
LE: loop exit
PB: predicated region body
PF: predicated region fallthrough
CT: control target
= control target key end

     0   :  { %14 = vsyncpa [#allocation3], 0  ;;  %v2015_v3 = vmov 0.0|0.0   ;;  %vm2016_vm0 = vmmov 0   ;;  %v2017_v6 = vmov 0.0   ;;  %s2496_s0 = inlined_call_operand.vmem [shape: f32[2,4,128], index: 0, kind: input, shape index: {}]   ;;  %s2497_s1 = inlined_call_operand.vmem [shape: f32[128,32], index: 1, kind: input, shape index: {}]   ;;  %s2498_s2 = inlined_call_operand.vmem [shape: f32[4,32,32], index: 2, kind: input, shape index: {}]   ;;  %s2499_s3 = inlined_call_operand.vmem [shape: f32[32,64], index: 3, kind: input, shape index: {}]   ;;  %s2500_s4 = inlined_call_operand.vmem [shape: f32[64,32], index: 4, kind: input, shape index: {}]   ;;  %s2501_s5 = inlined_call_operand.vmem [shape: f32[9,128], index: 5, kind: input, shape index: {}]   ;;  %s2502_s6 = inlined_call_operand.hbm [shape: f32[4,32], index: 6, kind: output, shape index: {0}]   ;;  %s2503_s7 = inlined_call_operand.hbm [shape: f32[4,32], index: 7, kind: output, shape index: {1}]   ;;  %s2504_s8 = inlined_call_operand.vmem [shape: f32[1,128], index: 8, kind: output, shape index: {2}]  }
   0x1   :  { %v76_v0 = vld [vmem:[%s2497_s1] sm:$0xff]  ;;  %v77_v1 = vld [vmem:[%s2497_s1 + $0x8] sm:$0xff]  ;;  %v78_v2 = vld [vmem:[%s2497_s1 + $0x10] sm:$0xff]  ;;  %1796 = vmatprep.subr.bf16.mxu0 %v2015_v3  ;;  %1633 = vmatprep.mubr.msk.f32.mxu0 %vm2016_vm0, %v2017_v6 }
   0x2   :  { %v2077_v4 = vpack.c.bf16 %v77_v1, %v76_v0  ;;  %v79_v5 = vld [vmem:[%s2497_s1 + $0x18] sm:$0xff]  ;;  %1820 = vmatprep.subr.bf16.mxu1 %v2015_v3  ;;  %1644 = vmatprep.mubr.msk.f32.mxu1 %vm2016_vm0, %v2017_v6  ;;  %v80_v8 = vld [vmem:[%s2497_s1 + $0x20] sm:$0xff]  ;;  %v81_v9 = vld [vmem:[%s2497_s1 + $0x28] sm:$0xff] }
   0x3   :  { %v2088_v7 = vpack.c.bf16 %v79_v5, %v78_v2  ;;  %v37_v10 = vld [vmem:[%s2498_s2] sm:$0xff]  ;;  %v38_v11 = vld [vmem:[%s2498_s2 + $0x8] sm:$0xff] }
   0x4   :  { %1798 = vmatpush3.bf16.msra.mxu0 %v2077_v4 }
   0x5   :  { %1799 = vmatprep.subr.bf16.mxu0 %v2015_v3 }
   0x6   :  { %15 = vsyncpa [#allocation5], 0  ;;  %v2104_v12 = vpack.c.bf16 %v81_v9, %v80_v8  ;;  %v1821_v13 = vpack.c.bf16 %v38_v11, %v37_v10  ;;  %v82_v14 = vld [vmem:[%s2497_s1 + $0x30] sm:$0xff]  ;;  %v83_v15 = vld [vmem:[%s2497_s1 + $0x38] sm:$0xff]  ;;  %v105_v33 = vlaneseq  ;;  %vm35_vm1 = vcmask 261120   ;;  %s2018_s19 = smov 32  }
   0x7   :  { %v2115_v16 = vpack.c.bf16 %v83_v15, %v82_v14  ;;  %v84_v17 = vld [vmem:[%s2497_s1 + $0x40] sm:$0xff]  ;;  %v85_v18 = vld [vmem:[%s2497_s1 + $0x48] sm:$0xff]  ;;  %v86_v20 = vld [vmem:[%s2497_s1 + $0x50] sm:$0xff]  ;;  %vm252_vm2 = vcmask 257024   ;;  %vm680_vm3 = vcmask 519168   ;;  %vm718_vm4 = vcmask 523264  }
   0x8   :  { %1801 = vmatpush3.bf16.msra.mxu0 %v2088_v7  ;;  %1822 = vmatpush3.bf16.msra.mxu1 %v1821_v13  ;;  %v2125_v19 = vpack.c.bf16 %v85_v18, %v84_v17  ;;  %v87_v21 = vld [vmem:[%s2497_s1 + $0x58] sm:$0xff]  ;;  %v88_v23 = vld [vmem:[%s2497_s1 + $0x60] sm:$0xff]  ;;  %v89_v24 = vld [vmem:[%s2497_s1 + $0x68] sm:$0xff]  ;;  %v2175_v34 = vshrl.u32 %v105_v33, 7  ;;  %vm968_vm5 = vcmask 1043456   ;;  %vm1251_vm11 = vcmask 64512  }
   0x9   :  { %1802 = vmatprep.subr.bf16.mxu0 %v2015_v3  ;;  %1823 = vmatprep.subr.bf16.mxu1 %v2015_v3  ;;  %v2135_v22 = vpack.c.bf16 %v87_v21, %v86_v20  ;;  %v2145_v25 = vpack.c.bf16 %v89_v24, %v88_v23  ;;  %v90_v26 = vld [vmem:[%s2497_s1 + $0x70] sm:$0xff]  ;;  %v91_v27 = vld [vmem:[%s2497_s1 + $0x78] sm:$0xff]  ;;  %v104_v29 = vld [vmem:[%s2496_s0] sm:$0xf]  ;;  %vm1417_vm13 = vcmask 261124   ;;  %s2021_s29 = smov [#allocation4]  }
   0xa   :  { %v2155_v28 = vpack.c.bf16 %v91_v27, %v90_v26  ;;  %v39_v30 = vld [vmem:[%s2498_s2 + $0x10] sm:$0xff]  ;;  %v40_v31 = vld [vmem:[%s2498_s2 + $0x18] sm:$0xff]  ;;  %v107_v35 = vsub.s32 0, %v2175_v34  ;;  %v2181_v36 = vld [vmem:[%s2501_s5] sm:$0xff]  ;;  %v278_v9 = vsub.s32 1, %v2175_v34  ;;  %v283_v10 = vsub.s32 2, %v2175_v34 }
   0xb   :  { %v1824_v32 = vpack.c.bf16 %v40_v31, %v39_v30  ;;  %v1482_v41 = vld [vmem:[%s2498_s2 + $0x20] sm:$0xff]  ;;  %v1483_v42 = vld [vmem:[%s2498_s2 + $0x28] sm:$0xff]  ;;  %v1484_v44 = vld [vmem:[%s2498_s2 + $0x30] sm:$0xff]  ;;  %s1466_s30 = sshll.u32 %s2021_s29, 4  ;;  %s1467_s30 = int_to_ptr.vmem [resolvable:$true] %s1466_s30 }
   0xc   :  { %1804 = vmatpush3.bf16.msra.mxu0 %v2104_v12  ;;  %v2184_v37 = vrot.slane %v2181_v36, %v107_v35  ;;  %v2196_v43 = vpack.c.bf16 %v1483_v42, %v1482_v41  ;;  %v1485_v45 = vld [vmem:[%s2498_s2 + $0x38] sm:$0xff]  ;;  %v2215_v11 = vrot.slane %v2181_v36, %v278_v9  ;;  %v2218_v15 = vrot.slane %v2181_v36, %v283_v10  ;;  %v102_v10 = vld [vmem:[%s2500_s4 + $0x30] sm:$0xff] }
   0xd   :  { %1805 = vmatprep.subr.bf16.mxu0 %v2015_v3  ;;  %1825 = vmatpush3.bf16.msra.mxu1 %v1824_v32  ;;  %v2206_v46 = vpack.c.bf16 %v1485_v45, %v1484_v44 }
   0xe   :  { %1826 = vmatprep.subr.bf16.mxu1 %v2015_v3 }
  0x10   :  { %1807 = vmatpush3.bf16.msra.mxu0 %v2115_v16 }
  0x11   :  { %1808 = vmatprep.subr.bf16.mxu0 %v2015_v3 }
  0x14   :  { %1810 = vmatpush3.bf16.msra.mxu0 %v2125_v19 }
  0x15   :  { %1811 = vmatprep.subr.bf16.mxu0 %v2015_v3 }
  0x18   :  { %1813 = vmatpush3.bf16.msra.mxu0 %v2135_v22 }
  0x19   :  { %1814 = vmatprep.subr.bf16.mxu0 %v2015_v3 }
  0x1c   :  { %1816 = vmatpush3.bf16.msra.mxu0 %v2145_v25 }
  0x1d   :  { %1817 = vmatprep.subr.bf16.mxu0 %v2015_v3 }
  0x20   :  { %1819 = vmatpush3.bf16.msra.mxu0 %v2155_v28 }
  0x21   :  { %1856 = vmatprep.subr.bf16.mxu0 %v2015_v3 }
  0x23   :  { %1634 = vmatmul.mubr.f32.vlgmr.msra.gmra.mrb[0].mxu0 %v104_v29 }
  0x24   :  { %1858 = vmatpush3.bf16.msra.mxu0 %v1821_v13  ;;  %1701 = vmatprep.mubr.msk.f32.mxu0 %vm2016_vm0, %v2017_v6 }
  0x25   :  { %1859 = vmatprep.subr.bf16.mxu0 %v2015_v3 }
  0x28   :  { %1861 = vmatpush3.bf16.msra.mxu0 %v1824_v32 }
  0x29   :  { %1862 = vmatprep.subr.bf16.mxu0 %v2015_v3 }
  0xf6   :  { %v175_v38 = vpop.f32.mrb[0].mxu0 }
  0xf7   :  { %v176_v39 = vadd.f32 %v175_v38, %v2184_v37  ;;  %v1635_v40 = vpop.f32.mrb[1].mxu0 }
  0xf9   :  { %1645 = vmatmul.mubr.msk.f32.vlgmr.msra.gmra.mrb[0].mxu1 %vm35_vm1, %v176_v39 }
  0xfa   :  { %1655 = vmatprep.mubr.msk.f32.mxu1 %vm2016_vm0, %v2017_v6  ;;  %1828 = vmatpush3.bf16.msra.mxu1 %v2196_v43 }
  0xfb   :  { %1829 = vmatprep.subr.bf16.mxu1 %v2015_v3 }
  0xfe   :  { %1831 = vmatpush3.bf16.msra.mxu1 %v2206_v46 }
  0xff   :  { %1832 = vmatprep.subr.bf16.mxu1 %v2015_v3 }
 0x1cc   :  { %v248_v47 = vpop.f32.mrb[0].mxu1 }
 0x1cd   :  { %v253_v48 = vsel %vm252_vm2, %v248_v47, 0.0  ;;  %v1646_v49 = vpop.f32.mrb[1].mxu1 }
 0x1ce   :  { %v254_v50 = vrot.slane %v253_v48, 4 }
 0x1d0   :  { %v255_v51 = vadd.f32 %v254_v50, %v253_v48 }
 0x1d2   :  { %v256_v52 = vrot.slane %v255_v51, 2 }
 0x1d4   :  { %v257_v53 = vadd.f32 %v256_v52, %v255_v51 }
 0x1d6   :  { %v258_v54 = vrot.slane %v257_v53, 1 }
 0x1d8   :  { %v259_v55 = vadd.f32 %v258_v54, %v257_v53  ;;  %v92_v53 = vld [vmem:[%s2499_s3] sm:$0xff]  ;;  %v93_v54 = vld [vmem:[%s2499_s3 + $0x8] sm:$0xff] }
 0x1da   :  { %v261_v56 = vmul.f32 0.25, %v259_v55 }
 0x1dc   :  { %v262_v57 = vsub.f32 %v248_v47, %v261_v56  ;;  %v1869_v56 = vpack.c.bf16 %v93_v54, %v92_v53 }
 0x1de   :  { %v263_v58 = vmul.f32 %v262_v57, %v262_v57 }
 0x1e0   :  { %v264_v59 = vsel %vm252_vm2, %v263_v58, 0.0  ;;  %v94_v58 = vld [vmem:[%s2499_s3 + $0x10] sm:$0xff] }
 0x1e1   :  { %v265_v60 = vrot.slane %v264_v59, 4 }
 0x1e3   :  { %v266_v61 = vadd.f32 %v265_v60, %v264_v59  ;;  %v95_v59 = vld [vmem:[%s2499_s3 + $0x18] sm:$0xff] }
 0x1e4   :  { %v1872_v60 = vpack.c.bf16 %v95_v59, %v94_v58 }
 0x1e5   :  { %v267_v62 = vrot.slane %v266_v61, 2 }
 0x1e7   :  { %v268_v63 = vadd.f32 %v267_v62, %v266_v61  ;;  %v96_v61 = vld [vmem:[%s2500_s4] sm:$0xff]  ;;  %v97_v62 = vld [vmem:[%s2500_s4 + $0x8] sm:$0xff] }
 0x1e9   :  { %v269_v0 = vrot.slane %v268_v63, 1 }
 0x1eb   :  { %v270_v1 = vadd.f32 %v269_v0, %v268_v63  ;;  %v1875_v63 = vpack.c.bf16 %v97_v62, %v96_v61  ;;  %v98_v0 = vld [vmem:[%s2500_s4 + $0x10] sm:$0xff] }
 0x1ed   :  { %v271_v2 = vmul.f32 0.25, %v270_v1  ;;  %v99_v1 = vld [vmem:[%s2500_s4 + $0x18] sm:$0xff] }
 0x1ef   :  { %v272_v5 = vmax.f32 %v271_v2, 0.0  ;;  %v1878_v2 = vpack.c.bf16 %v99_v1, %v98_v0 }
 0x1f1   :  { %v273_v8 = vadd.f32 1e-05, %v272_v5  ;;  %v100_v5 = vld [vmem:[%s2500_s4 + $0x20] sm:$0xff] }
 0x1f3   :  { %1929 = vrsqrt.f32 %v273_v8  ;;  %v101_v8 = vld [vmem:[%s2500_s4 + $0x28] sm:$0xff] }
 0x1f4   :  { %v1881_v9 = vpack.c.bf16 %v101_v8, %v100_v5 }
 0x1fd   :  { %v1930_v13 = vpop.eup %1929 }
 0x1fe   :  { %v275_v14 = vmul.f32 %v1930_v13, %v262_v57 }
 0x200   :  { %v280_v17 = vmul.f32 %v2215_v11, %v275_v14 }
 0x202   :  { %v285_v18 = vadd.f32 %v2218_v15, %v280_v17 }
 0x204   :  { %v286_v20 = vmax.f32 %v285_v18, 0.0 }
 0x206   :  { %1656 = vmatmul.mubr.msk.f32.vlgmr.msra.gmra.mrb[2].mxu1 %vm35_vm1, %v286_v20 }
 0x207   :  { %1834 = vmatpush3.bf16.msra.mxu1 %v2077_v4  ;;  %1690 = vmatprep.mubr.msk.f32.mxu1 %vm2016_vm0, %v2017_v6  ;;  %v1496_v4 = vld [vmem:[%s2496_s0 + $0x4] sm:$0xf] }
 0x208   :  { %1835 = vmatprep.subr.bf16.mxu1 %v2015_v3 }
 0x20b   :  { %1837 = vmatpush3.bf16.msra.mxu1 %v2088_v7  ;;  %v289_v7 = vsub.s32 3, %v2175_v34 }
 0x20c   :  { %1838 = vmatprep.subr.bf16.mxu1 %v2015_v3 }
 0x20f   :  { %1840 = vmatpush3.bf16.msra.mxu1 %v2104_v12  ;;  %v2248_v12 = vrot.slane %v2181_v36, %v289_v7 }
 0x210   :  { %1841 = vmatprep.subr.bf16.mxu1 %v2015_v3 }
 0x213   :  { %1843 = vmatpush3.bf16.msra.mxu1 %v2115_v16 }
 0x214   :  { %1844 = vmatprep.subr.bf16.mxu1 %v2015_v3 }
 0x217   :  { %1846 = vmatpush3.bf16.msra.mxu1 %v2125_v19 }
 0x218   :  { %1847 = vmatprep.subr.bf16.mxu1 %v2015_v3 }
 0x21b   :  { %1849 = vmatpush3.bf16.msra.mxu1 %v2135_v22 }
 0x21c   :  { %1850 = vmatprep.subr.bf16.mxu1 %v2015_v3 }
 0x21f   :  { %1852 = vmatpush3.bf16.msra.mxu1 %v2145_v25 }
 0x220   :  { %1853 = vmatprep.subr.bf16.mxu1 %v2015_v3 }
 0x223   :  { %1855 = vmatpush3.bf16.msra.mxu1 %v2155_v28 }
 0x224   :  { %1874 = vmatprep.subr.bf16.mxu1 %v2015_v3 }
 0x226   :  { %1691 = vmatmul.mubr.f32.vlgmr.msra.gmra.mrb[4].mxu1 %v1496_v4 }
 0x227   :  { %1742 = vmatprep.mubr.msk.f32.mxu1 %vm2016_vm0, %v2017_v6  ;;  %1876 = vmatpush3.bf16.msra.mxu1 %v1875_v63 }
 0x228   :  { %1877 = vmatprep.subr.bf16.mxu1 %v2015_v3 }
 0x22b   :  { %1879 = vmatpush3.bf16.msra.mxu1 %v1878_v2 }
 0x22c   :  { %1880 = vmatprep.subr.bf16.mxu1 %v2015_v3 }
 0x22f   :  { %1882 = vmatpush3.bf16.msra.mxu1 %v1881_v9 }
 0x230   :  { %1883 = vmatprep.subr.bf16.mxu1 %v2015_v3 }
 0x2d9   :  { %v360_v16 = vpop.f32.mrb[2].mxu1 }
 0x2da   :  { %v2251_v19 = vadd.f32 %v360_v16, %v2248_v12  ;;  %v1657_v21 = vpop.f32.mrb[3].mxu1 }
 0x2dc   :  { %1436 = vst.msk [vmem:[#allocation2] sm:$0xf] %vm252_vm2, %v2251_v19 }
 0x2f9   :  { %v432_v22 = vpop.f32.mrb[4].mxu1 }
 0x2fa   :  { %v433_v23 = vadd.f32 %v432_v22, %v2184_v37  ;;  %v1692_v24 = vpop.f32.mrb[5].mxu1 }
 0x2fc   :  { %1702 = vmatmul.mubr.msk.f32.vlgmr.msra.gmra.mrb[2].mxu0 %vm35_vm1, %v433_v23 }
 0x2fd   :  { %1864 = vmatpush3.bf16.msra.mxu0 %v2196_v43  ;;  %1712 = vmatprep.mubr.msk.f32.mxu0 %vm2016_vm0, %v2017_v6 }
 0x2fe   :  { %1865 = vmatprep.subr.bf16.mxu0 %v2015_v3 }
 0x301   :  { %1867 = vmatpush3.bf16.msra.mxu0 %v2206_v46 }
 0x302   :  { %1868 = vmatprep.subr.bf16.mxu0 %v2015_v3 }
 0x3cf   :  { %v505_v25 = vpop.f32.mrb[2].mxu0 }
 0x3d0   :  { %v509_v26 = vsel %vm252_vm2, %v505_v25, 0.0  ;;  %v1703_v27 = vpop.f32.mrb[3].mxu0 }
 0x3d1   :  { %v510_v28 = vrot.slane %v509_v26, 4 }
 0x3d3   :  { %v511_v29 = vadd.f32 %v510_v28, %v509_v26 }
 0x3d5   :  { %v512_v30 = vrot.slane %v511_v29, 2 }
 0x3d7   :  { %v513_v31 = vadd.f32 %v512_v30, %v511_v29 }
 0x3d9   :  { %v514_v32 = vrot.slane %v513_v31, 1 }
 0x3db   :  { %v515_v35 = vadd.f32 %v514_v32, %v513_v31 }
 0x3dd   :  { %v516_v37 = vmul.f32 0.25, %v515_v35 }
 0x3df   :  { %v517_v38 = vsub.f32 %v505_v25, %v516_v37 }
 0x3e1   :  { %v518_v39 = vmul.f32 %v517_v38, %v517_v38 }
 0x3e3   :  { %v519_v40 = vsel %vm252_vm2, %v518_v39, 0.0 }
 0x3e4   :  { %v520_v41 = vrot.slane %v519_v40, 4 }
 0x3e6   :  { %v521_v42 = vadd.f32 %v520_v41, %v519_v40  ;;  %v710_v40 = vsub.s32 5, %v2175_v34 }
 0x3e8   :  { %v522_v43 = vrot.slane %v521_v42, 2 }
 0x3ea   :  { %v523_v44 = vadd.f32 %v522_v43, %v521_v42 }
 0x3ec   :  { %v524_v45 = vrot.slane %v523_v44, 1 }
 0x3ee   :  { %v525_v46 = vadd.f32 %v524_v45, %v523_v44  ;;  %v711_v44 = vrot.slane %v2181_v36, %v710_v40  ;;  %v1489_v40 = vld [vmem:[%s2498_s2 + $0x58] sm:$0xff] }
 0x3f0   :  { %v526_v47 = vmul.f32 0.25, %v525_v46 }
 0x3f2   :  { %v527_v48 = vmax.f32 %v526_v47, 0.0 }
 0x3f4   :  { %v528_v49 = vadd.f32 1e-05, %v527_v48  ;;  %v1490_v48 = vld [vmem:[%s2498_s2 + $0x60] sm:$0xff] }
 0x3f6   :  { %1931 = vrsqrt.f32 %v528_v49  ;;  %v1491_v49 = vld [vmem:[%s2498_s2 + $0x68] sm:$0xff] }
 0x400   :  { %v1932_v50 = vpop.eup %1931 }
 0x401   :  { %v530_v51 = vmul.f32 %v1932_v50, %v517_v38  ;;  %v1492_v50 = vld [vmem:[%s2498_s2 + $0x70] sm:$0xff] }
 0x403   :  { %v531_v52 = vmul.f32 %v530_v51, %v2215_v11  ;;  %v103_v11 = vld [vmem:[%s2500_s4 + $0x38] sm:$0xff]  ;;  %v1919_v51 = vpack.i.bf16 %v1491_v49, %v1490_v48 }
 0x404   :  { %v1884_v13 = vpack.c.bf16 %v103_v11, %v102_v10 }
 0x405   :  { %v532_v55 = vadd.f32 %v531_v52, %v2218_v15  ;;  %v1493_v52 = vld [vmem:[%s2498_s2 + $0x78] sm:$0xff]  ;;  %1920 = vrot.lane.b32.xlu0 %v1919_v51, %s2018_s19 }
 0x406   :  { %1885 = vmatpush3.bf16.msra.mxu1 %v1884_v13  ;;  %v1924_v53 = vpack.i.bf16 %v1493_v52, %v1492_v50 }
 0x407   :  { %v533_v57 = vmax.f32 %v532_v55, 0.0 }
 0x409   :  { %1713 = vmatmul.mubr.msk.f32.vlgmr.msra.gmra.mrb[4].mxu0 %vm35_vm1, %v533_v57  ;;  %1925 = vrot.lane.b32.xlu0 %v1924_v53, %s2018_s19 }
 0x40a   :  { %1870 = vmatpush3.bf16.msra.mxu0 %v1869_v56  ;;  %1723 = vmatprep.mubr.msk.f32.mxu0 %vm2016_vm0, %v2017_v6 }
 0x40b   :  { %1871 = vmatprep.subr.bf16.mxu0 %v2015_v3 }
 0x40e   :  { %1873 = vmatpush3.bf16.msra.mxu0 %v1872_v60 }
 0x40f   :  { %1886 = vmatprep.subr.bf16.mxu0 %v2015_v3 }
 0x411   :  { %1724 = vmatmul.mubr.msk.f32.vlgmr.msra.gmra.mrb[6].mxu0 %vm35_vm1, %v2251_v19 }
 0x412   :  { %1888 = vmatpush3.bf16.msra.mxu0 %v1869_v56  ;;  %1753 = vmatprep.mubr.msk.f32.mxu0 %vm2016_vm0, %v2017_v6 }
 0x413   :  { %1889 = vmatprep.subr.bf16.mxu0 %v2015_v3 }
 0x416   :  { %1891 = vmatpush3.bf16.msra.mxu0 %v1872_v60 }
 0x417   :  { %1892 = vmatprep.subr.bf16.mxu0 %v2015_v3 }
 0x4dc   :  { %v603_v14 = vpop.f32.mrb[4].mxu0 }
 0x4dd   :  { %v2318_v15 = vadd.f32 %v603_v14, %v2248_v12  ;;  %v1714_v17 = vpop.f32.mrb[5].mxu0 }
 0x4df   :  { %1754 = vmatmul.mubr.msk.f32.vlgmr.msra.gmra.mrb[8].mxu0 %vm35_vm1, %v2318_v15  ;;  %v966_v49 = vrot.slane %v2318_v15, 4 }
 0x4e0   :  { %1894 = vmatpush3.bf16.msra.mxu0 %v1875_v63  ;;  %1772 = vmatprep.mubr.msk.f32.mxu0 %vm2016_vm0, %v2017_v6 }
 0x4e1   :  { %1895 = vmatprep.subr.bf16.mxu0 %v2015_v3  ;;  %v970_v52 = vsel %vm968_vm5, %v2251_v19, %v966_v49 }
 0x4e4   :  { %v676_v18 = vpop.f32.mrb[6].mxu0  ;;  %1897 = vmatpush3.bf16.msra.mxu0 %v1878_v2 }
 0x4e5   :  { %v681_v20 = vsel %vm680_vm3, %v676_v18, 0.0  ;;  %v1725_v4 = vpop.f32.mrb[7].mxu0  ;;  %1898 = vmatprep.subr.bf16.mxu0 %v2015_v3 }
 0x4e6   :  { %v682_v7 = vrot.slane %v681_v20, 4 }
 0x4e8   :  { %v683_v12 = vadd.f32 %v682_v7, %v681_v20  ;;  %1900 = vmatpush3.bf16.msra.mxu0 %v1881_v9 }
 0x4e9   :  { %1901 = vmatprep.subr.bf16.mxu0 %v2015_v3  ;;  %v705_v3 = vsub.s32 4, %v2175_v34 }
 0x4ea   :  { %v684_v16 = vrot.slane %v683_v12, 2 }
 0x4eb   :  { %v706_v41 = vrot.slane %v2181_v36, %v705_v3  ;;  %v1488_v3 = vld [vmem:[%s2498_s2 + $0x50] sm:$0xff] }
 0x4ec   :  { %v685_v21 = vadd.f32 %v684_v16, %v683_v12  ;;  %1903 = vmatpush3.bf16.msra.mxu0 %v1884_v13  ;;  %v1921_v16 = vpop.permute.xlu0 %1920 }
 0x4ee   :  { %v686_v22 = vrot.slane %v685_v21, 1 }
 0x4f0   :  { %v687_v23 = vadd.f32 %v686_v22, %v685_v21  ;;  %v1486_v21 = vld [vmem:[%s2498_s2 + $0x40] sm:$0xff]  ;;  %v1487_v22 = vld [vmem:[%s2498_s2 + $0x48] sm:$0xff]  ;;  %s2019_s2 = smov 96  }
 0x4f2   :  { %v688_v24 = vmul.f32 0.25, %v687_v23 }
 0x4f4   :  { %v689_v25 = vsub.f32 %v676_v18, %v688_v24  ;;  %v716_v24 = vsub.s32 6, %v2175_v34 }
 0x4f6   :  { %v690_v26 = vmul.f32 %v689_v25, %v689_v25 }
 0x4f8   :  { %v691_v27 = vsel %vm680_vm3, %v690_v26, 0.0  ;;  %v1922_v26 = vunpack.i.l.bf16 %v1921_v16 }
 0x4f9   :  { %v692_v28 = vrot.slane %v691_v27, 4 }
 0x4fb   :  { %v693_v29 = vadd.f32 %v692_v28, %v691_v27  ;;  %v72_v27 = vsel %vm35_vm1, %v1486_v21, %v1922_v26 }
 0x4fd   :  { %v694_v30 = vrot.slane %v693_v29, 2 }
 0x4ff   :  { %v695_v31 = vadd.f32 %v694_v30, %v693_v29  ;;  %v717_v30 = vrot.slane %v2181_v36, %v716_v24 }
 0x501   :  { %v696_v32 = vrot.slane %v695_v31, 1 }
 0x503   :  { %v697_v35 = vadd.f32 %v696_v32, %v695_v31 }
 0x505   :  { %v698_v37 = vmul.f32 0.25, %v697_v35 }
 0x507   :  { %v699_v38 = vmax.f32 %v698_v37, 0.0  ;;  %v1926_v37 = vpop.permute.xlu0 %1925 }
 0x509   :  { %v700_v39 = vadd.f32 1e-05, %v699_v38  ;;  %v1928_v38 = vunpack.i.h.bf16 %v1926_v37 }
 0x50b   :  { %1933 = vrsqrt.f32 %v700_v39  ;;  %v1927_v39 = vunpack.i.l.bf16 %v1926_v37  ;;  %v2421_v37 = vand.u32 127, %v105_v33 }
 0x50d   :  { %vm1234_vm10 = vcmp.eq.s32.totalorder %v2175_v34, %v2421_v37 }
 0x515   :  { %v1934_v42 = vpop.eup %1933 }
 0x516   :  { %v702_v43 = vmul.f32 %v1934_v42, %v689_v25  ;;  %v1923_v25 = vunpack.i.h.bf16 %v1921_v16  ;;  %v75_v42 = vsel %vm35_vm1, %v1489_v40, %v1928_v38 }
 0x518   :  { %v707_v45 = vmul.f32 %v706_v41, %v702_v43  ;;  %v73_v28 = vsel %vm35_vm1, %v1487_v22, %v1923_v25 }
 0x519   :  { %v1904_v29 = vpack.c.bf16 %v73_v28, %v72_v27 }
 0x51a   :  { %v712_v46 = vadd.f32 %v711_v44, %v707_v45 }
 0x51b   :  { %1905 = vmatprep.subr.bf16.mxu1 %v1904_v29 }
 0x51c   :  { %v713_v47 = vmax.f32 %v712_v46, 0.0 }
 0x51e   :  { %1743 = vmatmul.mubr.msk.f32.vlgmr.msra.gmra.mrb[6].mxu1 %vm718_vm4, %v713_v47 }
 0x51f   :  { %1907 = vmatpush3.bf16.msra.mxu1 %v1904_v29 }
 0x5b2   :  { %v861_v54 = vpop.f32.mrb[8].mxu0 }
 0x5b3   :  { %v865_v55 = vsel %vm680_vm3, %v861_v54, 0.0  ;;  %v1755_v56 = vpop.f32.mrb[9].mxu0 }
 0x5b4   :  { %v866_v57 = vrot.slane %v865_v55, 4 }
 0x5b6   :  { %v867_v58 = vadd.f32 %v866_v57, %v865_v55 }
 0x5b8   :  { %v868_v59 = vrot.slane %v867_v58, 2 }
 0x5ba   :  { %v869_v60 = vadd.f32 %v868_v59, %v867_v58 }
 0x5bc   :  { %v870_v61 = vrot.slane %v869_v60, 1 }
 0x5be   :  { %v871_v62 = vadd.f32 %v870_v61, %v869_v60 }
 0x5c0   :  { %v872_v63 = vmul.f32 0.25, %v871_v62 }
 0x5c2   :  { %v873_v0 = vsub.f32 %v861_v54, %v872_v63  ;;  %v973_v54 = vsub.s32 7, %v2175_v34 }
 0x5c4   :  { %v874_v1 = vmul.f32 %v873_v0, %v873_v0 }
 0x5c6   :  { %v875_v2 = vsel %vm680_vm3, %v874_v1, 0.0 }
 0x5c7   :  { %v876_v5 = vrot.slane %v875_v2, 4 }
 0x5c9   :  { %v877_v8 = vadd.f32 %v876_v5, %v875_v2 }
 0x5cb   :  { %v878_v9 = vrot.slane %v877_v8, 2 }
 0x5cd   :  { %v879_v10 = vadd.f32 %v878_v9, %v877_v8 }
 0x5cf   :  { %v880_v11 = vrot.slane %v879_v10, 1 }
 0x5d1   :  { %v881_v13 = vadd.f32 %v880_v11, %v879_v10 }
 0x5d3   :  { %v882_v14 = vmul.f32 0.25, %v881_v13 }
 0x5d5   :  { %v883_v17 = vmax.f32 %v882_v14, 0.0  ;;  %v1109_v14 = vmul.f32 %v2251_v19, %v2251_v19 }
 0x5d7   :  { %v884_v18 = vadd.f32 1e-05, %v883_v17  ;;  %v1110_v17 = vsel %vm252_vm2, %v1109_v14, 0.0 }
 0x5d9   :  { %1935 = vrsqrt.f32 %v884_v18 }
 0x5e3   :  { %v1936_v20 = vpop.eup %1935 }
 0x5e4   :  { %v886_v4 = vmul.f32 %v1936_v20, %v873_v0 }
 0x5e6   :  { %v887_v7 = vmul.f32 %v886_v4, %v706_v41  ;;  %v74_v41 = vsel %vm35_vm1, %v1488_v3, %v1927_v39 }
 0x5e7   :  { %v1908_v43 = vpack.c.bf16 %v75_v42, %v74_v41 }
 0x5e8   :  { %v888_v12 = vadd.f32 %v887_v7, %v711_v44  ;;  %v29_v44 = vld [vmem:[%s2501_s5 + $0x8] sm:$0x1]  ;;  %s2020_s5 = smov [#allocation2]  }
 0x5e9   :  { %1909 = vmatprep.subr.bf16.mxu1 %v1908_v43  ;;  %v31_v45 = vrot.slane %v29_v44, 1  ;;  %s1456_s28 = sshll.u32 %s2020_s5, 4  ;;  %s1457_s28 = int_to_ptr.vmem [resolvable:$true] %s1456_s28 }
 0x5ea   :  { %v889_v23 = vmax.f32 %v888_v12, 0.0  ;;  %1911 = vmatpush3.bf16.msra.mxu1 %v1908_v43  ;;  %s1967_s9 = scalar_lea.vmem %s1457_s28, 64  ;;  %p1972_p1 = scmp.lt.s32.totalorder %s1457_s28, %s1457_s28 }
 0x5eb   :  { %1786 = vmatprep.subr.mxu1 %v2017_v6  ;;  %32 = vrot.lane.b32.xlu1 %v31_v45, %s2018_s19  ;;  %p1968_p0 = scmp.ne.s32.totalorder %s1457_s28, %s1967_s9  ;;  %p1973_p2 = scmp.lt.s32.totalorder %s1967_s9, %s1967_s9 }
 0x5ec   :  { %1773 = vmatmul.mubr.msk.f32.vlgmr.msra.gmra.mrb[10].mxu0 %vm718_vm4, %v889_v23 }
 0x5ed   :  { %p1974_p3 = por %p1973_p2, %p1972_p1 }
 0x5ef   :  { %p1975_p4 = pnand %p1974_p3, %p1968_p0 }
 0x5f1   :  { %v788_v31 = vpop.f32.mrb[6].mxu1 }
 0x5f2   :  { %v2361_v32 = vadd.f32 %v788_v31, %v717_v30  ;;  %v1744_v35 = vpop.f32.mrb[7].mxu1 }
 0x5f4   :  { %1437 = vst.msk [vmem:[#allocation4] sm:$0xf] %vm252_vm2, %v2361_v32  ;;  %v1060_v9 = vmul.f32 %v2361_v32, %v2361_v32 }
 0x5f6   :  { %v1061_v10 = vsel %vm252_vm2, %v1060_v9, 0.0 }
 0x65d   :  { %v33_v53 = vpop.permute.xlu1 %32 }
 0x65e   :  { %v36_v55 = vsel %vm35_vm1, %v2181_v36, %v33_v53 }
 0x65f   :  { %v974_v56 = vrot.slane %v36_v55, %v973_v54 }
 0x6bf   :  { %v959_v46 = vpop.f32.mrb[10].mxu0 }
 0x6c0   :  { %v2378_v47 = vadd.f32 %v959_v46, %v717_v30  ;;  %v1774_v48 = vpop.f32.mrb[11].mxu0 }
 0x6c2   :  { %v964_v50 = vrot.slane %v2378_v47, 4  ;;  %v1098_v11 = vmul.f32 %v2378_v47, %v2378_v47 }
 0x6c4   :  { %v969_v51 = vsel %vm968_vm5, %v2361_v32, %v964_v50  ;;  %v1099_v13 = vsel %vm252_vm2, %v1098_v11, 0.0  ;;  %v1071_v50 = vmul.f32 %v2318_v15, %v2318_v15 }
 0x6c5   :  { %1783 = vmatprep.mubr.msk.f32.mxu1 %vm35_vm1, %v969_v51 }
 0x6c6   :  { %1784 = vmatmul.mubr.msk.f32.vlgmr.msra.gmra.mrb[8].mxu1 %vm35_vm1, %v970_v52  ;;  %v1072_v51 = vsel %vm252_vm2, %v1071_v50, 0.0 }
 0x6c7   :  { %1788 = vmatprep.mubr.msk.f32.mxu1 %vm2016_vm0, %v2017_v6 }
 0x799   :  { %v1785_v57 = vpop.f32.mrb[8].mxu1 }
 0x79a   :  { %v1053_v58 = vadd.f32 %v1785_v57, %v974_v56  ;;  %v1047_v59 = vpop.f32.mrb[9].mxu1 }
 0x79b   :  { %v2393_v60 = vadd.f32 %v1047_v59, %v974_v56 }
 0x79c   :  { %v1140_v61 = vrot.slane %v1053_v58, 4 }
 0x79d   :  { %v1135_v62 = vsel %vm968_vm5, %v2393_v60, %v1053_v58  ;;  %v1137_v63 = vrot.slane %v2393_v60, 4  ;;  %v1392_v8 = vmul.f32 %v2393_v60, %v2393_v60  ;;  %v1398_v44 = vmul.f32 1.442695, %v2393_v60 }
 0x79e   :  { %v1143_v0 = vmul.f32 %v1135_v62, %v1135_v62  ;;  %v1391_v45 = vadd.f32 1.0, %v2393_v60  ;;  %v1236_v58 = vadd.s32 4, %v2175_v34  ;;  %v1094_v34 = vmul.f32 %v2378_v47, %v2251_v19 }
 0x79f   :  { %v1142_v1 = vsel %vm968_vm5, %v1137_v63, %v1140_v61 }
 0x7a0   :  { %v1144_v2 = vsel %vm35_vm1, %v1143_v0, 0.0  ;;  %v1277_v5 = vmul.f32 %v1142_v1, %v1142_v1  ;;  %v1241_v59 = vand.u32 7, %v1236_v58 }
 0x7a1   :  { %1145 = vadd.xlane.f32.xlu1 %v1144_v2 }
 0x7a2   :  { %v1278_v36 = vsel %vm35_vm1, %v1277_v5, 0.0  ;;  %vm2443_vm12 = vcmp.eq.s32.totalorder %v2421_v37, %v1241_v59 }
 0x7a3   :  { %1279 = vadd.xlane.f32.xlu0 %v1278_v36 }
 0x7b9   :  { %1394 = vrot.lane.b32.xlu0 %v1392_v8, %s2018_s19 }
 0x7d8   :  { %1062 = vadd.xlane.f32.xlu0 %v1061_v10 }
 0x7dc   :  { %1100 = vadd.xlane.f32.xlu0 %v1099_v13 }
 0x7e0   :  { %1111 = vadd.xlane.f32.xlu0 %v1110_v17 }
 0x82e   :  { %v1146_v18 = vpop.xlane.xlu1 %1145 }
 0x82f   :  { %1937 = vrsqrt.f32 %v1146_v18  ;;  %vm1149_vm6 = vcmp.eq.f32.partialorder %v1146_v18, inf  ;;  %v1152_v16 = vand.u32 2147483648, %v1146_v18  ;;  %vm1151_vm7 = vcmp.eq.f32.partialorder %v1146_v18, 0.0 }
 0x830   :  { %v1280_v20 = vpop.xlane.xlu0 %1279 }
 0x831   :  { %1939 = vrsqrt.f32 %v1280_v20  ;;  %vm1283_vm8 = vcmp.eq.f32.partialorder %v1280_v20, inf  ;;  %v1286_v24 = vand.u32 2147483648, %v1280_v20  ;;  %vm1285_vm9 = vcmp.eq.f32.partialorder %v1280_v20, 0.0 }
 0x834   :  { %v1395_v33 = vpop.permute.xlu0 %1394 }
 0x835   :  { %v1397_v46 = vsub.f32 %v1391_v45, %v1395_v33 }
 0x839   :  { %v1938_v4 = vpop.eup %1937 }
 0x83a   :  { %v1148_v7 = vmul.f32 %v1938_v4, %v1146_v18 }
 0x83b   :  { %v1940_v12 = vpop.eup %1939 }
 0x83c   :  { %v1150_v21 = vsel %vm1149_vm6, %v1146_v18, %v1148_v7  ;;  %v1282_v22 = vmul.f32 %v1940_v12, %v1280_v20 }
 0x83d   :  { %v1153_v23 = vsel %vm1151_vm7, %v1152_v16, %v1150_v21 }
 0x83e   :  { %v1154_v25 = vmax.f32 %v1153_v23, 1e-08  ;;  %v1284_v26 = vsel %vm1283_vm8, %v1280_v20, %v1282_v22 }
 0x83f   :  { %v1287_v27 = vsel %vm1285_vm9, %v1286_v24, %v1284_v26 }
 0x840   :  { %1941 = vrcp.f32 %v1154_v25  ;;  %v1288_v28 = vmax.f32 %v1287_v27, 1e-08 }
 0x842   :  { %1943 = vrcp.f32 %v1288_v28 }
 0x843   :  { %1945 = vpow2.f32 %v1398_v44 }
 0x84a   :  { %v1942_v29 = vpop.eup %1941 }
 0x84b   :  { %v1156_v30 = vmul.f32 %v1942_v29, %v1135_v62  ;;  %v1056_v62 = vmul.f32 %v2361_v32, %v2318_v15  ;;  %v1095_v32 = vsel %vm252_vm2, %v1094_v34, 0.0 }
 0x84c   :  { %v1944_v31 = vpop.eup %1943 }
 0x84d   :  { %1787 = vmatpush3.xpose.msk.msra.mxu1 %vm35_vm1, %v1156_v30  ;;  %v1290_v35 = vmul.f32 %v1944_v31, %v1142_v1  ;;  %v1946_v48 = vpop.eup %1945  ;;  %v1057_v1 = vsel %vm252_vm2, %v1056_v62, 0.0 }
 0x84e   :  { %1791 = vmatprep.subr.mxu1 %v2017_v6  ;;  %v1400_v49 = vsub.f32 %v1397_v46, %v1946_v48 }
 0x850   :  { %1789 = vmatmul.mubr.msk.f32.vlgmr.msra.gmra.mrb[10].mxu1 %vm35_vm1, %v1156_v30 }
 0x851   :  { %1792 = vmatpush3.xpose.msk.msra.mxu1 %vm35_vm1, %v1290_v35  ;;  %1793 = vmatprep.mubr.msk.f32.mxu1 %vm2016_vm0, %v2017_v6 }
 0x854   :  { %1794 = vmatmul.mubr.msk.f32.vlgmr.msra.gmra.mrb[12].mxu1 %vm35_vm1, %v1290_v35 }
 0x923   :  { %v1226_v38 = vpop.f32.mrb[10].mxu1 }
 0x924   :  { %v1235_v39 = vsel %vm1234_vm10, -9e+15, %v1226_v38  ;;  %v1790_v3 = vpop.f32.mrb[11].mxu1 }
 0x925   :  { %v1255_v40 = vsel %vm1251_vm11, %v1235_v39, -inf  ;;  %v1250_v5 = vsel %vm2443_vm12, %v1235_v39, 0.0 }
 0x926   :  { %1256 = vmax.xlane.f32.xlu1 %v1255_v40  ;;  %v1252_v15 = vsel %vm1251_vm11, %v1250_v5, 0.0 }
 0x927   :  { %v1360_v41 = vpop.f32.mrb[12].mxu1 }
 0x928   :  { %v1364_v42 = vsel %vm1234_vm10, -9e+15, %v1360_v41  ;;  %v1795_v43 = vpop.f32.mrb[13].mxu1 }
 0x929   :  { %v1369_v6 = vsel %vm1251_vm11, %v1364_v42, -inf  ;;  %v1365_v8 = vsel %vm2443_vm12, %v1364_v42, 0.0 }
 0x92a   :  { %1370 = vmax.xlane.f32.xlu1 %v1369_v6  ;;  %v1366_v10 = vsel %vm1251_vm11, %v1365_v8, 0.0 }
 0x93b   :  { %1402 = vrot.lane.b32.xlu1 %v1400_v49, %s2019_s2 }
 0x95f   :  { %1073 = vadd.xlane.f32.xlu1 %v1072_v51 }
 0x9b3   :  { %v2432_v52 = vpop.xlane.xlu1 %1256 }
 0x9b4   :  { %v1258_v53 = vsub.f32 %v1235_v39, %v2432_v52 }
 0x9b6   :  { %v1259_v54 = vmul.f32 1.442695, %v1258_v53 }
 0x9b7   :  { %v2435_v55 = vpop.xlane.xlu1 %1370 }
 0x9b8   :  { %1947 = vpow2.f32 %v1259_v54  ;;  %v1372_v56 = vsub.f32 %v1364_v42, %v2435_v55 }
 0x9ba   :  { %v1373_v57 = vmul.f32 1.442695, %v1372_v56 }
 0x9bb   :  { %v1403_v36 = vpop.permute.xlu1 %1402 }
 0x9bc   :  { %1949 = vpow2.f32 %v1373_v57  ;;  %v1418_v9 = vsel %vm1417_vm13, %v1403_v36, 0.0  ;;  %v1405_v19 = vsel %vm252_vm2, %v1403_v36, 0.0 }
 0x9c2   :  { %v1948_v60 = vpop.eup %1947 }
 0x9c3   :  { %v1261_v61 = vsel %vm1251_vm11, %v1948_v60, 0.0 }
 0x9c4   :  { %1262 = vadd.xlane.f32.xlu0 %v1261_v61 }
 0x9c6   :  { %v1950_v0 = vpop.eup %1949 }
 0x9c7   :  { %v1375_v2 = vsel %vm1251_vm11, %v1950_v0, 0.0 }
 0x9c8   :  { %1058 = vadd.xlane.f32.xlu0 %v1057_v1  ;;  %1376 = vadd.xlane.f32.xlu1 %v1375_v2 }
 0x9cc   :  { %1253 = vadd.xlane.f32.xlu0 %v1252_v15  ;;  %1096 = vadd.xlane.f32.xlu1 %v1095_v32 }
 0x9d0   :  { %1419 = vadd.xlane.f32.xlu0 %v1418_v9  ;;  %1367 = vadd.xlane.f32.xlu1 %v1366_v10 }
 0x9d4   :  { %1406 = vadd.xlane.f32.xlu1 %v1405_v19 }
 0x9d5   :  { %1978 = shalt.err (!%p1975_p4)
}
 0x9d6   :  { %s1979_s12 = scalar_lea.hbm %s2502_s6, 64 }
 0x9d7   :  { %p1980_p5 = scmp.ne.s32.totalorder %s2502_s6, %s1979_s12  ;;  %p1983_p6 = scmp.lt.u32.totalorder %s1979_s12, %s2502_s6 }
 0x9d9   :  { %p1985_p7 = pnand %p1983_p6, %p1980_p5 }
 0x9db   :  { %1988 = shalt.err (!%p1985_p7)
}
 0x9dc   :  { %1459 = dma.vmem_to_hbm [thread:$0]  %s1457_s28, 64, %s2502_s6, [#allocation3]  }
 0x9dd   :  { %s1989_s17 = scalar_lea.vmem %s1467_s30, 64  ;;  %p1994_p9 = scmp.lt.s32.totalorder %s1467_s30, %s1467_s30 }
 0x9de   :  { %p1990_p8 = scmp.ne.s32.totalorder %s1467_s30, %s1989_s17  ;;  %p1995_p10 = scmp.lt.s32.totalorder %s1989_s17, %s1989_s17 }
 0x9e0   :  { %p1996_p11 = por %p1995_p10, %p1994_p9 }
 0x9e2   :  { %p1997_p12 = pnand %p1996_p11, %p1990_p8 }
 0x9e4   :  { %2000 = shalt.err (!%p1997_p12)
}
 0x9e5   :  { %s2001_s20 = scalar_lea.hbm %s2503_s7, 64 }
 0x9e6   :  { %p2002_p13 = scmp.ne.s32.totalorder %s2503_s7, %s2001_s20  ;;  %p2005_p0 = scmp.lt.u32.totalorder %s2001_s20, %s2503_s7 }
 0x9e8   :  { %p2007_p1 = pnand %p2005_p0, %p2002_p13 }
 0x9ea   :  { %2010 = shalt.err (!%p2007_p1)
}
 0x9eb   :  { %1469 = dma.vmem_to_hbm [thread:$0]  %s1467_s30, 64, %s2503_s7, [#allocation5]   ;;  %v1063_v47 = vpop.xlane.xlu0 %1062  ;;  %vm1438_vm7 = vcmp.eq.s32.totalorder %v2421_v37, 0  ;;  %vm1443_vm8 = vcmp.eq.s32.totalorder %v2421_v37, 2  ;;  %vm1446_vm9 = vcmp.eq.s32.totalorder %v2421_v37, 3 }
 0x9ec   :  { %v1074_v13 = vpop.xlane.xlu1 %1073  ;;  %vm1066_vm15 = vcmp.eq.f32.partialorder %v1063_v47, inf  ;;  %v1069_v25 = vand.u32 2147483648, %v1063_v47  ;;  %vm1068_vm2 = vcmp.eq.f32.partialorder %v1063_v47, 0.0 }
 0x9ed   :  { %1951 = vrsqrt.f32 %v1074_v13  ;;  %vm1077_vm14 = vcmp.eq.f32.partialorder %v1074_v13, inf  ;;  %v1080_v22 = vand.u32 2147483648, %v1074_v13  ;;  %vm1079_vm0 = vcmp.eq.f32.partialorder %v1074_v13, 0.0 }
 0x9ee   :  { %1953 = vrsqrt.f32 %v1063_v47 }
 0x9ef   :  { %v1101_v11 = vpop.xlane.xlu0 %1100 }
 0x9f0   :  { %vm1104_vm3 = vcmp.eq.f32.partialorder %v1101_v11, inf  ;;  %v1107_v35 = vand.u32 2147483648, %v1101_v11  ;;  %vm1106_vm6 = vcmp.eq.f32.partialorder %v1101_v11, 0.0 }
 0x9f3   :  { %v1112_v14 = vpop.xlane.xlu0 %1111 }
 0x9f4   :  { %1955 = vrsqrt.f32 %v1112_v14  ;;  %vm1115_vm1 = vcmp.eq.f32.partialorder %v1112_v14, inf  ;;  %v1118_v28 = vand.u32 2147483648, %v1112_v14  ;;  %vm1117_vm4 = vcmp.eq.f32.partialorder %v1112_v14, 0.0 }
 0x9f5   :  { %1957 = vrsqrt.f32 %v1101_v11 }
 0x9f7   :  { %v1952_v17 = vpop.eup %1951 }
 0x9f8   :  { %v1954_v18 = vpop.eup %1953  ;;  %v1076_v20 = vmul.f32 %v1952_v17, %v1074_v13 }
 0x9f9   :  { %v1065_v7 = vmul.f32 %v1954_v18, %v1063_v47 }
 0x9fa   :  { %v1078_v21 = vsel %vm1077_vm14, %v1074_v13, %v1076_v20 }
 0x9fb   :  { %v1067_v23 = vsel %vm1066_vm15, %v1063_v47, %v1065_v7  ;;  %v1081_v26 = vsel %vm1079_vm0, %v1080_v22, %v1078_v21 }
 0x9fc   :  { %v1070_v29 = vsel %vm1068_vm2, %v1069_v25, %v1067_v23 }
 0x9fd   :  { %v1082_v31 = vmul.f32 %v1081_v26, %v1070_v29 }
 0x9fe   :  { %v1956_v4 = vpop.eup %1955 }
 0x9ff   :  { %v1958_v12 = vpop.eup %1957  ;;  %v1114_v16 = vmul.f32 %v1956_v4, %v1112_v14  ;;  %v1083_v3 = vmax.f32 %v1082_v31, 1e-08 }
 0xa00   :  { %v1103_v24 = vmul.f32 %v1958_v12, %v1101_v11 }
 0xa01   :  { %v1116_v27 = vsel %vm1115_vm1, %v1112_v14, %v1114_v16  ;;  %1959 = vrcp.f32 %v1083_v3 }
 0xa02   :  { %v1105_v30 = vsel %vm1104_vm3, %v1101_v11, %v1103_v24  ;;  %v1119_v38 = vsel %vm1117_vm4, %v1118_v28, %v1116_v27 }
 0xa03   :  { %v1108_v39 = vsel %vm1106_vm6, %v1107_v35, %v1105_v30 }
 0xa04   :  { %v1120_v40 = vmul.f32 %v1119_v38, %v1108_v39 }
 0xa06   :  { %v1121_v41 = vmax.f32 %v1120_v40, 1e-08 }
 0xa08   :  { %1961 = vrcp.f32 %v1121_v41 }
 0xa0b   :  { %v1960_v43 = vpop.eup %1959 }
 0xa12   :  { %v1962_v46 = vpop.eup %1961 }
 0xa51   :  { %v1263_v42 = vpop.xlane.xlu0 %1262 }
 0xa52   :  { %1963 = vlog2.f32 %v1263_v42 }
 0xa55   :  { %v1059_v6 = vpop.xlane.xlu0 %1058  ;;  %v1377_v44 = vpop.xlane.xlu1 %1376 }
 0xa56   :  { %v1085_v33 = vmul.f32 %v1960_v43, %v1059_v6  ;;  %1965 = vlog2.f32 %v1377_v44 }
 0xa58   :  { %v1086_v45 = vsel %vm968_vm5, %v1085_v33, 0.0 }
 0xa59   :  { %v1087_v48 = vrot.slane %v1086_v45, 4  ;;  %v1254_v49 = vpop.xlane.xlu0 %1253  ;;  %v1097_v50 = vpop.xlane.xlu1 %1096 }
 0xa5a   :  { %v1123_v51 = vmul.f32 %v1962_v46, %v1097_v50  ;;  %v1267_v1 = vsub.f32 0.0, %v1254_v49 }
 0xa5b   :  { %v1088_v53 = vadd.f32 %v1087_v48, %v1086_v45 }
 0xa5c   :  { %v1964_v54 = vpop.eup %1963  ;;  %v1124_v56 = vsel %vm968_vm5, %v1123_v51, 0.0 }
 0xa5d   :  { %v1265_v57 = vmul.f32 0.6931472, %v1964_v54  ;;  %v1089_v58 = vrot.slane %v1088_v53, 2  ;;  %v1125_v59 = vrot.slane %v1124_v56, 4  ;;  %v1420_v60 = vpop.xlane.xlu0 %1419  ;;  %v1368_v61 = vpop.xlane.xlu1 %1367 }
 0xa5e   :  { %v1422_v62 = vrot.slane %v1420_v60, 4  ;;  %v1381_v10 = vsub.f32 0.0, %v1368_v61 }
 0xa5f   :  { %v1090_v63 = vadd.f32 %v1089_v58, %v1088_v53  ;;  %v1266_v0 = vadd.f32 %v1265_v57, %v2432_v52  ;;  %v1126_v2 = vadd.f32 %v1125_v59, %v1124_v56 }
 0xa60   :  { %v1966_v34 = vpop.eup %1965  ;;  %v1424_v5 = vsel %vm968_vm5, %v1422_v62, 0.0 }
 0xa61   :  { %v1379_v15 = vmul.f32 0.6931472, %v1966_v34  ;;  %v1268_v32 = vadd.f32 %v1267_v1, %v1266_v0  ;;  %v1127_v36 = vrot.slane %v1126_v2, 2  ;;  %v1407_v8 = vpop.xlane.xlu1 %1406  ;;  %v1425_v9 = vrot.slane %v1424_v5, 4 }
 0xa62   :  { %v1408_v19 = vsel %vm968_vm5, %v1407_v8, 0.0  ;;  %v1091_v47 = vrot.slane %v1090_v63, 1  ;;  %vm1440_vm5 = vcmp.eq.s32.totalorder %v2421_v37, 1 }
 0xa63   :  { %v1269_v11 = vrot.slane %v1268_v32, 4  ;;  %v1128_v13 = vadd.f32 %v1127_v36, %v1126_v2  ;;  %v1380_v14 = vadd.f32 %v1379_v15, %v2435_v55  ;;  %v1426_v17 = vadd.f32 %v1425_v9, %v1424_v5 }
 0xa64   :  { %v1409_v52 = vrot.slane %v1408_v19, 4  ;;  %v1092_v16 = vadd.f32 %v1091_v47, %v1090_v63 }
 0xa65   :  { %v1270_v18 = vadd.f32 %v1269_v11, %v1268_v32  ;;  %v1129_v20 = vrot.slane %v1128_v13, 1  ;;  %v1382_v4 = vadd.f32 %v1381_v10, %v1380_v14  ;;  %v1427_v7 = vrot.slane %v1426_v17, 2 }
 0xa66   :  { %v1410_v12 = vadd.f32 %v1409_v52, %v1408_v19  ;;  %v1093_v31 = vmul.f32 0.25, %v1092_v16 }
 0xa67   :  { %v1271_v21 = vrot.slane %v1270_v18, 2  ;;  %v1130_v22 = vadd.f32 %v1129_v20, %v1128_v13  ;;  %v1383_v23 = vrot.slane %v1382_v4, 4  ;;  %v1428_v24 = vadd.f32 %v1427_v7, %v1426_v17 }
 0xa68   :  { %v1411_v25 = vrot.slane %v1410_v12, 2 }
 0xa69   :  { %v1272_v26 = vadd.f32 %v1271_v21, %v1270_v18  ;;  %v1131_v27 = vmul.f32 0.25, %v1130_v22  ;;  %v1384_v28 = vadd.f32 %v1383_v23, %v1382_v4  ;;  %v1429_v29 = vrot.slane %v1428_v24, 1 }
 0xa6a   :  { %v1412_v30 = vadd.f32 %v1411_v25, %v1410_v12 }
 0xa6b   :  { %v1273_v55 = vrot.slane %v1272_v26, 1  ;;  %v1385_v35 = vrot.slane %v1384_v28, 2  ;;  %v1132_v39 = vadd.f32 %v1131_v27, %v1093_v31  ;;  %v1430_v3 = vadd.f32 %v1429_v29, %v1428_v24 }
 0xa6c   :  { %v1413_v38 = vrot.slane %v1412_v30, 1 }
 0xa6d   :  { %v1386_v40 = vadd.f32 %v1385_v35, %v1384_v28  ;;  %v1274_v42 = vadd.f32 %v1273_v55, %v1272_v26  ;;  %v1133_v44 = vsub.f32 0.0, %v1132_v39  ;;  %v1431_v33 = vmul.f32 -0.5, %v1430_v3 }
 0xa6e   :  { %v1414_v41 = vadd.f32 %v1413_v38, %v1412_v30 }
 0xa6f   :  { %v1387_v43 = vrot.slane %v1386_v40, 1  ;;  %v1276_v46 = vmul.f32 0.125, %v1274_v42  ;;  %v1134_v50 = vmul.f32 0.5, %v1133_v44  ;;  %v1432_v51 = vmul.f32 0.001, %v1431_v33 }
 0xa70   :  { %v1415_v6 = vmul.f32 -0.5, %v1414_v41 }
 0xa71   :  { %v1388_v45 = vadd.f32 %v1387_v43, %v1386_v40  ;;  %v1441_v58 = vsel %vm1440_vm5, %v1134_v50, 0.0 }
 0xa72   :  { %v1416_v49 = vmul.f32 0.001, %v1415_v6 }
 0xa73   :  { %v1389_v48 = vmul.f32 0.125, %v1388_v45 }
 0xa74   :  { %v1433_v56 = vadd.f32 %v1432_v51, %v1416_v49 }
 0xa75   :  { %v1390_v53 = vadd.f32 %v1389_v48, %v1276_v46 }
 0xa76   :  { %v1447_v63 = vsel %vm1446_vm9, %v1433_v56, 0.0 }
 0xa77   :  { %v1434_v54 = vadd.f32 %v1390_v53, %v1134_v50  ;;  %v1444_v61 = vsel %vm1443_vm8, %v1390_v53, 0.0 }
 0xa79   :  { %v1435_v57 = vadd.f32 %v1434_v54, %v1433_v56 }
 0xa7b   :  { %v1439_v59 = vsel %vm1438_vm7, %v1435_v57, 0.0 }
 0xa7c   :  { %v1442_v60 = vadd.f32 %v1441_v58, %v1439_v59 }
 0xa7e   :  { %v1445_v62 = vadd.f32 %v1444_v61, %v1442_v60 }
 0xa80   :  { %v1448_v0 = vadd.f32 %v1447_v63, %v1445_v62 }
 0xa82   :  { %1449 = vst [vmem:[%s2504_s8] sm:$0x1] %v1448_v0 }
 0xa83   :  { %2011 = dma.done.wait [#allocation3], 64  }
 0xa84   :  { %2012 = vsyncadd [#allocation3], 4294967232 }
 0xa85   :  { %2013 = dma.done.wait [#allocation5], 64  }
 0xa86   :  { %2014 = vsyncadd [#allocation5], 4294967232 }
 0xa87   :  { %1480 = vsyncpa [#allocation3], 1 }
 0xa88   :  { %1481 = vsyncpa [#allocation5], 1 }

// kernel: forward.2
= control target key start
LH: loop header
LB: loop body
LE: loop exit
PB: predicated region body
PF: predicated region fallthrough
CT: control target
= control target key end

     0   :  { %s19359_s12 = smov 0   ;;  %s25125_s0 = inlined_call_operand.vmem [shape: f32[8,18,18,8], index: 0, kind: input, shape index: {}]   ;;  %s25126_s1 = inlined_call_operand.vmem [shape: f32[9,8,128], index: 1, kind: input, shape index: {}]   ;;  %s25127_s2 = inlined_call_operand.vmem [shape: f32[3,128], index: 2, kind: input, shape index: {}]   ;;  %s25128_s3 = inlined_call_operand.vmem [shape: f32[2,4,128], index: 3, kind: output, shape index: {}]  }
   0x1 LB: > { %s19365_s13 = sadd.s32 4294967295, %s19337_s12   ;;  %p13448_p0 = scmp.ge.s32.totalorder %s19337_s12, 1  ;;  %s19337_s12 = sphi %s19359_s12, %s13_s12  }
   0x2   : > { %p139_p1 = scmp.lt.s32.totalorder %s19337_s12, 3 }
   0x4   : > { %p140_p2 = pnand %p13448_p0, %p139_p1 }
   0x6   : > { %143 = sbr.rel (%p140_p2) target bundleno = 1922 (0x782), region = 32 }
   0xd   : > { %v13452_v0 = vld [vmem:[%s25126_s1 + $0x8] sm:$0xff]  ;;  %v14223_v1 = vld [vmem:[%s25126_s1 + $0x20] sm:$0xff]  ;;  %s13449_s18 = sshll.u32 %s19365_s13, 2  ;;  %vm433_vm0 = vcmask 64512   ;;  %v19399_v9 = vld [vmem:[%s25126_s1 + $0x30] sm:$0xff]  ;;  %p170_p4 = scmp.lt.s32.totalorder %s19365_s13, 1 }
   0xe   : > { %v302_v2 = vld [vmem:[%s25126_s1] sm:$0xff]  ;;  %16546 = vmatprep.subr.mxu1 %v13452_v0  ;;  %17322 = vmatprep.subr.mxu0 %v14223_v1  ;;  %p164_p3 = scmp.lt.s32.totalorder %s13449_s18, 7  ;;  %v14480_v3 = vld [vmem:[%s25126_s1 + $0x28] sm:$0xff]  ;;  %vm13383_vm1 = vcmask 1041409   ;;  %vm13385_vm2 = vcmask 1042434   ;;  %vm13387_vm3 = vcmask 1043459  }
   0xf   : > { %16547 = vmatpush3.msra.mxu1 %v13452_v0  ;;  %17323 = vmatpush3.msra.mxu0 %v14223_v1  ;;  %s26092_s13 = smov (!%p170_p4, %s19365_s13), 1 }
  0x10   : > { %s26090_s18 = smov (!%p164_p3, %s13449_s18), 7  ;;  %16740 = vmatprep.subr.mxu1 %v302_v2  ;;  %17516 = vmatprep.subr.mxu0 %v14480_v3  ;;  %s13451_s22 = sshll.u32 %s26092_s13, 2 }
  0x11   : > { %s19318_s23 = smul.u32 432, %s26090_s18  ;;  %s173_s25 = scalar_lea.vmem %s25128_s3, %s13451_s22 }
  0x13   : > { %s19385_s26 = scalar_lea.vmem %s25125_s0, %s19318_s23 }
  0x14   : > { %v303_v4 = vld [vmem:[%s19385_s26 + $0x1] sm:$0xff]  ;;  %v14095_v5 = vld [vmem:[%s19385_s26 + $0x19] sm:$0xff]  ;;  %v304_v6 = vld [vmem:[%s19385_s26 + $0x9] sm:$0xff] }
  0x15   : > { %16548 = vmatprep.mubr.msk.f32.mxu1 %vm433_vm0, %v303_v4  ;;  %17324 = vmatprep.mubr.msk.f32.mxu0 %vm433_vm0, %v14095_v5  ;;  %v14096_v7 = vld [vmem:[%s19385_s26 + $0x21] sm:$0xff]  ;;  %v14097_v8 = vld [vmem:[%s19385_s26 + $0x31] sm:$0xff]  ;;  %v14098_v10 = vld [vmem:[%s19385_s26 + $0x39] sm:$0xff] }
  0x16   : > { %16549 = vmatmul.mubr.msk.f32.vlgmr.msra.gmra.mrb[0].mxu1 %vm433_vm0, %v304_v6  ;;  %17325 = vmatmul.mubr.msk.f32.vlgmr.msra.gmra.mrb[0].mxu0 %vm433_vm0, %v14096_v7  ;;  %v14099_v11 = vld [vmem:[%s19385_s26 + $0x49] sm:$0xff]  ;;  %v14100_v12 = vld [vmem:[%s19385_s26 + $0x51] sm:$0xff]  ;;  %v14101_v13 = vld [vmem:[%s19385_s26 + $0x61] sm:$0xff] }
  0x17   : > { %16741 = vmatpush3.msra.mxu1 %v302_v2  ;;  %17517 = vmatpush3.msra.mxu0 %v14480_v3  ;;  %v14102_v14 = vld [vmem:[%s19385_s26 + $0x69] sm:$0xff]  ;;  %v14103_v15 = vld [vmem:[%s19385_s26 + $0x79] sm:$0xff]  ;;  %v14104_v16 = vld [vmem:[%s19385_s26 + $0x81] sm:$0xff] }
  0x18   : > { %16551 = vmatprep.mubr.msk.f32.mxu1 %vm433_vm0, %v14095_v5  ;;  %17327 = vmatprep.mubr.msk.f32.mxu0 %vm433_vm0, %v14097_v8  ;;  %v14105_v17 = vld [vmem:[%s19385_s26 + $0x91] sm:$0xff]  ;;  %v14106_v18 = vld [vmem:[%s19385_s26 + $0x99] sm:$0xff]  ;;  %v14107_v19 = vld [vmem:[%s19385_s26 + $0xa9] sm:$0xff] }
  0x19   : > { %17710 = vmatprep.subr.mxu0 %v19399_v9  ;;  %v14108_v20 = vld [vmem:[%s19385_s26 + $0xb1] sm:$0xff]  ;;  %v14109_v21 = vld [vmem:[%s19385_s26 + $0xc1] sm:$0xff]  ;;  %v14110_v22 = vld [vmem:[%s19385_s26 + $0xc9] sm:$0xff] }
  0x1a   : > { %16552 = vmatmul.mubr.msk.f32.gmra.mrb[2].mxu1 %vm433_vm0, %v14096_v7  ;;  %17328 = vmatmul.mubr.msk.f32.gmra.mrb[2].mxu0 %vm433_vm0, %v14098_v10  ;;  %v14111_v23 = vld [vmem:[%s19385_s26 + $0xd9] sm:$0xff]  ;;  %v14112_v24 = vld [vmem:[%s19385_s26 + $0xe1] sm:$0xff]  ;;  %v14113_v25 = vld [vmem:[%s19385_s26 + $0xf1] sm:$0xff] }
  0x1b   : > { %16554 = vmatprep.mubr.msk.f32.mxu1 %vm433_vm0, %v14097_v8  ;;  %17330 = vmatprep.mubr.msk.f32.mxu0 %vm433_vm0, %v14099_v11  ;;  %v14114_v26 = vld [vmem:[%s19385_s26 + $0xf9] sm:$0xff]  ;;  %v14115_v27 = vld [vmem:[%s19385_s26 + $0x109] sm:$0xff]  ;;  %v14116_v28 = vld [vmem:[%s19385_s26 + $0x111] sm:$0xff] }
  0x1c   : > { %v14117_v29 = vld [vmem:[%s19385_s26 + $0x121] sm:$0xff]  ;;  %v14118_v30 = vld [vmem:[%s19385_s26 + $0x129] sm:$0xff]  ;;  %v14119_v31 = vld [vmem:[%s19385_s26 + $0x139] sm:$0xff] }
  0x1d   : > { %v14120_v32 = vld [vmem:[%s19385_s26 + $0x141] sm:$0xff]  ;;  %v14121_v33 = vld [vmem:[%s19385_s26 + $0x151] sm:$0xff]  ;;  %v14122_v34 = vld [vmem:[%s19385_s26 + $0x159] sm:$0xff] }
  0x1e   : > { %16555 = vmatmul.mubr.msk.f32.gmra.mrb[4].mxu1 %vm433_vm0, %v14098_v10  ;;  %17331 = vmatmul.mubr.msk.f32.gmra.mrb[4].mxu0 %vm433_vm0, %v14100_v12  ;;  %v14123_v35 = vld [vmem:[%s19385_s26 + $0x169] sm:$0xff]  ;;  %v14124_v36 = vld [vmem:[%s19385_s26 + $0x171] sm:$0xff]  ;;  %v14125_v37 = vld [vmem:[%s19385_s26 + $0x181] sm:$0xff] }
  0x1f   : > { %16557 = vmatprep.mubr.msk.f32.mxu1 %vm433_vm0, %v14099_v11  ;;  %17333 = vmatprep.mubr.msk.f32.mxu0 %vm433_vm0, %v14101_v13  ;;  %v14126_v38 = vld [vmem:[%s19385_s26 + $0x189] sm:$0xff]  ;;  %v335_v39 = vld [vmem:[%s19385_s26 + $0x1b1] sm:$0xff]  ;;  %v336_v41 = vld [vmem:[%s19385_s26 + $0x1b9] sm:$0xff] }
  0x20   : > { %v14127_v40 = vld [vmem:[%s19385_s26 + $0x1c9] sm:$0xff]  ;;  %v14128_v42 = vld [vmem:[%s19385_s26 + $0x1d1] sm:$0xff]  ;;  %v14129_v43 = vld [vmem:[%s19385_s26 + $0x1e1] sm:$0xff] }
  0x21   : > { %v14130_v44 = vld [vmem:[%s19385_s26 + $0x1e9] sm:$0xff]  ;;  %v14131_v45 = vld [vmem:[%s19385_s26 + $0x1f9] sm:$0xff]  ;;  %v14132_v46 = vld [vmem:[%s19385_s26 + $0x201] sm:$0xff] }
  0x22   : > { %16558 = vmatmul.mubr.msk.f32.gmra.mrb[6].mxu1 %vm433_vm0, %v14100_v12  ;;  %17334 = vmatmul.mubr.msk.f32.gmra.mrb[6].mxu0 %vm433_vm0, %v14102_v14  ;;  %v14133_v47 = vld [vmem:[%s19385_s26 + $0x211] sm:$0xff]  ;;  %v14134_v48 = vld [vmem:[%s19385_s26 + $0x219] sm:$0xff]  ;;  %v14135_v49 = vld [vmem:[%s19385_s26 + $0x229] sm:$0xff] }
  0x23   : > { %16560 = vmatprep.mubr.msk.f32.mxu1 %vm433_vm0, %v14101_v13  ;;  %17336 = vmatprep.mubr.msk.f32.mxu0 %vm433_vm0, %v14103_v15  ;;  %v14136_v50 = vld [vmem:[%s19385_s26 + $0x231] sm:$0xff]  ;;  %v14137_v51 = vld [vmem:[%s19385_s26 + $0x241] sm:$0xff]  ;;  %v14138_v52 = vld [vmem:[%s19385_s26 + $0x249] sm:$0xff] }
  0x24   : > { %v14139_v53 = vld [vmem:[%s19385_s26 + $0x259] sm:$0xff]  ;;  %v14140_v54 = vld [vmem:[%s19385_s26 + $0x261] sm:$0xff]  ;;  %v14141_v55 = vld [vmem:[%s19385_s26 + $0x271] sm:$0xff] }
  0x25   : > { %v14142_v56 = vld [vmem:[%s19385_s26 + $0x279] sm:$0xff]  ;;  %v14143_v57 = vld [vmem:[%s19385_s26 + $0x289] sm:$0xff]  ;;  %v14144_v58 = vld [vmem:[%s19385_s26 + $0x291] sm:$0xff] }
  0x26   : > { %16561 = vmatmul.mubr.msk.f32.gmra.mrb[8].mxu1 %vm433_vm0, %v14102_v14  ;;  %17337 = vmatmul.mubr.msk.f32.gmra.mrb[8].mxu0 %vm433_vm0, %v14104_v16  ;;  %v14145_v59 = vld [vmem:[%s19385_s26 + $0x2a1] sm:$0xff]  ;;  %v14146_v60 = vld [vmem:[%s19385_s26 + $0x2a9] sm:$0xff]  ;;  %v14147_v61 = vld [vmem:[%s19385_s26 + $0x2b9] sm:$0xff] }
  0x27   : > { %16563 = vmatprep.mubr.msk.f32.mxu1 %vm433_vm0, %v14103_v15  ;;  %17339 = vmatprep.mubr.msk.f32.mxu0 %vm433_vm0, %v14105_v17  ;;  %v14148_v62 = vld [vmem:[%s19385_s26 + $0x2c1] sm:$0xff]  ;;  %v14149_v63 = vld [vmem:[%s19385_s26 + $0x2d1] sm:$0xff]  ;;  %v14150_v0 = vld [vmem:[%s19385_s26 + $0x2d9] sm:$0xff] }
  0x28   : > { %v14151_v1 = vld [vmem:[%s19385_s26 + $0x2e9] sm:$0xff]  ;;  %v14152_v2 = vld [vmem:[%s19385_s26 + $0x2f1] sm:$0xff]  ;;  %v14153_v3 = vld [vmem:[%s19385_s26 + $0x301] sm:$0xff] }
  0x29   : > { %v14154_v4 = vld [vmem:[%s19385_s26 + $0x309] sm:$0xff]  ;;  %v14155_v5 = vld [vmem:[%s19385_s26 + $0x319] sm:$0xff]  ;;  %v14156_v6 = vld [vmem:[%s19385_s26 + $0x321] sm:$0xff] }
  0x2a   : > { %16564 = vmatmul.mubr.msk.f32.gmra.mrb[10].mxu1 %vm433_vm0, %v14104_v16  ;;  %17340 = vmatmul.mubr.msk.f32.gmra.mrb[10].mxu0 %vm433_vm0, %v14106_v18  ;;  %v14157_v7 = vld [vmem:[%s19385_s26 + $0x331] sm:$0xff]  ;;  %v14158_v8 = vld [vmem:[%s19385_s26 + $0x339] sm:$0xff]  ;;  %v367_v10 = vld [vmem:[%s19385_s26 + $0x361] sm:$0xff] }
  0x2b   : > { %16566 = vmatprep.mubr.msk.f32.mxu1 %vm433_vm0, %v14105_v17  ;;  %17342 = vmatprep.mubr.msk.f32.mxu0 %vm433_vm0, %v14107_v19  ;;  %v14352_v11 = vld [vmem:[%s19385_s26 + $0x1a] sm:$0xff]  ;;  %v368_v12 = vld [vmem:[%s19385_s26 + $0x369] sm:$0xff]  ;;  %v14354_v16 = vld [vmem:[%s19385_s26 + $0x32] sm:$0xff] }
  0x2c   : > { %v14353_v13 = vld [vmem:[%s19385_s26 + $0x22] sm:$0xff]  ;;  %v19598_v14 = vld [vmem:[%s25126_s1 + $0x10] sm:$0xff]  ;;  %v369_v15 = vld [vmem:[%s19385_s26 + $0x379] sm:$0xff] }
  0x2d   : > { %16934 = vmatprep.subr.mxu1 %v19598_v14  ;;  %v370_v17 = vld [vmem:[%s19385_s26 + $0x381] sm:$0xff] }
  0x2e   : > { %16567 = vmatmul.mubr.msk.f32.gmra.mrb[12].mxu1 %vm433_vm0, %v14106_v18  ;;  %17343 = vmatmul.mubr.msk.f32.gmra.mrb[12].mxu0 %vm433_vm0, %v14108_v20  ;;  %v14355_v18 = vld [vmem:[%s19385_s26 + $0x3a] sm:$0xff] }
  0x2f   : > { %16569 = vmatprep.mubr.msk.f32.mxu1 %vm433_vm0, %v14107_v19  ;;  %17345 = vmatprep.mubr.msk.f32.mxu0 %vm433_vm0, %v14109_v21  ;;  %v371_v19 = vld [vmem:[%s19385_s26 + $0x391] sm:$0xff] }
  0x32   : > { %16570 = vmatmul.mubr.msk.f32.gmra.mrb[14].mxu1 %vm433_vm0, %v14108_v20  ;;  %17346 = vmatmul.mubr.msk.f32.gmra.mrb[14].mxu0 %vm433_vm0, %v14110_v22  ;;  %v14356_v20 = vld [vmem:[%s19385_s26 + $0x4a] sm:$0xff] }
  0x33   : > { %16572 = vmatprep.mubr.msk.f32.mxu1 %vm433_vm0, %v14109_v21  ;;  %17348 = vmatprep.mubr.msk.f32.mxu0 %vm433_vm0, %v14111_v23  ;;  %v14357_v21 = vld [vmem:[%s19385_s26 + $0x52] sm:$0xff] }
  0x36   : > { %16573 = vmatmul.mubr.msk.f32.gmra.mrb[16].mxu1 %vm433_vm0, %v14110_v22  ;;  %17349 = vmatmul.mubr.msk.f32.gmra.mrb[16].mxu0 %vm433_vm0, %v14112_v24  ;;  %v373_v22 = vld [vmem:[%s19385_s26 + $0x3a9] sm:$0xff] }
  0x37   : > { %16575 = vmatprep.mubr.msk.f32.mxu1 %vm433_vm0, %v14111_v23  ;;  %17351 = vmatprep.mubr.msk.f32.mxu0 %vm433_vm0, %v14113_v25  ;;  %v14358_v23 = vld [vmem:[%s19385_s26 + $0x62] sm:$0xff] }
  0x3a   : > { %16576 = vmatmul.mubr.msk.f32.gmra.mrb[18].mxu1 %vm433_vm0, %v14112_v24  ;;  %17352 = vmatmul.mubr.msk.f32.gmra.mrb[18].mxu0 %vm433_vm0, %v14114_v26  ;;  %v374_v24 = vld [vmem:[%s19385_s26 + $0x3b1] sm:$0xff] }
  0x3b   : > { %16578 = vmatprep.mubr.msk.f32.mxu1 %vm433_vm0, %v14113_v25  ;;  %17354 = vmatprep.mubr.msk.f32.mxu0 %vm433_vm0, %v14115_v27  ;;  %v14359_v25 = vld [vmem:[%s19385_s26 + $0x6a] sm:$0xff] }
  0x3e   : > { %16579 = vmatmul.mubr.msk.f32.gmra.mrb[20].mxu1 %vm433_vm0, %v14114_v26  ;;  %17355 = vmatmul.mubr.msk.f32.gmra.mrb[20].mxu0 %vm433_vm0, %v14116_v28  ;;  %v375_v26 = vld [vmem:[%s19385_s26 + $0x3c1] sm:$0xff] }
  0x3f   : > { %16581 = vmatprep.mubr.msk.f32.mxu1 %vm433_vm0, %v14115_v27  ;;  %17357 = vmatprep.mubr.msk.f32.mxu0 %vm433_vm0, %v14117_v29  ;;  %v14360_v27 = vld [vmem:[%s19385_s26 + $0x7a] sm:$0xff] }
  0x42   : > { %16582 = vmatmul.mubr.msk.f32.gmra.mrb[22].mxu1 %vm433_vm0, %v14116_v28  ;;  %17358 = vmatmul.mubr.msk.f32.gmra.mrb[22].mxu0 %vm433_vm0, %v14118_v30  ;;  %v376_v28 = vld [vmem:[%s19385_s26 + $0x3c9] sm:$0xff] }
  0x43   : > { %16584 = vmatprep.mubr.msk.f32.mxu1 %vm433_vm0, %v14117_v29  ;;  %17360 = vmatprep.mubr.msk.f32.mxu0 %vm433_vm0, %v14119_v31  ;;  %v14361_v29 = vld [vmem:[%s19385_s26 + $0x82] sm:$0xff] }
  0x46   : > { %16585 = vmatmul.mubr.msk.f32.gmra.mrb[24].mxu1 %vm433_vm0, %v14118_v30  ;;  %17361 = vmatmul.mubr.msk.f32.gmra.mrb[24].mxu0 %vm433_vm0, %v14120_v32  ;;  %v377_v30 = vld [vmem:[%s19385_s26 + $0x3d9] sm:$0xff] }
  0x47   : > { %16587 = vmatprep.mubr.msk.f32.mxu1 %vm433_vm0, %v14119_v31  ;;  %17363 = vmatprep.mubr.msk.f32.mxu0 %vm433_vm0, %v14121_v33  ;;  %v14362_v31 = vld [vmem:[%s19385_s26 + $0x92] sm:$0xff] }
  0x4a   : > { %16588 = vmatmul.mubr.msk.f32.gmra.mrb[26].mxu1 %vm433_vm0, %v14120_v32  ;;  %17364 = vmatmul.mubr.msk.f32.gmra.mrb[26].mxu0 %vm433_vm0, %v14122_v34  ;;  %v378_v32 = vld [vmem:[%s19385_s26 + $0x3e1] sm:$0xff] }
  0x4b   : > { %16590 = vmatprep.mubr.msk.f32.mxu1 %vm433_vm0, %v14121_v33  ;;  %17366 = vmatprep.mubr.msk.f32.mxu0 %vm433_vm0, %v14123_v35  ;;  %v14363_v33 = vld [vmem:[%s19385_s26 + $0x9a] sm:$0xff] }
  0x4e   : > { %16591 = vmatmul.mubr.msk.f32.gmra.mrb[28].mxu1 %vm433_vm0, %v14122_v34  ;;  %17367 = vmatmul.mubr.msk.f32.gmra.mrb[28].mxu0 %vm433_vm0, %v14124_v36  ;;  %v379_v34 = vld [vmem:[%s19385_s26 + $0x3f1] sm:$0xff] }
  0x4f   : > { %16593 = vmatprep.mubr.msk.f32.mxu1 %vm433_vm0, %v14123_v35  ;;  %17369 = vmatprep.mubr.msk.f32.mxu0 %vm433_vm0, %v14125_v37  ;;  %v14364_v35 = vld [vmem:[%s19385_s26 + $0xaa] sm:$0xff]  ;;  %v14365_v37 = vld [vmem:[%s19385_s26 + $0xb2] sm:$0xff] }
  0x52   : > { %16594 = vmatmul.mubr.msk.f32.gmra.mrb[30].mxu1 %vm433_vm0, %v14124_v36  ;;  %17370 = vmatmul.mubr.msk.f32.gmra.mrb[30].mxu0 %vm433_vm0, %v14126_v38  ;;  %v380_v36 = vld [vmem:[%s19385_s26 + $0x3f9] sm:$0xff]  ;;  %v381_v38 = vld [vmem:[%s19385_s26 + $0x409] sm:$0xff] }
  0x53   : > { %16596 = vmatprep.mubr.msk.f32.mxu1 %vm433_vm0, %v335_v39  ;;  %17372 = vmatprep.mubr.msk.f32.mxu0 %vm433_vm0, %v14127_v40  ;;  %v14366_v39 = vld [vmem:[%s19385_s26 + $0xc2] sm:$0xff] }
  0x56   : > { %16597 = vmatmul.mubr.msk.f32.gmra.mrb[32].mxu1 %vm433_vm0, %v336_v41  ;;  %17373 = vmatmul.mubr.msk.f32.gmra.mrb[32].mxu0 %vm433_vm0, %v14128_v42  ;;  %v14367_v41 = vld [vmem:[%s19385_s26 + $0xca] sm:$0xff] }
  0x57   : > { %16599 = vmatprep.mubr.msk.f32.mxu1 %vm433_vm0, %v14127_v40  ;;  %17375 = vmatprep.mubr.msk.f32.mxu0 %vm433_vm0, %v14129_v43  ;;  %v382_v40 = vld [vmem:[%s19385_s26 + $0x411] sm:$0xff] }
  0x5a   : > { %16600 = vmatmul.mubr.msk.f32.gmra.mrb[34].mxu1 %vm433_vm0, %v14128_v42  ;;  %17376 = vmatmul.mubr.msk.f32.gmra.mrb[34].mxu0 %vm433_vm0, %v14130_v44  ;;  %v383_v42 = vld [vmem:[%s19385_s26 + $0x421] sm:$0xff] }
  0x5b   : > { %16602 = vmatprep.mubr.msk.f32.mxu1 %vm433_vm0, %v14129_v43  ;;  %17378 = vmatprep.mubr.msk.f32.mxu0 %vm433_vm0, %v14131_v45  ;;  %v14368_v43 = vld [vmem:[%s19385_s26 + $0xda] sm:$0xff] }
  0x5e   : > { %16603 = vmatmul.mubr.msk.f32.gmra.mrb[36].mxu1 %vm433_vm0, %v14130_v44  ;;  %17379 = vmatmul.mubr.msk.f32.gmra.mrb[36].mxu0 %vm433_vm0, %v14132_v46  ;;  %v384_v44 = vld [vmem:[%s19385_s26 + $0x429] sm:$0xff] }
  0x5f   : > { %16605 = vmatprep.mubr.msk.f32.mxu1 %vm433_vm0, %v14131_v45  ;;  %17381 = vmatprep.mubr.msk.f32.mxu0 %vm433_vm0, %v14133_v47  ;;  %v14369_v45 = vld [vmem:[%s19385_s26 + $0xe2] sm:$0xff] }
  0x62   : > { %16606 = vmatmul.mubr.msk.f32.gmra.mrb[38].mxu1 %vm433_vm0, %v14132_v46  ;;  %17382 = vmatmul.mubr.msk.f32.gmra.mrb[38].mxu0 %vm433_vm0, %v14134_v48  ;;  %v385_v46 = vld [vmem:[%s19385_s26 + $0x439] sm:$0xff] }
  0x63   : > { %16608 = vmatprep.mubr.msk.f32.mxu1 %vm433_vm0, %v14133_v47  ;;  %17384 = vmatprep.mubr.msk.f32.mxu0 %vm433_vm0, %v14135_v49  ;;  %v14370_v47 = vld [vmem:[%s19385_s26 + $0xf2] sm:$0xff] }
  0x66   : > { %16609 = vmatmul.mubr.msk.f32.gmra.mrb[40].mxu1 %vm433_vm0, %v14134_v48  ;;  %17385 = vmatmul.mubr.msk.f32.gmra.mrb[40].mxu0 %vm433_vm0, %v14136_v50  ;;  %v386_v48 = vld [vmem:[%s19385_s26 + $0x441] sm:$0xff] }
  0x67   : > { %16611 = vmatprep.mubr.msk.f32.mxu1 %vm433_vm0, %v14135_v49  ;;  %17387 = vmatprep.mubr.msk.f32.mxu0 %vm433_vm0, %v14137_v51  ;;  %v14371_v49 = vld [vmem:[%s19385_s26 + $0xfa] sm:$0xff] }
  0x6a   : > { %16612 = vmatmul.mubr.msk.f32.gmra.mrb[42].mxu1 %vm433_vm0, %v14136_v50  ;;  %17388 = vmatmul.mubr.msk.f32.gmra.mrb[42].mxu0 %vm433_vm0, %v14138_v52  ;;  %v387_v50 = vld [vmem:[%s19385_s26 + $0x451] sm:$0xff] }
  0x6b   : > { %16614 = vmatprep.mubr.msk.f32.mxu1 %vm433_vm0, %v14137_v51  ;;  %17390 = vmatprep.mubr.msk.f32.mxu0 %vm433_vm0, %v14139_v53  ;;  %v14372_v51 = vld [vmem:[%s19385_s26 + $0x10a] sm:$0xff] }
  0x6e   : > { %16615 = vmatmul.mubr.msk.f32.gmra.mrb[44].mxu1 %vm433_vm0, %v14138_v52  ;;  %17391 = vmatmul.mubr.msk.f32.gmra.mrb[44].mxu0 %vm433_vm0, %v14140_v54  ;;  %v388_v52 = vld [vmem:[%s19385_s26 + $0x459] sm:$0xff] }
  0x6f   : > { %16617 = vmatprep.mubr.msk.f32.mxu1 %vm433_vm0, %v14139_v53  ;;  %17393 = vmatprep.mubr.msk.f32.mxu0 %vm433_vm0, %v14141_v55  ;;  %v14373_v53 = vld [vmem:[%s19385_s26 + $0x112] sm:$0xff] }
  0x72   : > { %16618 = vmatmul.mubr.msk.f32.gmra.mrb[46].mxu1 %vm433_vm0, %v14140_v54  ;;  %17394 = vmatmul.mubr.msk.f32.gmra.mrb[46].mxu0 %vm433_vm0, %v14142_v56  ;;  %v389_v54 = vld [vmem:[%s19385_s26 + $0x469] sm:$0xff] }
  0x73   : > { %16620 = vmatprep.mubr.msk.f32.mxu1 %vm433_vm0, %v14141_v55  ;;  %17396 = vmatprep.mubr.msk.f32.mxu0 %vm433_vm0, %v14143_v57  ;;  %v14374_v55 = vld [vmem:[%s19385_s26 + $0x122] sm:$0xff] }
  0x76   : > { %16621 = vmatmul.mubr.msk.f32.gmra.mrb[48].mxu1 %vm433_vm0, %v14142_v56  ;;  %17397 = vmatmul.mubr.msk.f32.gmra.mrb[48].mxu0 %vm433_vm0, %v14144_v58  ;;  %v390_v56 = vld [vmem:[%s19385_s26 + $0x471] sm:$0xff] }
  0x77   : > { %16623 = vmatprep.mubr.msk.f32.mxu1 %vm433_vm0, %v14143_v57  ;;  %17399 = vmatprep.mubr.msk.f32.mxu0 %vm433_vm0, %v14145_v59  ;;  %v14375_v57 = vld [vmem:[%s19385_s26 + $0x12a] sm:$0xff] }
  0x7a   : > { %16624 = vmatmul.mubr.msk.f32.gmra.mrb[50].mxu1 %vm433_vm0, %v14144_v58  ;;  %17400 = vmatmul.mubr.msk.f32.gmra.mrb[50].mxu0 %vm433_vm0, %v14146_v60  ;;  %v391_v58 = vld [vmem:[%s19385_s26 + $0x481] sm:$0xff] }
  0x7b   : > { %16626 = vmatprep.mubr.msk.f32.mxu1 %vm433_vm0, %v14145_v59  ;;  %17402 = vmatprep.mubr.msk.f32.mxu0 %vm433_vm0, %v14147_v61  ;;  %v14376_v59 = vld [vmem:[%s19385_s26 + $0x13a] sm:$0xff] }
  0x7e   : > { %16627 = vmatmul.mubr.msk.f32.gmra.mrb[52].mxu1 %vm433_vm0, %v14146_v60  ;;  %17403 = vmatmul.mubr.msk.f32.gmra.mrb[52].mxu0 %vm433_vm0, %v14148_v62  ;;  %v392_v60 = vld [vmem:[%s19385_s26 + $0x489] sm:$0xff] }
  0x7f   : > { %16629 = vmatprep.mubr.msk.f32.mxu1 %vm433_vm0, %v14147_v61  ;;  %17405 = vmatprep.mubr.msk.f32.mxu0 %vm433_vm0, %v14149_v63  ;;  %v14377_v61 = vld [vmem:[%s19385_s26 + $0x142] sm:$0xff] }
  0x82   : > { %16630 = vmatmul.mubr.msk.f32.gmra.mrb[54].mxu1 %vm433_vm0, %v14148_v62  ;;  %17406 = vmatmul.mubr.msk.f32.gmra.mrb[54].mxu0 %vm433_vm0, %v14150_v0  ;;  %v393_v62 = vld [vmem:[%s19385_s26 + $0x499] sm:$0xff] }
  0x83   : > { %16632 = vmatprep.mubr.msk.f32.mxu1 %vm433_vm0, %v14149_v63  ;;  %17408 = vmatprep.mubr.msk.f32.mxu0 %vm433_vm0, %v14151_v1  ;;  %v14378_v63 = vld [vmem:[%s19385_s26 + $0x152] sm:$0xff] }
  0x86   : > { %16633 = vmatmul.mubr.msk.f32.gmra.mrb[56].mxu1 %vm433_vm0, %v14150_v0  ;;  %17409 = vmatmul.mubr.msk.f32.gmra.mrb[56].mxu0 %vm433_vm0, %v14152_v2  ;;  %v394_v0 = vld [vmem:[%s19385_s26 + $0x4a1] sm:$0xff] }
  0x87   : > { %16635 = vmatprep.mubr.msk.f32.mxu1 %vm433_vm0, %v14151_v1  ;;  %17411 = vmatprep.mubr.msk.f32.mxu0 %vm433_vm0, %v14153_v3  ;;  %v14379_v1 = vld [vmem:[%s19385_s26 + $0x15a] sm:$0xff] }
  0x8a   : > { %16636 = vmatmul.mubr.msk.f32.gmra.mrb[58].mxu1 %vm433_vm0, %v14152_v2  ;;  %17412 = vmatmul.mubr.msk.f32.gmra.mrb[58].mxu0 %vm433_vm0, %v14154_v4  ;;  %v395_v2 = vld [vmem:[%s19385_s26 + $0x4b1] sm:$0xff] }
  0x8b   : > { %16638 = vmatprep.mubr.msk.f32.mxu1 %vm433_vm0, %v14153_v3  ;;  %17414 = vmatprep.mubr.msk.f32.mxu0 %vm433_vm0, %v14155_v5  ;;  %v14380_v3 = vld [vmem:[%s19385_s26 + $0x16a] sm:$0xff] }
  0x8e   : > { %16639 = vmatmul.mubr.msk.f32.gmra.mrb[60].mxu1 %vm433_vm0, %v14154_v4  ;;  %17415 = vmatmul.mubr.msk.f32.gmra.mrb[60].mxu0 %vm433_vm0, %v14156_v6  ;;  %v396_v4 = vld [vmem:[%s19385_s26 + $0x4b9] sm:$0xff] }
  0x8f   : > { %16641 = vmatprep.mubr.msk.f32.mxu1 %vm433_vm0, %v14155_v5  ;;  %17417 = vmatprep.mubr.msk.f32.mxu0 %vm433_vm0, %v14157_v7  ;;  %v14381_v5 = vld [vmem:[%s19385_s26 + $0x172] sm:$0xff]  ;;  %v14382_v7 = vld [vmem:[%s19385_s26 + $0x182] sm:$0xff] }
  0x92   : > { %16642 = vmatmul.mubr.msk.f32.gmra.mrb[62].mxu1 %vm433_vm0, %v14156_v6  ;;  %17418 = vmatmul.mubr.msk.f32.gmra.mrb[62].mxu0 %vm433_vm0, %v14158_v8  ;;  %v397_v6 = vld [vmem:[%s19385_s26 + $0x4c9] sm:$0xff]  ;;  %v398_v8 = vld [vmem:[%s19385_s26 + $0x4d1] sm:$0xff] }
  0x93   : > { %16644 = vmatprep.mubr.msk.f32.mxu1 %vm433_vm0, %v367_v10  ;;  %17518 = vmatprep.mubr.msk.f32.mxu0 %vm433_vm0, %v14352_v11  ;;  %v14383_v10 = vld [vmem:[%s19385_s26 + $0x18a] sm:$0xff] }
  0x94   : > { %v399_v11 = vld [vmem:[%s19385_s26 + $0x511] sm:$0xff] }
  0x96   : > { %16645 = vmatmul.mubr.msk.f32.gmra.mrb[64].mxu1 %vm433_vm0, %v368_v12  ;;  %17519 = vmatmul.mubr.msk.f32.vlgmr.msra.gmra.mrb[0].mxu0 %vm433_vm0, %v14353_v13  ;;  %v14384_v12 = vld [vmem:[%s19385_s26 + $0x1ca] sm:$0xff]  ;;  %v400_v13 = vld [vmem:[%s19385_s26 + $0x519] sm:$0xff] }
  0x97   : > { %17711 = vmatpush3.msra.mxu0 %v19399_v9  ;;  %16647 = vmatprep.mubr.msk.f32.mxu1 %vm433_vm0, %v369_v15  ;;  %v372_v9 = vld [vmem:[%s19385_s26 + $0x399] sm:$0xff] }
  0x98   : > { %17521 = vmatprep.mubr.msk.f32.mxu0 %vm433_vm0, %v14354_v16  ;;  %v14385_v15 = vld [vmem:[%s19385_s26 + $0x1d2] sm:$0xff]  ;;  %v401_v16 = vld [vmem:[%s19385_s26 + $0x529] sm:$0xff] }
  0x9a   : > { %16648 = vmatmul.mubr.msk.f32.gmra.mrb[66].mxu1 %vm433_vm0, %v370_v17  ;;  %17522 = vmatmul.mubr.msk.f32.gmra.mrb[2].mxu0 %vm433_vm0, %v14355_v18  ;;  %v14386_v17 = vld [vmem:[%s19385_s26 + $0x1e2] sm:$0xff]  ;;  %v402_v18 = vld [vmem:[%s19385_s26 + $0x531] sm:$0xff] }
  0x9b   : > { %16650 = vmatprep.mubr.msk.f32.mxu1 %vm433_vm0, %v371_v19  ;;  %17524 = vmatprep.mubr.msk.f32.mxu0 %vm433_vm0, %v14356_v20  ;;  %v14387_v19 = vld [vmem:[%s19385_s26 + $0x1ea] sm:$0xff]  ;;  %v403_v20 = vld [vmem:[%s19385_s26 + $0x541] sm:$0xff] }
  0x9e   : > { %16651 = vmatmul.mubr.msk.f32.gmra.mrb[68].mxu1 %vm433_vm0, %v372_v9  ;;  %17525 = vmatmul.mubr.msk.f32.gmra.mrb[4].mxu0 %vm433_vm0, %v14357_v21  ;;  %v14388_v9 = vld [vmem:[%s19385_s26 + $0x1fa] sm:$0xff]  ;;  %v404_v21 = vld [vmem:[%s19385_s26 + $0x549] sm:$0xff] }
  0x9f   : > { %16653 = vmatprep.mubr.msk.f32.mxu1 %vm433_vm0, %v373_v22  ;;  %17527 = vmatprep.mubr.msk.f32.mxu0 %vm433_vm0, %v14358_v23  ;;  %v14389_v22 = vld [vmem:[%s19385_s26 + $0x202] sm:$0xff]  ;;  %v405_v23 = vld [vmem:[%s19385_s26 + $0x559] sm:$0xff] }
  0xa2   : > { %16654 = vmatmul.mubr.msk.f32.gmra.mrb[70].mxu1 %vm433_vm0, %v374_v24  ;;  %17528 = vmatmul.mubr.msk.f32.gmra.mrb[6].mxu0 %vm433_vm0, %v14359_v25  ;;  %v14390_v24 = vld [vmem:[%s19385_s26 + $0x212] sm:$0xff]  ;;  %v406_v25 = vld [vmem:[%s19385_s26 + $0x561] sm:$0xff] }
  0xa3   : > { %16656 = vmatprep.mubr.msk.f32.mxu1 %vm433_vm0, %v375_v26  ;;  %17530 = vmatprep.mubr.msk.f32.mxu0 %vm433_vm0, %v14360_v27  ;;  %v14391_v26 = vld [vmem:[%s19385_s26 + $0x21a] sm:$0xff]  ;;  %v407_v27 = vld [vmem:[%s19385_s26 + $0x571] sm:$0xff] }
  0xa6   : > { %16657 = vmatmul.mubr.msk.f32.gmra.mrb[72].mxu1 %vm433_vm0, %v376_v28  ;;  %17531 = vmatmul.mubr.msk.f32.gmra.mrb[8].mxu0 %vm433_vm0, %v14361_v29  ;;  %v14392_v28 = vld [vmem:[%s19385_s26 + $0x22a] sm:$0xff]  ;;  %v408_v29 = vld [vmem:[%s19385_s26 + $0x579] sm:$0xff] }
  0xa7   : > { %16659 = vmatprep.mubr.msk.f32.mxu1 %vm433_vm0, %v377_v30  ;;  %17533 = vmatprep.mubr.msk.f32.mxu0 %vm433_vm0, %v14362_v31  ;;  %v14393_v30 = vld [vmem:[%s19385_s26 + $0x232] sm:$0xff]  ;;  %v409_v31 = vld [vmem:[%s19385_s26 + $0x589] sm:$0xff] }
  0xaa   : > { %16660 = vmatmul.mubr.msk.f32.gmra.mrb[74].mxu1 %vm433_vm0, %v378_v32  ;;  %17534 = vmatmul.mubr.msk.f32.gmra.mrb[10].mxu0 %vm433_vm0, %v14363_v33  ;;  %v14394_v32 = vld [vmem:[%s19385_s26 + $0x242] sm:$0xff]  ;;  %v410_v33 = vld [vmem:[%s19385_s26 + $0x591] sm:$0xff] }
  0xab   : > { %16662 = vmatprep.mubr.msk.f32.mxu1 %vm433_vm0, %v379_v34  ;;  %17536 = vmatprep.mubr.msk.f32.mxu0 %vm433_vm0, %v14364_v35  ;;  %v14395_v34 = vld [vmem:[%s19385_s26 + $0x24a] sm:$0xff]  ;;  %v411_v35 = vld [vmem:[%s19385_s26 + $0x5a1] sm:$0xff] }
  0xae   : > { %16663 = vmatmul.mubr.msk.f32.gmra.mrb[76].mxu1 %vm433_vm0, %v380_v36  ;;  %17537 = vmatmul.mubr.msk.f32.gmra.mrb[12].mxu0 %vm433_vm0, %v14365_v37  ;;  %v14396_v36 = vld [vmem:[%s19385_s26 + $0x25a] sm:$0xff]  ;;  %v412_v37 = vld [vmem:[%s19385_s26 + $0x5a9] sm:$0xff] }
  0xaf   : > { %16665 = vmatprep.mubr.msk.f32.mxu1 %vm433_vm0, %v381_v38  ;;  %17539 = vmatprep.mubr.msk.f32.mxu0 %vm433_vm0, %v14366_v39  ;;  %v14397_v38 = vld [vmem:[%s19385_s26 + $0x262] sm:$0xff]  ;;  %v413_v39 = vld [vmem:[%s19385_s26 + $0x5b9] sm:$0xff] }
  0xb2   : > { %16666 = vmatmul.mubr.msk.f32.gmra.mrb[78].mxu1 %vm433_vm0, %v382_v40  ;;  %17540 = vmatmul.mubr.msk.f32.gmra.mrb[14].mxu0 %vm433_vm0, %v14367_v41  ;;  %v14398_v40 = vld [vmem:[%s19385_s26 + $0x272] sm:$0xff]  ;;  %v414_v41 = vld [vmem:[%s19385_s26 + $0x5c1] sm:$0xff] }
  0xb3   : > { %16668 = vmatprep.mubr.msk.f32.mxu1 %vm433_vm0, %v383_v42  ;;  %17542 = vmatprep.mubr.msk.f32.mxu0 %vm433_vm0, %v14368_v43  ;;  %v14399_v42 = vld [vmem:[%s19385_s26 + $0x27a] sm:$0xff]  ;;  %v415_v43 = vld [vmem:[%s19385_s26 + $0x5d1] sm:$0xff] }
  0xb6   : > { %16669 = vmatmul.mubr.msk.f32.gmra.mrb[80].mxu1 %vm433_vm0, %v384_v44  ;;  %17543 = vmatmul.mubr.msk.f32.gmra.mrb[16].mxu0 %vm433_vm0, %v14369_v45  ;;  %v14400_v44 = vld [vmem:[%s19385_s26 + $0x28a] sm:$0xff]  ;;  %v416_v45 = vld [vmem:[%s19385_s26 + $0x5d9] sm:$0xff] }
  0xb7   : > { %16671 = vmatprep.mubr.msk.f32.mxu1 %vm433_vm0, %v385_v46  ;;  %17545 = vmatprep.mubr.msk.f32.mxu0 %vm433_vm0, %v14370_v47  ;;  %v14401_v46 = vld [vmem:[%s19385_s26 + $0x292] sm:$0xff]  ;;  %v417_v47 = vld [vmem:[%s19385_s26 + $0x5e9] sm:$0xff] }
  0xba   : > { %16672 = vmatmul.mubr.msk.f32.gmra.mrb[82].mxu1 %vm433_vm0, %v386_v48  ;;  %17546 = vmatmul.mubr.msk.f32.gmra.mrb[18].mxu0 %vm433_vm0, %v14371_v49  ;;  %v14402_v48 = vld [vmem:[%s19385_s26 + $0x2a2] sm:$0xff]  ;;  %v418_v49 = vld [vmem:[%s19385_s26 + $0x5f1] sm:$0xff] }
  0xbb   : > { %16674 = vmatprep.mubr.msk.f32.mxu1 %vm433_vm0, %v387_v50  ;;  %17548 = vmatprep.mubr.msk.f32.mxu0 %vm433_vm0, %v14372_v51  ;;  %v14403_v50 = vld [vmem:[%s19385_s26 + $0x2aa] sm:$0xff]  ;;  %v419_v51 = vld [vmem:[%s19385_s26 + $0x601] sm:$0xff] }
  0xbe   : > { %16675 = vmatmul.mubr.msk.f32.gmra.mrb[84].mxu1 %vm433_vm0, %v388_v52  ;;  %17549 = vmatmul.mubr.msk.f32.gmra.mrb[20].mxu0 %vm433_vm0, %v14373_v53  ;;  %v14404_v52 = vld [vmem:[%s19385_s26 + $0x2ba] sm:$0xff]  ;;  %v420_v53 = vld [vmem:[%s19385_s26 + $0x609] sm:$0xff] }
  0xbf   : > { %16677 = vmatprep.mubr.msk.f32.mxu1 %vm433_vm0, %v389_v54  ;;  %17551 = vmatprep.mubr.msk.f32.mxu0 %vm433_vm0, %v14374_v55  ;;  %v14405_v54 = vld [vmem:[%s19385_s26 + $0x2c2] sm:$0xff]  ;;  %v421_v55 = vld [vmem:[%s19385_s26 + $0x619] sm:$0xff] }
  0xc2   : > { %16678 = vmatmul.mubr.msk.f32.gmra.mrb[86].mxu1 %vm433_vm0, %v390_v56  ;;  %17552 = vmatmul.mubr.msk.f32.gmra.mrb[22].mxu0 %vm433_vm0, %v14375_v57  ;;  %v14406_v56 = vld [vmem:[%s19385_s26 + $0x2d2] sm:$0xff]  ;;  %v422_v57 = vld [vmem:[%s19385_s26 + $0x621] sm:$0xff] }
  0xc3   : > { %16680 = vmatprep.mubr.msk.f32.mxu1 %vm433_vm0, %v391_v58  ;;  %17554 = vmatprep.mubr.msk.f32.mxu0 %vm433_vm0, %v14376_v59  ;;  %v14407_v58 = vld [vmem:[%s19385_s26 + $0x2da] sm:$0xff]  ;;  %v423_v59 = vld [vmem:[%s19385_s26 + $0x631] sm:$0xff] }
  0xc6   : > { %16681 = vmatmul.mubr.msk.f32.gmra.mrb[88].mxu1 %vm433_vm0, %v392_v60  ;;  %17555 = vmatmul.mubr.msk.f32.gmra.mrb[24].mxu0 %vm433_vm0, %v14377_v61  ;;  %v14408_v60 = vld [vmem:[%s19385_s26 + $0x2ea] sm:$0xff]  ;;  %v424_v61 = vld [vmem:[%s19385_s26 + $0x639] sm:$0xff] }
  0xc7   : > { %16683 = vmatprep.mubr.msk.f32.mxu1 %vm433_vm0, %v393_v62  ;;  %17557 = vmatprep.mubr.msk.f32.mxu0 %vm433_vm0, %v14378_v63  ;;  %v14409_v62 = vld [vmem:[%s19385_s26 + $0x2f2] sm:$0xff]  ;;  %v425_v63 = vld [vmem:[%s19385_s26 + $0x649] sm:$0xff] }
  0xca   : > { %16684 = vmatmul.mubr.msk.f32.gmra.mrb[90].mxu1 %vm433_vm0, %v394_v0  ;;  %17558 = vmatmul.mubr.msk.f32.gmra.mrb[26].mxu0 %vm433_vm0, %v14379_v1  ;;  %v14410_v0 = vld [vmem:[%s19385_s26 + $0x302] sm:$0xff]  ;;  %v426_v1 = vld [vmem:[%s19385_s26 + $0x651] sm:$0xff] }
  0xcb   : > { %16686 = vmatprep.mubr.msk.f32.mxu1 %vm433_vm0, %v395_v2  ;;  %17560 = vmatprep.mubr.msk.f32.mxu0 %vm433_vm0, %v14380_v3  ;;  %v14411_v2 = vld [vmem:[%s19385_s26 + $0x30a] sm:$0xff]  ;;  %v427_v3 = vld [vmem:[%s19385_s26 + $0x661] sm:$0xff] }
  0xce   : > { %16687 = vmatmul.mubr.msk.f32.gmra.mrb[92].mxu1 %vm433_vm0, %v396_v4  ;;  %17561 = vmatmul.mubr.msk.f32.gmra.mrb[28].mxu0 %vm433_vm0, %v14381_v5  ;;  %v14412_v4 = vld [vmem:[%s19385_s26 + $0x31a] sm:$0xff]  ;;  %v428_v5 = vld [vmem:[%s19385_s26 + $0x669] sm:$0xff] }
  0xcf   : > { %16689 = vmatprep.mubr.msk.f32.mxu1 %vm433_vm0, %v397_v6  ;;  %17563 = vmatprep.mubr.msk.f32.mxu0 %vm433_vm0, %v14382_v7  ;;  %v14413_v6 = vld [vmem:[%s19385_s26 + $0x322] sm:$0xff]  ;;  %v429_v7 = vld [vmem:[%s19385_s26 + $0x679] sm:$0xff] }
  0xd2   : > { %16690 = vmatmul.mubr.msk.f32.gmra.mrb[94].mxu1 %vm433_vm0, %v398_v8  ;;  %17564 = vmatmul.mubr.msk.f32.gmra.mrb[30].mxu0 %vm433_vm0, %v14383_v10  ;;  %v14414_v8 = vld [vmem:[%s19385_s26 + $0x332] sm:$0xff]  ;;  %v430_v10 = vld [vmem:[%s19385_s26 + $0x681] sm:$0xff] }
  0xd3   : > { %16692 = vmatprep.mubr.msk.f32.mxu1 %vm433_vm0, %v399_v11  ;;  %17566 = vmatprep.mubr.msk.f32.mxu0 %vm433_vm0, %v14384_v12  ;;  %v14415_v11 = vld [vmem:[%s19385_s26 + $0x33a] sm:$0xff] }
  0xd4   : > { %v174_v12 = vld [vmem:[%s19385_s26] sm:$0xff] }
  0xd6   : > { %16693 = vmatmul.mubr.msk.f32.gmra.mrb[96].mxu1 %vm433_vm0, %v400_v13  ;;  %17567 = vmatmul.mubr.msk.f32.gmra.mrb[32].mxu0 %vm433_vm0, %v14385_v15  ;;  %v14416_v13 = vld [vmem:[%s19385_s26 + $0x37a] sm:$0xff]  ;;  %v175_v15 = vld [vmem:[%s19385_s26 + $0x8] sm:$0xff] }
  0xd7   : > { %16695 = vmatprep.mubr.msk.f32.mxu1 %vm433_vm0, %v401_v16  ;;  %17569 = vmatprep.mubr.msk.f32.mxu0 %vm433_vm0, %v14386_v17  ;;  %v14417_v16 = vld [vmem:[%s19385_s26 + $0x382] sm:$0xff]  ;;  %v19861_v17 = vld [vmem:[%s25126_s1 + $0x38] sm:$0xff] }
  0xd8   : > { %17904 = vmatprep.subr.mxu0 %v19861_v17 }
  0xda   : > { %16696 = vmatmul.mubr.msk.f32.gmra.mrb[98].mxu1 %vm433_vm0, %v402_v18  ;;  %17570 = vmatmul.mubr.msk.f32.gmra.mrb[34].mxu0 %vm433_vm0, %v14387_v19  ;;  %v176_v18 = vld [vmem:[%s19385_s26 + $0x18] sm:$0xff] }
  0xdb   : > { %16698 = vmatprep.mubr.msk.f32.mxu1 %vm433_vm0, %v403_v20  ;;  %17572 = vmatprep.mubr.msk.f32.mxu0 %vm433_vm0, %v14388_v9  ;;  %v14418_v19 = vld [vmem:[%s19385_s26 + $0x392] sm:$0xff]  ;;  %v177_v20 = vld [vmem:[%s19385_s26 + $0x20] sm:$0xff] }
  0xdc   : > { %v14419_v9 = vld [vmem:[%s19385_s26 + $0x39a] sm:$0xff] }
  0xde   : > { %16699 = vmatmul.mubr.msk.f32.gmra.mrb[100].mxu1 %vm433_vm0, %v404_v21  ;;  %17573 = vmatmul.mubr.msk.f32.gmra.mrb[36].mxu0 %vm433_vm0, %v14389_v22  ;;  %v19874_v21 = vld [vmem:[%s19385_s26 + $0x30] sm:$0xff] }
  0xdf   : > { %16701 = vmatprep.mubr.msk.f32.mxu1 %vm433_vm0, %v405_v23  ;;  %17575 = vmatprep.mubr.msk.f32.mxu0 %vm433_vm0, %v14390_v24  ;;  %v14420_v22 = vld [vmem:[%s19385_s26 + $0x3aa] sm:$0xff]  ;;  %v14421_v23 = vld [vmem:[%s19385_s26 + $0x3b2] sm:$0xff] }
  0xe0   : > { %v19887_v24 = vld [vmem:[%s19385_s26 + $0x48] sm:$0xff] }
  0xe2   : > { %16702 = vmatmul.mubr.msk.f32.gmra.mrb[102].mxu1 %vm433_vm0, %v406_v25  ;;  %17576 = vmatmul.mubr.msk.f32.gmra.mrb[38].mxu0 %vm433_vm0, %v14391_v26  ;;  %v14422_v25 = vld [vmem:[%s19385_s26 + $0x3c2] sm:$0xff]  ;;  %v19897_v26 = vld [vmem:[%s19385_s26 + $0x50] sm:$0xff] }
  0xe3   : > { %16704 = vmatprep.mubr.msk.f32.mxu1 %vm433_vm0, %v407_v27  ;;  %17578 = vmatprep.mubr.msk.f32.mxu0 %vm433_vm0, %v14392_v28  ;;  %v14423_v27 = vld [vmem:[%s19385_s26 + $0x3ca] sm:$0xff]  ;;  %v19901_v28 = vld [vmem:[%s19385_s26 + $0x60] sm:$0xff] }
  0xe6   : > { %16705 = vmatmul.mubr.msk.f32.gmra.mrb[104].mxu1 %vm433_vm0, %v408_v29  ;;  %17579 = vmatmul.mubr.msk.f32.gmra.mrb[40].mxu0 %vm433_vm0, %v14393_v30  ;;  %v14424_v29 = vld [vmem:[%s19385_s26 + $0x3da] sm:$0xff]  ;;  %v19911_v30 = vld [vmem:[%s19385_s26 + $0x68] sm:$0xff] }
  0xe7   : > { %16707 = vmatprep.mubr.msk.f32.mxu1 %vm433_vm0, %v409_v31  ;;  %17581 = vmatprep.mubr.msk.f32.mxu0 %vm433_vm0, %v14394_v32  ;;  %v14425_v31 = vld [vmem:[%s19385_s26 + $0x3e2] sm:$0xff]  ;;  %v19915_v32 = vld [vmem:[%s19385_s26 + $0x78] sm:$0xff] }
  0xea   : > { %16708 = vmatmul.mubr.msk.f32.gmra.mrb[106].mxu1 %vm433_vm0, %v410_v33  ;;  %17582 = vmatmul.mubr.msk.f32.gmra.mrb[42].mxu0 %vm433_vm0, %v14395_v34  ;;  %v14426_v33 = vld [vmem:[%s19385_s26 + $0x3f2] sm:$0xff]  ;;  %v19925_v34 = vld [vmem:[%s19385_s26 + $0x80] sm:$0xff] }
  0xeb   : > { %16710 = vmatprep.mubr.msk.f32.mxu1 %vm433_vm0, %v411_v35  ;;  %17584 = vmatprep.mubr.msk.f32.mxu0 %vm433_vm0, %v14396_v36  ;;  %v14427_v35 = vld [vmem:[%s19385_s26 + $0x3fa] sm:$0xff]  ;;  %v19929_v36 = vld [vmem:[%s19385_s26 + $0x90] sm:$0xff] }
  0xee   : > { %16711 = vmatmul.mubr.msk.f32.gmra.mrb[108].mxu1 %vm433_vm0, %v412_v37  ;;  %17585 = vmatmul.mubr.msk.f32.gmra.mrb[44].mxu0 %vm433_vm0, %v14397_v38  ;;  %v14428_v37 = vld [vmem:[%s19385_s26 + $0x40a] sm:$0xff]  ;;  %v19939_v38 = vld [vmem:[%s19385_s26 + $0x98] sm:$0xff] }
  0xef   : > { %16713 = vmatprep.mubr.msk.f32.mxu1 %vm433_vm0, %v413_v39  ;;  %17587 = vmatprep.mubr.msk.f32.mxu0 %vm433_vm0, %v14398_v40  ;;  %v14429_v39 = vld [vmem:[%s19385_s26 + $0x412] sm:$0xff]  ;;  %v19943_v40 = vld [vmem:[%s19385_s26 + $0xa8] sm:$0xff] }
  0xf2   : > { %16714 = vmatmul.mubr.msk.f32.gmra.mrb[110].mxu1 %vm433_vm0, %v414_v41  ;;  %17588 = vmatmul.mubr.msk.f32.gmra.mrb[46].mxu0 %vm433_vm0, %v14399_v42  ;;  %v14430_v41 = vld [vmem:[%s19385_s26 + $0x422] sm:$0xff]  ;;  %v19953_v42 = vld [vmem:[%s19385_s26 + $0xb0] sm:$0xff] }
  0xf3   : > { %16716 = vmatprep.mubr.msk.f32.mxu1 %vm433_vm0, %v415_v43  ;;  %17590 = vmatprep.mubr.msk.f32.mxu0 %vm433_vm0, %v14400_v44  ;;  %v14431_v43 = vld [vmem:[%s19385_s26 + $0x42a] sm:$0xff]  ;;  %v19957_v44 = vld [vmem:[%s19385_s26 + $0xc0] sm:$0xff] }
  0xf6   : > { %16717 = vmatmul.mubr.msk.f32.gmra.mrb[112].mxu1 %vm433_vm0, %v416_v45  ;;  %17591 = vmatmul.mubr.msk.f32.gmra.mrb[48].mxu0 %vm433_vm0, %v14401_v46  ;;  %v14432_v45 = vld [vmem:[%s19385_s26 + $0x43a] sm:$0xff]  ;;  %v19967_v46 = vld [vmem:[%s19385_s26 + $0xc8] sm:$0xff] }
  0xf7   : > { %16719 = vmatprep.mubr.msk.f32.mxu1 %vm433_vm0, %v417_v47  ;;  %17593 = vmatprep.mubr.msk.f32.mxu0 %vm433_vm0, %v14402_v48  ;;  %v14433_v47 = vld [vmem:[%s19385_s26 + $0x442] sm:$0xff]  ;;  %v19971_v48 = vld [vmem:[%s19385_s26 + $0xd8] sm:$0xff] }
  0xfa   : > { %16720 = vmatmul.mubr.msk.f32.gmra.mrb[114].mxu1 %vm433_vm0, %v418_v49  ;;  %17594 = vmatmul.mubr.msk.f32.gmra.mrb[50].mxu0 %vm433_vm0, %v14403_v50  ;;  %v14434_v49 = vld [vmem:[%s19385_s26 + $0x452] sm:$0xff]  ;;  %v19981_v50 = vld [vmem:[%s19385_s26 + $0xe0] sm:$0xff] }
  0xfb   : > { %16722 = vmatprep.mubr.msk.f32.mxu1 %vm433_vm0, %v419_v51  ;;  %17596 = vmatprep.mubr.msk.f32.mxu0 %vm433_vm0, %v14404_v52  ;;  %v14435_v51 = vld [vmem:[%s19385_s26 + $0x45a] sm:$0xff]  ;;  %v19985_v52 = vld [vmem:[%s19385_s26 + $0xf0] sm:$0xff] }
  0xfe   : > { %16723 = vmatmul.mubr.msk.f32.gmra.mrb[116].mxu1 %vm433_vm0, %v420_v53  ;;  %17597 = vmatmul.mubr.msk.f32.gmra.mrb[52].mxu0 %vm433_vm0, %v14405_v54  ;;  %v14436_v53 = vld [vmem:[%s19385_s26 + $0x46a] sm:$0xff]  ;;  %v19995_v54 = vld [vmem:[%s19385_s26 + $0xf8] sm:$0xff] }
  0xff   : > { %16725 = vmatprep.mubr.msk.f32.mxu1 %vm433_vm0, %v421_v55  ;;  %17599 = vmatprep.mubr.msk.f32.mxu0 %vm433_vm0, %v14406_v56  ;;  %v14437_v55 = vld [vmem:[%s19385_s26 + $0x472] sm:$0xff]  ;;  %v19999_v56 = vld [vmem:[%s19385_s26 + $0x108] sm:$0xff] }
 0x102   : > { %16726 = vmatmul.mubr.msk.f32.gmra.mrb[118].mxu1 %vm433_vm0, %v422_v57  ;;  %17600 = vmatmul.mubr.msk.f32.gmra.mrb[54].mxu0 %vm433_vm0, %v14407_v58  ;;  %v14438_v57 = vld [vmem:[%s19385_s26 + $0x482] sm:$0xff]  ;;  %v20009_v58 = vld [vmem:[%s19385_s26 + $0x110] sm:$0xff] }
 0x103   : > { %16728 = vmatprep.mubr.msk.f32.mxu1 %vm433_vm0, %v423_v59  ;;  %17602 = vmatprep.mubr.msk.f32.mxu0 %vm433_vm0, %v14408_v60  ;;  %v14439_v59 = vld [vmem:[%s19385_s26 + $0x48a] sm:$0xff]  ;;  %v20013_v60 = vld [vmem:[%s19385_s26 + $0x120] sm:$0xff] }
 0x106   : > { %16729 = vmatmul.mubr.msk.f32.gmra.mrb[120].mxu1 %vm433_vm0, %v424_v61  ;;  %17603 = vmatmul.mubr.msk.f32.gmra.mrb[56].mxu0 %vm433_vm0, %v14409_v62  ;;  %v14440_v61 = vld [vmem:[%s19385_s26 + $0x49a] sm:$0xff]  ;;  %v20023_v62 = vld [vmem:[%s19385_s26 + $0x128] sm:$0xff] }
 0x107   : > { %16731 = vmatprep.mubr.msk.f32.mxu1 %vm433_vm0, %v425_v63  ;;  %17605 = vmatprep.mubr.msk.f32.mxu0 %vm433_vm0, %v14410_v0  ;;  %v14441_v63 = vld [vmem:[%s19385_s26 + $0x4a2] sm:$0xff]  ;;  %v20027_v0 = vld [vmem:[%s19385_s26 + $0x138] sm:$0xff] }
 0x10a   : > { %16732 = vmatmul.mubr.msk.f32.gmra.mrb[122].mxu1 %vm433_vm0, %v426_v1  ;;  %17606 = vmatmul.mubr.msk.f32.gmra.mrb[58].mxu0 %vm433_vm0, %v14411_v2  ;;  %v14442_v1 = vld [vmem:[%s19385_s26 + $0x4b2] sm:$0xff]  ;;  %v20037_v2 = vld [vmem:[%s19385_s26 + $0x140] sm:$0xff] }
 0x10b   : > { %16734 = vmatprep.mubr.msk.f32.mxu1 %vm433_vm0, %v427_v3  ;;  %17608 = vmatprep.mubr.msk.f32.mxu0 %vm433_vm0, %v14412_v4  ;;  %v14443_v3 = vld [vmem:[%s19385_s26 + $0x4ba] sm:$0xff]  ;;  %v20041_v4 = vld [vmem:[%s19385_s26 + $0x150] sm:$0xff] }
 0x10e   : > { %16735 = vmatmul.mubr.msk.f32.gmra.mrb[124].mxu1 %vm433_vm0, %v428_v5  ;;  %17609 = vmatmul.mubr.msk.f32.gmra.mrb[60].mxu0 %vm433_vm0, %v14413_v6  ;;  %v14444_v5 = vld [vmem:[%s19385_s26 + $0x4ca] sm:$0xff]  ;;  %v20051_v6 = vld [vmem:[%s19385_s26 + $0x158] sm:$0xff] }
 0x10f   : > { %16737 = vmatprep.mubr.msk.f32.mxu1 %vm433_vm0, %v429_v7  ;;  %17611 = vmatprep.mubr.msk.f32.mxu0 %vm433_vm0, %v14414_v8  ;;  %v14445_v7 = vld [vmem:[%s19385_s26 + $0x4d2] sm:$0xff]  ;;  %v20055_v8 = vld [vmem:[%s19385_s26 + $0x168] sm:$0xff] }
 0x112   : > { %16738 = vmatmul.mubr.msk.f32.gmra.mrb[126].mxu1 %vm433_vm0, %v430_v10  ;;  %17612 = vmatmul.mubr.msk.f32.gmra.mrb[62].mxu0 %vm433_vm0, %v14415_v11  ;;  %v14446_v10 = vld [vmem:[%s19385_s26 + $0x4e2] sm:$0xff]  ;;  %v20065_v11 = vld [vmem:[%s19385_s26 + $0x170] sm:$0xff] }
 0x113   : > { %16742 = vmatprep.mubr.msk.f32.mxu1 %vm433_vm0, %v174_v12  ;;  %17614 = vmatprep.mubr.msk.f32.mxu0 %vm433_vm0, %v14416_v13  ;;  %v14447_v12 = vld [vmem:[%s19385_s26 + $0x4ea] sm:$0xff] }
 0x114   : > { %v206_v13 = vld [vmem:[%s19385_s26 + $0x1b0] sm:$0xff] }
 0x116   : > { %16743 = vmatmul.mubr.msk.f32.vlgmr.msra.gmra.mrb[0].mxu1 %vm433_vm0, %v175_v15  ;;  %17615 = vmatmul.mubr.msk.f32.gmra.mrb[64].mxu0 %vm433_vm0, %v14417_v16  ;;  %v14448_v15 = vld [vmem:[%s19385_s26 + $0x52a] sm:$0xff]  ;;  %v207_v16 = vld [vmem:[%s19385_s26 + $0x1b8] sm:$0xff] }
 0x117   : > { %16935 = vmatpush3.msra.mxu1 %v19598_v14  ;;  %16745 = vmatprep.mubr.msk.f32.mxu1 %vm433_vm0, %v176_v18  ;;  %v19883_v14 = vld [vmem:[%s19385_s26 + $0x38] sm:$0xff] }
 0x118   : > { %17617 = vmatprep.mubr.msk.f32.mxu0 %vm433_vm0, %v14418_v19  ;;  %v14449_v18 = vld [vmem:[%s19385_s26 + $0x532] sm:$0xff]  ;;  %v208_v19 = vld [vmem:[%s19385_s26 + $0x1c8] sm:$0xff] }
 0x11a   : > { %16746 = vmatmul.mubr.msk.f32.gmra.mrb[2].mxu1 %vm433_vm0, %v177_v20  ;;  %17618 = vmatmul.mubr.msk.f32.gmra.mrb[66].mxu0 %vm433_vm0, %v14419_v9  ;;  %v14450_v20 = vld [vmem:[%s19385_s26 + $0x542] sm:$0xff]  ;;  %v209_v9 = vld [vmem:[%s19385_s26 + $0x1d0] sm:$0xff] }
 0x11b   : > { %16748 = vmatprep.mubr.msk.f32.mxu1 %vm433_vm0, %v19874_v21  ;;  %17620 = vmatprep.mubr.msk.f32.mxu0 %vm433_vm0, %v14420_v22  ;;  %v14451_v22 = vld [vmem:[%s19385_s26 + $0x54a] sm:$0xff] }
 0x11e   : > { %16749 = vmatmul.mubr.msk.f32.gmra.mrb[4].mxu1 %vm433_vm0, %v19883_v14  ;;  %17621 = vmatmul.mubr.msk.f32.gmra.mrb[68].mxu0 %vm433_vm0, %v14421_v23  ;;  %v20086_v23 = vld [vmem:[%s19385_s26 + $0x1e0] sm:$0xff] }
 0x11f   : > { %16751 = vmatprep.mubr.msk.f32.mxu1 %vm433_vm0, %v19887_v24  ;;  %17623 = vmatprep.mubr.msk.f32.mxu0 %vm433_vm0, %v14422_v25  ;;  %v14452_v25 = vld [vmem:[%s19385_s26 + $0x55a] sm:$0xff] }
 0x122   : > { %16752 = vmatmul.mubr.msk.f32.gmra.mrb[6].mxu1 %vm433_vm0, %v19897_v26  ;;  %17624 = vmatmul.mubr.msk.f32.gmra.mrb[70].mxu0 %vm433_vm0, %v14423_v27  ;;  %v20095_v27 = vld [vmem:[%s19385_s26 + $0x1e8] sm:$0xff] }
 0x123   : > { %16754 = vmatprep.mubr.msk.f32.mxu1 %vm433_vm0, %v19901_v28  ;;  %17626 = vmatprep.mubr.msk.f32.mxu0 %vm433_vm0, %v14424_v29  ;;  %v14453_v29 = vld [vmem:[%s19385_s26 + $0x562] sm:$0xff] }
 0x126   : > { %16755 = vmatmul.mubr.msk.f32.gmra.mrb[8].mxu1 %vm433_vm0, %v19911_v30  ;;  %17627 = vmatmul.mubr.msk.f32.gmra.mrb[72].mxu0 %vm433_vm0, %v14425_v31  ;;  %v20099_v31 = vld [vmem:[%s19385_s26 + $0x1f8] sm:$0xff] }
 0x127   : > { %16757 = vmatprep.mubr.msk.f32.mxu1 %vm433_vm0, %v19915_v32  ;;  %17629 = vmatprep.mubr.msk.f32.mxu0 %vm433_vm0, %v14426_v33  ;;  %v14454_v33 = vld [vmem:[%s19385_s26 + $0x572] sm:$0xff] }
 0x12a   : > { %16758 = vmatmul.mubr.msk.f32.gmra.mrb[10].mxu1 %vm433_vm0, %v19925_v34  ;;  %17630 = vmatmul.mubr.msk.f32.gmra.mrb[74].mxu0 %vm433_vm0, %v14427_v35  ;;  %v20109_v35 = vld [vmem:[%s19385_s26 + $0x200] sm:$0xff] }
 0x12b   : > { %16760 = vmatprep.mubr.msk.f32.mxu1 %vm433_vm0, %v19929_v36  ;;  %17632 = vmatprep.mubr.msk.f32.mxu0 %vm433_vm0, %v14428_v37  ;;  %v14455_v37 = vld [vmem:[%s19385_s26 + $0x57a] sm:$0xff] }
 0x12e   : > { %16761 = vmatmul.mubr.msk.f32.gmra.mrb[12].mxu1 %vm433_vm0, %v19939_v38  ;;  %17633 = vmatmul.mubr.msk.f32.gmra.mrb[76].mxu0 %vm433_vm0, %v14429_v39  ;;  %v20113_v39 = vld [vmem:[%s19385_s26 + $0x210] sm:$0xff] }
 0x12f   : > { %16763 = vmatprep.mubr.msk.f32.mxu1 %vm433_vm0, %v19943_v40  ;;  %17635 = vmatprep.mubr.msk.f32.mxu0 %vm433_vm0, %v14430_v41  ;;  %v14456_v41 = vld [vmem:[%s19385_s26 + $0x58a] sm:$0xff] }
 0x132   : > { %16764 = vmatmul.mubr.msk.f32.gmra.mrb[14].mxu1 %vm433_vm0, %v19953_v42  ;;  %17636 = vmatmul.mubr.msk.f32.gmra.mrb[78].mxu0 %vm433_vm0, %v14431_v43  ;;  %v20123_v43 = vld [vmem:[%s19385_s26 + $0x218] sm:$0xff] }
 0x133   : > { %16766 = vmatprep.mubr.msk.f32.mxu1 %vm433_vm0, %v19957_v44  ;;  %17638 = vmatprep.mubr.msk.f32.mxu0 %vm433_vm0, %v14432_v45  ;;  %v14457_v45 = vld [vmem:[%s19385_s26 + $0x592] sm:$0xff] }
 0x136   : > { %16767 = vmatmul.mubr.msk.f32.gmra.mrb[16].mxu1 %vm433_vm0, %v19967_v46  ;;  %17639 = vmatmul.mubr.msk.f32.gmra.mrb[80].mxu0 %vm433_vm0, %v14433_v47  ;;  %v20127_v47 = vld [vmem:[%s19385_s26 + $0x228] sm:$0xff] }
 0x137   : > { %16769 = vmatprep.mubr.msk.f32.mxu1 %vm433_vm0, %v19971_v48  ;;  %17641 = vmatprep.mubr.msk.f32.mxu0 %vm433_vm0, %v14434_v49  ;;  %v14458_v49 = vld [vmem:[%s19385_s26 + $0x5a2] sm:$0xff] }
 0x13a   : > { %16770 = vmatmul.mubr.msk.f32.gmra.mrb[18].mxu1 %vm433_vm0, %v19981_v50  ;;  %17642 = vmatmul.mubr.msk.f32.gmra.mrb[82].mxu0 %vm433_vm0, %v14435_v51  ;;  %v20137_v51 = vld [vmem:[%s19385_s26 + $0x230] sm:$0xff] }
 0x13b   : > { %16772 = vmatprep.mubr.msk.f32.mxu1 %vm433_vm0, %v19985_v52  ;;  %17644 = vmatprep.mubr.msk.f32.mxu0 %vm433_vm0, %v14436_v53  ;;  %v14459_v53 = vld [vmem:[%s19385_s26 + $0x5aa] sm:$0xff] }
 0x13e   : > { %16773 = vmatmul.mubr.msk.f32.gmra.mrb[20].mxu1 %vm433_vm0, %v19995_v54  ;;  %17645 = vmatmul.mubr.msk.f32.gmra.mrb[84].mxu0 %vm433_vm0, %v14437_v55  ;;  %v20141_v55 = vld [vmem:[%s19385_s26 + $0x240] sm:$0xff] }
 0x13f   : > { %16775 = vmatprep.mubr.msk.f32.mxu1 %vm433_vm0, %v19999_v56  ;;  %17647 = vmatprep.mubr.msk.f32.mxu0 %vm433_vm0, %v14438_v57  ;;  %v14460_v57 = vld [vmem:[%s19385_s26 + $0x5ba] sm:$0xff] }
 0x142   : > { %16776 = vmatmul.mubr.msk.f32.gmra.mrb[22].mxu1 %vm433_vm0, %v20009_v58  ;;  %17648 = vmatmul.mubr.msk.f32.gmra.mrb[86].mxu0 %vm433_vm0, %v14439_v59  ;;  %v20151_v59 = vld [vmem:[%s19385_s26 + $0x248] sm:$0xff] }
 0x143   : > { %16778 = vmatprep.mubr.msk.f32.mxu1 %vm433_vm0, %v20013_v60  ;;  %17650 = vmatprep.mubr.msk.f32.mxu0 %vm433_vm0, %v14440_v61  ;;  %v14461_v61 = vld [vmem:[%s19385_s26 + $0x5c2] sm:$0xff] }
 0x146   : > { %16779 = vmatmul.mubr.msk.f32.gmra.mrb[24].mxu1 %vm433_vm0, %v20023_v62  ;;  %17651 = vmatmul.mubr.msk.f32.gmra.mrb[88].mxu0 %vm433_vm0, %v14441_v63  ;;  %v20155_v63 = vld [vmem:[%s19385_s26 + $0x258] sm:$0xff] }
 0x147   : > { %16781 = vmatprep.mubr.msk.f32.mxu1 %vm433_vm0, %v20027_v0  ;;  %17653 = vmatprep.mubr.msk.f32.mxu0 %vm433_vm0, %v14442_v1  ;;  %v14462_v1 = vld [vmem:[%s19385_s26 + $0x5d2] sm:$0xff] }
 0x14a   : > { %16782 = vmatmul.mubr.msk.f32.gmra.mrb[26].mxu1 %vm433_vm0, %v20037_v2  ;;  %17654 = vmatmul.mubr.msk.f32.gmra.mrb[90].mxu0 %vm433_vm0, %v14443_v3  ;;  %v20165_v3 = vld [vmem:[%s19385_s26 + $0x260] sm:$0xff] }
 0x14b   : > { %16784 = vmatprep.mubr.msk.f32.mxu1 %vm433_vm0, %v20041_v4  ;;  %17656 = vmatprep.mubr.msk.f32.mxu0 %vm433_vm0, %v14444_v5  ;;  %v14463_v5 = vld [vmem:[%s19385_s26 + $0x5da] sm:$0xff] }
 0x14e   : > { %16785 = vmatmul.mubr.msk.f32.gmra.mrb[28].mxu1 %vm433_vm0, %v20051_v6  ;;  %17657 = vmatmul.mubr.msk.f32.gmra.mrb[92].mxu0 %vm433_vm0, %v14445_v7  ;;  %v20169_v7 = vld [vmem:[%s19385_s26 + $0x270] sm:$0xff] }
 0x14f   : > { %16787 = vmatprep.mubr.msk.f32.mxu1 %vm433_vm0, %v20055_v8  ;;  %17659 = vmatprep.mubr.msk.f32.mxu0 %vm433_vm0, %v14446_v10  ;;  %v14464_v10 = vld [vmem:[%s19385_s26 + $0x5ea] sm:$0xff] }
 0x152   : > { %16788 = vmatmul.mubr.msk.f32.gmra.mrb[30].mxu1 %vm433_vm0, %v20065_v11  ;;  %17660 = vmatmul.mubr.msk.f32.gmra.mrb[94].mxu0 %vm433_vm0, %v14447_v12  ;;  %v20179_v12 = vld [vmem:[%s19385_s26 + $0x278] sm:$0xff] }
 0x153   : > { %16790 = vmatprep.mubr.msk.f32.mxu1 %vm433_vm0, %v206_v13  ;;  %17662 = vmatprep.mubr.msk.f32.mxu0 %vm433_vm0, %v14448_v15  ;;  %v14465_v13 = vld [vmem:[%s19385_s26 + $0x5f2] sm:$0xff]  ;;  %v20183_v15 = vld [vmem:[%s19385_s26 + $0x288] sm:$0xff] }
 0x156   : > { %16791 = vmatmul.mubr.msk.f32.gmra.mrb[32].mxu1 %vm433_vm0, %v207_v16  ;;  %17663 = vmatmul.mubr.msk.f32.gmra.mrb[96].mxu0 %vm433_vm0, %v14449_v18  ;;  %v14466_v16 = vld [vmem:[%s19385_s26 + $0x602] sm:$0xff]  ;;  %v20193_v18 = vld [vmem:[%s19385_s26 + $0x290] sm:$0xff] }
 0x157   : > { %16793 = vmatprep.mubr.msk.f32.mxu1 %vm433_vm0, %v208_v19  ;;  %17665 = vmatprep.mubr.msk.f32.mxu0 %vm433_vm0, %v14450_v20  ;;  %v14467_v19 = vld [vmem:[%s19385_s26 + $0x60a] sm:$0xff]  ;;  %v20197_v20 = vld [vmem:[%s19385_s26 + $0x2a0] sm:$0xff] }
 0x15a   : > { %16794 = vmatmul.mubr.msk.f32.gmra.mrb[34].mxu1 %vm433_vm0, %v209_v9  ;;  %17666 = vmatmul.mubr.msk.f32.gmra.mrb[98].mxu0 %vm433_vm0, %v14451_v22  ;;  %v14468_v9 = vld [vmem:[%s19385_s26 + $0x61a] sm:$0xff]  ;;  %v20207_v22 = vld [vmem:[%s19385_s26 + $0x2a8] sm:$0xff] }
 0x15b   : > { %16796 = vmatprep.mubr.msk.f32.mxu1 %vm433_vm0, %v20086_v23  ;;  %17668 = vmatprep.mubr.msk.f32.mxu0 %vm433_vm0, %v14452_v25  ;;  %v14469_v25 = vld [vmem:[%s19385_s26 + $0x622] sm:$0xff] }
 0x15e   : > { %16797 = vmatmul.mubr.msk.f32.gmra.mrb[36].mxu1 %vm433_vm0, %v20095_v27  ;;  %17669 = vmatmul.mubr.msk.f32.gmra.mrb[100].mxu0 %vm433_vm0, %v14453_v29  ;;  %v20211_v29 = vld [vmem:[%s19385_s26 + $0x2b8] sm:$0xff] }
 0x15f   : > { %16799 = vmatprep.mubr.msk.f32.mxu1 %vm433_vm0, %v20099_v31  ;;  %17671 = vmatprep.mubr.msk.f32.mxu0 %vm433_vm0, %v14454_v33  ;;  %v14470_v33 = vld [vmem:[%s19385_s26 + $0x632] sm:$0xff] }
 0x162   : > { %16800 = vmatmul.mubr.msk.f32.gmra.mrb[38].mxu1 %vm433_vm0, %v20109_v35  ;;  %17672 = vmatmul.mubr.msk.f32.gmra.mrb[102].mxu0 %vm433_vm0, %v14455_v37  ;;  %v20221_v37 = vld [vmem:[%s19385_s26 + $0x2c0] sm:$0xff] }
 0x163   : > { %16802 = vmatprep.mubr.msk.f32.mxu1 %vm433_vm0, %v20113_v39  ;;  %17674 = vmatprep.mubr.msk.f32.mxu0 %vm433_vm0, %v14456_v41  ;;  %v14471_v41 = vld [vmem:[%s19385_s26 + $0x63a] sm:$0xff] }
 0x166   : > { %16803 = vmatmul.mubr.msk.f32.gmra.mrb[40].mxu1 %vm433_vm0, %v20123_v43  ;;  %17675 = vmatmul.mubr.msk.f32.gmra.mrb[104].mxu0 %vm433_vm0, %v14457_v45  ;;  %v20225_v45 = vld [vmem:[%s19385_s26 + $0x2d0] sm:$0xff] }
 0x167   : > { %16805 = vmatprep.mubr.msk.f32.mxu1 %vm433_vm0, %v20127_v47  ;;  %17677 = vmatprep.mubr.msk.f32.mxu0 %vm433_vm0, %v14458_v49  ;;  %v14472_v49 = vld [vmem:[%s19385_s26 + $0x64a] sm:$0xff] }
 0x16a   : > { %16806 = vmatmul.mubr.msk.f32.gmra.mrb[42].mxu1 %vm433_vm0, %v20137_v51  ;;  %17678 = vmatmul.mubr.msk.f32.gmra.mrb[106].mxu0 %vm433_vm0, %v14459_v53  ;;  %v20235_v53 = vld [vmem:[%s19385_s26 + $0x2d8] sm:$0xff] }
 0x16b   : > { %16808 = vmatprep.mubr.msk.f32.mxu1 %vm433_vm0, %v20141_v55  ;;  %17680 = vmatprep.mubr.msk.f32.mxu0 %vm433_vm0, %v14460_v57  ;;  %v14473_v57 = vld [vmem:[%s19385_s26 + $0x652] sm:$0xff] }
 0x16e   : > { %16809 = vmatmul.mubr.msk.f32.gmra.mrb[44].mxu1 %vm433_vm0, %v20151_v59  ;;  %17681 = vmatmul.mubr.msk.f32.gmra.mrb[108].mxu0 %vm433_vm0, %v14461_v61  ;;  %v20239_v61 = vld [vmem:[%s19385_s26 + $0x2e8] sm:$0xff] }
 0x16f   : > { %16811 = vmatprep.mubr.msk.f32.mxu1 %vm433_vm0, %v20155_v63  ;;  %17683 = vmatprep.mubr.msk.f32.mxu0 %vm433_vm0, %v14462_v1  ;;  %v14474_v1 = vld [vmem:[%s19385_s26 + $0x662] sm:$0xff] }
 0x172   : > { %16812 = vmatmul.mubr.msk.f32.gmra.mrb[46].mxu1 %vm433_vm0, %v20165_v3  ;;  %17684 = vmatmul.mubr.msk.f32.gmra.mrb[110].mxu0 %vm433_vm0, %v14463_v5  ;;  %v20249_v5 = vld [vmem:[%s19385_s26 + $0x2f0] sm:$0xff] }
 0x173   : > { %16814 = vmatprep.mubr.msk.f32.mxu1 %vm433_vm0, %v20169_v7  ;;  %17686 = vmatprep.mubr.msk.f32.mxu0 %vm433_vm0, %v14464_v10  ;;  %v14475_v10 = vld [vmem:[%s19385_s26 + $0x66a] sm:$0xff] }
 0x176   : > { %16815 = vmatmul.mubr.msk.f32.gmra.mrb[48].mxu1 %vm433_vm0, %v20179_v12  ;;  %17687 = vmatmul.mubr.msk.f32.gmra.mrb[112].mxu0 %vm433_vm0, %v14465_v13  ;;  %v20253_v13 = vld [vmem:[%s19385_s26 + $0x300] sm:$0xff] }
 0x177   : > { %16817 = vmatprep.mubr.msk.f32.mxu1 %vm433_vm0, %v20183_v15  ;;  %17689 = vmatprep.mubr.msk.f32.mxu0 %vm433_vm0, %v14466_v16  ;;  %v14476_v16 = vld [vmem:[%s19385_s26 + $0x67a] sm:$0xff] }
 0x17a   : > { %16818 = vmatmul.mubr.msk.f32.gmra.mrb[50].mxu1 %vm433_vm0, %v20193_v18  ;;  %17690 = vmatmul.mubr.msk.f32.gmra.mrb[114].mxu0 %vm433_vm0, %v14467_v19  ;;  %v20263_v19 = vld [vmem:[%s19385_s26 + $0x308] sm:$0xff] }
 0x17b   : > { %16820 = vmatprep.mubr.msk.f32.mxu1 %vm433_vm0, %v20197_v20  ;;  %17692 = vmatprep.mubr.msk.f32.mxu0 %vm433_vm0, %v14468_v9  ;;  %v14477_v9 = vld [vmem:[%s19385_s26 + $0x682] sm:$0xff] }
 0x17e   : > { %16821 = vmatmul.mubr.msk.f32.gmra.mrb[52].mxu1 %vm433_vm0, %v20207_v22  ;;  %17693 = vmatmul.mubr.msk.f32.gmra.mrb[116].mxu0 %vm433_vm0, %v14469_v25  ;;  %v20267_v25 = vld [vmem:[%s19385_s26 + $0x318] sm:$0xff] }
 0x17f   : > { %16823 = vmatprep.mubr.msk.f32.mxu1 %vm433_vm0, %v20211_v29  ;;  %17695 = vmatprep.mubr.msk.f32.mxu0 %vm433_vm0, %v14470_v33  ;;  %v14478_v33 = vld [vmem:[%s19385_s26 + $0x692] sm:$0xff] }
 0x182   : > { %16824 = vmatmul.mubr.msk.f32.gmra.mrb[54].mxu1 %vm433_vm0, %v20221_v37  ;;  %17696 = vmatmul.mubr.msk.f32.gmra.mrb[118].mxu0 %vm433_vm0, %v14471_v41  ;;  %v20277_v41 = vld [vmem:[%s19385_s26 + $0x320] sm:$0xff] }
 0x183   : > { %16826 = vmatprep.mubr.msk.f32.mxu1 %vm433_vm0, %v20225_v45  ;;  %17698 = vmatprep.mubr.msk.f32.mxu0 %vm433_vm0, %v14472_v49  ;;  %v14479_v49 = vld [vmem:[%s19385_s26 + $0x69a] sm:$0xff] }
 0x186   : > { %16827 = vmatmul.mubr.msk.f32.gmra.mrb[56].mxu1 %vm433_vm0, %v20235_v53  ;;  %17699 = vmatmul.mubr.msk.f32.gmra.mrb[120].mxu0 %vm433_vm0, %v14473_v57  ;;  %v238_v57 = vld [vmem:[%s19385_s26 + $0x360] sm:$0xff] }
 0x187   : > { %16829 = vmatprep.mubr.msk.f32.mxu1 %vm433_vm0, %v20239_v61  ;;  %17701 = vmatprep.mubr.msk.f32.mxu0 %vm433_vm0, %v14474_v1  ;;  %v239_v1 = vld [vmem:[%s19385_s26 + $0x368] sm:$0xff] }
 0x18a   : > { %16830 = vmatmul.mubr.msk.f32.gmra.mrb[58].mxu1 %vm433_vm0, %v20249_v5  ;;  %17702 = vmatmul.mubr.msk.f32.gmra.mrb[122].mxu0 %vm433_vm0, %v14475_v10  ;;  %v20291_v10 = vld [vmem:[%s25126_s1 + $0x18] sm:$0xff] }
 0x18b   : > { %16832 = vmatprep.mubr.msk.f32.mxu1 %vm433_vm0, %v20253_v13  ;;  %17704 = vmatprep.mubr.msk.f32.mxu0 %vm433_vm0, %v14476_v16  ;;  %v240_v16 = vld [vmem:[%s19385_s26 + $0x378] sm:$0xff] }
 0x18c   : > { %17128 = vmatprep.subr.mxu1 %v20291_v10 }
 0x18e   : > { %16833 = vmatmul.mubr.msk.f32.gmra.mrb[60].mxu1 %vm433_vm0, %v20263_v19  ;;  %17705 = vmatmul.mubr.msk.f32.gmra.mrb[124].mxu0 %vm433_vm0, %v14477_v9  ;;  %v20304_v9 = vld [vmem:[%s19385_s26 + $0x390] sm:$0xff] }
 0x18f   : > { %16835 = vmatprep.mubr.msk.f32.mxu1 %vm433_vm0, %v20267_v25  ;;  %17707 = vmatprep.mubr.msk.f32.mxu0 %vm433_vm0, %v14478_v33  ;;  %v20486_v33 = vld [vmem:[%s19385_s26 + $0x4c8] sm:$0xff] }
 0x192   : > { %16836 = vmatmul.mubr.msk.f32.gmra.mrb[62].mxu1 %vm433_vm0, %v20277_v41  ;;  %17708 = vmatmul.mubr.msk.f32.gmra.mrb[126].mxu0 %vm433_vm0, %v14479_v49  ;;  %v14639_v49 = vld [vmem:[%s19385_s26 + $0x198] sm:$0xff] }
 0x193   : > { %16838 = vmatprep.mubr.msk.f32.mxu1 %vm433_vm0, %v238_v57  ;;  %17712 = vmatprep.mubr.msk.f32.mxu0 %vm433_vm0, %v19874_v21  ;;  %v241_v21 = vld [vmem:[%s19385_s26 + $0x380] sm:$0xff] }
 0x194   : > { %v14640_v57 = vld [vmem:[%s19385_s26 + $0x1a0] sm:$0xff] }
 0x196   : > { %16839 = vmatmul.mubr.msk.f32.gmra.mrb[64].mxu1 %vm433_vm0, %v239_v1  ;;  %17713 = vmatmul.mubr.msk.f32.vlgmr.msra.gmra.mrb[0].mxu0 %vm433_vm0, %v19883_v14  ;;  %v20317_v14 = vld [vmem:[%s19385_s26 + $0x3a8] sm:$0xff]  ;;  %v270_v1 = vld [vmem:[%s19385_s26 + $0x510] sm:$0xff] }
 0x197   : > { %17905 = vmatpush3.msra.mxu0 %v19861_v17  ;;  %16841 = vmatprep.mubr.msk.f32.mxu1 %vm433_vm0, %v240_v16  ;;  %v20314_v17 = vld [vmem:[%s19385_s26 + $0x398] sm:$0xff] }
 0x198   : > { %17715 = vmatprep.mubr.msk.f32.mxu0 %vm433_vm0, %v19887_v24  ;;  %v20328_v24 = vld [vmem:[%s19385_s26 + $0x3b0] sm:$0xff]  ;;  %v271_v16 = vld [vmem:[%s19385_s26 + $0x518] sm:$0xff] }
 0x19a   : > { %16842 = vmatmul.mubr.msk.f32.gmra.mrb[66].mxu1 %vm433_vm0, %v241_v21  ;;  %17716 = vmatmul.mubr.msk.f32.gmra.mrb[2].mxu0 %vm433_vm0, %v19897_v26  ;;  %v20331_v26 = vld [vmem:[%s19385_s26 + $0x3c0] sm:$0xff]  ;;  %v272_v21 = vld [vmem:[%s19385_s26 + $0x528] sm:$0xff] }
 0x19b   : > { %16844 = vmatprep.mubr.msk.f32.mxu1 %vm433_vm0, %v20304_v9  ;;  %17718 = vmatprep.mubr.msk.f32.mxu0 %vm433_vm0, %v19901_v28  ;;  %v20342_v28 = vld [vmem:[%s19385_s26 + $0x3c8] sm:$0xff] }
 0x19e   : > { %16845 = vmatmul.mubr.msk.f32.gmra.mrb[68].mxu1 %vm433_vm0, %v20314_v17  ;;  %17719 = vmatmul.mubr.msk.f32.gmra.mrb[4].mxu0 %vm433_vm0, %v19911_v30  ;;  %v20345_v30 = vld [vmem:[%s19385_s26 + $0x3d8] sm:$0xff] }
 0x19f   : > { %16847 = vmatprep.mubr.msk.f32.mxu1 %vm433_vm0, %v20317_v14  ;;  %17721 = vmatprep.mubr.msk.f32.mxu0 %vm433_vm0, %v19915_v32  ;;  %v20356_v32 = vld [vmem:[%s19385_s26 + $0x3e0] sm:$0xff] }
 0x1a2   : > { %16848 = vmatmul.mubr.msk.f32.gmra.mrb[70].mxu1 %vm433_vm0, %v20328_v24  ;;  %17722 = vmatmul.mubr.msk.f32.gmra.mrb[6].mxu0 %vm433_vm0, %v19925_v34  ;;  %v20359_v34 = vld [vmem:[%s19385_s26 + $0x3f0] sm:$0xff] }
 0x1a3   : > { %16850 = vmatprep.mubr.msk.f32.mxu1 %vm433_vm0, %v20331_v26  ;;  %17724 = vmatprep.mubr.msk.f32.mxu0 %vm433_vm0, %v19929_v36  ;;  %v20370_v36 = vld [vmem:[%s19385_s26 + $0x3f8] sm:$0xff] }
 0x1a6   : > { %16851 = vmatmul.mubr.msk.f32.gmra.mrb[72].mxu1 %vm433_vm0, %v20342_v28  ;;  %17725 = vmatmul.mubr.msk.f32.gmra.mrb[8].mxu0 %vm433_vm0, %v19939_v38  ;;  %v20373_v38 = vld [vmem:[%s19385_s26 + $0x408] sm:$0xff] }
 0x1a7   : > { %16853 = vmatprep.mubr.msk.f32.mxu1 %vm433_vm0, %v20345_v30  ;;  %17727 = vmatprep.mubr.msk.f32.mxu0 %vm433_vm0, %v19943_v40  ;;  %v20384_v40 = vld [vmem:[%s19385_s26 + $0x410] sm:$0xff] }
 0x1aa   : > { %16854 = vmatmul.mubr.msk.f32.gmra.mrb[74].mxu1 %vm433_vm0, %v20356_v32  ;;  %17728 = vmatmul.mubr.msk.f32.gmra.mrb[10].mxu0 %vm433_vm0, %v19953_v42  ;;  %v20387_v42 = vld [vmem:[%s19385_s26 + $0x420] sm:$0xff] }
 0x1ab   : > { %16856 = vmatprep.mubr.msk.f32.mxu1 %vm433_vm0, %v20359_v34  ;;  %17730 = vmatprep.mubr.msk.f32.mxu0 %vm433_vm0, %v19957_v44  ;;  %v20398_v44 = vld [vmem:[%s19385_s26 + $0x428] sm:$0xff] }
 0x1ae   : > { %16857 = vmatmul.mubr.msk.f32.gmra.mrb[76].mxu1 %vm433_vm0, %v20370_v36  ;;  %17731 = vmatmul.mubr.msk.f32.gmra.mrb[12].mxu0 %vm433_vm0, %v19967_v46  ;;  %v20401_v46 = vld [vmem:[%s19385_s26 + $0x438] sm:$0xff] }
 0x1af   : > { %16859 = vmatprep.mubr.msk.f32.mxu1 %vm433_vm0, %v20373_v38  ;;  %17733 = vmatprep.mubr.msk.f32.mxu0 %vm433_vm0, %v19971_v48  ;;  %v20412_v48 = vld [vmem:[%s19385_s26 + $0x440] sm:$0xff] }
 0x1b2   : > { %16860 = vmatmul.mubr.msk.f32.gmra.mrb[78].mxu1 %vm433_vm0, %v20384_v40  ;;  %17734 = vmatmul.mubr.msk.f32.gmra.mrb[14].mxu0 %vm433_vm0, %v19981_v50  ;;  %v20415_v50 = vld [vmem:[%s19385_s26 + $0x450] sm:$0xff] }
 0x1b3   : > { %16862 = vmatprep.mubr.msk.f32.mxu1 %vm433_vm0, %v20387_v42  ;;  %17736 = vmatprep.mubr.msk.f32.mxu0 %vm433_vm0, %v19985_v52  ;;  %v20426_v52 = vld [vmem:[%s19385_s26 + $0x458] sm:$0xff] }
 0x1b6   : > { %16863 = vmatmul.mubr.msk.f32.gmra.mrb[80].mxu1 %vm433_vm0, %v20398_v44  ;;  %17737 = vmatmul.mubr.msk.f32.gmra.mrb[16].mxu0 %vm433_vm0, %v19995_v54  ;;  %v20429_v54 = vld [vmem:[%s19385_s26 + $0x468] sm:$0xff] }
 0x1b7   : > { %16865 = vmatprep.mubr.msk.f32.mxu1 %vm433_vm0, %v20401_v46  ;;  %17739 = vmatprep.mubr.msk.f32.mxu0 %vm433_vm0, %v19999_v56  ;;  %v20440_v56 = vld [vmem:[%s19385_s26 + $0x470] sm:$0xff] }
 0x1ba   : > { %16866 = vmatmul.mubr.msk.f32.gmra.mrb[82].mxu1 %vm433_vm0, %v20412_v48  ;;  %17740 = vmatmul.mubr.msk.f32.gmra.mrb[18].mxu0 %vm433_vm0, %v20009_v58  ;;  %v20443_v58 = vld [vmem:[%s19385_s26 + $0x480] sm:$0xff] }
 0x1bb   : > { %16868 = vmatprep.mubr.msk.f32.mxu1 %vm433_vm0, %v20415_v50  ;;  %17742 = vmatprep.mubr.msk.f32.mxu0 %vm433_vm0, %v20013_v60  ;;  %v20454_v60 = vld [vmem:[%s19385_s26 + $0x488] sm:$0xff] }
 0x1be   : > { %16869 = vmatmul.mubr.msk.f32.gmra.mrb[84].mxu1 %vm433_vm0, %v20426_v52  ;;  %17743 = vmatmul.mubr.msk.f32.gmra.mrb[20].mxu0 %vm433_vm0, %v20023_v62  ;;  %v20457_v62 = vld [vmem:[%s19385_s26 + $0x498] sm:$0xff] }
 0x1bf   : > { %16871 = vmatprep.mubr.msk.f32.mxu1 %vm433_vm0, %v20429_v54  ;;  %17745 = vmatprep.mubr.msk.f32.mxu0 %vm433_vm0, %v20027_v0  ;;  %v20468_v0 = vld [vmem:[%s19385_s26 + $0x4a0] sm:$0xff] }
 0x1c2   : > { %16872 = vmatmul.mubr.msk.f32.gmra.mrb[86].mxu1 %vm433_vm0, %v20440_v56  ;;  %17746 = vmatmul.mubr.msk.f32.gmra.mrb[22].mxu0 %vm433_vm0, %v20037_v2  ;;  %v20471_v2 = vld [vmem:[%s19385_s26 + $0x4b0] sm:$0xff] }
 0x1c3   : > { %16874 = vmatprep.mubr.msk.f32.mxu1 %vm433_vm0, %v20443_v58  ;;  %17748 = vmatprep.mubr.msk.f32.mxu0 %vm433_vm0, %v20041_v4  ;;  %v14637_v4 = vld [vmem:[%s19385_s26 + $0x180] sm:$0xff] }
 0x1c6   : > { %16875 = vmatmul.mubr.msk.f32.gmra.mrb[88].mxu1 %vm433_vm0, %v20454_v60  ;;  %17749 = vmatmul.mubr.msk.f32.gmra.mrb[24].mxu0 %vm433_vm0, %v20051_v6  ;;  %v20482_v6 = vld [vmem:[%s19385_s26 + $0x4b8] sm:$0xff] }
 0x1c7   : > { %16877 = vmatprep.mubr.msk.f32.mxu1 %vm433_vm0, %v20457_v62  ;;  %17751 = vmatprep.mubr.msk.f32.mxu0 %vm433_vm0, %v20055_v8  ;;  %v14638_v8 = vld [vmem:[%s19385_s26 + $0x188] sm:$0xff] }
 0x1ca   : > { %16878 = vmatmul.mubr.msk.f32.gmra.mrb[90].mxu1 %vm433_vm0, %v20468_v0  ;;  %17752 = vmatmul.mubr.msk.f32.gmra.mrb[26].mxu0 %vm433_vm0, %v20065_v11  ;;  %v20496_v11 = vld [vmem:[%s19385_s26 + $0x4d0] sm:$0xff] }
 0x1cb   : > { %16880 = vmatprep.mubr.msk.f32.mxu1 %vm433_vm0, %v20471_v2  ;;  %17754 = vmatprep.mubr.msk.f32.mxu0 %vm433_vm0, %v14637_v4  ;;  %v273_v4 = vld [vmem:[%s19385_s26 + $0x530] sm:$0xff] }
 0x1ce   : > { %16881 = vmatmul.mubr.msk.f32.gmra.mrb[92].mxu1 %vm433_vm0, %v20482_v6  ;;  %17755 = vmatmul.mubr.msk.f32.gmra.mrb[28].mxu0 %vm433_vm0, %v14638_v8  ;;  %v20516_v8 = vld [vmem:[%s19385_s26 + $0x540] sm:$0xff] }
 0x1cf   : > { %16883 = vmatprep.mubr.msk.f32.mxu1 %vm433_vm0, %v20486_v33  ;;  %17757 = vmatprep.mubr.msk.f32.mxu0 %vm433_vm0, %v14639_v49  ;;  %v20698_v49 = vld [vmem:[%s19385_s26 + $0x678] sm:$0xff] }
 0x1d2   : > { %16884 = vmatmul.mubr.msk.f32.gmra.mrb[94].mxu1 %vm433_vm0, %v20496_v11  ;;  %17758 = vmatmul.mubr.msk.f32.gmra.mrb[30].mxu0 %vm433_vm0, %v14640_v57  ;;  %v14671_v57 = vld [vmem:[%s19385_s26 + $0x348] sm:$0xff] }
 0x1d3   : > { %16886 = vmatprep.mubr.msk.f32.mxu1 %vm433_vm0, %v270_v1  ;;  %17760 = vmatprep.mubr.msk.f32.mxu0 %vm433_vm0, %v20086_v23  ;;  %v20526_v23 = vld [vmem:[%s19385_s26 + $0x548] sm:$0xff]  ;;  %v14672_v1 = vld [vmem:[%s19385_s26 + $0x350] sm:$0xff] }
 0x1d6   : > { %16887 = vmatmul.mubr.msk.f32.gmra.mrb[96].mxu1 %vm433_vm0, %v271_v16  ;;  %17761 = vmatmul.mubr.msk.f32.gmra.mrb[32].mxu0 %vm433_vm0, %v20095_v27  ;;  %v20529_v27 = vld [vmem:[%s19385_s26 + $0x558] sm:$0xff]  ;;  %v2612_v16 = vld [vmem:[%s19385_s26 + $0x2] sm:$0xff] }
 0x1d7   : > { %16889 = vmatprep.mubr.msk.f32.mxu1 %vm433_vm0, %v272_v21  ;;  %17763 = vmatprep.mubr.msk.f32.mxu0 %vm433_vm0, %v20099_v31  ;;  %v20540_v31 = vld [vmem:[%s19385_s26 + $0x560] sm:$0xff]  ;;  %v2613_v21 = vld [vmem:[%s19385_s26 + $0xa] sm:$0xff] }
 0x1da   : > { %16890 = vmatmul.mubr.msk.f32.gmra.mrb[98].mxu1 %vm433_vm0, %v273_v4  ;;  %17764 = vmatmul.mubr.msk.f32.gmra.mrb[34].mxu0 %vm433_vm0, %v20109_v35  ;;  %v20543_v35 = vld [vmem:[%s19385_s26 + $0x570] sm:$0xff]  ;;  %v20722_v4 = vld [vmem:[%s25126_s1 + $0x40] sm:$0xff] }
 0x1db   : > { %16892 = vmatprep.mubr.msk.f32.mxu1 %vm433_vm0, %v20516_v8  ;;  %17766 = vmatprep.mubr.msk.f32.mxu0 %vm433_vm0, %v20113_v39  ;;  %v20554_v39 = vld [vmem:[%s19385_s26 + $0x578] sm:$0xff] }
 0x1dc   : > { %18098 = vmatprep.subr.mxu0 %v20722_v4 }
 0x1de   : > { %16893 = vmatmul.mubr.msk.f32.gmra.mrb[100].mxu1 %vm433_vm0, %v20526_v23  ;;  %17767 = vmatmul.mubr.msk.f32.gmra.mrb[36].mxu0 %vm433_vm0, %v20123_v43  ;;  %v20557_v43 = vld [vmem:[%s19385_s26 + $0x588] sm:$0xff] }
 0x1df   : > { %16895 = vmatprep.mubr.msk.f32.mxu1 %vm433_vm0, %v20529_v27  ;;  %17769 = vmatprep.mubr.msk.f32.mxu0 %vm433_vm0, %v20127_v47  ;;  %v20568_v47 = vld [vmem:[%s19385_s26 + $0x590] sm:$0xff] }
 0x1e2   : > { %16896 = vmatmul.mubr.msk.f32.gmra.mrb[102].mxu1 %vm433_vm0, %v20540_v31  ;;  %17770 = vmatmul.mubr.msk.f32.gmra.mrb[38].mxu0 %vm433_vm0, %v20137_v51  ;;  %v20571_v51 = vld [vmem:[%s19385_s26 + $0x5a0] sm:$0xff] }
 0x1e3   : > { %16898 = vmatprep.mubr.msk.f32.mxu1 %vm433_vm0, %v20543_v35  ;;  %17772 = vmatprep.mubr.msk.f32.mxu0 %vm433_vm0, %v20141_v55  ;;  %v20582_v55 = vld [vmem:[%s19385_s26 + $0x5a8] sm:$0xff] }
 0x1e6   : > { %16899 = vmatmul.mubr.msk.f32.gmra.mrb[104].mxu1 %vm433_vm0, %v20554_v39  ;;  %17773 = vmatmul.mubr.msk.f32.gmra.mrb[40].mxu0 %vm433_vm0, %v20151_v59  ;;  %v20585_v59 = vld [vmem:[%s19385_s26 + $0x5b8] sm:$0xff] }
 0x1e7   : > { %16901 = vmatprep.mubr.msk.f32.mxu1 %vm433_vm0, %v20557_v43  ;;  %17775 = vmatprep.mubr.msk.f32.mxu0 %vm433_vm0, %v20155_v63  ;;  %v20596_v63 = vld [vmem:[%s19385_s26 + $0x5c0] sm:$0xff] }
 0x1ea   : > { %16902 = vmatmul.mubr.msk.f32.gmra.mrb[106].mxu1 %vm433_vm0, %v20568_v47  ;;  %17776 = vmatmul.mubr.msk.f32.gmra.mrb[42].mxu0 %vm433_vm0, %v20165_v3  ;;  %v20599_v3 = vld [vmem:[%s19385_s26 + $0x5d0] sm:$0xff] }
 0x1eb   : > { %16904 = vmatprep.mubr.msk.f32.mxu1 %vm433_vm0, %v20571_v51  ;;  %17778 = vmatprep.mubr.msk.f32.mxu0 %vm433_vm0, %v20169_v7  ;;  %v20610_v7 = vld [vmem:[%s19385_s26 + $0x5d8] sm:$0xff] }
 0x1ee   : > { %16905 = vmatmul.mubr.msk.f32.gmra.mrb[108].mxu1 %vm433_vm0, %v20582_v55  ;;  %17779 = vmatmul.mubr.msk.f32.gmra.mrb[44].mxu0 %vm433_vm0, %v20179_v12  ;;  %v20613_v12 = vld [vmem:[%s19385_s26 + $0x5e8] sm:$0xff] }
 0x1ef   : > { %16907 = vmatprep.mubr.msk.f32.mxu1 %vm433_vm0, %v20585_v59  ;;  %17781 = vmatprep.mubr.msk.f32.mxu0 %vm433_vm0, %v20183_v15  ;;  %v20624_v15 = vld [vmem:[%s19385_s26 + $0x5f0] sm:$0xff] }
 0x1f2   : > { %16908 = vmatmul.mubr.msk.f32.gmra.mrb[110].mxu1 %vm433_vm0, %v20596_v63  ;;  %17782 = vmatmul.mubr.msk.f32.gmra.mrb[46].mxu0 %vm433_vm0, %v20193_v18  ;;  %v20627_v18 = vld [vmem:[%s19385_s26 + $0x600] sm:$0xff] }
 0x1f3   : > { %16910 = vmatprep.mubr.msk.f32.mxu1 %vm433_vm0, %v20599_v3  ;;  %17784 = vmatprep.mubr.msk.f32.mxu0 %vm433_vm0, %v20197_v20  ;;  %v20638_v20 = vld [vmem:[%s19385_s26 + $0x608] sm:$0xff] }
 0x1f6   : > { %16911 = vmatmul.mubr.msk.f32.gmra.mrb[112].mxu1 %vm433_vm0, %v20610_v7  ;;  %17785 = vmatmul.mubr.msk.f32.gmra.mrb[48].mxu0 %vm433_vm0, %v20207_v22  ;;  %v20641_v22 = vld [vmem:[%s19385_s26 + $0x618] sm:$0xff] }
 0x1f7   : > { %16913 = vmatprep.mubr.msk.f32.mxu1 %vm433_vm0, %v20613_v12  ;;  %17787 = vmatprep.mubr.msk.f32.mxu0 %vm433_vm0, %v20211_v29  ;;  %v20652_v29 = vld [vmem:[%s19385_s26 + $0x620] sm:$0xff] }
 0x1fa   : > { %16914 = vmatmul.mubr.msk.f32.gmra.mrb[114].mxu1 %vm433_vm0, %v20624_v15  ;;  %17788 = vmatmul.mubr.msk.f32.gmra.mrb[50].mxu0 %vm433_vm0, %v20221_v37  ;;  %v20655_v37 = vld [vmem:[%s19385_s26 + $0x630] sm:$0xff] }
 0x1fb   : > { %16916 = vmatprep.mubr.msk.f32.mxu1 %vm433_vm0, %v20627_v18  ;;  %17790 = vmatprep.mubr.msk.f32.mxu0 %vm433_vm0, %v20225_v45  ;;  %v20666_v45 = vld [vmem:[%s19385_s26 + $0x638] sm:$0xff] }
 0x1fe   : > { %16917 = vmatmul.mubr.msk.f32.gmra.mrb[116].mxu1 %vm433_vm0, %v20638_v20  ;;  %17791 = vmatmul.mubr.msk.f32.gmra.mrb[52].mxu0 %vm433_vm0, %v20235_v53  ;;  %v20669_v53 = vld [vmem:[%s19385_s26 + $0x648] sm:$0xff] }
 0x1ff   : > { %16919 = vmatprep.mubr.msk.f32.mxu1 %vm433_vm0, %v20641_v22  ;;  %17793 = vmatprep.mubr.msk.f32.mxu0 %vm433_vm0, %v20239_v61  ;;  %v20680_v61 = vld [vmem:[%s19385_s26 + $0x650] sm:$0xff] }
 0x202   : > { %16920 = vmatmul.mubr.msk.f32.gmra.mrb[118].mxu1 %vm433_vm0, %v20652_v29  ;;  %17794 = vmatmul.mubr.msk.f32.gmra.mrb[54].mxu0 %vm433_vm0, %v20249_v5  ;;  %v20683_v5 = vld [vmem:[%s19385_s26 + $0x660] sm:$0xff] }
 0x203   : > { %16922 = vmatprep.mubr.msk.f32.mxu1 %vm433_vm0, %v20655_v37  ;;  %17796 = vmatprep.mubr.msk.f32.mxu0 %vm433_vm0, %v20253_v13  ;;  %v14669_v13 = vld [vmem:[%s19385_s26 + $0x330] sm:$0xff] }
 0x206   : > { %16923 = vmatmul.mubr.msk.f32.gmra.mrb[120].mxu1 %vm433_vm0, %v20666_v45  ;;  %17797 = vmatmul.mubr.msk.f32.gmra.mrb[56].mxu0 %vm433_vm0, %v20263_v19  ;;  %v20694_v19 = vld [vmem:[%s19385_s26 + $0x668] sm:$0xff] }
 0x207   : > { %16925 = vmatprep.mubr.msk.f32.mxu1 %vm433_vm0, %v20669_v53  ;;  %17799 = vmatprep.mubr.msk.f32.mxu0 %vm433_vm0, %v20267_v25  ;;  %v14670_v25 = vld [vmem:[%s19385_s26 + $0x338] sm:$0xff] }
 0x20a   : > { %16926 = vmatmul.mubr.msk.f32.gmra.mrb[122].mxu1 %vm433_vm0, %v20680_v61  ;;  %17800 = vmatmul.mubr.msk.f32.gmra.mrb[58].mxu0 %vm433_vm0, %v20277_v41  ;;  %v20708_v41 = vld [vmem:[%s19385_s26 + $0x680] sm:$0xff] }
 0x20b   : > { %16928 = vmatprep.mubr.msk.f32.mxu1 %vm433_vm0, %v20683_v5  ;;  %17802 = vmatprep.mubr.msk.f32.mxu0 %vm433_vm0, %v14669_v13  ;;  %v2614_v13 = vld [vmem:[%s19385_s26 + $0x1a] sm:$0xff] }
 0x20e   : > { %16929 = vmatmul.mubr.msk.f32.gmra.mrb[124].mxu1 %vm433_vm0, %v20694_v19  ;;  %17803 = vmatmul.mubr.msk.f32.gmra.mrb[60].mxu0 %vm433_vm0, %v14670_v25  ;;  %v2616_v25 = vld [vmem:[%s19385_s26 + $0x32] sm:$0xff] }
 0x20f   : > { %16931 = vmatprep.mubr.msk.f32.mxu1 %vm433_vm0, %v20698_v49  ;;  %17805 = vmatprep.mubr.msk.f32.mxu0 %vm433_vm0, %v14671_v57  ;;  %v20738_v57 = vld [vmem:[%s25126_s1 + $0x20] sm:$0xff] }
 0x212   : > { %16932 = vmatmul.mubr.msk.f32.gmra.mrb[126].mxu1 %vm433_vm0, %v20708_v41  ;;  %17806 = vmatmul.mubr.msk.f32.gmra.mrb[62].mxu0 %vm433_vm0, %v14672_v1  ;;  %v14702_v1 = vld [vmem:[%s19385_s26 + $0x4e8] sm:$0xff] }
 0x213   : > { %16936 = vmatprep.mubr.msk.f32.mxu1 %vm433_vm0, %v2612_v16  ;;  %17808 = vmatprep.mubr.msk.f32.mxu0 %vm433_vm0, %v20304_v9  ;;  %v2615_v9 = vld [vmem:[%s19385_s26 + $0x22] sm:$0xff]  ;;  %v14703_v16 = vld [vmem:[%s19385_s26 + $0x4f8] sm:$0xff] }
 0x216   : > { %16937 = vmatmul.mubr.msk.f32.vlgmr.msra.gmra.mrb[0].mxu1 %vm433_vm0, %v2613_v21  ;;  %17809 = vmatmul.mubr.msk.f32.gmra.mrb[64].mxu0 %vm433_vm0, %v20314_v17  ;;  %v2618_v17 = vld [vmem:[%s19385_s26 + $0x4a] sm:$0xff]  ;;  %v14704_v21 = vld [vmem:[%s19385_s26 + $0x500] sm:$0xff] }
 0x217   : > { %17129 = vmatpush3.msra.mxu1 %v20291_v10  ;;  %16939 = vmatprep.mubr.msk.f32.mxu1 %vm433_vm0, %v2614_v13  ;;  %v2617_v10 = vld [vmem:[%s19385_s26 + $0x3a] sm:$0xff]  ;;  %v2644_v13 = vld [vmem:[%s19385_s26 + $0x1b2] sm:$0xff] }
 0x218   : > { %17811 = vmatprep.mubr.msk.f32.mxu0 %vm433_vm0, %v20317_v14  ;;  %18292 = vmatprep.subr.mxu1 %v20738_v57  ;;  %v2619_v14 = vld [vmem:[%s19385_s26 + $0x52] sm:$0xff] }
 0x21a   : > { %16940 = vmatmul.mubr.msk.f32.gmra.mrb[2].mxu1 %vm433_vm0, %v2615_v9  ;;  %17812 = vmatmul.mubr.msk.f32.gmra.mrb[66].mxu0 %vm433_vm0, %v20328_v24  ;;  %v2620_v24 = vld [vmem:[%s19385_s26 + $0x62] sm:$0xff]  ;;  %v2645_v9 = vld [vmem:[%s19385_s26 + $0x1ba] sm:$0xff] }
 0x21b   : > { %16942 = vmatprep.mubr.msk.f32.mxu1 %vm433_vm0, %v2616_v25  ;;  %17814 = vmatprep.mubr.msk.f32.mxu0 %vm433_vm0, %v20331_v26  ;;  %v2621_v26 = vld [vmem:[%s19385_s26 + $0x6a] sm:$0xff] }
 0x21c   : > { %v2646_v25 = vld [vmem:[%s19385_s26 + $0x1ca] sm:$0xff] }
 0x21e   : > { %16943 = vmatmul.mubr.msk.f32.gmra.mrb[4].mxu1 %vm433_vm0, %v2617_v10  ;;  %17815 = vmatmul.mubr.msk.f32.gmra.mrb[68].mxu0 %vm433_vm0, %v20342_v28  ;;  %v2622_v28 = vld [vmem:[%s19385_s26 + $0x7a] sm:$0xff]  ;;  %v2647_v10 = vld [vmem:[%s19385_s26 + $0x1d2] sm:$0xff] }
 0x21f   : > { %16945 = vmatprep.mubr.msk.f32.mxu1 %vm433_vm0, %v2618_v17  ;;  %17817 = vmatprep.mubr.msk.f32.mxu0 %vm433_vm0, %v20345_v30  ;;  %v2623_v30 = vld [vmem:[%s19385_s26 + $0x82] sm:$0xff] }
 0x220   : > { %v2648_v17 = vld [vmem:[%s19385_s26 + $0x1e2] sm:$0xff] }
 0x222   : > { %16946 = vmatmul.mubr.msk.f32.gmra.mrb[6].mxu1 %vm433_vm0, %v2619_v14  ;;  %17818 = vmatmul.mubr.msk.f32.gmra.mrb[70].mxu0 %vm433_vm0, %v20356_v32  ;;  %v2624_v32 = vld [vmem:[%s19385_s26 + $0x92] sm:$0xff] }
 0x223   : > { %16948 = vmatprep.mubr.msk.f32.mxu1 %vm433_vm0, %v2620_v24  ;;  %17820 = vmatprep.mubr.msk.f32.mxu0 %vm433_vm0, %v20359_v34  ;;  %v2625_v34 = vld [vmem:[%s19385_s26 + $0x9a] sm:$0xff]  ;;  %v14735_v24 = vld [vmem:[%s19385_s26 + $0x6a8] sm:$0xff] }
 0x224   : > { %v14734_v14 = vld [vmem:[%s19385_s26 + $0x698] sm:$0xff] }
 0x226   : > { %16949 = vmatmul.mubr.msk.f32.gmra.mrb[8].mxu1 %vm433_vm0, %v2621_v26  ;;  %17821 = vmatmul.mubr.msk.f32.gmra.mrb[72].mxu0 %vm433_vm0, %v20370_v36  ;;  %v2626_v36 = vld [vmem:[%s19385_s26 + $0xaa] sm:$0xff] }
 0x227   : > { %16951 = vmatprep.mubr.msk.f32.mxu1 %vm433_vm0, %v2622_v28  ;;  %17823 = vmatprep.mubr.msk.f32.mxu0 %vm433_vm0, %v20373_v38  ;;  %v2627_v38 = vld [vmem:[%s19385_s26 + $0xb2] sm:$0xff]  ;;  %v2676_v28 = vld [vmem:[%s19385_s26 + $0x362] sm:$0xff] }
 0x228   : > { %v14736_v26 = vld [vmem:[%s19385_s26 + $0x6b0] sm:$0xff] }
 0x22a   : > { %16952 = vmatmul.mubr.msk.f32.gmra.mrb[10].mxu1 %vm433_vm0, %v2623_v30  ;;  %17824 = vmatmul.mubr.msk.f32.gmra.mrb[74].mxu0 %vm433_vm0, %v20384_v40  ;;  %v2628_v40 = vld [vmem:[%s19385_s26 + $0xc2] sm:$0xff]  ;;  %v14866_v30 = vld [vmem:[%s19385_s26 + $0x31] sm:$0xff] }
 0x22b   : > { %16954 = vmatprep.mubr.msk.f32.mxu1 %vm433_vm0, %v2624_v32  ;;  %17826 = vmatprep.mubr.msk.f32.mxu0 %vm433_vm0, %v20387_v42  ;;  %v2629_v42 = vld [vmem:[%s19385_s26 + $0xca] sm:$0xff] }
 0x22c   : > { %v2677_v32 = vld [vmem:[%s19385_s26 + $0x36a] sm:$0xff] }
 0x22e   : > { %16955 = vmatmul.mubr.msk.f32.gmra.mrb[12].mxu1 %vm433_vm0, %v2625_v34  ;;  %17827 = vmatmul.mubr.msk.f32.gmra.mrb[76].mxu0 %vm433_vm0, %v20398_v44  ;;  %v2630_v44 = vld [vmem:[%s19385_s26 + $0xda] sm:$0xff] }
 0x22f   : > { %16957 = vmatprep.mubr.msk.f32.mxu1 %vm433_vm0, %v2626_v36  ;;  %17829 = vmatprep.mubr.msk.f32.mxu0 %vm433_vm0, %v20401_v46  ;;  %v2631_v46 = vld [vmem:[%s19385_s26 + $0xe2] sm:$0xff]  ;;  %v14867_v34 = vld [vmem:[%s19385_s26 + $0x39] sm:$0xff] }
 0x230   : > { %v2678_v36 = vld [vmem:[%s19385_s26 + $0x37a] sm:$0xff] }
 0x232   : > { %16958 = vmatmul.mubr.msk.f32.gmra.mrb[14].mxu1 %vm433_vm0, %v2627_v38  ;;  %17830 = vmatmul.mubr.msk.f32.gmra.mrb[78].mxu0 %vm433_vm0, %v20412_v48  ;;  %v2632_v48 = vld [vmem:[%s19385_s26 + $0xf2] sm:$0xff]  ;;  %v14868_v38 = vld [vmem:[%s19385_s26 + $0x49] sm:$0xff] }
 0x233   : > { %16960 = vmatprep.mubr.msk.f32.mxu1 %vm433_vm0, %v2628_v40  ;;  %17832 = vmatprep.mubr.msk.f32.mxu0 %vm433_vm0, %v20415_v50  ;;  %v2633_v50 = vld [vmem:[%s19385_s26 + $0xfa] sm:$0xff]  ;;  %v2679_v40 = vld [vmem:[%s19385_s26 + $0x382] sm:$0xff] }
 0x236   : > { %16961 = vmatmul.mubr.msk.f32.gmra.mrb[16].mxu1 %vm433_vm0, %v2629_v42  ;;  %17833 = vmatmul.mubr.msk.f32.gmra.mrb[80].mxu0 %vm433_vm0, %v20426_v52  ;;  %v2634_v52 = vld [vmem:[%s19385_s26 + $0x10a] sm:$0xff] }
 0x237   : > { %16963 = vmatprep.mubr.msk.f32.mxu1 %vm433_vm0, %v2630_v44  ;;  %17835 = vmatprep.mubr.msk.f32.mxu0 %vm433_vm0, %v20429_v54  ;;  %v2635_v54 = vld [vmem:[%s19385_s26 + $0x112] sm:$0xff] }
 0x238   : > { %v14869_v42 = vld [vmem:[%s19385_s26 + $0x51] sm:$0xff] }
 0x239   : > { %v2680_v44 = vld [vmem:[%s19385_s26 + $0x392] sm:$0xff] }
 0x23a   : > { %16964 = vmatmul.mubr.msk.f32.gmra.mrb[18].mxu1 %vm433_vm0, %v2631_v46  ;;  %17836 = vmatmul.mubr.msk.f32.gmra.mrb[82].mxu0 %vm433_vm0, %v20440_v56  ;;  %v2636_v56 = vld [vmem:[%s19385_s26 + $0x122] sm:$0xff] }
 0x23b   : > { %16966 = vmatprep.mubr.msk.f32.mxu1 %vm433_vm0, %v2632_v48  ;;  %17838 = vmatprep.mubr.msk.f32.mxu0 %vm433_vm0, %v20443_v58  ;;  %v2637_v58 = vld [vmem:[%s19385_s26 + $0x12a] sm:$0xff]  ;;  %v14870_v46 = vld [vmem:[%s19385_s26 + $0x61] sm:$0xff] }
 0x23c   : > { %v14871_v48 = vld [vmem:[%s19385_s26 + $0x69] sm:$0xff] }
 0x23e   : > { %16967 = vmatmul.mubr.msk.f32.gmra.mrb[20].mxu1 %vm433_vm0, %v2633_v50  ;;  %17839 = vmatmul.mubr.msk.f32.gmra.mrb[84].mxu0 %vm433_vm0, %v20454_v60  ;;  %v2638_v60 = vld [vmem:[%s19385_s26 + $0x13a] sm:$0xff]  ;;  %v2682_v50 = vld [vmem:[%s19385_s26 + $0x3aa] sm:$0xff] }
 0x23f   : > { %16969 = vmatprep.mubr.msk.f32.mxu1 %vm433_vm0, %v2634_v52  ;;  %17841 = vmatprep.mubr.msk.f32.mxu0 %vm433_vm0, %v20457_v62  ;;  %v2639_v62 = vld [vmem:[%s19385_s26 + $0x142] sm:$0xff]  ;;  %v14872_v52 = vld [vmem:[%s19385_s26 + $0x79] sm:$0xff] }
 0x242   : > { %16970 = vmatmul.mubr.msk.f32.gmra.mrb[22].mxu1 %vm433_vm0, %v2635_v54  ;;  %17842 = vmatmul.mubr.msk.f32.gmra.mrb[86].mxu0 %vm433_vm0, %v20468_v0  ;;  %v2640_v0 = vld [vmem:[%s19385_s26 + $0x152] sm:$0xff] }
 0x243   : > { %16972 = vmatprep.mubr.msk.f32.mxu1 %vm433_vm0, %v2636_v56  ;;  %17844 = vmatprep.mubr.msk.f32.mxu0 %vm433_vm0, %v20471_v2  ;;  %v14701_v2 = vld [vmem:[%s19385_s26 + $0x4e0] sm:$0xff]  ;;  %v2683_v54 = vld [vmem:[%s19385_s26 + $0x3b2] sm:$0xff] }
 0x244   : > { %v14873_v56 = vld [vmem:[%s19385_s26 + $0x81] sm:$0xff] }
 0x246   : > { %16973 = vmatmul.mubr.msk.f32.gmra.mrb[24].mxu1 %vm433_vm0, %v2637_v58  ;;  %17845 = vmatmul.mubr.msk.f32.gmra.mrb[88].mxu0 %vm433_vm0, %v20482_v6  ;;  %v2641_v6 = vld [vmem:[%s19385_s26 + $0x15a] sm:$0xff]  ;;  %v2684_v58 = vld [vmem:[%s19385_s26 + $0x3c2] sm:$0xff] }
 0x247   : > { %16975 = vmatprep.mubr.msk.f32.mxu1 %vm433_vm0, %v2638_v60  ;;  %17847 = vmatprep.mubr.msk.f32.mxu0 %vm433_vm0, %v20486_v33  ;;  %v2642_v33 = vld [vmem:[%s19385_s26 + $0x16a] sm:$0xff] }
 0x248   : > { %v14874_v60 = vld [vmem:[%s19385_s26 + $0x91] sm:$0xff] }
 0x24a   : > { %16976 = vmatmul.mubr.msk.f32.gmra.mrb[26].mxu1 %vm433_vm0, %v2639_v62  ;;  %17848 = vmatmul.mubr.msk.f32.gmra.mrb[90].mxu0 %vm433_vm0, %v20496_v11  ;;  %v2643_v11 = vld [vmem:[%s19385_s26 + $0x172] sm:$0xff]  ;;  %v2685_v62 = vld [vmem:[%s19385_s26 + $0x3ca] sm:$0xff] }
 0x24b   : > { %16978 = vmatprep.mubr.msk.f32.mxu1 %vm433_vm0, %v2640_v0  ;;  %17850 = vmatprep.mubr.msk.f32.mxu0 %vm433_vm0, %v14701_v2  ;;  %v14875_v0 = vld [vmem:[%s19385_s26 + $0x99] sm:$0xff] }
 0x24c   : > { %v2686_v2 = vld [vmem:[%s19385_s26 + $0x3da] sm:$0xff] }
 0x24e   : > { %16979 = vmatmul.mubr.msk.f32.gmra.mrb[28].mxu1 %vm433_vm0, %v2641_v6  ;;  %17851 = vmatmul.mubr.msk.f32.gmra.mrb[92].mxu0 %vm433_vm0, %v14702_v1  ;;  %v14876_v6 = vld [vmem:[%s19385_s26 + $0xa9] sm:$0xff] }
 0x24f   : > { %16981 = vmatprep.mubr.msk.f32.mxu1 %vm433_vm0, %v2642_v33  ;;  %17853 = vmatprep.mubr.msk.f32.mxu0 %vm433_vm0, %v14703_v16  ;;  %v2687_v1 = vld [vmem:[%s19385_s26 + $0x3e2] sm:$0xff]  ;;  %v14877_v33 = vld [vmem:[%s19385_s26 + $0xb1] sm:$0xff] }
 0x250   : > { %v2688_v16 = vld [vmem:[%s19385_s26 + $0x3f2] sm:$0xff] }
 0x252   : > { %16982 = vmatmul.mubr.msk.f32.gmra.mrb[30].mxu1 %vm433_vm0, %v2643_v11  ;;  %17854 = vmatmul.mubr.msk.f32.gmra.mrb[94].mxu0 %vm433_vm0, %v14704_v21  ;;  %v14878_v11 = vld [vmem:[%s19385_s26 + $0xc1] sm:$0xff] }
 0x253   : > { %16984 = vmatprep.mubr.msk.f32.mxu1 %vm433_vm0, %v2644_v13  ;;  %17856 = vmatprep.mubr.msk.f32.mxu0 %vm433_vm0, %v20516_v8  ;;  %v2649_v8 = vld [vmem:[%s19385_s26 + $0x1ea] sm:$0xff]  ;;  %v2689_v21 = vld [vmem:[%s19385_s26 + $0x3fa] sm:$0xff] }
 0x254   : > { %v14879_v13 = vld [vmem:[%s19385_s26 + $0xc9] sm:$0xff] }
 0x256   : > { %16985 = vmatmul.mubr.msk.f32.gmra.mrb[32].mxu1 %vm433_vm0, %v2645_v9  ;;  %17857 = vmatmul.mubr.msk.f32.gmra.mrb[96].mxu0 %vm433_vm0, %v20526_v23  ;;  %v2650_v23 = vld [vmem:[%s19385_s26 + $0x1fa] sm:$0xff]  ;;  %v2690_v9 = vld [vmem:[%s19385_s26 + $0x40a] sm:$0xff] }
 0x257   : > { %16987 = vmatprep.mubr.msk.f32.mxu1 %vm433_vm0, %v2646_v25  ;;  %17859 = vmatprep.mubr.msk.f32.mxu0 %vm433_vm0, %v20529_v27  ;;  %v2651_v27 = vld [vmem:[%s19385_s26 + $0x202] sm:$0xff]  ;;  %v14880_v25 = vld [vmem:[%s19385_s26 + $0xd9] sm:$0xff] }
 0x25a   : > { %16988 = vmatmul.mubr.msk.f32.gmra.mrb[34].mxu1 %vm433_vm0, %v2647_v10  ;;  %17860 = vmatmul.mubr.msk.f32.gmra.mrb[98].mxu0 %vm433_vm0, %v20540_v31  ;;  %v2652_v31 = vld [vmem:[%s19385_s26 + $0x212] sm:$0xff] }
 0x25b   : > { %16990 = vmatprep.mubr.msk.f32.mxu1 %vm433_vm0, %v2648_v17  ;;  %17862 = vmatprep.mubr.msk.f32.mxu0 %vm433_vm0, %v20543_v35  ;;  %v2653_v35 = vld [vmem:[%s19385_s26 + $0x21a] sm:$0xff]  ;;  %v2691_v10 = vld [vmem:[%s19385_s26 + $0x412] sm:$0xff] }
 0x25c   : > { %v14881_v17 = vld [vmem:[%s19385_s26 + $0xe1] sm:$0xff] }
 0x25e   : > { %16991 = vmatmul.mubr.msk.f32.gmra.mrb[36].mxu1 %vm433_vm0, %v2649_v8  ;;  %17863 = vmatmul.mubr.msk.f32.gmra.mrb[100].mxu0 %vm433_vm0, %v20554_v39  ;;  %v2654_v39 = vld [vmem:[%s19385_s26 + $0x22a] sm:$0xff]  ;;  %v2692_v8 = vld [vmem:[%s19385_s26 + $0x422] sm:$0xff] }
 0x25f   : > { %16993 = vmatprep.mubr.msk.f32.mxu1 %vm433_vm0, %v2650_v23  ;;  %17865 = vmatprep.mubr.msk.f32.mxu0 %vm433_vm0, %v20557_v43  ;;  %v2655_v43 = vld [vmem:[%s19385_s26 + $0x232] sm:$0xff] }
 0x260   : > { %v14882_v23 = vld [vmem:[%s19385_s26 + $0xf1] sm:$0xff] }
 0x262   : > { %16994 = vmatmul.mubr.msk.f32.gmra.mrb[38].mxu1 %vm433_vm0, %v2651_v27  ;;  %17866 = vmatmul.mubr.msk.f32.gmra.mrb[102].mxu0 %vm433_vm0, %v20568_v47  ;;  %v2656_v47 = vld [vmem:[%s19385_s26 + $0x242] sm:$0xff]  ;;  %v2693_v27 = vld [vmem:[%s19385_s26 + $0x42a] sm:$0xff] }
 0x263   : > { %16996 = vmatprep.mubr.msk.f32.mxu1 %vm433_vm0, %v2652_v31  ;;  %17868 = vmatprep.mubr.msk.f32.mxu0 %vm433_vm0, %v20571_v51  ;;  %v2657_v51 = vld [vmem:[%s19385_s26 + $0x24a] sm:$0xff]  ;;  %v14883_v31 = vld [vmem:[%s19385_s26 + $0xf9] sm:$0xff] }
 0x266   : > { %16997 = vmatmul.mubr.msk.f32.gmra.mrb[40].mxu1 %vm433_vm0, %v2653_v35  ;;  %17869 = vmatmul.mubr.msk.f32.gmra.mrb[104].mxu0 %vm433_vm0, %v20582_v55  ;;  %v2658_v55 = vld [vmem:[%s19385_s26 + $0x25a] sm:$0xff] }
 0x267   : > { %16999 = vmatprep.mubr.msk.f32.mxu1 %vm433_vm0, %v2654_v39  ;;  %17871 = vmatprep.mubr.msk.f32.mxu0 %vm433_vm0, %v20585_v59  ;;  %v2659_v59 = vld [vmem:[%s19385_s26 + $0x262] sm:$0xff]  ;;  %v2694_v35 = vld [vmem:[%s19385_s26 + $0x43a] sm:$0xff] }
 0x268   : > { %v14884_v39 = vld [vmem:[%s19385_s26 + $0x109] sm:$0xff] }
 0x26a   : > { %17000 = vmatmul.mubr.msk.f32.gmra.mrb[42].mxu1 %vm433_vm0, %v2655_v43  ;;  %17872 = vmatmul.mubr.msk.f32.gmra.mrb[106].mxu0 %vm433_vm0, %v20596_v63  ;;  %v2660_v63 = vld [vmem:[%s19385_s26 + $0x272] sm:$0xff]  ;;  %v2695_v43 = vld [vmem:[%s19385_s26 + $0x442] sm:$0xff] }
 0x26b   : > { %17002 = vmatprep.mubr.msk.f32.mxu1 %vm433_vm0, %v2656_v47  ;;  %17874 = vmatprep.mubr.msk.f32.mxu0 %vm433_vm0, %v20599_v3  ;;  %v2661_v3 = vld [vmem:[%s19385_s26 + $0x27a] sm:$0xff]  ;;  %v14885_v47 = vld [vmem:[%s19385_s26 + $0x111] sm:$0xff] }
 0x26e   : > { %17003 = vmatmul.mubr.msk.f32.gmra.mrb[44].mxu1 %vm433_vm0, %v2657_v51  ;;  %17875 = vmatmul.mubr.msk.f32.gmra.mrb[108].mxu0 %vm433_vm0, %v20610_v7  ;;  %v2662_v7 = vld [vmem:[%s19385_s26 + $0x28a] sm:$0xff]  ;;  %v2696_v51 = vld [vmem:[%s19385_s26 + $0x452] sm:$0xff] }
 0x26f   : > { %17005 = vmatprep.mubr.msk.f32.mxu1 %vm433_vm0, %v2658_v55  ;;  %17877 = vmatprep.mubr.msk.f32.mxu0 %vm433_vm0, %v20613_v12  ;;  %v2663_v12 = vld [vmem:[%s19385_s26 + $0x292] sm:$0xff]  ;;  %v14886_v55 = vld [vmem:[%s19385_s26 + $0x121] sm:$0xff] }
 0x272   : > { %17006 = vmatmul.mubr.msk.f32.gmra.mrb[46].mxu1 %vm433_vm0, %v2659_v59  ;;  %17878 = vmatmul.mubr.msk.f32.gmra.mrb[110].mxu0 %vm433_vm0, %v20624_v15  ;;  %v2664_v15 = vld [vmem:[%s19385_s26 + $0x2a2] sm:$0xff]  ;;  %v2697_v59 = vld [vmem:[%s19385_s26 + $0x45a] sm:$0xff] }
 0x273   : > { %17008 = vmatprep.mubr.msk.f32.mxu1 %vm433_vm0, %v2660_v63  ;;  %17880 = vmatprep.mubr.msk.f32.mxu0 %vm433_vm0, %v20627_v18  ;;  %v2665_v18 = vld [vmem:[%s19385_s26 + $0x2aa] sm:$0xff] }
 0x274   : > { %v14887_v63 = vld [vmem:[%s19385_s26 + $0x129] sm:$0xff] }
 0x276   : > { %17009 = vmatmul.mubr.msk.f32.gmra.mrb[48].mxu1 %vm433_vm0, %v2661_v3  ;;  %17881 = vmatmul.mubr.msk.f32.gmra.mrb[112].mxu0 %vm433_vm0, %v20638_v20  ;;  %v2666_v20 = vld [vmem:[%s19385_s26 + $0x2ba] sm:$0xff]  ;;  %v2698_v3 = vld [vmem:[%s19385_s26 + $0x46a] sm:$0xff] }
 0x277   : > { %17011 = vmatprep.mubr.msk.f32.mxu1 %vm433_vm0, %v2662_v7  ;;  %17883 = vmatprep.mubr.msk.f32.mxu0 %vm433_vm0, %v20641_v22  ;;  %v2667_v22 = vld [vmem:[%s19385_s26 + $0x2c2] sm:$0xff]  ;;  %v14888_v7 = vld [vmem:[%s19385_s26 + $0x139] sm:$0xff] }
 0x27a   : > { %17012 = vmatmul.mubr.msk.f32.gmra.mrb[50].mxu1 %vm433_vm0, %v2663_v12  ;;  %17884 = vmatmul.mubr.msk.f32.gmra.mrb[114].mxu0 %vm433_vm0, %v20652_v29  ;;  %v2668_v29 = vld [vmem:[%s19385_s26 + $0x2d2] sm:$0xff] }
 0x27b   : > { %17014 = vmatprep.mubr.msk.f32.mxu1 %vm433_vm0, %v2664_v15  ;;  %17886 = vmatprep.mubr.msk.f32.mxu0 %vm433_vm0, %v20655_v37  ;;  %v2669_v37 = vld [vmem:[%s19385_s26 + $0x2da] sm:$0xff]  ;;  %v2699_v12 = vld [vmem:[%s19385_s26 + $0x472] sm:$0xff] }
 0x27c   : > { %v14889_v15 = vld [vmem:[%s19385_s26 + $0x141] sm:$0xff] }
 0x27e   : > { %17015 = vmatmul.mubr.msk.f32.gmra.mrb[52].mxu1 %vm433_vm0, %v2665_v18  ;;  %17887 = vmatmul.mubr.msk.f32.gmra.mrb[116].mxu0 %vm433_vm0, %v20666_v45  ;;  %v2670_v45 = vld [vmem:[%s19385_s26 + $0x2ea] sm:$0xff]  ;;  %v2700_v18 = vld [vmem:[%s19385_s26 + $0x482] sm:$0xff] }
 0x27f   : > { %17017 = vmatprep.mubr.msk.f32.mxu1 %vm433_vm0, %v2666_v20  ;;  %17889 = vmatprep.mubr.msk.f32.mxu0 %vm433_vm0, %v20669_v53  ;;  %v2671_v53 = vld [vmem:[%s19385_s26 + $0x2f2] sm:$0xff] }
 0x280   : > { %v14890_v20 = vld [vmem:[%s19385_s26 + $0x151] sm:$0xff] }
 0x282   : > { %17018 = vmatmul.mubr.msk.f32.gmra.mrb[54].mxu1 %vm433_vm0, %v2667_v22  ;;  %17890 = vmatmul.mubr.msk.f32.gmra.mrb[118].mxu0 %vm433_vm0, %v20680_v61  ;;  %v2672_v61 = vld [vmem:[%s19385_s26 + $0x302] sm:$0xff]  ;;  %v2701_v22 = vld [vmem:[%s19385_s26 + $0x48a] sm:$0xff] }
 0x283   : > { %17020 = vmatprep.mubr.msk.f32.mxu1 %vm433_vm0, %v2668_v29  ;;  %17892 = vmatprep.mubr.msk.f32.mxu0 %vm433_vm0, %v20683_v5  ;;  %v14733_v5 = vld [vmem:[%s19385_s26 + $0x690] sm:$0xff]  ;;  %v14891_v29 = vld [vmem:[%s19385_s26 + $0x159] sm:$0xff] }
 0x286   : > { %17021 = vmatmul.mubr.msk.f32.gmra.mrb[56].mxu1 %vm433_vm0, %v2669_v37  ;;  %17893 = vmatmul.mubr.msk.f32.gmra.mrb[120].mxu0 %vm433_vm0, %v20694_v19  ;;  %v2673_v19 = vld [vmem:[%s19385_s26 + $0x30a] sm:$0xff]  ;;  %v2702_v37 = vld [vmem:[%s19385_s26 + $0x49a] sm:$0xff] }
 0x287   : > { %17023 = vmatprep.mubr.msk.f32.mxu1 %vm433_vm0, %v2670_v45  ;;  %17895 = vmatprep.mubr.msk.f32.mxu0 %vm433_vm0, %v20698_v49  ;;  %v2674_v49 = vld [vmem:[%s19385_s26 + $0x31a] sm:$0xff]  ;;  %v14892_v45 = vld [vmem:[%s19385_s26 + $0x169] sm:$0xff] }
 0x28a   : > { %17024 = vmatmul.mubr.msk.f32.gmra.mrb[58].mxu1 %vm433_vm0, %v2671_v53  ;;  %17896 = vmatmul.mubr.msk.f32.gmra.mrb[122].mxu0 %vm433_vm0, %v20708_v41  ;;  %v2675_v41 = vld [vmem:[%s19385_s26 + $0x322] sm:$0xff] }
 0x28b   : > { %17026 = vmatprep.mubr.msk.f32.mxu1 %vm433_vm0, %v2672_v61  ;;  %17898 = vmatprep.mubr.msk.f32.mxu0 %vm433_vm0, %v14733_v5  ;;  %v2703_v53 = vld [vmem:[%s19385_s26 + $0x4a2] sm:$0xff]  ;;  %v14893_v61 = vld [vmem:[%s19385_s26 + $0x171] sm:$0xff] }
 0x28c   : > { %v2704_v5 = vld [vmem:[%s19385_s26 + $0x4b2] sm:$0xff] }
 0x28e   : > { %17027 = vmatmul.mubr.msk.f32.gmra.mrb[60].mxu1 %vm433_vm0, %v2673_v19  ;;  %17899 = vmatmul.mubr.msk.f32.gmra.mrb[124].mxu0 %vm433_vm0, %v14734_v14  ;;  %v14894_v19 = vld [vmem:[%s19385_s26 + $0x181] sm:$0xff] }
 0x28f   : > { %17029 = vmatprep.mubr.msk.f32.mxu1 %vm433_vm0, %v2674_v49  ;;  %17901 = vmatprep.mubr.msk.f32.mxu0 %vm433_vm0, %v14735_v24  ;;  %v2705_v14 = vld [vmem:[%s19385_s26 + $0x4ba] sm:$0xff]  ;;  %v14895_v49 = vld [vmem:[%s19385_s26 + $0x189] sm:$0xff] }
 0x290   : > { %v2706_v24 = vld [vmem:[%s19385_s26 + $0x4ca] sm:$0xff] }
 0x292   : > { %17030 = vmatmul.mubr.msk.f32.gmra.mrb[62].mxu1 %vm433_vm0, %v2675_v41  ;;  %17902 = vmatmul.mubr.msk.f32.gmra.mrb[126].mxu0 %vm433_vm0, %v14736_v26  ;;  %v14896_v41 = vld [vmem:[%s19385_s26 + $0x199] sm:$0xff] }
 0x293   : > { %17032 = vmatprep.mubr.msk.f32.mxu1 %vm433_vm0, %v2676_v28  ;;  %17906 = vmatprep.mubr.msk.f32.mxu0 %vm433_vm0, %v14866_v30  ;;  %v2707_v26 = vld [vmem:[%s19385_s26 + $0x4d2] sm:$0xff]  ;;  %v14897_v28 = vld [vmem:[%s19385_s26 + $0x1a1] sm:$0xff] }
 0x294   : > { %v2708_v30 = vld [vmem:[%s19385_s26 + $0x512] sm:$0xff] }
 0x296   : > { %17033 = vmatmul.mubr.msk.f32.gmra.mrb[64].mxu1 %vm433_vm0, %v2677_v32  ;;  %17907 = vmatmul.mubr.msk.f32.vlgmr.msra.gmra.mrb[0].mxu0 %vm433_vm0, %v14867_v34  ;;  %v14898_v32 = vld [vmem:[%s19385_s26 + $0x1e1] sm:$0xff] }
 0x297   : > { %18099 = vmatpush3.msra.mxu0 %v20722_v4  ;;  %17035 = vmatprep.mubr.msk.f32.mxu1 %vm433_vm0, %v2678_v36  ;;  %v2681_v4 = vld [vmem:[%s19385_s26 + $0x39a] sm:$0xff]  ;;  %v14899_v36 = vld [vmem:[%s19385_s26 + $0x1e9] sm:$0xff] }
 0x298   : > { %17909 = vmatprep.mubr.msk.f32.mxu0 %vm433_vm0, %v14868_v38  ;;  %v2709_v34 = vld [vmem:[%s19385_s26 + $0x51a] sm:$0xff]  ;;  %v2710_v38 = vld [vmem:[%s19385_s26 + $0x52a] sm:$0xff] }
 0x29a   : > { %17036 = vmatmul.mubr.msk.f32.gmra.mrb[66].mxu1 %vm433_vm0, %v2679_v40  ;;  %17910 = vmatmul.mubr.msk.f32.gmra.mrb[2].mxu0 %vm433_vm0, %v14869_v42  ;;  %v14900_v40 = vld [vmem:[%s19385_s26 + $0x1f9] sm:$0xff] }
 0x29b   : > { %17038 = vmatprep.mubr.msk.f32.mxu1 %vm433_vm0, %v2680_v44  ;;  %17912 = vmatprep.mubr.msk.f32.mxu0 %vm433_vm0, %v14870_v46  ;;  %v2711_v42 = vld [vmem:[%s19385_s26 + $0x532] sm:$0xff]  ;;  %v14901_v44 = vld [vmem:[%s19385_s26 + $0x201] sm:$0xff] }
 0x29c   : > { %v2712_v46 = vld [vmem:[%s19385_s26 + $0x542] sm:$0xff] }
 0x29e   : > { %17039 = vmatmul.mubr.msk.f32.gmra.mrb[68].mxu1 %vm433_vm0, %v2681_v4  ;;  %17913 = vmatmul.mubr.msk.f32.gmra.mrb[4].mxu0 %vm433_vm0, %v14871_v48  ;;  %v14902_v4 = vld [vmem:[%s19385_s26 + $0x211] sm:$0xff] }
 0x29f   : > { %17041 = vmatprep.mubr.msk.f32.mxu1 %vm433_vm0, %v2682_v50  ;;  %17915 = vmatprep.mubr.msk.f32.mxu0 %vm433_vm0, %v14872_v52  ;;  %v2713_v48 = vld [vmem:[%s19385_s26 + $0x54a] sm:$0xff]  ;;  %v14903_v50 = vld [vmem:[%s19385_s26 + $0x219] sm:$0xff] }
 0x2a0   : > { %v2714_v52 = vld [vmem:[%s19385_s26 + $0x55a] sm:$0xff] }
 0x2a2   : > { %17042 = vmatmul.mubr.msk.f32.gmra.mrb[70].mxu1 %vm433_vm0, %v2683_v54  ;;  %17916 = vmatmul.mubr.msk.f32.gmra.mrb[6].mxu0 %vm433_vm0, %v14873_v56  ;;  %v14904_v54 = vld [vmem:[%s19385_s26 + $0x229] sm:$0xff] }
 0x2a3   : > { %17044 = vmatprep.mubr.msk.f32.mxu1 %vm433_vm0, %v2684_v58  ;;  %17918 = vmatprep.mubr.msk.f32.mxu0 %vm433_vm0, %v14874_v60  ;;  %v2715_v56 = vld [vmem:[%s19385_s26 + $0x562] sm:$0xff]  ;;  %v14905_v58 = vld [vmem:[%s19385_s26 + $0x231] sm:$0xff] }
 0x2a4   : > { %v2716_v60 = vld [vmem:[%s19385_s26 + $0x572] sm:$0xff] }
 0x2a6   : > { %17045 = vmatmul.mubr.msk.f32.gmra.mrb[72].mxu1 %vm433_vm0, %v2685_v62  ;;  %17919 = vmatmul.mubr.msk.f32.gmra.mrb[8].mxu0 %vm433_vm0, %v14875_v0  ;;  %v14906_v62 = vld [vmem:[%s19385_s26 + $0x241] sm:$0xff] }
 0x2a7   : > { %17047 = vmatprep.mubr.msk.f32.mxu1 %vm433_vm0, %v2686_v2  ;;  %17921 = vmatprep.mubr.msk.f32.mxu0 %vm433_vm0, %v14876_v6  ;;  %v2717_v0 = vld [vmem:[%s19385_s26 + $0x57a] sm:$0xff]  ;;  %v14907_v2 = vld [vmem:[%s19385_s26 + $0x249] sm:$0xff] }
 0x2a8   : > { %v2718_v6 = vld [vmem:[%s19385_s26 + $0x58a] sm:$0xff] }
 0x2aa   : > { %17048 = vmatmul.mubr.msk.f32.gmra.mrb[74].mxu1 %vm433_vm0, %v2687_v1  ;;  %17922 = vmatmul.mubr.msk.f32.gmra.mrb[10].mxu0 %vm433_vm0, %v14877_v33  ;;  %v14908_v1 = vld [vmem:[%s19385_s26 + $0x259] sm:$0xff] }
 0x2ab   : > { %17050 = vmatprep.mubr.msk.f32.mxu1 %vm433_vm0, %v2688_v16  ;;  %17924 = vmatprep.mubr.msk.f32.mxu0 %vm433_vm0, %v14878_v11  ;;  %v2719_v33 = vld [vmem:[%s19385_s26 + $0x592] sm:$0xff]  ;;  %v14909_v16 = vld [vmem:[%s19385_s26 + $0x261] sm:$0xff] }
 0x2ac   : > { %v2720_v11 = vld [vmem:[%s19385_s26 + $0x5a2] sm:$0xff] }
 0x2ae   : > { %17051 = vmatmul.mubr.msk.f32.gmra.mrb[76].mxu1 %vm433_vm0, %v2689_v21  ;;  %17925 = vmatmul.mubr.msk.f32.gmra.mrb[12].mxu0 %vm433_vm0, %v14879_v13  ;;  %v14910_v21 = vld [vmem:[%s19385_s26 + $0x271] sm:$0xff] }
 0x2af   : > { %17053 = vmatprep.mubr.msk.f32.mxu1 %vm433_vm0, %v2690_v9  ;;  %17927 = vmatprep.mubr.msk.f32.mxu0 %vm433_vm0, %v14880_v25  ;;  %v2721_v13 = vld [vmem:[%s19385_s26 + $0x5aa] sm:$0xff]  ;;  %v14911_v9 = vld [vmem:[%s19385_s26 + $0x279] sm:$0xff] }
 0x2b0   : > { %v2722_v25 = vld [vmem:[%s19385_s26 + $0x5ba] sm:$0xff] }
 0x2b2   : > { %17054 = vmatmul.mubr.msk.f32.gmra.mrb[78].mxu1 %vm433_vm0, %v2691_v10  ;;  %17928 = vmatmul.mubr.msk.f32.gmra.mrb[14].mxu0 %vm433_vm0, %v14881_v17  ;;  %v14912_v10 = vld [vmem:[%s19385_s26 + $0x289] sm:$0xff] }
 0x2b3   : > { %17056 = vmatprep.mubr.msk.f32.mxu1 %vm433_vm0, %v2692_v8  ;;  %17930 = vmatprep.mubr.msk.f32.mxu0 %vm433_vm0, %v14882_v23  ;;  %v2723_v17 = vld [vmem:[%s19385_s26 + $0x5c2] sm:$0xff]  ;;  %v14913_v8 = vld [vmem:[%s19385_s26 + $0x291] sm:$0xff] }
 0x2b4   : > { %v2724_v23 = vld [vmem:[%s19385_s26 + $0x5d2] sm:$0xff] }
 0x2b6   : > { %17057 = vmatmul.mubr.msk.f32.gmra.mrb[80].mxu1 %vm433_vm0, %v2693_v27  ;;  %17931 = vmatmul.mubr.msk.f32.gmra.mrb[16].mxu0 %vm433_vm0, %v14883_v31  ;;  %v14914_v27 = vld [vmem:[%s19385_s26 + $0x2a1] sm:$0xff] }
 0x2b7   : > { %17059 = vmatprep.mubr.msk.f32.mxu1 %vm433_vm0, %v2694_v35  ;;  %17933 = vmatprep.mubr.msk.f32.mxu0 %vm433_vm0, %v14884_v39  ;;  %v2725_v31 = vld [vmem:[%s19385_s26 + $0x5da] sm:$0xff]  ;;  %v14915_v35 = vld [vmem:[%s19385_s26 + $0x2a9] sm:$0xff] }
 0x2b8   : > { %v2726_v39 = vld [vmem:[%s19385_s26 + $0x5ea] sm:$0xff] }
 0x2ba   : > { %17060 = vmatmul.mubr.msk.f32.gmra.mrb[82].mxu1 %vm433_vm0, %v2695_v43  ;;  %17934 = vmatmul.mubr.msk.f32.gmra.mrb[18].mxu0 %vm433_vm0, %v14885_v47  ;;  %v14916_v43 = vld [vmem:[%s19385_s26 + $0x2b9] sm:$0xff] }
 0x2bb   : > { %17062 = vmatprep.mubr.msk.f32.mxu1 %vm433_vm0, %v2696_v51  ;;  %17936 = vmatprep.mubr.msk.f32.mxu0 %vm433_vm0, %v14886_v55  ;;  %v2727_v47 = vld [vmem:[%s19385_s26 + $0x5f2] sm:$0xff]  ;;  %v14917_v51 = vld [vmem:[%s19385_s26 + $0x2c1] sm:$0xff] }
 0x2bc   : > { %v2728_v55 = vld [vmem:[%s19385_s26 + $0x602] sm:$0xff] }
 0x2be   : > { %17063 = vmatmul.mubr.msk.f32.gmra.mrb[84].mxu1 %vm433_vm0, %v2697_v59  ;;  %17937 = vmatmul.mubr.msk.f32.gmra.mrb[20].mxu0 %vm433_vm0, %v14887_v63  ;;  %v14918_v59 = vld [vmem:[%s19385_s26 + $0x2d1] sm:$0xff] }
 0x2bf   : > { %17065 = vmatprep.mubr.msk.f32.mxu1 %vm433_vm0, %v2698_v3  ;;  %17939 = vmatprep.mubr.msk.f32.mxu0 %vm433_vm0, %v14888_v7  ;;  %v2729_v63 = vld [vmem:[%s19385_s26 + $0x60a] sm:$0xff]  ;;  %v14919_v3 = vld [vmem:[%s19385_s26 + $0x2d9] sm:$0xff] }
 0x2c0   : > { %v2730_v7 = vld [vmem:[%s19385_s26 + $0x61a] sm:$0xff] }
 0x2c2   : > { %17066 = vmatmul.mubr.msk.f32.gmra.mrb[86].mxu1 %vm433_vm0, %v2699_v12  ;;  %17940 = vmatmul.mubr.msk.f32.gmra.mrb[22].mxu0 %vm433_vm0, %v14889_v15  ;;  %v14920_v12 = vld [vmem:[%s19385_s26 + $0x2e9] sm:$0xff] }
 0x2c3   : > { %17068 = vmatprep.mubr.msk.f32.mxu1 %vm433_vm0, %v2700_v18  ;;  %17942 = vmatprep.mubr.msk.f32.mxu0 %vm433_vm0, %v14890_v20  ;;  %v2731_v15 = vld [vmem:[%s19385_s26 + $0x622] sm:$0xff]  ;;  %v14921_v18 = vld [vmem:[%s19385_s26 + $0x2f1] sm:$0xff] }
 0x2c4   : > { %v2732_v20 = vld [vmem:[%s19385_s26 + $0x632] sm:$0xff] }
 0x2c6   : > { %17069 = vmatmul.mubr.msk.f32.gmra.mrb[88].mxu1 %vm433_vm0, %v2701_v22  ;;  %17943 = vmatmul.mubr.msk.f32.gmra.mrb[24].mxu0 %vm433_vm0, %v14891_v29  ;;  %v14922_v22 = vld [vmem:[%s19385_s26 + $0x301] sm:$0xff] }
 0x2c7   : > { %17071 = vmatprep.mubr.msk.f32.mxu1 %vm433_vm0, %v2702_v37  ;;  %17945 = vmatprep.mubr.msk.f32.mxu0 %vm433_vm0, %v14892_v45  ;;  %v2733_v29 = vld [vmem:[%s19385_s26 + $0x63a] sm:$0xff]  ;;  %v14923_v37 = vld [vmem:[%s19385_s26 + $0x309] sm:$0xff] }
 0x2c8   : > { %v2734_v45 = vld [vmem:[%s19385_s26 + $0x64a] sm:$0xff] }
 0x2ca   : > { %17072 = vmatmul.mubr.msk.f32.gmra.mrb[90].mxu1 %vm433_vm0, %v2703_v53  ;;  %17946 = vmatmul.mubr.msk.f32.gmra.mrb[26].mxu0 %vm433_vm0, %v14893_v61  ;;  %v14924_v53 = vld [vmem:[%s19385_s26 + $0x319] sm:$0xff] }
 0x2cb   : > { %17074 = vmatprep.mubr.msk.f32.mxu1 %vm433_vm0, %v2704_v5  ;;  %17948 = vmatprep.mubr.msk.f32.mxu0 %vm433_vm0, %v14894_v19  ;;  %v2735_v61 = vld [vmem:[%s19385_s26 + $0x652] sm:$0xff]  ;;  %v14925_v5 = vld [vmem:[%s19385_s26 + $0x321] sm:$0xff] }
 0x2cc   : > { %v2736_v19 = vld [vmem:[%s19385_s26 + $0x662] sm:$0xff] }
 0x2ce   : > { %17075 = vmatmul.mubr.msk.f32.gmra.mrb[92].mxu1 %vm433_vm0, %v2705_v14  ;;  %17949 = vmatmul.mubr.msk.f32.gmra.mrb[28].mxu0 %vm433_vm0, %v14895_v49  ;;  %v14926_v14 = vld [vmem:[%s19385_s26 + $0x331] sm:$0xff] }
 0x2cf   : > { %17077 = vmatprep.mubr.msk.f32.mxu1 %vm433_vm0, %v2706_v24  ;;  %17951 = vmatprep.mubr.msk.f32.mxu0 %vm433_vm0, %v14896_v41  ;;  %v2737_v49 = vld [vmem:[%s19385_s26 + $0x66a] sm:$0xff]  ;;  %v14927_v24 = vld [vmem:[%s19385_s26 + $0x339] sm:$0xff] }
 0x2d0   : > { %v2738_v41 = vld [vmem:[%s19385_s26 + $0x67a] sm:$0xff] }
 0x2d2   : > { %17078 = vmatmul.mubr.msk.f32.gmra.mrb[94].mxu1 %vm433_vm0, %v2707_v26  ;;  %17952 = vmatmul.mubr.msk.f32.gmra.mrb[30].mxu0 %vm433_vm0, %v14897_v28  ;;  %v14928_v26 = vld [vmem:[%s19385_s26 + $0x349] sm:$0xff] }
 0x2d3   : > { %17080 = vmatprep.mubr.msk.f32.mxu1 %vm433_vm0, %v2708_v30  ;;  %17954 = vmatprep.mubr.msk.f32.mxu0 %vm433_vm0, %v14898_v32  ;;  %v2739_v28 = vld [vmem:[%s19385_s26 + $0x682] sm:$0xff]  ;;  %v14929_v30 = vld [vmem:[%s19385_s26 + $0x351] sm:$0xff] }
 0x2d4   : > { %v13838_v32 = vld [vmem:[%s19385_s26 + $0x18] sm:$0xff] }
 0x2d6   : > { %17081 = vmatmul.mubr.msk.f32.gmra.mrb[96].mxu1 %vm433_vm0, %v2709_v34  ;;  %17955 = vmatmul.mubr.msk.f32.gmra.mrb[32].mxu0 %vm433_vm0, %v14899_v36  ;;  %v14930_v34 = vld [vmem:[%s19385_s26 + $0x391] sm:$0xff]  ;;  %v13839_v36 = vld [vmem:[%s19385_s26 + $0x20] sm:$0xff] }
 0x2d7   : > { %17083 = vmatprep.mubr.msk.f32.mxu1 %vm433_vm0, %v2710_v38  ;;  %17957 = vmatprep.mubr.msk.f32.mxu0 %vm433_vm0, %v14900_v40  ;;  %v14931_v38 = vld [vmem:[%s19385_s26 + $0x399] sm:$0xff]  ;;  %v13840_v40 = vld [vmem:[%s19385_s26 + $0x30] sm:$0xff] }
 0x2da   : > { %17084 = vmatmul.mubr.msk.f32.gmra.mrb[98].mxu1 %vm433_vm0, %v2711_v42  ;;  %17958 = vmatmul.mubr.msk.f32.gmra.mrb[34].mxu0 %vm433_vm0, %v14901_v44  ;;  %v14932_v42 = vld [vmem:[%s19385_s26 + $0x3a9] sm:$0xff]  ;;  %v13841_v44 = vld [vmem:[%s19385_s26 + $0x38] sm:$0xff] }
 0x2db   : > { %17086 = vmatprep.mubr.msk.f32.mxu1 %vm433_vm0, %v2712_v46  ;;  %17960 = vmatprep.mubr.msk.f32.mxu0 %vm433_vm0, %v14902_v4  ;;  %v14933_v46 = vld [vmem:[%s19385_s26 + $0x3b1] sm:$0xff]  ;;  %v13842_v4 = vld [vmem:[%s19385_s26 + $0x48] sm:$0xff] }
 0x2de   : > { %17087 = vmatmul.mubr.msk.f32.gmra.mrb[100].mxu1 %vm433_vm0, %v2713_v48  ;;  %17961 = vmatmul.mubr.msk.f32.gmra.mrb[36].mxu0 %vm433_vm0, %v14903_v50  ;;  %v14934_v48 = vld [vmem:[%s19385_s26 + $0x3c1] sm:$0xff]  ;;  %v14935_v50 = vld [vmem:[%s19385_s26 + $0x3c9] sm:$0xff] }
 0x2df   : > { %17089 = vmatprep.mubr.msk.f32.mxu1 %vm433_vm0, %v2714_v52  ;;  %17963 = vmatprep.mubr.msk.f32.mxu0 %vm433_vm0, %v14904_v54  ;;  %v13844_v52 = vld [vmem:[%s19385_s26 + $0x60] sm:$0xff] }
 0x2e0   : > { %v14936_v54 = vld [vmem:[%s19385_s26 + $0x3d9] sm:$0xff] }
 0x2e2   : > { %17090 = vmatmul.mubr.msk.f32.gmra.mrb[102].mxu1 %vm433_vm0, %v2715_v56  ;;  %17964 = vmatmul.mubr.msk.f32.gmra.mrb[38].mxu0 %vm433_vm0, %v14905_v58  ;;  %v13845_v56 = vld [vmem:[%s19385_s26 + $0x68] sm:$0xff] }
 0x2e3   : > { %17092 = vmatprep.mubr.msk.f32.mxu1 %vm433_vm0, %v2716_v60  ;;  %17966 = vmatprep.mubr.msk.f32.mxu0 %vm433_vm0, %v14906_v62  ;;  %v14937_v58 = vld [vmem:[%s19385_s26 + $0x3e1] sm:$0xff]  ;;  %v13846_v60 = vld [vmem:[%s19385_s26 + $0x78] sm:$0xff] }
 0x2e4   : > { %v14938_v62 = vld [vmem:[%s19385_s26 + $0x3f1] sm:$0xff] }
 0x2e6   : > { %17093 = vmatmul.mubr.msk.f32.gmra.mrb[104].mxu1 %vm433_vm0, %v2717_v0  ;;  %17967 = vmatmul.mubr.msk.f32.gmra.mrb[40].mxu0 %vm433_vm0, %v14907_v2  ;;  %v13847_v0 = vld [vmem:[%s19385_s26 + $0x80] sm:$0xff] }
 0x2e7   : > { %17095 = vmatprep.mubr.msk.f32.mxu1 %vm433_vm0, %v2718_v6  ;;  %17969 = vmatprep.mubr.msk.f32.mxu0 %vm433_vm0, %v14908_v1  ;;  %v14939_v2 = vld [vmem:[%s19385_s26 + $0x3f9] sm:$0xff]  ;;  %v13848_v6 = vld [vmem:[%s19385_s26 + $0x90] sm:$0xff] }
 0x2e8   : > { %v14940_v1 = vld [vmem:[%s19385_s26 + $0x409] sm:$0xff] }
 0x2ea   : > { %17096 = vmatmul.mubr.msk.f32.gmra.mrb[106].mxu1 %vm433_vm0, %v2719_v33  ;;  %17970 = vmatmul.mubr.msk.f32.gmra.mrb[42].mxu0 %vm433_vm0, %v14909_v16  ;;  %v13849_v33 = vld [vmem:[%s19385_s26 + $0x98] sm:$0xff] }
 0x2eb   : > { %17098 = vmatprep.mubr.msk.f32.mxu1 %vm433_vm0, %v2720_v11  ;;  %17972 = vmatprep.mubr.msk.f32.mxu0 %vm433_vm0, %v14910_v21  ;;  %v14941_v16 = vld [vmem:[%s19385_s26 + $0x411] sm:$0xff]  ;;  %v13850_v11 = vld [vmem:[%s19385_s26 + $0xa8] sm:$0xff] }
 0x2ec   : > { %v14942_v21 = vld [vmem:[%s19385_s26 + $0x421] sm:$0xff] }
 0x2ee   : > { %17099 = vmatmul.mubr.msk.f32.gmra.mrb[108].mxu1 %vm433_vm0, %v2721_v13  ;;  %17973 = vmatmul.mubr.msk.f32.gmra.mrb[44].mxu0 %vm433_vm0, %v14911_v9  ;;  %v13851_v13 = vld [vmem:[%s19385_s26 + $0xb0] sm:$0xff] }
 0x2ef   : > { %17101 = vmatprep.mubr.msk.f32.mxu1 %vm433_vm0, %v2722_v25  ;;  %17975 = vmatprep.mubr.msk.f32.mxu0 %vm433_vm0, %v14912_v10  ;;  %v14943_v9 = vld [vmem:[%s19385_s26 + $0x429] sm:$0xff]  ;;  %v13852_v25 = vld [vmem:[%s19385_s26 + $0xc0] sm:$0xff] }
 0x2f0   : > { %v14944_v10 = vld [vmem:[%s19385_s26 + $0x439] sm:$0xff] }
 0x2f2   : > { %17102 = vmatmul.mubr.msk.f32.gmra.mrb[110].mxu1 %vm433_vm0, %v2723_v17  ;;  %17976 = vmatmul.mubr.msk.f32.gmra.mrb[46].mxu0 %vm433_vm0, %v14913_v8  ;;  %v13853_v17 = vld [vmem:[%s19385_s26 + $0xc8] sm:$0xff] }
 0x2f3   : > { %17104 = vmatprep.mubr.msk.f32.mxu1 %vm433_vm0, %v2724_v23  ;;  %17978 = vmatprep.mubr.msk.f32.mxu0 %vm433_vm0, %v14914_v27  ;;  %v14945_v8 = vld [vmem:[%s19385_s26 + $0x441] sm:$0xff]  ;;  %v13854_v23 = vld [vmem:[%s19385_s26 + $0xd8] sm:$0xff] }
 0x2f4   : > { %v14946_v27 = vld [vmem:[%s19385_s26 + $0x451] sm:$0xff] }
 0x2f6   : > { %17105 = vmatmul.mubr.msk.f32.gmra.mrb[112].mxu1 %vm433_vm0, %v2725_v31  ;;  %17979 = vmatmul.mubr.msk.f32.gmra.mrb[48].mxu0 %vm433_vm0, %v14915_v35  ;;  %v13855_v31 = vld [vmem:[%s19385_s26 + $0xe0] sm:$0xff] }
 0x2f7   : > { %17107 = vmatprep.mubr.msk.f32.mxu1 %vm433_vm0, %v2726_v39  ;;  %17981 = vmatprep.mubr.msk.f32.mxu0 %vm433_vm0, %v14916_v43  ;;  %v14947_v35 = vld [vmem:[%s19385_s26 + $0x459] sm:$0xff]  ;;  %v13856_v39 = vld [vmem:[%s19385_s26 + $0xf0] sm:$0xff] }
 0x2f8   : > { %v14948_v43 = vld [vmem:[%s19385_s26 + $0x469] sm:$0xff] }
 0x2fa   : > { %17108 = vmatmul.mubr.msk.f32.gmra.mrb[114].mxu1 %vm433_vm0, %v2727_v47  ;;  %17982 = vmatmul.mubr.msk.f32.gmra.mrb[50].mxu0 %vm433_vm0, %v14917_v51  ;;  %v13857_v47 = vld [vmem:[%s19385_s26 + $0xf8] sm:$0xff] }
 0x2fb   : > { %17110 = vmatprep.mubr.msk.f32.mxu1 %vm433_vm0, %v2728_v55  ;;  %17984 = vmatprep.mubr.msk.f32.mxu0 %vm433_vm0, %v14918_v59  ;;  %v14949_v51 = vld [vmem:[%s19385_s26 + $0x471] sm:$0xff]  ;;  %v13858_v55 = vld [vmem:[%s19385_s26 + $0x108] sm:$0xff] }
 0x2fc   : > { %v14950_v59 = vld [vmem:[%s19385_s26 + $0x481] sm:$0xff] }
 0x2fe   : > { %17111 = vmatmul.mubr.msk.f32.gmra.mrb[116].mxu1 %vm433_vm0, %v2729_v63  ;;  %17985 = vmatmul.mubr.msk.f32.gmra.mrb[52].mxu0 %vm433_vm0, %v14919_v3  ;;  %v13859_v63 = vld [vmem:[%s19385_s26 + $0x110] sm:$0xff] }
 0x2ff   : > { %17113 = vmatprep.mubr.msk.f32.mxu1 %vm433_vm0, %v2730_v7  ;;  %17987 = vmatprep.mubr.msk.f32.mxu0 %vm433_vm0, %v14920_v12  ;;  %v14951_v3 = vld [vmem:[%s19385_s26 + $0x489] sm:$0xff]  ;;  %v13860_v7 = vld [vmem:[%s19385_s26 + $0x120] sm:$0xff] }
 0x300   : > { %v14952_v12 = vld [vmem:[%s19385_s26 + $0x499] sm:$0xff] }
 0x302   : > { %17114 = vmatmul.mubr.msk.f32.gmra.mrb[118].mxu1 %vm433_vm0, %v2731_v15  ;;  %17988 = vmatmul.mubr.msk.f32.gmra.mrb[54].mxu0 %vm433_vm0, %v14921_v18  ;;  %v13861_v15 = vld [vmem:[%s19385_s26 + $0x128] sm:$0xff] }
 0x303   : > { %17116 = vmatprep.mubr.msk.f32.mxu1 %vm433_vm0, %v2732_v20  ;;  %17990 = vmatprep.mubr.msk.f32.mxu0 %vm433_vm0, %v14922_v22  ;;  %v14953_v18 = vld [vmem:[%s19385_s26 + $0x4a1] sm:$0xff]  ;;  %v13862_v20 = vld [vmem:[%s19385_s26 + $0x138] sm:$0xff] }
 0x304   : > { %v14954_v22 = vld [vmem:[%s19385_s26 + $0x4b1] sm:$0xff] }
 0x306   : > { %17117 = vmatmul.mubr.msk.f32.gmra.mrb[120].mxu1 %vm433_vm0, %v2733_v29  ;;  %17991 = vmatmul.mubr.msk.f32.gmra.mrb[56].mxu0 %vm433_vm0, %v14923_v37  ;;  %v13863_v29 = vld [vmem:[%s19385_s26 + $0x140] sm:$0xff] }
 0x307   : > { %17119 = vmatprep.mubr.msk.f32.mxu1 %vm433_vm0, %v2734_v45  ;;  %17993 = vmatprep.mubr.msk.f32.mxu0 %vm433_vm0, %v14924_v53  ;;  %v14955_v37 = vld [vmem:[%s19385_s26 + $0x4b9] sm:$0xff]  ;;  %v13864_v45 = vld [vmem:[%s19385_s26 + $0x150] sm:$0xff] }
 0x308   : > { %v14956_v53 = vld [vmem:[%s19385_s26 + $0x4c9] sm:$0xff] }
 0x30a   : > { %17120 = vmatmul.mubr.msk.f32.gmra.mrb[122].mxu1 %vm433_vm0, %v2735_v61  ;;  %17994 = vmatmul.mubr.msk.f32.gmra.mrb[58].mxu0 %vm433_vm0, %v14925_v5  ;;  %v13865_v61 = vld [vmem:[%s19385_s26 + $0x158] sm:$0xff] }
 0x30b   : > { %17122 = vmatprep.mubr.msk.f32.mxu1 %vm433_vm0, %v2736_v19  ;;  %17996 = vmatprep.mubr.msk.f32.mxu0 %vm433_vm0, %v14926_v14  ;;  %v14957_v5 = vld [vmem:[%s19385_s26 + $0x4d1] sm:$0xff]  ;;  %v13866_v19 = vld [vmem:[%s19385_s26 + $0x168] sm:$0xff] }
 0x30c   : > { %v14958_v14 = vld [vmem:[%s19385_s26 + $0x4e1] sm:$0xff] }
 0x30e   : > { %17123 = vmatmul.mubr.msk.f32.gmra.mrb[124].mxu1 %vm433_vm0, %v2737_v49  ;;  %17997 = vmatmul.mubr.msk.f32.gmra.mrb[60].mxu0 %vm433_vm0, %v14927_v24  ;;  %v13867_v49 = vld [vmem:[%s19385_s26 + $0x170] sm:$0xff] }
 0x30f   : > { %17125 = vmatprep.mubr.msk.f32.mxu1 %vm433_vm0, %v2738_v41  ;;  %17999 = vmatprep.mubr.msk.f32.mxu0 %vm433_vm0, %v14928_v26  ;;  %v14959_v24 = vld [vmem:[%s19385_s26 + $0x4e9] sm:$0xff]  ;;  %v13868_v41 = vld [vmem:[%s19385_s26 + $0x180] sm:$0xff] }
 0x310   : > { %v14960_v26 = vld [vmem:[%s19385_s26 + $0x4f9] sm:$0xff] }
 0x312   : > { %17126 = vmatmul.mubr.msk.f32.gmra.mrb[126].mxu1 %vm433_vm0, %v2739_v28  ;;  %18000 = vmatmul.mubr.msk.f32.gmra.mrb[62].mxu0 %vm433_vm0, %v14929_v30  ;;  %v13869_v28 = vld [vmem:[%s19385_s26 + $0x188] sm:$0xff] }
 0x313   : > { %17130 = vmatprep.mubr.msk.f32.mxu1 %vm433_vm0, %v13838_v32  ;;  %18002 = vmatprep.mubr.msk.f32.mxu0 %vm433_vm0, %v14930_v34  ;;  %v14961_v30 = vld [vmem:[%s19385_s26 + $0x501] sm:$0xff] }
 0x314   : > { %v13870_v32 = vld [vmem:[%s19385_s26 + $0x1c8] sm:$0xff] }
 0x315   : > { %v14962_v34 = vld [vmem:[%s19385_s26 + $0x541] sm:$0xff] }
 0x316   : > { %17131 = vmatmul.mubr.msk.f32.vlgmr.msra.gmra.mrb[0].mxu1 %vm433_vm0, %v13839_v36  ;;  %18003 = vmatmul.mubr.msk.f32.gmra.mrb[64].mxu0 %vm433_vm0, %v14931_v38  ;;  %v13871_v36 = vld [vmem:[%s19385_s26 + $0x1d0] sm:$0xff] }
 0x317   : > { %18293 = vmatpush3.msra.mxu1 %v20738_v57  ;;  %17133 = vmatprep.mubr.msk.f32.mxu1 %vm433_vm0, %v13840_v40  ;;  %v13843_v57 = vld [vmem:[%s19385_s26 + $0x50] sm:$0xff]  ;;  %v13872_v40 = vld [vmem:[%s19385_s26 + $0x1e0] sm:$0xff] }
 0x318   : > { %18005 = vmatprep.mubr.msk.f32.mxu0 %vm433_vm0, %v14932_v42  ;;  %v14963_v38 = vld [vmem:[%s19385_s26 + $0x549] sm:$0xff]  ;;  %v14964_v42 = vld [vmem:[%s19385_s26 + $0x559] sm:$0xff] }
 0x31a   : > { %17134 = vmatmul.mubr.msk.f32.gmra.mrb[2].mxu1 %vm433_vm0, %v13841_v44  ;;  %18006 = vmatmul.mubr.msk.f32.gmra.mrb[66].mxu0 %vm433_vm0, %v14933_v46  ;;  %v13873_v44 = vld [vmem:[%s19385_s26 + $0x1e8] sm:$0xff] }
 0x31b   : > { %17136 = vmatprep.mubr.msk.f32.mxu1 %vm433_vm0, %v13842_v4  ;;  %18008 = vmatprep.mubr.msk.f32.mxu0 %vm433_vm0, %v14934_v48  ;;  %v14965_v46 = vld [vmem:[%s19385_s26 + $0x561] sm:$0xff]  ;;  %v13874_v4 = vld [vmem:[%s19385_s26 + $0x1f8] sm:$0xff] }
 0x31c   : > { %v14966_v48 = vld [vmem:[%s19385_s26 + $0x571] sm:$0xff] }
 0x31e   : > { %17137 = vmatmul.mubr.msk.f32.gmra.mrb[4].mxu1 %vm433_vm0, %v13843_v57  ;;  %18009 = vmatmul.mubr.msk.f32.gmra.mrb[68].mxu0 %vm433_vm0, %v14935_v50  ;;  %v13875_v57 = vld [vmem:[%s19385_s26 + $0x200] sm:$0xff] }
 0x31f   : > { %17139 = vmatprep.mubr.msk.f32.mxu1 %vm433_vm0, %v13844_v52  ;;  %18011 = vmatprep.mubr.msk.f32.mxu0 %vm433_vm0, %v14936_v54  ;;  %v14967_v50 = vld [vmem:[%s19385_s26 + $0x579] sm:$0xff]  ;;  %v13876_v52 = vld [vmem:[%s19385_s26 + $0x210] sm:$0xff] }
 0x320   : > { %v14968_v54 = vld [vmem:[%s19385_s26 + $0x589] sm:$0xff] }
 0x322   : > { %17140 = vmatmul.mubr.msk.f32.gmra.mrb[6].mxu1 %vm433_vm0, %v13845_v56  ;;  %18012 = vmatmul.mubr.msk.f32.gmra.mrb[70].mxu0 %vm433_vm0, %v14937_v58  ;;  %v13877_v56 = vld [vmem:[%s19385_s26 + $0x218] sm:$0xff] }
 0x323   : > { %17142 = vmatprep.mubr.msk.f32.mxu1 %vm433_vm0, %v13846_v60  ;;  %18014 = vmatprep.mubr.msk.f32.mxu0 %vm433_vm0, %v14938_v62  ;;  %v14969_v58 = vld [vmem:[%s19385_s26 + $0x591] sm:$0xff]  ;;  %v13878_v60 = vld [vmem:[%s19385_s26 + $0x228] sm:$0xff] }
 0x324   : > { %v14970_v62 = vld [vmem:[%s19385_s26 + $0x5a1] sm:$0xff] }
 0x326   : > { %17143 = vmatmul.mubr.msk.f32.gmra.mrb[8].mxu1 %vm433_vm0, %v13847_v0  ;;  %18015 = vmatmul.mubr.msk.f32.gmra.mrb[72].mxu0 %vm433_vm0, %v14939_v2  ;;  %v13879_v0 = vld [vmem:[%s19385_s26 + $0x230] sm:$0xff] }
 0x327   : > { %17145 = vmatprep.mubr.msk.f32.mxu1 %vm433_vm0, %v13848_v6  ;;  %18017 = vmatprep.mubr.msk.f32.mxu0 %vm433_vm0, %v14940_v1  ;;  %v14971_v2 = vld [vmem:[%s19385_s26 + $0x5a9] sm:$0xff]  ;;  %v13880_v6 = vld [vmem:[%s19385_s26 + $0x240] sm:$0xff] }
 0x328   : > { %v14972_v1 = vld [vmem:[%s19385_s26 + $0x5b9] sm:$0xff] }
 0x32a   : > { %17146 = vmatmul.mubr.msk.f32.gmra.mrb[10].mxu1 %vm433_vm0, %v13849_v33  ;;  %18018 = vmatmul.mubr.msk.f32.gmra.mrb[74].mxu0 %vm433_vm0, %v14941_v16  ;;  %v13881_v33 = vld [vmem:[%s19385_s26 + $0x248] sm:$0xff] }
 0x32b   : > { %17148 = vmatprep.mubr.msk.f32.mxu1 %vm433_vm0, %v13850_v11  ;;  %18020 = vmatprep.mubr.msk.f32.mxu0 %vm433_vm0, %v14942_v21  ;;  %v14973_v16 = vld [vmem:[%s19385_s26 + $0x5c1] sm:$0xff]  ;;  %v13882_v11 = vld [vmem:[%s19385_s26 + $0x258] sm:$0xff] }
 0x32c   : > { %v14974_v21 = vld [vmem:[%s19385_s26 + $0x5d1] sm:$0xff] }
 0x32e   : > { %17149 = vmatmul.mubr.msk.f32.gmra.mrb[12].mxu1 %vm433_vm0, %v13851_v13  ;;  %18021 = vmatmul.mubr.msk.f32.gmra.mrb[76].mxu0 %vm433_vm0, %v14943_v9  ;;  %v13883_v13 = vld [vmem:[%s19385_s26 + $0x260] sm:$0xff] }
 0x32f   : > { %17151 = vmatprep.mubr.msk.f32.mxu1 %vm433_vm0, %v13852_v25  ;;  %18023 = vmatprep.mubr.msk.f32.mxu0 %vm433_vm0, %v14944_v10  ;;  %v14975_v9 = vld [vmem:[%s19385_s26 + $0x5d9] sm:$0xff]  ;;  %v13884_v25 = vld [vmem:[%s19385_s26 + $0x270] sm:$0xff] }
 0x330   : > { %v14976_v10 = vld [vmem:[%s19385_s26 + $0x5e9] sm:$0xff] }
 0x332   : > { %17152 = vmatmul.mubr.msk.f32.gmra.mrb[14].mxu1 %vm433_vm0, %v13853_v17  ;;  %18024 = vmatmul.mubr.msk.f32.gmra.mrb[78].mxu0 %vm433_vm0, %v14945_v8  ;;  %v13885_v17 = vld [vmem:[%s19385_s26 + $0x278] sm:$0xff] }
 0x333   : > { %17154 = vmatprep.mubr.msk.f32.mxu1 %vm433_vm0, %v13854_v23  ;;  %18026 = vmatprep.mubr.msk.f32.mxu0 %vm433_vm0, %v14946_v27  ;;  %v14977_v8 = vld [vmem:[%s19385_s26 + $0x5f1] sm:$0xff]  ;;  %v13886_v23 = vld [vmem:[%s19385_s26 + $0x288] sm:$0xff] }
 0x334   : > { %v14978_v27 = vld [vmem:[%s19385_s26 + $0x601] sm:$0xff] }
 0x336   : > { %17155 = vmatmul.mubr.msk.f32.gmra.mrb[16].mxu1 %vm433_vm0, %v13855_v31  ;;  %18027 = vmatmul.mubr.msk.f32.gmra.mrb[80].mxu0 %vm433_vm0, %v14947_v35  ;;  %v13887_v31 = vld [vmem:[%s19385_s26 + $0x290] sm:$0xff] }
 0x337   : > { %17157 = vmatprep.mubr.msk.f32.mxu1 %vm433_vm0, %v13856_v39  ;;  %18029 = vmatprep.mubr.msk.f32.mxu0 %vm433_vm0, %v14948_v43  ;;  %v14979_v35 = vld [vmem:[%s19385_s26 + $0x609] sm:$0xff]  ;;  %v13888_v39 = vld [vmem:[%s19385_s26 + $0x2a0] sm:$0xff] }
 0x338   : > { %v14980_v43 = vld [vmem:[%s19385_s26 + $0x619] sm:$0xff] }
 0x33a   : > { %17158 = vmatmul.mubr.msk.f32.gmra.mrb[18].mxu1 %vm433_vm0, %v13857_v47  ;;  %18030 = vmatmul.mubr.msk.f32.gmra.mrb[82].mxu0 %vm433_vm0, %v14949_v51  ;;  %v13889_v47 = vld [vmem:[%s19385_s26 + $0x2a8] sm:$0xff] }
 0x33b   : > { %17160 = vmatprep.mubr.msk.f32.mxu1 %vm433_vm0, %v13858_v55  ;;  %18032 = vmatprep.mubr.msk.f32.mxu0 %vm433_vm0, %v14950_v59  ;;  %v14981_v51 = vld [vmem:[%s19385_s26 + $0x621] sm:$0xff]  ;;  %v13890_v55 = vld [vmem:[%s19385_s26 + $0x2b8] sm:$0xff] }
 0x33c   : > { %v14982_v59 = vld [vmem:[%s19385_s26 + $0x631] sm:$0xff] }
 0x33e   : > { %17161 = vmatmul.mubr.msk.f32.gmra.mrb[20].mxu1 %vm433_vm0, %v13859_v63  ;;  %18033 = vmatmul.mubr.msk.f32.gmra.mrb[84].mxu0 %vm433_vm0, %v14951_v3  ;;  %v13891_v63 = vld [vmem:[%s19385_s26 + $0x2c0] sm:$0xff] }
 0x33f   : > { %17163 = vmatprep.mubr.msk.f32.mxu1 %vm433_vm0, %v13860_v7  ;;  %18035 = vmatprep.mubr.msk.f32.mxu0 %vm433_vm0, %v14952_v12  ;;  %v14983_v3 = vld [vmem:[%s19385_s26 + $0x639] sm:$0xff]  ;;  %v13892_v7 = vld [vmem:[%s19385_s26 + $0x2d0] sm:$0xff] }
 0x340   : > { %v14984_v12 = vld [vmem:[%s19385_s26 + $0x649] sm:$0xff] }
 0x342   : > { %17164 = vmatmul.mubr.msk.f32.gmra.mrb[22].mxu1 %vm433_vm0, %v13861_v15  ;;  %18036 = vmatmul.mubr.msk.f32.gmra.mrb[86].mxu0 %vm433_vm0, %v14953_v18  ;;  %v13893_v15 = vld [vmem:[%s19385_s26 + $0x2d8] sm:$0xff] }
 0x343   : > { %17166 = vmatprep.mubr.msk.f32.mxu1 %vm433_vm0, %v13862_v20  ;;  %18038 = vmatprep.mubr.msk.f32.mxu0 %vm433_vm0, %v14954_v22  ;;  %v14985_v18 = vld [vmem:[%s19385_s26 + $0x651] sm:$0xff]  ;;  %v13894_v20 = vld [vmem:[%s19385_s26 + $0x2e8] sm:$0xff] }
 0x344   : > { %v14986_v22 = vld [vmem:[%s19385_s26 + $0x661] sm:$0xff] }
 0x346   : > { %17167 = vmatmul.mubr.msk.f32.gmra.mrb[24].mxu1 %vm433_vm0, %v13863_v29  ;;  %18039 = vmatmul.mubr.msk.f32.gmra.mrb[88].mxu0 %vm433_vm0, %v14955_v37  ;;  %v13895_v29 = vld [vmem:[%s19385_s26 + $0x2f0] sm:$0xff] }
 0x347   : > { %17169 = vmatprep.mubr.msk.f32.mxu1 %vm433_vm0, %v13864_v45  ;;  %18041 = vmatprep.mubr.msk.f32.mxu0 %vm433_vm0, %v14956_v53  ;;  %v14987_v37 = vld [vmem:[%s19385_s26 + $0x669] sm:$0xff]  ;;  %v13896_v45 = vld [vmem:[%s19385_s26 + $0x300] sm:$0xff] }
 0x348   : > { %v14988_v53 = vld [vmem:[%s19385_s26 + $0x679] sm:$0xff] }
 0x34a   : > { %17170 = vmatmul.mubr.msk.f32.gmra.mrb[26].mxu1 %vm433_vm0, %v13865_v61  ;;  %18042 = vmatmul.mubr.msk.f32.gmra.mrb[90].mxu0 %vm433_vm0, %v14957_v5  ;;  %v13897_v61 = vld [vmem:[%s19385_s26 + $0x308] sm:$0xff] }
 0x34b   : > { %17172 = vmatprep.mubr.msk.f32.mxu1 %vm433_vm0, %v13866_v19  ;;  %18044 = vmatprep.mubr.msk.f32.mxu0 %vm433_vm0, %v14958_v14  ;;  %v14989_v5 = vld [vmem:[%s19385_s26 + $0x681] sm:$0xff]  ;;  %v13898_v19 = vld [vmem:[%s19385_s26 + $0x318] sm:$0xff] }
 0x34c   : > { %v14990_v14 = vld [vmem:[%s19385_s26 + $0x691] sm:$0xff] }
 0x34e   : > { %17173 = vmatmul.mubr.msk.f32.gmra.mrb[28].mxu1 %vm433_vm0, %v13867_v49  ;;  %18045 = vmatmul.mubr.msk.f32.gmra.mrb[92].mxu0 %vm433_vm0, %v14959_v24  ;;  %v13899_v49 = vld [vmem:[%s19385_s26 + $0x320] sm:$0xff] }
 0x34f   : > { %17175 = vmatprep.mubr.msk.f32.mxu1 %vm433_vm0, %v13868_v41  ;;  %18047 = vmatprep.mubr.msk.f32.mxu0 %vm433_vm0, %v14960_v26  ;;  %v14991_v24 = vld [vmem:[%s19385_s26 + $0x699] sm:$0xff]  ;;  %v13900_v41 = vld [vmem:[%s19385_s26 + $0x330] sm:$0xff] }
 0x350   : > { %v14992_v26 = vld [vmem:[%s19385_s26 + $0x6a9] sm:$0xff] }
 0x352   : > { %17176 = vmatmul.mubr.msk.f32.gmra.mrb[30].mxu1 %vm433_vm0, %v13869_v28  ;;  %18048 = vmatmul.mubr.msk.f32.gmra.mrb[94].mxu0 %vm433_vm0, %v14961_v30  ;;  %v13901_v28 = vld [vmem:[%s19385_s26 + $0x338] sm:$0xff] }
 0x353   : > { %17178 = vmatprep.mubr.msk.f32.mxu1 %vm433_vm0, %v13870_v32  ;;  %18050 = vmatprep.mubr.msk.f32.mxu0 %vm433_vm0, %v14962_v34  ;;  %v14993_v30 = vld [vmem:[%s19385_s26 + $0x6b1] sm:$0xff] }
 0x354   : > { %v13902_v32 = vld [vmem:[%s19385_s26 + $0x378] sm:$0xff] }
 0x355   : > { %v15123_v34 = vld [vmem:[%s19385_s26 + $0x32] sm:$0xff] }
 0x356   : > { %17179 = vmatmul.mubr.msk.f32.gmra.mrb[32].mxu1 %vm433_vm0, %v13871_v36  ;;  %18051 = vmatmul.mubr.msk.f32.gmra.mrb[96].mxu0 %vm433_vm0, %v14963_v38  ;;  %v13903_v36 = vld [vmem:[%s19385_s26 + $0x380] sm:$0xff] }
 0x357   : > { %17181 = vmatprep.mubr.msk.f32.mxu1 %vm433_vm0, %v13872_v40  ;;  %18053 = vmatprep.mubr.msk.f32.mxu0 %vm433_vm0, %v14964_v42  ;;  %v15124_v38 = vld [vmem:[%s19385_s26 + $0x3a] sm:$0xff]  ;;  %v13904_v40 = vld [vmem:[%s19385_s26 + $0x390] sm:$0xff] }
 0x358   : > { %v15125_v42 = vld [vmem:[%s19385_s26 + $0x4a] sm:$0xff] }
 0x35a   : > { %17182 = vmatmul.mubr.msk.f32.gmra.mrb[34].mxu1 %vm433_vm0, %v13873_v44  ;;  %18054 = vmatmul.mubr.msk.f32.gmra.mrb[98].mxu0 %vm433_vm0, %v14965_v46  ;;  %v13905_v44 = vld [vmem:[%s19385_s26 + $0x398] sm:$0xff] }
 0x35b   : > { %17184 = vmatprep.mubr.msk.f32.mxu1 %vm433_vm0, %v13874_v4  ;;  %18056 = vmatprep.mubr.msk.f32.mxu0 %vm433_vm0, %v14966_v48  ;;  %v15126_v46 = vld [vmem:[%s19385_s26 + $0x52] sm:$0xff]  ;;  %v13906_v4 = vld [vmem:[%s19385_s26 + $0x3a8] sm:$0xff] }
 0x35c   : > { %v15127_v48 = vld [vmem:[%s19385_s26 + $0x62] sm:$0xff] }
 0x35e   : > { %17185 = vmatmul.mubr.msk.f32.gmra.mrb[36].mxu1 %vm433_vm0, %v13875_v57  ;;  %18057 = vmatmul.mubr.msk.f32.gmra.mrb[100].mxu0 %vm433_vm0, %v14967_v50  ;;  %v13907_v57 = vld [vmem:[%s19385_s26 + $0x3b0] sm:$0xff] }
 0x35f   : > { %17187 = vmatprep.mubr.msk.f32.mxu1 %vm433_vm0, %v13876_v52  ;;  %18059 = vmatprep.mubr.msk.f32.mxu0 %vm433_vm0, %v14968_v54  ;;  %v15128_v50 = vld [vmem:[%s19385_s26 + $0x6a] sm:$0xff]  ;;  %v13908_v52 = vld [vmem:[%s19385_s26 + $0x3c0] sm:$0xff] }
 0x360   : > { %v15129_v54 = vld [vmem:[%s19385_s26 + $0x7a] sm:$0xff] }
 0x362   : > { %17188 = vmatmul.mubr.msk.f32.gmra.mrb[38].mxu1 %vm433_vm0, %v13877_v56  ;;  %18060 = vmatmul.mubr.msk.f32.gmra.mrb[102].mxu0 %vm433_vm0, %v14969_v58  ;;  %v13909_v56 = vld [vmem:[%s19385_s26 + $0x3c8] sm:$0xff] }
 0x363   : > { %17190 = vmatprep.mubr.msk.f32.mxu1 %vm433_vm0, %v13878_v60  ;;  %18062 = vmatprep.mubr.msk.f32.mxu0 %vm433_vm0, %v14970_v62  ;;  %v15130_v58 = vld [vmem:[%s19385_s26 + $0x82] sm:$0xff]  ;;  %v13910_v60 = vld [vmem:[%s19385_s26 + $0x3d8] sm:$0xff] }
 0x364   : > { %v15131_v62 = vld [vmem:[%s19385_s26 + $0x92] sm:$0xff] }
 0x366   : > { %17191 = vmatmul.mubr.msk.f32.gmra.mrb[40].mxu1 %vm433_vm0, %v13879_v0  ;;  %18063 = vmatmul.mubr.msk.f32.gmra.mrb[104].mxu0 %vm433_vm0, %v14971_v2  ;;  %v13911_v0 = vld [vmem:[%s19385_s26 + $0x3e0] sm:$0xff] }
 0x367   : > { %17193 = vmatprep.mubr.msk.f32.mxu1 %vm433_vm0, %v13880_v6  ;;  %18065 = vmatprep.mubr.msk.f32.mxu0 %vm433_vm0, %v14972_v1  ;;  %v15132_v2 = vld [vmem:[%s19385_s26 + $0x9a] sm:$0xff]  ;;  %v13912_v6 = vld [vmem:[%s19385_s26 + $0x3f0] sm:$0xff] }
 0x368   : > { %v15133_v1 = vld [vmem:[%s19385_s26 + $0xaa] sm:$0xff] }
 0x36a   : > { %17194 = vmatmul.mubr.msk.f32.gmra.mrb[42].mxu1 %vm433_vm0, %v13881_v33  ;;  %18066 = vmatmul.mubr.msk.f32.gmra.mrb[106].mxu0 %vm433_vm0, %v14973_v16  ;;  %v13913_v33 = vld [vmem:[%s19385_s26 + $0x3f8] sm:$0xff] }
 0x36b   : > { %17196 = vmatprep.mubr.msk.f32.mxu1 %vm433_vm0, %v13882_v11  ;;  %18068 = vmatprep.mubr.msk.f32.mxu0 %vm433_vm0, %v14974_v21  ;;  %v15134_v16 = vld [vmem:[%s19385_s26 + $0xb2] sm:$0xff]  ;;  %v13914_v11 = vld [vmem:[%s19385_s26 + $0x408] sm:$0xff] }
 0x36c   : > { %v15135_v21 = vld [vmem:[%s19385_s26 + $0xc2] sm:$0xff] }
 0x36e   : > { %17197 = vmatmul.mubr.msk.f32.gmra.mrb[44].mxu1 %vm433_vm0, %v13883_v13  ;;  %18069 = vmatmul.mubr.msk.f32.gmra.mrb[108].mxu0 %vm433_vm0, %v14975_v9  ;;  %v13915_v13 = vld [vmem:[%s19385_s26 + $0x410] sm:$0xff] }
 0x36f   : > { %17199 = vmatprep.mubr.msk.f32.mxu1 %vm433_vm0, %v13884_v25  ;;  %18071 = vmatprep.mubr.msk.f32.mxu0 %vm433_vm0, %v14976_v10  ;;  %v15136_v9 = vld [vmem:[%s19385_s26 + $0xca] sm:$0xff]  ;;  %v13916_v25 = vld [vmem:[%s19385_s26 + $0x420] sm:$0xff] }
 0x370   : > { %v15137_v10 = vld [vmem:[%s19385_s26 + $0xda] sm:$0xff] }
 0x372   : > { %17200 = vmatmul.mubr.msk.f32.gmra.mrb[46].mxu1 %vm433_vm0, %v13885_v17  ;;  %18072 = vmatmul.mubr.msk.f32.gmra.mrb[110].mxu0 %vm433_vm0, %v14977_v8  ;;  %v13917_v17 = vld [vmem:[%s19385_s26 + $0x428] sm:$0xff] }
 0x373   : > { %17202 = vmatprep.mubr.msk.f32.mxu1 %vm433_vm0, %v13886_v23  ;;  %18074 = vmatprep.mubr.msk.f32.mxu0 %vm433_vm0, %v14978_v27  ;;  %v15138_v8 = vld [vmem:[%s19385_s26 + $0xe2] sm:$0xff]  ;;  %v13918_v23 = vld [vmem:[%s19385_s26 + $0x438] sm:$0xff] }
 0x374   : > { %v15139_v27 = vld [vmem:[%s19385_s26 + $0xf2] sm:$0xff] }
 0x376   : > { %17203 = vmatmul.mubr.msk.f32.gmra.mrb[48].mxu1 %vm433_vm0, %v13887_v31  ;;  %18075 = vmatmul.mubr.msk.f32.gmra.mrb[112].mxu0 %vm433_vm0, %v14979_v35  ;;  %v13919_v31 = vld [vmem:[%s19385_s26 + $0x440] sm:$0xff] }
 0x377   : > { %17205 = vmatprep.mubr.msk.f32.mxu1 %vm433_vm0, %v13888_v39  ;;  %18077 = vmatprep.mubr.msk.f32.mxu0 %vm433_vm0, %v14980_v43  ;;  %v15140_v35 = vld [vmem:[%s19385_s26 + $0xfa] sm:$0xff]  ;;  %v13920_v39 = vld [vmem:[%s19385_s26 + $0x450] sm:$0xff] }
 0x378   : > { %v15141_v43 = vld [vmem:[%s19385_s26 + $0x10a] sm:$0xff] }
 0x37a   : > { %17206 = vmatmul.mubr.msk.f32.gmra.mrb[50].mxu1 %vm433_vm0, %v13889_v47  ;;  %18078 = vmatmul.mubr.msk.f32.gmra.mrb[114].mxu0 %vm433_vm0, %v14981_v51  ;;  %v13921_v47 = vld [vmem:[%s19385_s26 + $0x458] sm:$0xff] }
 0x37b   : > { %17208 = vmatprep.mubr.msk.f32.mxu1 %vm433_vm0, %v13890_v55  ;;  %18080 = vmatprep.mubr.msk.f32.mxu0 %vm433_vm0, %v14982_v59  ;;  %v15142_v51 = vld [vmem:[%s19385_s26 + $0x112] sm:$0xff]  ;;  %v13922_v55 = vld [vmem:[%s19385_s26 + $0x468] sm:$0xff] }
 0x37c   : > { %v15143_v59 = vld [vmem:[%s19385_s26 + $0x122] sm:$0xff] }
 0x37e   : > { %17209 = vmatmul.mubr.msk.f32.gmra.mrb[52].mxu1 %vm433_vm0, %v13891_v63  ;;  %18081 = vmatmul.mubr.msk.f32.gmra.mrb[116].mxu0 %vm433_vm0, %v14983_v3  ;;  %v13923_v63 = vld [vmem:[%s19385_s26 + $0x470] sm:$0xff] }
 0x37f   : > { %17211 = vmatprep.mubr.msk.f32.mxu1 %vm433_vm0, %v13892_v7  ;;  %18083 = vmatprep.mubr.msk.f32.mxu0 %vm433_vm0, %v14984_v12  ;;  %v15144_v3 = vld [vmem:[%s19385_s26 + $0x12a] sm:$0xff]  ;;  %v13924_v7 = vld [vmem:[%s19385_s26 + $0x480] sm:$0xff] }
 0x380   : > { %v15145_v12 = vld [vmem:[%s19385_s26 + $0x13a] sm:$0xff] }
 0x382   : > { %17212 = vmatmul.mubr.msk.f32.gmra.mrb[54].mxu1 %vm433_vm0, %v13893_v15  ;;  %18084 = vmatmul.mubr.msk.f32.gmra.mrb[118].mxu0 %vm433_vm0, %v14985_v18  ;;  %v13925_v15 = vld [vmem:[%s19385_s26 + $0x488] sm:$0xff] }
 0x383   : > { %17214 = vmatprep.mubr.msk.f32.mxu1 %vm433_vm0, %v13894_v20  ;;  %18086 = vmatprep.mubr.msk.f32.mxu0 %vm433_vm0, %v14986_v22  ;;  %v15146_v18 = vld [vmem:[%s19385_s26 + $0x142] sm:$0xff]  ;;  %v13926_v20 = vld [vmem:[%s19385_s26 + $0x498] sm:$0xff] }
 0x384   : > { %v15147_v22 = vld [vmem:[%s19385_s26 + $0x152] sm:$0xff] }
 0x386   : > { %17215 = vmatmul.mubr.msk.f32.gmra.mrb[56].mxu1 %vm433_vm0, %v13895_v29  ;;  %18087 = vmatmul.mubr.msk.f32.gmra.mrb[120].mxu0 %vm433_vm0, %v14987_v37  ;;  %v13927_v29 = vld [vmem:[%s19385_s26 + $0x4a0] sm:$0xff] }
 0x387   : > { %17217 = vmatprep.mubr.msk.f32.mxu1 %vm433_vm0, %v13896_v45  ;;  %18089 = vmatprep.mubr.msk.f32.mxu0 %vm433_vm0, %v14988_v53  ;;  %v15148_v37 = vld [vmem:[%s19385_s26 + $0x15a] sm:$0xff]  ;;  %v13928_v45 = vld [vmem:[%s19385_s26 + $0x4b0] sm:$0xff] }
 0x388   : > { %v15149_v53 = vld [vmem:[%s19385_s26 + $0x16a] sm:$0xff] }
 0x38a   : > { %17218 = vmatmul.mubr.msk.f32.gmra.mrb[58].mxu1 %vm433_vm0, %v13897_v61  ;;  %18090 = vmatmul.mubr.msk.f32.gmra.mrb[122].mxu0 %vm433_vm0, %v14989_v5  ;;  %v13929_v61 = vld [vmem:[%s19385_s26 + $0x4b8] sm:$0xff] }
 0x38b   : > { %17220 = vmatprep.mubr.msk.f32.mxu1 %vm433_vm0, %v13898_v19  ;;  %18092 = vmatprep.mubr.msk.f32.mxu0 %vm433_vm0, %v14990_v14  ;;  %v15150_v5 = vld [vmem:[%s19385_s26 + $0x172] sm:$0xff]  ;;  %v13930_v19 = vld [vmem:[%s19385_s26 + $0x4c8] sm:$0xff] }
 0x38c   : > { %v15151_v14 = vld [vmem:[%s19385_s26 + $0x182] sm:$0xff] }
 0x38e   : > { %17221 = vmatmul.mubr.msk.f32.gmra.mrb[60].mxu1 %vm433_vm0, %v13899_v49  ;;  %18093 = vmatmul.mubr.msk.f32.gmra.mrb[124].mxu0 %vm433_vm0, %v14991_v24  ;;  %v13931_v49 = vld [vmem:[%s19385_s26 + $0x4d0] sm:$0xff] }
 0x38f   : > { %17223 = vmatprep.mubr.msk.f32.mxu1 %vm433_vm0, %v13900_v41  ;;  %18095 = vmatprep.mubr.msk.f32.mxu0 %vm433_vm0, %v14992_v26  ;;  %v15152_v24 = vld [vmem:[%s19385_s26 + $0x18a] sm:$0xff]  ;;  %v13932_v41 = vld [vmem:[%s19385_s26 + $0x4e0] sm:$0xff] }
 0x390   : > { %v15153_v26 = vld [vmem:[%s19385_s26 + $0x19a] sm:$0xff] }
 0x392   : > { %17224 = vmatmul.mubr.msk.f32.gmra.mrb[62].mxu1 %vm433_vm0, %v13901_v28  ;;  %18096 = vmatmul.mubr.msk.f32.gmra.mrb[126].mxu0 %vm433_vm0, %v14993_v30  ;;  %v13933_v28 = vld [vmem:[%s19385_s26 + $0x4e8] sm:$0xff] }
 0x393   : > { %17226 = vmatprep.mubr.msk.f32.mxu1 %vm433_vm0, %v13902_v32  ;;  %18100 = vmatprep.mubr.msk.f32.mxu0 %vm433_vm0, %v15123_v34  ;;  %v15154_v30 = vld [vmem:[%s19385_s26 + $0x1a2] sm:$0xff] }
 0x394   : > { %v13934_v32 = vld [vmem:[%s19385_s26 + $0x528] sm:$0xff] }
 0x395   : > { %v15155_v34 = vld [vmem:[%s19385_s26 + $0x1e2] sm:$0xff] }
 0x396   : > { %17227 = vmatmul.mubr.msk.f32.gmra.mrb[64].mxu1 %vm433_vm0, %v13903_v36  ;;  %18101 = vmatmul.mubr.msk.f32.vlgmr.msra.gmra.mrb[0].mxu0 %vm433_vm0, %v15124_v38  ;;  %v13935_v36 = vld [vmem:[%s19385_s26 + $0x530] sm:$0xff] }
 0x397   : > { %17229 = vmatprep.mubr.msk.f32.mxu1 %vm433_vm0, %v13904_v40  ;;  %18103 = vmatprep.mubr.msk.f32.mxu0 %vm433_vm0, %v15125_v42  ;;  %v15156_v38 = vld [vmem:[%s19385_s26 + $0x1ea] sm:$0xff]  ;;  %v13936_v40 = vld [vmem:[%s19385_s26 + $0x540] sm:$0xff] }
 0x398   : > { %v15157_v42 = vld [vmem:[%s19385_s26 + $0x1fa] sm:$0xff] }
 0x39a   : > { %17230 = vmatmul.mubr.msk.f32.gmra.mrb[66].mxu1 %vm433_vm0, %v13905_v44  ;;  %18104 = vmatmul.mubr.msk.f32.gmra.mrb[2].mxu0 %vm433_vm0, %v15126_v46  ;;  %v13937_v44 = vld [vmem:[%s19385_s26 + $0x548] sm:$0xff] }
 0x39b   : > { %17232 = vmatprep.mubr.msk.f32.mxu1 %vm433_vm0, %v13906_v4  ;;  %18106 = vmatprep.mubr.msk.f32.mxu0 %vm433_vm0, %v15127_v48  ;;  %v15158_v46 = vld [vmem:[%s19385_s26 + $0x202] sm:$0xff]  ;;  %v13938_v4 = vld [vmem:[%s19385_s26 + $0x558] sm:$0xff] }
 0x39c   : > { %v15159_v48 = vld [vmem:[%s19385_s26 + $0x212] sm:$0xff] }
 0x39e   : > { %17233 = vmatmul.mubr.msk.f32.gmra.mrb[68].mxu1 %vm433_vm0, %v13907_v57  ;;  %18107 = vmatmul.mubr.msk.f32.gmra.mrb[4].mxu0 %vm433_vm0, %v15128_v50  ;;  %v13939_v57 = vld [vmem:[%s19385_s26 + $0x560] sm:$0xff] }
 0x39f   : > { %17235 = vmatprep.mubr.msk.f32.mxu1 %vm433_vm0, %v13908_v52  ;;  %18109 = vmatprep.mubr.msk.f32.mxu0 %vm433_vm0, %v15129_v54  ;;  %v15160_v50 = vld [vmem:[%s19385_s26 + $0x21a] sm:$0xff]  ;;  %v13940_v52 = vld [vmem:[%s19385_s26 + $0x570] sm:$0xff] }
 0x3a0   : > { %v15161_v54 = vld [vmem:[%s19385_s26 + $0x22a] sm:$0xff] }
 0x3a2   : > { %17236 = vmatmul.mubr.msk.f32.gmra.mrb[70].mxu1 %vm433_vm0, %v13909_v56  ;;  %18110 = vmatmul.mubr.msk.f32.gmra.mrb[6].mxu0 %vm433_vm0, %v15130_v58  ;;  %v13941_v56 = vld [vmem:[%s19385_s26 + $0x578] sm:$0xff] }
 0x3a3   : > { %17238 = vmatprep.mubr.msk.f32.mxu1 %vm433_vm0, %v13910_v60  ;;  %18112 = vmatprep.mubr.msk.f32.mxu0 %vm433_vm0, %v15131_v62  ;;  %v15162_v58 = vld [vmem:[%s19385_s26 + $0x232] sm:$0xff]  ;;  %v13942_v60 = vld [vmem:[%s19385_s26 + $0x588] sm:$0xff] }
 0x3a4   : > { %v15163_v62 = vld [vmem:[%s19385_s26 + $0x242] sm:$0xff] }
 0x3a6   : > { %17239 = vmatmul.mubr.msk.f32.gmra.mrb[72].mxu1 %vm433_vm0, %v13911_v0  ;;  %18113 = vmatmul.mubr.msk.f32.gmra.mrb[8].mxu0 %vm433_vm0, %v15132_v2  ;;  %v13943_v0 = vld [vmem:[%s19385_s26 + $0x590] sm:$0xff] }
 0x3a7   : > { %17241 = vmatprep.mubr.msk.f32.mxu1 %vm433_vm0, %v13912_v6  ;;  %18115 = vmatprep.mubr.msk.f32.mxu0 %vm433_vm0, %v15133_v1  ;;  %v15164_v2 = vld [vmem:[%s19385_s26 + $0x24a] sm:$0xff]  ;;  %v13944_v6 = vld [vmem:[%s19385_s26 + $0x5a0] sm:$0xff] }
 0x3a8   : > { %v15165_v1 = vld [vmem:[%s19385_s26 + $0x25a] sm:$0xff] }
 0x3aa   : > { %17242 = vmatmul.mubr.msk.f32.gmra.mrb[74].mxu1 %vm433_vm0, %v13913_v33  ;;  %18116 = vmatmul.mubr.msk.f32.gmra.mrb[10].mxu0 %vm433_vm0, %v15134_v16  ;;  %v13945_v33 = vld [vmem:[%s19385_s26 + $0x5a8] sm:$0xff] }
 0x3ab   : > { %17244 = vmatprep.mubr.msk.f32.mxu1 %vm433_vm0, %v13914_v11  ;;  %18118 = vmatprep.mubr.msk.f32.mxu0 %vm433_vm0, %v15135_v21  ;;  %v15166_v16 = vld [vmem:[%s19385_s26 + $0x262] sm:$0xff]  ;;  %v13946_v11 = vld [vmem:[%s19385_s26 + $0x5b8] sm:$0xff] }
 0x3ac   : > { %v15167_v21 = vld [vmem:[%s19385_s26 + $0x272] sm:$0xff] }
 0x3ae   : > { %17245 = vmatmul.mubr.msk.f32.gmra.mrb[76].mxu1 %vm433_vm0, %v13915_v13  ;;  %18119 = vmatmul.mubr.msk.f32.gmra.mrb[12].mxu0 %vm433_vm0, %v15136_v9 }
 0x3af   : > { %17247 = vmatprep.mubr.msk.f32.mxu1 %vm433_vm0, %v13916_v25  ;;  %18121 = vmatprep.mubr.msk.f32.mxu0 %vm433_vm0, %v15137_v10  ;;  %v13947_v25 = vld [vmem:[%s19385_s26 + $0x5c0] sm:$0xff] }
 0x3b0   : > { %v15168_v10 = vld [vmem:[%s19385_s26 + $0x27a] sm:$0xff] }
 0x3b2   : > { %17248 = vmatmul.mubr.msk.f32.gmra.mrb[78].mxu1 %vm433_vm0, %v13917_v17  ;;  %18122 = vmatmul.mubr.msk.f32.gmra.mrb[14].mxu0 %vm433_vm0, %v15138_v8  ;;  %v13948_v17 = vld [vmem:[%s19385_s26 + $0x5d0] sm:$0xff] }
 0x3b3   : > { %17250 = vmatprep.mubr.msk.f32.mxu1 %vm433_vm0, %v13918_v23  ;;  %18124 = vmatprep.mubr.msk.f32.mxu0 %vm433_vm0, %v15139_v27  ;;  %v15169_v8 = vld [vmem:[%s19385_s26 + $0x28a] sm:$0xff] }
 0x3b6   : > { %17251 = vmatmul.mubr.msk.f32.gmra.mrb[80].mxu1 %vm433_vm0, %v13919_v31  ;;  %18125 = vmatmul.mubr.msk.f32.gmra.mrb[16].mxu0 %vm433_vm0, %v15140_v35  ;;  %v13949_v31 = vld [vmem:[%s19385_s26 + $0x5d8] sm:$0xff] }
 0x3b7   : > { %17253 = vmatprep.mubr.msk.f32.mxu1 %vm433_vm0, %v13920_v39  ;;  %18127 = vmatprep.mubr.msk.f32.mxu0 %vm433_vm0, %v15141_v43  ;;  %v15170_v35 = vld [vmem:[%s19385_s26 + $0x292] sm:$0xff]  ;;  %v13950_v39 = vld [vmem:[%s19385_s26 + $0x5e8] sm:$0xff] }
 0x3b8   : > { %v15171_v43 = vld [vmem:[%s19385_s26 + $0x2a2] sm:$0xff] }
 0x3ba   : > { %17254 = vmatmul.mubr.msk.f32.gmra.mrb[82].mxu1 %vm433_vm0, %v13921_v47  ;;  %18128 = vmatmul.mubr.msk.f32.gmra.mrb[18].mxu0 %vm433_vm0, %v15142_v51 }
 0x3bb   : > { %17256 = vmatprep.mubr.msk.f32.mxu1 %vm433_vm0, %v13922_v55  ;;  %18130 = vmatprep.mubr.msk.f32.mxu0 %vm433_vm0, %v15143_v59  ;;  %v13951_v55 = vld [vmem:[%s19385_s26 + $0x5f0] sm:$0xff] }
 0x3bc   : > { %v15172_v59 = vld [vmem:[%s19385_s26 + $0x2aa] sm:$0xff] }
 0x3be   : > { %17257 = vmatmul.mubr.msk.f32.gmra.mrb[84].mxu1 %vm433_vm0, %v13923_v63  ;;  %18131 = vmatmul.mubr.msk.f32.gmra.mrb[20].mxu0 %vm433_vm0, %v15144_v3  ;;  %v13952_v63 = vld [vmem:[%s19385_s26 + $0x600] sm:$0xff] }
 0x3bf   : > { %17259 = vmatprep.mubr.msk.f32.mxu1 %vm433_vm0, %v13924_v7  ;;  %18133 = vmatprep.mubr.msk.f32.mxu0 %vm433_vm0, %v15145_v12  ;;  %v15173_v3 = vld [vmem:[%s19385_s26 + $0x2ba] sm:$0xff] }
 0x3c2   : > { %17260 = vmatmul.mubr.msk.f32.gmra.mrb[86].mxu1 %vm433_vm0, %v13925_v15  ;;  %18134 = vmatmul.mubr.msk.f32.gmra.mrb[22].mxu0 %vm433_vm0, %v15146_v18  ;;  %v13953_v15 = vld [vmem:[%s19385_s26 + $0x608] sm:$0xff] }
 0x3c3   : > { %17262 = vmatprep.mubr.msk.f32.mxu1 %vm433_vm0, %v13926_v20  ;;  %18136 = vmatprep.mubr.msk.f32.mxu0 %vm433_vm0, %v15147_v22  ;;  %v15174_v18 = vld [vmem:[%s19385_s26 + $0x2c2] sm:$0xff]  ;;  %v13954_v20 = vld [vmem:[%s19385_s26 + $0x618] sm:$0xff] }
 0x3c4   : > { %v15175_v22 = vld [vmem:[%s19385_s26 + $0x2d2] sm:$0xff] }
 0x3c6   : > { %17263 = vmatmul.mubr.msk.f32.gmra.mrb[88].mxu1 %vm433_vm0, %v13927_v29  ;;  %18137 = vmatmul.mubr.msk.f32.gmra.mrb[24].mxu0 %vm433_vm0, %v15148_v37 }
 0x3c7   : > { %17265 = vmatprep.mubr.msk.f32.mxu1 %vm433_vm0, %v13928_v45  ;;  %18139 = vmatprep.mubr.msk.f32.mxu0 %vm433_vm0, %v15149_v53  ;;  %v13955_v45 = vld [vmem:[%s19385_s26 + $0x620] sm:$0xff] }
 0x3c8   : > { %v15176_v53 = vld [vmem:[%s19385_s26 + $0x2da] sm:$0xff] }
 0x3ca   : > { %17266 = vmatmul.mubr.msk.f32.gmra.mrb[90].mxu1 %vm433_vm0, %v13929_v61  ;;  %18140 = vmatmul.mubr.msk.f32.gmra.mrb[26].mxu0 %vm433_vm0, %v15150_v5  ;;  %v13956_v61 = vld [vmem:[%s19385_s26 + $0x630] sm:$0xff] }
 0x3cb   : > { %17268 = vmatprep.mubr.msk.f32.mxu1 %vm433_vm0, %v13930_v19  ;;  %18142 = vmatprep.mubr.msk.f32.mxu0 %vm433_vm0, %v15151_v14  ;;  %v15177_v5 = vld [vmem:[%s19385_s26 + $0x2ea] sm:$0xff] }
 0x3ce   : > { %17269 = vmatmul.mubr.msk.f32.gmra.mrb[92].mxu1 %vm433_vm0, %v13931_v49  ;;  %18143 = vmatmul.mubr.msk.f32.gmra.mrb[28].mxu0 %vm433_vm0, %v15152_v24  ;;  %v13957_v49 = vld [vmem:[%s19385_s26 + $0x638] sm:$0xff] }
 0x3cf   : > { %17271 = vmatprep.mubr.msk.f32.mxu1 %vm433_vm0, %v13932_v41  ;;  %18145 = vmatprep.mubr.msk.f32.mxu0 %vm433_vm0, %v15153_v26  ;;  %v15178_v24 = vld [vmem:[%s19385_s26 + $0x2f2] sm:$0xff]  ;;  %v13958_v41 = vld [vmem:[%s19385_s26 + $0x648] sm:$0xff] }
 0x3d0   : > { %v15179_v26 = vld [vmem:[%s19385_s26 + $0x302] sm:$0xff] }
 0x3d2   : > { %17272 = vmatmul.mubr.msk.f32.gmra.mrb[94].mxu1 %vm433_vm0, %v13933_v28  ;;  %18146 = vmatmul.mubr.msk.f32.gmra.mrb[30].mxu0 %vm433_vm0, %v15154_v30 }
 0x3d3   : > { %17274 = vmatprep.mubr.msk.f32.mxu1 %vm433_vm0, %v13934_v32  ;;  %18148 = vmatprep.mubr.msk.f32.mxu0 %vm433_vm0, %v15155_v34  ;;  %v13959_v32 = vld [vmem:[%s19385_s26 + $0x650] sm:$0xff] }
 0x3d4   : > { %v15180_v34 = vld [vmem:[%s19385_s26 + $0x30a] sm:$0xff] }
 0x3d6   : > { %17275 = vmatmul.mubr.msk.f32.gmra.mrb[96].mxu1 %vm433_vm0, %v13935_v36  ;;  %18149 = vmatmul.mubr.msk.f32.gmra.mrb[32].mxu0 %vm433_vm0, %v15156_v38  ;;  %v13960_v36 = vld [vmem:[%s19385_s26 + $0x660] sm:$0xff] }
 0x3d7   : > { %17277 = vmatprep.mubr.msk.f32.mxu1 %vm433_vm0, %v13936_v40  ;;  %18151 = vmatprep.mubr.msk.f32.mxu0 %vm433_vm0, %v15157_v42  ;;  %v15181_v38 = vld [vmem:[%s19385_s26 + $0x31a] sm:$0xff] }
 0x3da   : > { %17278 = vmatmul.mubr.msk.f32.gmra.mrb[98].mxu1 %vm433_vm0, %v13937_v44  ;;  %18152 = vmatmul.mubr.msk.f32.gmra.mrb[34].mxu0 %vm433_vm0, %v15158_v46  ;;  %v13961_v44 = vld [vmem:[%s19385_s26 + $0x668] sm:$0xff] }
 0x3db   : > { %17280 = vmatprep.mubr.msk.f32.mxu1 %vm433_vm0, %v13938_v4  ;;  %18154 = vmatprep.mubr.msk.f32.mxu0 %vm433_vm0, %v15159_v48  ;;  %v15182_v46 = vld [vmem:[%s19385_s26 + $0x322] sm:$0xff]  ;;  %v13962_v4 = vld [vmem:[%s19385_s26 + $0x678] sm:$0xff] }
 0x3dc   : > { %v15183_v48 = vld [vmem:[%s19385_s26 + $0x332] sm:$0xff] }
 0x3de   : > { %17281 = vmatmul.mubr.msk.f32.gmra.mrb[100].mxu1 %vm433_vm0, %v13939_v57  ;;  %18155 = vmatmul.mubr.msk.f32.gmra.mrb[36].mxu0 %vm433_vm0, %v15160_v50 }
 0x3df   : > { %17283 = vmatprep.mubr.msk.f32.mxu1 %vm433_vm0, %v13940_v52  ;;  %18157 = vmatprep.mubr.msk.f32.mxu0 %vm433_vm0, %v15161_v54  ;;  %v13963_v52 = vld [vmem:[%s19385_s26 + $0x680] sm:$0xff] }
 0x3e0   : > { %v15184_v54 = vld [vmem:[%s19385_s26 + $0x33a] sm:$0xff] }
 0x3e2   : > { %17284 = vmatmul.mubr.msk.f32.gmra.mrb[102].mxu1 %vm433_vm0, %v13941_v56  ;;  %18158 = vmatmul.mubr.msk.f32.gmra.mrb[38].mxu0 %vm433_vm0, %v15162_v58  ;;  %v13964_v56 = vld [vmem:[%s19385_s26 + $0x690] sm:$0xff] }
 0x3e3   : > { %17286 = vmatprep.mubr.msk.f32.mxu1 %vm433_vm0, %v13942_v60  ;;  %18160 = vmatprep.mubr.msk.f32.mxu0 %vm433_vm0, %v15163_v62  ;;  %v15185_v58 = vld [vmem:[%s19385_s26 + $0x34a] sm:$0xff] }
 0x3e6   : > { %17287 = vmatmul.mubr.msk.f32.gmra.mrb[104].mxu1 %vm433_vm0, %v13943_v0  ;;  %18161 = vmatmul.mubr.msk.f32.gmra.mrb[40].mxu0 %vm433_vm0, %v15164_v2  ;;  %v13965_v0 = vld [vmem:[%s19385_s26 + $0x698] sm:$0xff] }
 0x3e7   : > { %17289 = vmatprep.mubr.msk.f32.mxu1 %vm433_vm0, %v13944_v6  ;;  %18163 = vmatprep.mubr.msk.f32.mxu0 %vm433_vm0, %v15165_v1  ;;  %v15186_v2 = vld [vmem:[%s19385_s26 + $0x352] sm:$0xff] }
 0x3e8   : > { %v14159_v6 = vld [vmem:[%s19385_s26 + $0x379] sm:$0xff] }
 0x3e9   : > { %v21673_v13 = vpop.f32.mrb[0].mxu1  ;;  %v15187_v1 = vld [vmem:[%s19385_s26 + $0x392] sm:$0xff] }
 0x3ea   : > { %v21675_v9 = vpop.f32.mrb[1].mxu1  ;;  %17290 = vmatmul.mubr.msk.f32.gmra.mrb[106].mxu1 %vm433_vm0, %v13945_v33  ;;  %18164 = vmatmul.mubr.msk.f32.gmra.mrb[42].mxu0 %vm433_vm0, %v15166_v16 }
 0x3eb   : > { %17292 = vmatprep.mubr.msk.f32.mxu1 %vm433_vm0, %v13946_v11  ;;  %18166 = vmatprep.mubr.msk.f32.mxu0 %vm433_vm0, %v15167_v21  ;;  %v14160_v11 = vld [vmem:[%s19385_s26 + $0x381] sm:$0xff] }
 0x3ec   : > { %v15188_v21 = vld [vmem:[%s19385_s26 + $0x39a] sm:$0xff] }
 0x3ed   : > { %v21685_v23 = vpop.f32.mrb[2].mxu1 }
 0x3ee   : > { %v21687_v27 = vpop.f32.mrb[3].mxu1  ;;  %17293 = vmatmul.mubr.msk.f32.gmra.mrb[108].mxu1 %vm433_vm0, %v13947_v25  ;;  %18167 = vmatmul.mubr.msk.f32.gmra.mrb[44].mxu0 %vm433_vm0, %v15168_v10  ;;  %v14161_v25 = vld [vmem:[%s19385_s26 + $0x391] sm:$0xff] }
 0x3ef   : > { %17295 = vmatprep.mubr.msk.f32.mxu1 %vm433_vm0, %v13948_v17  ;;  %18169 = vmatprep.mubr.msk.f32.mxu0 %vm433_vm0, %v15169_v8  ;;  %v15189_v10 = vld [vmem:[%s19385_s26 + $0x3aa] sm:$0xff] }
 0x3f1   : > { %v21697_v47 = vpop.f32.mrb[4].mxu1 }
 0x3f2   : > { %v21699_v51 = vpop.f32.mrb[5].mxu1  ;;  %17296 = vmatmul.mubr.msk.f32.gmra.mrb[110].mxu1 %vm433_vm0, %v13949_v31  ;;  %18170 = vmatmul.mubr.msk.f32.gmra.mrb[46].mxu0 %vm433_vm0, %v15170_v35  ;;  %v14162_v31 = vld [vmem:[%s19385_s26 + $0x399] sm:$0xff] }
 0x3f3   : > { %17298 = vmatprep.mubr.msk.f32.mxu1 %vm433_vm0, %v13950_v39  ;;  %18172 = vmatprep.mubr.msk.f32.mxu0 %vm433_vm0, %v15171_v43  ;;  %v15190_v35 = vld [vmem:[%s19385_s26 + $0x3b2] sm:$0xff]  ;;  %v14163_v39 = vld [vmem:[%s19385_s26 + $0x3a9] sm:$0xff] }
 0x3f4   : > { %v15191_v43 = vld [vmem:[%s19385_s26 + $0x3c2] sm:$0xff] }
 0x3f5   : > { %v21709_v7 = vpop.f32.mrb[6].mxu1 }
 0x3f6   : > { %v21711_v12 = vpop.f32.mrb[7].mxu1  ;;  %17299 = vmatmul.mubr.msk.f32.gmra.mrb[112].mxu1 %vm433_vm0, %v13951_v55  ;;  %18173 = vmatmul.mubr.msk.f32.gmra.mrb[48].mxu0 %vm433_vm0, %v15172_v59 }
 0x3f7   : > { %17301 = vmatprep.mubr.msk.f32.mxu1 %vm433_vm0, %v13952_v63  ;;  %18175 = vmatprep.mubr.msk.f32.mxu0 %vm433_vm0, %v15173_v3  ;;  %v14164_v63 = vld [vmem:[%s19385_s26 + $0x3b1] sm:$0xff] }
 0x3f8   : > { %v15192_v3 = vld [vmem:[%s19385_s26 + $0x3ca] sm:$0xff] }
 0x3f9   : > { %v21721_v29 = vpop.f32.mrb[8].mxu1 }
 0x3fa   : > { %v21723_v37 = vpop.f32.mrb[9].mxu1  ;;  %17302 = vmatmul.mubr.msk.f32.gmra.mrb[114].mxu1 %vm433_vm0, %v13953_v15  ;;  %18176 = vmatmul.mubr.msk.f32.gmra.mrb[50].mxu0 %vm433_vm0, %v15174_v18  ;;  %v14165_v15 = vld [vmem:[%s19385_s26 + $0x3c1] sm:$0xff] }
 0x3fb   : > { %17304 = vmatprep.mubr.msk.f32.mxu1 %vm433_vm0, %v13954_v20  ;;  %18178 = vmatprep.mubr.msk.f32.mxu0 %vm433_vm0, %v15175_v22  ;;  %v15193_v18 = vld [vmem:[%s19385_s26 + $0x3da] sm:$0xff] }
 0x3fd   : > { %v21733_v19 = vpop.f32.mrb[10].mxu1 }
 0x3fe   : > { %v21735_v14 = vpop.f32.mrb[11].mxu1  ;;  %17305 = vmatmul.mubr.msk.f32.gmra.mrb[116].mxu1 %vm433_vm0, %v13955_v45  ;;  %18179 = vmatmul.mubr.msk.f32.gmra.mrb[52].mxu0 %vm433_vm0, %v15176_v53  ;;  %v14166_v45 = vld [vmem:[%s19385_s26 + $0x3c9] sm:$0xff] }
 0x3ff   : > { %17307 = vmatprep.mubr.msk.f32.mxu1 %vm433_vm0, %v13956_v61  ;;  %18181 = vmatprep.mubr.msk.f32.mxu0 %vm433_vm0, %v15177_v5  ;;  %v15194_v53 = vld [vmem:[%s19385_s26 + $0x3e2] sm:$0xff]  ;;  %v14167_v61 = vld [vmem:[%s19385_s26 + $0x3d9] sm:$0xff] }
 0x400   : > { %v15195_v5 = vld [vmem:[%s19385_s26 + $0x3f2] sm:$0xff] }
 0x401   : > { %v21745_v28 = vpop.f32.mrb[12].mxu1 }
 0x402   : > { %v21747_v30 = vpop.f32.mrb[13].mxu1  ;;  %17308 = vmatmul.mubr.msk.f32.gmra.mrb[118].mxu1 %vm433_vm0, %v13957_v49  ;;  %18182 = vmatmul.mubr.msk.f32.gmra.mrb[54].mxu0 %vm433_vm0, %v15178_v24 }
 0x403   : > { %17310 = vmatprep.mubr.msk.f32.mxu1 %vm433_vm0, %v13958_v41  ;;  %18184 = vmatprep.mubr.msk.f32.mxu0 %vm433_vm0, %v15179_v26  ;;  %v14168_v41 = vld [vmem:[%s19385_s26 + $0x3e1] sm:$0xff] }
 0x404   : > { %v15196_v26 = vld [vmem:[%s19385_s26 + $0x3fa] sm:$0xff] }
 0x405   : > { %v21757_v40 = vpop.f32.mrb[14].mxu1 }
 0x406   : > { %v21759_v42 = vpop.f32.mrb[15].mxu1  ;;  %17311 = vmatmul.mubr.msk.f32.gmra.mrb[120].mxu1 %vm433_vm0, %v13959_v32  ;;  %18185 = vmatmul.mubr.msk.f32.gmra.mrb[56].mxu0 %vm433_vm0, %v15180_v34  ;;  %v14169_v32 = vld [vmem:[%s19385_s26 + $0x3f1] sm:$0xff] }
 0x407   : > { %17313 = vmatprep.mubr.msk.f32.mxu1 %vm433_vm0, %v13960_v36  ;;  %18187 = vmatprep.mubr.msk.f32.mxu0 %vm433_vm0, %v15181_v38  ;;  %v15197_v34 = vld [vmem:[%s19385_s26 + $0x40a] sm:$0xff] }
 0x409   : > { %v21769_v57 = vpop.f32.mrb[16].mxu1 }
 0x40a   : > { %v21771_v50 = vpop.f32.mrb[17].mxu1  ;;  %17314 = vmatmul.mubr.msk.f32.gmra.mrb[122].mxu1 %vm433_vm0, %v13961_v44  ;;  %18188 = vmatmul.mubr.msk.f32.gmra.mrb[58].mxu0 %vm433_vm0, %v15182_v46  ;;  %v14170_v44 = vld [vmem:[%s19385_s26 + $0x3f9] sm:$0xff] }
 0x40b   : > { %17316 = vmatprep.mubr.msk.f32.mxu1 %vm433_vm0, %v13962_v4  ;;  %18190 = vmatprep.mubr.msk.f32.mxu0 %vm433_vm0, %v15183_v48  ;;  %v15198_v46 = vld [vmem:[%s19385_s26 + $0x412] sm:$0xff]  ;;  %v14171_v4 = vld [vmem:[%s19385_s26 + $0x409] sm:$0xff] }
 0x40c   : > { %v15199_v48 = vld [vmem:[%s19385_s26 + $0x422] sm:$0xff] }
 0x40d   : > { %v21781_v60 = vpop.f32.mrb[18].mxu1 }
 0x40e   : > { %v21783_v62 = vpop.f32.mrb[19].mxu1  ;;  %17317 = vmatmul.mubr.msk.f32.gmra.mrb[124].mxu1 %vm433_vm0, %v13963_v52  ;;  %18191 = vmatmul.mubr.msk.f32.gmra.mrb[60].mxu0 %vm433_vm0, %v15184_v54 }
 0x40f   : > { %17319 = vmatprep.mubr.msk.f32.mxu1 %vm433_vm0, %v13964_v56  ;;  %18193 = vmatprep.mubr.msk.f32.mxu0 %vm433_vm0, %v15185_v58  ;;  %v14172_v56 = vld [vmem:[%s19385_s26 + $0x411] sm:$0xff] }
 0x410   : > { %v15200_v58 = vld [vmem:[%s19385_s26 + $0x42a] sm:$0xff] }
 0x411   : > { %v21793_v33 = vpop.f32.mrb[20].mxu1 }
 0x412   : > { %v21795_v16 = vpop.f32.mrb[21].mxu1  ;;  %17320 = vmatmul.mubr.msk.f32.gmra.mrb[126].mxu1 %vm433_vm0, %v13965_v0  ;;  %18194 = vmatmul.mubr.msk.f32.gmra.mrb[62].mxu0 %vm433_vm0, %v15186_v2  ;;  %v14173_v0 = vld [vmem:[%s19385_s26 + $0x421] sm:$0xff] }
 0x413   : > { %17420 = vmatprep.mubr.msk.f32.mxu1 %vm433_vm0, %v14159_v6  ;;  %18196 = vmatprep.mubr.msk.f32.mxu0 %vm433_vm0, %v15187_v1  ;;  %v15201_v2 = vld [vmem:[%s19385_s26 + $0x43a] sm:$0xff] }
 0x415   : > { %v21805_v17 = vpop.f32.mrb[22].mxu1 }
 0x416   : > { %v21807_v8 = vpop.f32.mrb[23].mxu1  ;;  %17421 = vmatmul.mubr.msk.f32.vlgmr.msra.gmra.mrb[64].mxu1 %vm433_vm0, %v14160_v11  ;;  %18197 = vmatmul.mubr.msk.f32.gmra.mrb[64].mxu0 %vm433_vm0, %v15188_v21  ;;  %v14174_v11 = vld [vmem:[%s19385_s26 + $0x429] sm:$0xff] }
 0x417   : > { %17423 = vmatprep.mubr.msk.f32.mxu1 %vm433_vm0, %v14161_v25  ;;  %18199 = vmatprep.mubr.msk.f32.mxu0 %vm433_vm0, %v15189_v10  ;;  %v15202_v21 = vld [vmem:[%s19385_s26 + $0x442] sm:$0xff]  ;;  %v14175_v25 = vld [vmem:[%s19385_s26 + $0x439] sm:$0xff] }
 0x418   : > { %v15203_v10 = vld [vmem:[%s19385_s26 + $0x452] sm:$0xff] }
 0x419   : > { %v21817_v55 = vpop.f32.mrb[24].mxu1 }
 0x41a   : > { %v21819_v59 = vpop.f32.mrb[25].mxu1  ;;  %17424 = vmatmul.mubr.msk.f32.gmra.mrb[66].mxu1 %vm433_vm0, %v14162_v31  ;;  %18200 = vmatmul.mubr.msk.f32.gmra.mrb[66].mxu0 %vm433_vm0, %v15190_v35 }
 0x41b   : > { %17426 = vmatprep.mubr.msk.f32.mxu1 %vm433_vm0, %v14163_v39  ;;  %18202 = vmatprep.mubr.msk.f32.mxu0 %vm433_vm0, %v15191_v43  ;;  %v14176_v39 = vld [vmem:[%s19385_s26 + $0x441] sm:$0xff] }
 0x41c   : > { %v15204_v43 = vld [vmem:[%s19385_s26 + $0x45a] sm:$0xff] }
 0x41d   : > { %v21829_v20 = vpop.f32.mrb[26].mxu1 }
 0x41e   : > { %v21831_v22 = vpop.f32.mrb[27].mxu1  ;;  %17427 = vmatmul.mubr.msk.f32.gmra.mrb[68].mxu1 %vm433_vm0, %v14164_v63  ;;  %18203 = vmatmul.mubr.msk.f32.gmra.mrb[68].mxu0 %vm433_vm0, %v15192_v3  ;;  %v14177_v63 = vld [vmem:[%s19385_s26 + $0x451] sm:$0xff] }
 0x41f   : > { %17429 = vmatprep.mubr.msk.f32.mxu1 %vm433_vm0, %v14165_v15  ;;  %18205 = vmatprep.mubr.msk.f32.mxu0 %vm433_vm0, %v15193_v18  ;;  %v15205_v3 = vld [vmem:[%s19385_s26 + $0x46a] sm:$0xff] }
 0x421   : > { %v21841_v49 = vpop.f32.mrb[28].mxu1 }
 0x422   : > { %v21843_v24 = vpop.f32.mrb[29].mxu1  ;;  %17430 = vmatmul.mubr.msk.f32.gmra.mrb[70].mxu1 %vm433_vm0, %v14166_v45  ;;  %18206 = vmatmul.mubr.msk.f32.gmra.mrb[70].mxu0 %vm433_vm0, %v15194_v53  ;;  %v14178_v45 = vld [vmem:[%s19385_s26 + $0x459] sm:$0xff] }
 0x423   : > { %17432 = vmatprep.mubr.msk.f32.mxu1 %vm433_vm0, %v14167_v61  ;;  %18208 = vmatprep.mubr.msk.f32.mxu0 %vm433_vm0, %v15195_v5  ;;  %v15206_v53 = vld [vmem:[%s19385_s26 + $0x472] sm:$0xff]  ;;  %v14179_v61 = vld [vmem:[%s19385_s26 + $0x469] sm:$0xff] }
 0x424   : > { %v15207_v5 = vld [vmem:[%s19385_s26 + $0x482] sm:$0xff] }
 0x425   : > { %v21853_v36 = vpop.f32.mrb[30].mxu1 }
 0x426   : > { %v21855_v38 = vpop.f32.mrb[31].mxu1  ;;  %17433 = vmatmul.mubr.msk.f32.gmra.mrb[72].mxu1 %vm433_vm0, %v14168_v41  ;;  %18209 = vmatmul.mubr.msk.f32.gmra.mrb[72].mxu0 %vm433_vm0, %v15196_v26 }
 0x427   : > { %17435 = vmatprep.mubr.msk.f32.mxu1 %vm433_vm0, %v14169_v32  ;;  %18211 = vmatprep.mubr.msk.f32.mxu0 %vm433_vm0, %v15197_v34  ;;  %v14180_v32 = vld [vmem:[%s19385_s26 + $0x471] sm:$0xff] }
 0x428   : > { %v15208_v34 = vld [vmem:[%s19385_s26 + $0x48a] sm:$0xff] }
 0x429   : > { %v21865_v52 = vpop.f32.mrb[32].mxu1 }
 0x42a   : > { %v21867_v54 = vpop.f32.mrb[33].mxu1  ;;  %17436 = vmatmul.mubr.msk.f32.gmra.mrb[74].mxu1 %vm433_vm0, %v14170_v44  ;;  %18212 = vmatmul.mubr.msk.f32.gmra.mrb[74].mxu0 %vm433_vm0, %v15198_v46  ;;  %v14181_v44 = vld [vmem:[%s19385_s26 + $0x481] sm:$0xff] }
 0x42b   : > { %17438 = vmatprep.mubr.msk.f32.mxu1 %vm433_vm0, %v14171_v4  ;;  %18214 = vmatprep.mubr.msk.f32.mxu0 %vm433_vm0, %v15199_v48  ;;  %v15209_v46 = vld [vmem:[%s19385_s26 + $0x49a] sm:$0xff] }
 0x42d   : > { %v21877_v6 = vpop.f32.mrb[34].mxu1 }
 0x42e   : > { %v21879_v1 = vpop.f32.mrb[35].mxu1  ;;  %17439 = vmatmul.mubr.msk.f32.gmra.mrb[76].mxu1 %vm433_vm0, %v14172_v56  ;;  %18215 = vmatmul.mubr.msk.f32.gmra.mrb[76].mxu0 %vm433_vm0, %v15200_v58  ;;  %v14182_v56 = vld [vmem:[%s19385_s26 + $0x489] sm:$0xff] }
 0x42f   : > { %17441 = vmatprep.mubr.msk.f32.mxu1 %vm433_vm0, %v14173_v0  ;;  %18217 = vmatprep.mubr.msk.f32.mxu0 %vm433_vm0, %v15201_v2  ;;  %v15210_v58 = vld [vmem:[%s19385_s26 + $0x4a2] sm:$0xff]  ;;  %v14183_v0 = vld [vmem:[%s19385_s26 + $0x499] sm:$0xff] }
 0x430   : > { %v15211_v2 = vld [vmem:[%s19385_s26 + $0x4b2] sm:$0xff] }
 0x431   : > { %v21889_v31 = vpop.f32.mrb[36].mxu1 }
 0x432   : > { %v21891_v35 = vpop.f32.mrb[37].mxu1  ;;  %17442 = vmatmul.mubr.msk.f32.gmra.mrb[78].mxu1 %vm433_vm0, %v14174_v11  ;;  %18218 = vmatmul.mubr.msk.f32.gmra.mrb[78].mxu0 %vm433_vm0, %v15202_v21 }
 0x433   : > { %17444 = vmatprep.mubr.msk.f32.mxu1 %vm433_vm0, %v14175_v25  ;;  %18220 = vmatprep.mubr.msk.f32.mxu0 %vm433_vm0, %v15203_v10  ;;  %v14184_v25 = vld [vmem:[%s19385_s26 + $0x4a1] sm:$0xff] }
 0x434   : > { %v15212_v10 = vld [vmem:[%s19385_s26 + $0x4ba] sm:$0xff] }
 0x435   : > { %v21901_v15 = vpop.f32.mrb[38].mxu1 }
 0x436   : > { %v21903_v18 = vpop.f32.mrb[39].mxu1  ;;  %17445 = vmatmul.mubr.msk.f32.gmra.mrb[80].mxu1 %vm433_vm0, %v14176_v39  ;;  %18221 = vmatmul.mubr.msk.f32.gmra.mrb[80].mxu0 %vm433_vm0, %v15204_v43  ;;  %v14185_v39 = vld [vmem:[%s19385_s26 + $0x4b1] sm:$0xff] }
 0x437   : > { %17447 = vmatprep.mubr.msk.f32.mxu1 %vm433_vm0, %v14177_v63  ;;  %18223 = vmatprep.mubr.msk.f32.mxu0 %vm433_vm0, %v15205_v3  ;;  %v15213_v43 = vld [vmem:[%s19385_s26 + $0x4ca] sm:$0xff] }
 0x439   : > { %v21913_v41 = vpop.f32.mrb[40].mxu1 }
 0x43a   : > { %v21915_v26 = vpop.f32.mrb[41].mxu1  ;;  %17448 = vmatmul.mubr.msk.f32.gmra.mrb[82].mxu1 %vm433_vm0, %v14178_v45  ;;  %18224 = vmatmul.mubr.msk.f32.gmra.mrb[82].mxu0 %vm433_vm0, %v15206_v53  ;;  %v14186_v45 = vld [vmem:[%s19385_s26 + $0x4b9] sm:$0xff] }
 0x43b   : > { %17450 = vmatprep.mubr.msk.f32.mxu1 %vm433_vm0, %v14179_v61  ;;  %18226 = vmatprep.mubr.msk.f32.mxu0 %vm433_vm0, %v15207_v5  ;;  %v15214_v53 = vld [vmem:[%s19385_s26 + $0x4d2] sm:$0xff]  ;;  %v14187_v61 = vld [vmem:[%s19385_s26 + $0x4c9] sm:$0xff] }
 0x43c   : > { %v15215_v5 = vld [vmem:[%s19385_s26 + $0x4e2] sm:$0xff] }
 0x43d   : > { %v21925_v4 = vpop.f32.mrb[42].mxu1 }
 0x43e   : > { %v21927_v48 = vpop.f32.mrb[43].mxu1  ;;  %17451 = vmatmul.mubr.msk.f32.gmra.mrb[84].mxu1 %vm433_vm0, %v14180_v32  ;;  %18227 = vmatmul.mubr.msk.f32.gmra.mrb[84].mxu0 %vm433_vm0, %v15208_v34 }
 0x43f   : > { %17453 = vmatprep.mubr.msk.f32.mxu1 %vm433_vm0, %v14181_v44  ;;  %18229 = vmatprep.mubr.msk.f32.mxu0 %vm433_vm0, %v15209_v46  ;;  %v14188_v44 = vld [vmem:[%s19385_s26 + $0x4d1] sm:$0xff] }
 0x440   : > { %v15216_v46 = vld [vmem:[%s19385_s26 + $0x4ea] sm:$0xff] }
 0x441   : > { %v21937_v11 = vpop.f32.mrb[44].mxu1 }
 0x442   : > { %v21939_v21 = vpop.f32.mrb[45].mxu1  ;;  %17454 = vmatmul.mubr.msk.f32.gmra.mrb[86].mxu1 %vm433_vm0, %v14182_v56  ;;  %18230 = vmatmul.mubr.msk.f32.gmra.mrb[86].mxu0 %vm433_vm0, %v15210_v58  ;;  %v14189_v56 = vld [vmem:[%s19385_s26 + $0x4e1] sm:$0xff] }
 0x443   : > { %17456 = vmatprep.mubr.msk.f32.mxu1 %vm433_vm0, %v14183_v0  ;;  %18232 = vmatprep.mubr.msk.f32.mxu0 %vm433_vm0, %v15211_v2  ;;  %v15217_v58 = vld [vmem:[%s19385_s26 + $0x4fa] sm:$0xff] }
 0x445   : > { %v21949_v63 = vpop.f32.mrb[46].mxu1 }
 0x446   : > { %v21951_v3 = vpop.f32.mrb[47].mxu1  ;;  %17457 = vmatmul.mubr.msk.f32.gmra.mrb[88].mxu1 %vm433_vm0, %v14184_v25  ;;  %18233 = vmatmul.mubr.msk.f32.gmra.mrb[88].mxu0 %vm433_vm0, %v15212_v10  ;;  %v14190_v25 = vld [vmem:[%s19385_s26 + $0x4e9] sm:$0xff] }
 0x447   : > { %17459 = vmatprep.mubr.msk.f32.mxu1 %vm433_vm0, %v14185_v39  ;;  %18235 = vmatprep.mubr.msk.f32.mxu0 %vm433_vm0, %v15213_v43  ;;  %v15218_v10 = vld [vmem:[%s19385_s26 + $0x502] sm:$0xff] }
 0x448   : > { %v14191_v39 = vld [vmem:[%s19385_s26 + $0x529] sm:$0xff] }
 0x449   : > { %v21961_v32 = vpop.f32.mrb[48].mxu1  ;;  %v15219_v43 = vld [vmem:[%s19385_s26 + $0x542] sm:$0xff] }
 0x44a   : > { %v21963_v34 = vpop.f32.mrb[49].mxu1  ;;  %17460 = vmatmul.mubr.msk.f32.gmra.mrb[90].mxu1 %vm433_vm0, %v14186_v45  ;;  %18236 = vmatmul.mubr.msk.f32.gmra.mrb[90].mxu0 %vm433_vm0, %v15214_v53 }
 0x44b   : > { %17462 = vmatprep.mubr.msk.f32.mxu1 %vm433_vm0, %v14187_v61  ;;  %18238 = vmatprep.mubr.msk.f32.mxu0 %vm433_vm0, %v15215_v5  ;;  %v14192_v61 = vld [vmem:[%s19385_s26 + $0x531] sm:$0xff] }
 0x44c   : > { %v15220_v5 = vld [vmem:[%s19385_s26 + $0x54a] sm:$0xff] }
 0x44d   : > { %v21973_v0 = vpop.f32.mrb[50].mxu1 }
 0x44e   : > { %v21975_v2 = vpop.f32.mrb[51].mxu1  ;;  %17463 = vmatmul.mubr.msk.f32.gmra.mrb[92].mxu1 %vm433_vm0, %v14188_v44  ;;  %18239 = vmatmul.mubr.msk.f32.gmra.mrb[92].mxu0 %vm433_vm0, %v15216_v46  ;;  %v14193_v44 = vld [vmem:[%s19385_s26 + $0x541] sm:$0xff] }
 0x44f   : > { %25293 = vst [vmem:[#allocation2_spill] sm:$0xff] %v21975_v2  ;;  %17465 = vmatprep.mubr.msk.f32.mxu1 %vm433_vm0, %v14189_v56  ;;  %18241 = vmatprep.mubr.msk.f32.mxu0 %vm433_vm0, %v15217_v58  ;;  %v15221_v46 = vld [vmem:[%s19385_s26 + $0x55a] sm:$0xff]  ;;  %v15235_v2 = vld [vmem:[%s19385_s26 + $0x602] sm:$0xff] }
 0x451   : > { %v21985_v45 = vpop.f32.mrb[52].mxu1 }
 0x452   : > { %25294 = vst [vmem:[#allocation3_spill] sm:$0xff] %v21985_v45  ;;  %v21987_v53 = vpop.f32.mrb[53].mxu1  ;;  %17466 = vmatmul.mubr.msk.f32.gmra.mrb[94].mxu1 %vm433_vm0, %v14190_v25  ;;  %18242 = vmatmul.mubr.msk.f32.gmra.mrb[94].mxu0 %vm433_vm0, %v15218_v10  ;;  %v14194_v25 = vld [vmem:[%s19385_s26 + $0x549] sm:$0xff] }
 0x453   : > { %25295 = vst [vmem:[#allocation4_spill] sm:$0xff] %v21987_v53  ;;  %17468 = vmatprep.mubr.msk.f32.mxu1 %vm433_vm0, %v14191_v39  ;;  %18244 = vmatprep.mubr.msk.f32.mxu0 %vm433_vm0, %v15219_v43  ;;  %v15222_v10 = vld [vmem:[%s19385_s26 + $0x562] sm:$0xff]  ;;  %v14195_v39 = vld [vmem:[%s19385_s26 + $0x559] sm:$0xff] }
 0x454   : > { %v15223_v43 = vld [vmem:[%s19385_s26 + $0x572] sm:$0xff] }
 0x455   : > { %v21997_v56 = vpop.f32.mrb[54].mxu1 }
 0x456   : > { %25296 = vst [vmem:[#allocation5_spill] sm:$0xff] %v21997_v56  ;;  %v21999_v58 = vpop.f32.mrb[55].mxu1  ;;  %17469 = vmatmul.mubr.msk.f32.gmra.mrb[96].mxu1 %vm433_vm0, %v14192_v61  ;;  %18245 = vmatmul.mubr.msk.f32.gmra.mrb[96].mxu0 %vm433_vm0, %v15220_v5  ;;  %v14196_v61 = vld [vmem:[%s19385_s26 + $0x561] sm:$0xff] }
 0x457   : > { %25297 = vst [vmem:[#allocation6_spill] sm:$0xff] %v21999_v58  ;;  %17471 = vmatprep.mubr.msk.f32.mxu1 %vm433_vm0, %v14193_v44  ;;  %18247 = vmatprep.mubr.msk.f32.mxu0 %vm433_vm0, %v15221_v46  ;;  %v15224_v5 = vld [vmem:[%s19385_s26 + $0x57a] sm:$0xff]  ;;  %v14197_v44 = vld [vmem:[%s19385_s26 + $0x571] sm:$0xff] }
 0x458   : > { %v15225_v46 = vld [vmem:[%s19385_s26 + $0x58a] sm:$0xff] }
 0x459   : > { %v22009_v53 = vpop.f32.mrb[56].mxu1 }
 0x45a   : > { %25298 = vst [vmem:[#allocation7_spill] sm:$0xff] %v22009_v53  ;;  %v22011_v56 = vpop.f32.mrb[57].mxu1  ;;  %17472 = vmatmul.mubr.msk.f32.gmra.mrb[98].mxu1 %vm433_vm0, %v14194_v25  ;;  %18248 = vmatmul.mubr.msk.f32.gmra.mrb[98].mxu0 %vm433_vm0, %v15222_v10  ;;  %v14198_v25 = vld [vmem:[%s19385_s26 + $0x579] sm:$0xff] }
 0x45b   : > { %25299 = vst [vmem:[#allocation8_spill] sm:$0xff] %v22011_v56  ;;  %17474 = vmatprep.mubr.msk.f32.mxu1 %vm433_vm0, %v14195_v39  ;;  %18250 = vmatprep.mubr.msk.f32.mxu0 %vm433_vm0, %v15223_v43  ;;  %v15226_v10 = vld [vmem:[%s19385_s26 + $0x592] sm:$0xff]  ;;  %v14199_v39 = vld [vmem:[%s19385_s26 + $0x589] sm:$0xff] }
 0x45c   : > { %v15227_v43 = vld [vmem:[%s19385_s26 + $0x5a2] sm:$0xff] }
 0x45d   : > { %v22021_v58 = vpop.f32.mrb[58].mxu1 }
 0x45e   : > { %25300 = vst [vmem:[#allocation9_spill] sm:$0xff] %v22021_v58  ;;  %v22023_v53 = vpop.f32.mrb[59].mxu1  ;;  %17475 = vmatmul.mubr.msk.f32.gmra.mrb[100].mxu1 %vm433_vm0, %v14196_v61  ;;  %18251 = vmatmul.mubr.msk.f32.gmra.mrb[100].mxu0 %vm433_vm0, %v15224_v5  ;;  %v14200_v61 = vld [vmem:[%s19385_s26 + $0x591] sm:$0xff] }
 0x45f   : > { %25301 = vst [vmem:[#allocation10_spill] sm:$0xff] %v22023_v53  ;;  %17477 = vmatprep.mubr.msk.f32.mxu1 %vm433_vm0, %v14197_v44  ;;  %18253 = vmatprep.mubr.msk.f32.mxu0 %vm433_vm0, %v15225_v46  ;;  %v15228_v5 = vld [vmem:[%s19385_s26 + $0x5aa] sm:$0xff]  ;;  %v14201_v44 = vld [vmem:[%s19385_s26 + $0x5a1] sm:$0xff] }
 0x460   : > { %v15229_v46 = vld [vmem:[%s19385_s26 + $0x5ba] sm:$0xff] }
 0x461   : > { %v22033_v56 = vpop.f32.mrb[60].mxu1 }
 0x462   : > { %25302 = vst [vmem:[#allocation11_spill] sm:$0xff] %v22033_v56  ;;  %v22035_v58 = vpop.f32.mrb[61].mxu1  ;;  %17478 = vmatmul.mubr.msk.f32.gmra.mrb[102].mxu1 %vm433_vm0, %v14198_v25  ;;  %18254 = vmatmul.mubr.msk.f32.gmra.mrb[102].mxu0 %vm433_vm0, %v15226_v10  ;;  %v14202_v25 = vld [vmem:[%s19385_s26 + $0x5a9] sm:$0xff] }
 0x463   : > { %25303 = vst [vmem:[#allocation12_spill] sm:$0xff] %v22035_v58  ;;  %17480 = vmatprep.mubr.msk.f32.mxu1 %vm433_vm0, %v14199_v39  ;;  %18256 = vmatprep.mubr.msk.f32.mxu0 %vm433_vm0, %v15227_v43  ;;  %v15230_v10 = vld [vmem:[%s19385_s26 + $0x5c2] sm:$0xff]  ;;  %v14203_v39 = vld [vmem:[%s19385_s26 + $0x5b9] sm:$0xff] }
 0x464   : > { %v15231_v43 = vld [vmem:[%s19385_s26 + $0x5d2] sm:$0xff] }
 0x465   : > { %v22045_v53 = vpop.f32.mrb[62].mxu1 }
 0x466   : > { %25304 = vst [vmem:[#allocation13_spill] sm:$0xff] %v22045_v53  ;;  %v22047_v56 = vpop.f32.mrb[63].mxu1  ;;  %17481 = vmatmul.mubr.msk.f32.gmra.mrb[104].mxu1 %vm433_vm0, %v14200_v61  ;;  %18257 = vmatmul.mubr.msk.f32.gmra.mrb[104].mxu0 %vm433_vm0, %v15228_v5  ;;  %v22061_v61 = vld [vmem:[%s25127_s2] ss:$0 sm:$0xff] }
 0x467   : > { %25305 = vst [vmem:[#allocation14_spill] sm:$0xff] %v22047_v56  ;;  %17483 = vmatprep.mubr.msk.f32.mxu1 %vm433_vm0, %v14201_v44  ;;  %18259 = vmatprep.mubr.msk.f32.mxu0 %vm433_vm0, %v15229_v46  ;;  %v14204_v46 = vld [vmem:[%s19385_s26 + $0x5c1] sm:$0xff]  ;;  %v15233_v56 = vld [vmem:[%s19385_s26 + $0x5ea] sm:$0xff] }
 0x469   : > { %v18102_v58 = vpop.f32.mrb[0].mxu0 }
 0x46a   : > { %v18294_v53 = vadd.f32 %v18102_v58, %v21673_v13  ;;  %17484 = vmatmul.mubr.msk.f32.gmra.mrb[106].mxu1 %vm433_vm0, %v14202_v25  ;;  %v11276_v5 = vpop.f32.mrb[1].mxu0  ;;  %18260 = vmatmul.mubr.msk.f32.gmra.mrb[106].mxu0 %vm433_vm0, %v15230_v10  ;;  %v15232_v13 = vld [vmem:[%s19385_s26 + $0x5da] sm:$0xff]  ;;  %v14205_v58 = vld [vmem:[%s19385_s26 + $0x5d1] sm:$0xff] }
 0x46b   : > { %v18295_v44 = vadd.f32 %v11276_v5, %v21675_v9  ;;  %17486 = vmatprep.mubr.msk.f32.mxu1 %vm433_vm0, %v14203_v39  ;;  %18262 = vmatprep.mubr.msk.f32.mxu0 %vm433_vm0, %v15231_v43  ;;  %v14206_v5 = vld [vmem:[%s19385_s26 + $0x5d9] sm:$0xff] }
 0x46c   : > { %v22073_v45 = vadd.f32 %v18294_v53, %v22061_v61  ;;  %v15234_v53 = vld [vmem:[%s19385_s26 + $0x5f2] sm:$0xff] }
 0x46d   : > { %v22076_v25 = vadd.f32 %v18295_v44, %v22061_v61  ;;  %v18105_v10 = vpop.f32.mrb[2].mxu0  ;;  %v14207_v44 = vld [vmem:[%s19385_s26 + $0x5e9] sm:$0xff] }
 0x46e   : > { %25306 = vst [vmem:[#allocation15_spill] sm:$0xff] %v22073_v45  ;;  %v18296_v9 = vadd.f32 %v18105_v10, %v21685_v23  ;;  %17487 = vmatmul.mubr.msk.f32.gmra.mrb[108].mxu1 %vm433_vm0, %v14204_v46  ;;  %v11286_v39 = vpop.f32.mrb[3].mxu0  ;;  %18263 = vmatmul.mubr.msk.f32.gmra.mrb[108].mxu0 %vm433_vm0, %v15232_v13 }
 0x46f   : > { %v18297_v43 = vadd.f32 %v11286_v39, %v21687_v27  ;;  %17489 = vmatprep.mubr.msk.f32.mxu1 %vm433_vm0, %v14205_v58  ;;  %18265 = vmatprep.mubr.msk.f32.mxu0 %vm433_vm0, %v15233_v56  ;;  %v12176_v23 = vadd.f32 %v22073_v45, %v22076_v25  ;;  %v15236_v45 = vld [vmem:[%s19385_s26 + $0x60a] sm:$0xff] }
 0x470   : > { %v22097_v58 = vadd.f32 %v18296_v9, %v22061_v61 }
 0x471   : > { %v22091_v46 = vadd.f32 %v18297_v43, %v22061_v61  ;;  %v18108_v13 = vpop.f32.mrb[4].mxu0  ;;  %v14208_v43 = vld [vmem:[%s19385_s26 + $0x5f1] sm:$0xff] }
 0x472   : > { %v18298_v27 = vadd.f32 %v18108_v13, %v21697_v47  ;;  %17490 = vmatmul.mubr.msk.f32.gmra.mrb[110].mxu1 %vm433_vm0, %v14206_v5  ;;  %v11296_v56 = vpop.f32.mrb[5].mxu0  ;;  %18266 = vmatmul.mubr.msk.f32.gmra.mrb[110].mxu0 %vm433_vm0, %v15234_v53  ;;  %v14209_v47 = vld [vmem:[%s19385_s26 + $0x601] sm:$0xff] }
 0x473   : > { %v12177_v10 = vadd.f32 %v12176_v23, %v22091_v46  ;;  %v18299_v39 = vadd.f32 %v11296_v56, %v21699_v51  ;;  %17492 = vmatprep.mubr.msk.f32.mxu1 %vm433_vm0, %v14207_v44  ;;  %18268 = vmatprep.mubr.msk.f32.mxu0 %vm433_vm0, %v15235_v2  ;;  %v15237_v5 = vld [vmem:[%s19385_s26 + $0x61a] sm:$0xff] }
 0x474   : > { %v22115_v2 = vadd.f32 %v18298_v27, %v22061_v61 }
 0x475   : > { %v12178_v53 = vadd.f32 %v12177_v10, %v22097_v58  ;;  %v22109_v9 = vadd.f32 %v18299_v39, %v22061_v61  ;;  %v18111_v23 = vpop.f32.mrb[6].mxu0  ;;  %v14210_v10 = vld [vmem:[%s19385_s26 + $0x609] sm:$0xff] }
 0x476   : > { %v18300_v51 = vadd.f32 %v18111_v23, %v21709_v7  ;;  %17493 = vmatmul.mubr.msk.f32.gmra.mrb[112].mxu1 %vm433_vm0, %v14208_v43  ;;  %v11306_v44 = vpop.f32.mrb[7].mxu0  ;;  %18269 = vmatmul.mubr.msk.f32.gmra.mrb[112].mxu0 %vm433_vm0, %v15236_v45  ;;  %v15238_v39 = vld [vmem:[%s19385_s26 + $0x622] sm:$0xff]  ;;  %v14211_v7 = vld [vmem:[%s19385_s26 + $0x619] sm:$0xff] }
 0x477   : > { %v12179_v13 = vadd.f32 %v12178_v53, %v22109_v9  ;;  %v18301_v56 = vadd.f32 %v11306_v44, %v21711_v12  ;;  %17495 = vmatprep.mubr.msk.f32.mxu1 %vm433_vm0, %v14209_v47  ;;  %18271 = vmatprep.mubr.msk.f32.mxu0 %vm433_vm0, %v15237_v5  ;;  %v15239_v43 = vld [vmem:[%s19385_s26 + $0x632] sm:$0xff] }
 0x478   : > { %v22133_v5 = vadd.f32 %v18300_v51, %v22061_v61 }
 0x479   : > { %v12180_v45 = vadd.f32 %v12179_v13, %v22115_v2  ;;  %v22127_v27 = vadd.f32 %v18301_v56, %v22061_v61  ;;  %v18114_v53 = vpop.f32.mrb[8].mxu0  ;;  %v14212_v13 = vld [vmem:[%s19385_s26 + $0x621] sm:$0xff] }
 0x47a   : > { %v18302_v12 = vadd.f32 %v18114_v53, %v21721_v29  ;;  %17496 = vmatmul.mubr.msk.f32.gmra.mrb[114].mxu1 %vm433_vm0, %v14210_v10  ;;  %v11316_v47 = vpop.f32.mrb[9].mxu0  ;;  %18272 = vmatmul.mubr.msk.f32.gmra.mrb[114].mxu0 %vm433_vm0, %v15238_v39  ;;  %v15240_v56 = vld [vmem:[%s19385_s26 + $0x63a] sm:$0xff]  ;;  %v14213_v29 = vld [vmem:[%s19385_s26 + $0x631] sm:$0xff] }
 0x47b   : > { %v12181_v23 = vadd.f32 %v12180_v45, %v22127_v27  ;;  %v18303_v44 = vadd.f32 %v11316_v47, %v21723_v37  ;;  %17498 = vmatprep.mubr.msk.f32.mxu1 %vm433_vm0, %v14211_v7  ;;  %18274 = vmatprep.mubr.msk.f32.mxu0 %vm433_vm0, %v15239_v43  ;;  %v15241_v10 = vld [vmem:[%s19385_s26 + $0x64a] sm:$0xff] }
 0x47c   : > { %v22151_v43 = vadd.f32 %v18302_v12, %v22061_v61 }
 0x47d   : > { %v12182_v39 = vadd.f32 %v12181_v23, %v22133_v5  ;;  %v22145_v51 = vadd.f32 %v18303_v44, %v22061_v61  ;;  %v18117_v45 = vpop.f32.mrb[10].mxu0  ;;  %v14214_v23 = vld [vmem:[%s19385_s26 + $0x639] sm:$0xff] }
 0x47e   : > { %v18304_v37 = vadd.f32 %v18117_v45, %v21733_v19  ;;  %17499 = vmatmul.mubr.msk.f32.gmra.mrb[116].mxu1 %vm433_vm0, %v14212_v13  ;;  %v11326_v7 = vpop.f32.mrb[11].mxu0  ;;  %18275 = vmatmul.mubr.msk.f32.gmra.mrb[116].mxu0 %vm433_vm0, %v15240_v56  ;;  %v15242_v44 = vld [vmem:[%s19385_s26 + $0x652] sm:$0xff]  ;;  %v14215_v19 = vld [vmem:[%s19385_s26 + $0x649] sm:$0xff] }
 0x47f   : > { %v12183_v53 = vadd.f32 %v12182_v39, %v22145_v51  ;;  %v18305_v47 = vadd.f32 %v11326_v7, %v21735_v14  ;;  %17501 = vmatprep.mubr.msk.f32.mxu1 %vm433_vm0, %v14213_v29  ;;  %18277 = vmatprep.mubr.msk.f32.mxu0 %vm433_vm0, %v15241_v10  ;;  %v15243_v13 = vld [vmem:[%s19385_s26 + $0x662] sm:$0xff] }
 0x480   : > { %v22169_v10 = vadd.f32 %v18304_v37, %v22061_v61 }
 0x481   : > { %v12184_v56 = vadd.f32 %v12183_v53, %v22151_v43  ;;  %v22163_v12 = vadd.f32 %v18305_v47, %v22061_v61  ;;  %v18120_v39 = vpop.f32.mrb[12].mxu0  ;;  %v14216_v53 = vld [vmem:[%s19385_s26 + $0x651] sm:$0xff] }
 0x482   : > { %v18306_v14 = vadd.f32 %v18120_v39, %v21745_v28  ;;  %17502 = vmatmul.mubr.msk.f32.gmra.mrb[118].mxu1 %vm433_vm0, %v14214_v23  ;;  %v11336_v29 = vpop.f32.mrb[13].mxu0  ;;  %18278 = vmatmul.mubr.msk.f32.gmra.mrb[118].mxu0 %vm433_vm0, %v15242_v44  ;;  %v15244_v47 = vld [vmem:[%s19385_s26 + $0x66a] sm:$0xff]  ;;  %v14217_v28 = vld [vmem:[%s19385_s26 + $0x661] sm:$0xff] }
 0x483   : > { %v12185_v45 = vadd.f32 %v12184_v56, %v22163_v12  ;;  %v18307_v7 = vadd.f32 %v11336_v29, %v21747_v30  ;;  %17504 = vmatprep.mubr.msk.f32.mxu1 %vm433_vm0, %v14215_v19  ;;  %18280 = vmatprep.mubr.msk.f32.mxu0 %vm433_vm0, %v15243_v13  ;;  %v15245_v23 = vld [vmem:[%s19385_s26 + $0x67a] sm:$0xff] }
 0x484   : > { %v22187_v13 = vadd.f32 %v18306_v14, %v22061_v61 }
 0x485   : > { %v12186_v44 = vadd.f32 %v12185_v45, %v22169_v10  ;;  %v22181_v37 = vadd.f32 %v18307_v7, %v22061_v61  ;;  %v18123_v56 = vpop.f32.mrb[14].mxu0  ;;  %v14218_v45 = vld [vmem:[%s19385_s26 + $0x669] sm:$0xff] }
 0x486   : > { %v18308_v30 = vadd.f32 %v18123_v56, %v21757_v40  ;;  %17505 = vmatmul.mubr.msk.f32.gmra.mrb[120].mxu1 %vm433_vm0, %v14216_v53  ;;  %v11346_v19 = vpop.f32.mrb[15].mxu0  ;;  %18281 = vmatmul.mubr.msk.f32.gmra.mrb[120].mxu0 %vm433_vm0, %v15244_v47  ;;  %v15246_v7 = vld [vmem:[%s19385_s26 + $0x682] sm:$0xff]  ;;  %v14219_v40 = vld [vmem:[%s19385_s26 + $0x679] sm:$0xff] }
 0x487   : > { %v12187_v39 = vadd.f32 %v12186_v44, %v22181_v37  ;;  %v18309_v29 = vadd.f32 %v11346_v19, %v21759_v42  ;;  %17507 = vmatprep.mubr.msk.f32.mxu1 %vm433_vm0, %v14217_v28  ;;  %18283 = vmatprep.mubr.msk.f32.mxu0 %vm433_vm0, %v15245_v23  ;;  %v15247_v53 = vld [vmem:[%s19385_s26 + $0x692] sm:$0xff] }
 0x488   : > { %v22205_v23 = vadd.f32 %v18308_v30, %v22061_v61 }
 0x489   : > { %v12188_v47 = vadd.f32 %v12187_v39, %v22187_v13  ;;  %v22199_v14 = vadd.f32 %v18309_v29, %v22061_v61  ;;  %v18126_v44 = vpop.f32.mrb[16].mxu0  ;;  %v14220_v39 = vld [vmem:[%s19385_s26 + $0x681] sm:$0xff] }
 0x48a   : > { %v18310_v42 = vadd.f32 %v18126_v44, %v21769_v57  ;;  %17508 = vmatmul.mubr.msk.f32.gmra.mrb[122].mxu1 %vm433_vm0, %v14218_v45  ;;  %v11356_v28 = vpop.f32.mrb[17].mxu0  ;;  %18284 = vmatmul.mubr.msk.f32.gmra.mrb[122].mxu0 %vm433_vm0, %v15246_v7  ;;  %v15248_v29 = vld [vmem:[%s19385_s26 + $0x69a] sm:$0xff]  ;;  %v14221_v57 = vld [vmem:[%s19385_s26 + $0x691] sm:$0xff] }
 0x48b   : > { %v12189_v56 = vadd.f32 %v12188_v47, %v22199_v14  ;;  %v18311_v19 = vadd.f32 %v11356_v28, %v21771_v50  ;;  %17510 = vmatprep.mubr.msk.f32.mxu1 %vm433_vm0, %v14219_v40  ;;  %18286 = vmatprep.mubr.msk.f32.mxu0 %vm433_vm0, %v15247_v53  ;;  %v15249_v45 = vld [vmem:[%s19385_s26 + $0x6aa] sm:$0xff] }
 0x48c   : > { %v22223_v40 = vadd.f32 %v18310_v42, %v22061_v61 }
 0x48d   : > { %v12190_v44 = vadd.f32 %v12189_v56, %v22205_v23  ;;  %v22217_v7 = vadd.f32 %v18311_v19, %v22061_v61  ;;  %v18129_v30 = vpop.f32.mrb[18].mxu0  ;;  %v14222_v56 = vld [vmem:[%s19385_s26 + $0x699] sm:$0xff] }
 0x48e   : > { %v18312_v47 = vadd.f32 %v18129_v30, %v21781_v60  ;;  %17511 = vmatmul.mubr.msk.f32.gmra.mrb[124].mxu1 %vm433_vm0, %v14220_v39  ;;  %v11366_v50 = vpop.f32.mrb[19].mxu0  ;;  %18287 = vmatmul.mubr.msk.f32.gmra.mrb[124].mxu0 %vm433_vm0, %v15248_v29  ;;  %v15250_v19 = vld [vmem:[%s19385_s26 + $0x6b2] sm:$0xff] }
 0x48f   : > { %v12191_v53 = vadd.f32 %v12190_v44, %v22217_v7  ;;  %v18313_v28 = vadd.f32 %v11366_v50, %v21783_v62  ;;  %17513 = vmatprep.mubr.msk.f32.mxu1 %vm433_vm0, %v14221_v57  ;;  %18289 = vmatprep.mubr.msk.f32.mxu0 %vm433_vm0, %v15249_v45 }
 0x490   : > { %v22239_v62 = vadd.f32 %v18312_v47, %v22061_v61 }
 0x491   : > { %v12192_v60 = vadd.f32 %v12191_v53, %v22223_v40  ;;  %v22233_v39 = vadd.f32 %v18313_v28, %v22061_v61  ;;  %v18132_v30 = vpop.f32.mrb[20].mxu0 }
 0x492   : > { %v18314_v29 = vadd.f32 %v18132_v30, %v21793_v33  ;;  %17514 = vmatmul.mubr.msk.f32.gmra.mrb[126].mxu1 %vm433_vm0, %v14222_v56  ;;  %v11376_v42 = vpop.f32.mrb[21].mxu0  ;;  %18290 = vmatmul.mubr.msk.f32.gmra.mrb[126].mxu0 %vm433_vm0, %v15250_v19 }
 0x493   : > { %v12193_v57 = vadd.f32 %v12192_v60, %v22233_v39  ;;  %v18315_v45 = vadd.f32 %v11376_v42, %v21795_v16 }
 0x494   : > { %v22249_v56 = vadd.f32 %v18314_v29, %v22061_v61 }
 0x495   : > { %v12194_v44 = vadd.f32 %v12193_v57, %v22239_v62  ;;  %v22245_v50 = vadd.f32 %v18315_v45, %v22061_v61  ;;  %v18135_v53 = vpop.f32.mrb[22].mxu0 }
 0x496   : > { %v18316_v33 = vadd.f32 %v18135_v53, %v21805_v17  ;;  %v11386_v28 = vpop.f32.mrb[23].mxu0 }
 0x497   : > { %v12195_v19 = vadd.f32 %v12194_v44, %v22245_v50  ;;  %v18317_v47 = vadd.f32 %v11386_v28, %v21807_v8 }
 0x498   : > { %v22259_v45 = vadd.f32 %v18316_v33, %v22061_v61 }
 0x499   : > { %v12196_v60 = vadd.f32 %v12195_v19, %v22249_v56  ;;  %v22255_v16 = vadd.f32 %v18317_v47, %v22061_v61  ;;  %v18138_v30 = vpop.f32.mrb[24].mxu0 }
 0x49a   : > { %v18318_v42 = vadd.f32 %v18138_v30, %v21817_v55  ;;  %v11396_v57 = vpop.f32.mrb[25].mxu0 }
 0x49b   : > { %v12197_v17 = vadd.f32 %v12196_v60, %v22255_v16  ;;  %v18319_v29 = vadd.f32 %v11396_v57, %v21819_v59 }
 0x49c   : > { %v22269_v47 = vadd.f32 %v18318_v42, %v22061_v61 }
 0x49d   : > { %v12198_v44 = vadd.f32 %v12197_v17, %v22259_v45  ;;  %v22265_v8 = vadd.f32 %v18319_v29, %v22061_v61  ;;  %v18141_v53 = vpop.f32.mrb[26].mxu0 }
 0x49e   : > { %v18320_v28 = vadd.f32 %v18141_v53, %v21829_v20  ;;  %v11406_v19 = vpop.f32.mrb[27].mxu0 }
 0x49f   : > { %v12199_v55 = vadd.f32 %v12198_v44, %v22265_v8  ;;  %v18321_v33 = vadd.f32 %v11406_v19, %v21831_v22 }
 0x4a0   : > { %v22279_v29 = vadd.f32 %v18320_v28, %v22061_v61 }
 0x4a1   : > { %v12200_v60 = vadd.f32 %v12199_v55, %v22269_v47  ;;  %v22275_v59 = vadd.f32 %v18321_v33, %v22061_v61  ;;  %v18144_v30 = vpop.f32.mrb[28].mxu0 }
 0x4a2   : > { %v18322_v57 = vadd.f32 %v18144_v30, %v21841_v49  ;;  %v11416_v17 = vpop.f32.mrb[29].mxu0 }
 0x4a3   : > { %v12201_v20 = vadd.f32 %v12200_v60, %v22275_v59  ;;  %v18323_v42 = vadd.f32 %v11416_v17, %v21843_v24 }
 0x4a4   : > { %v22289_v33 = vadd.f32 %v18322_v57, %v22061_v61 }
 0x4a5   : > { %v12202_v44 = vadd.f32 %v12201_v20, %v22279_v29  ;;  %v22285_v22 = vadd.f32 %v18323_v42, %v22061_v61  ;;  %v18147_v53 = vpop.f32.mrb[30].mxu0 }
 0x4a6   : > { %v18324_v19 = vadd.f32 %v18147_v53, %v21853_v36  ;;  %v11426_v55 = vpop.f32.mrb[31].mxu0 }
 0x4a7   : > { %v12203_v49 = vadd.f32 %v12202_v44, %v22285_v22  ;;  %v18325_v28 = vadd.f32 %v11426_v55, %v21855_v38 }
 0x4a8   : > { %v22299_v42 = vadd.f32 %v18324_v19, %v22061_v61 }
 0x4a9   : > { %v12204_v60 = vadd.f32 %v12203_v49, %v22289_v33  ;;  %v22295_v24 = vadd.f32 %v18325_v28, %v22061_v61  ;;  %v18150_v30 = vpop.f32.mrb[32].mxu0 }
 0x4aa   : > { %v18326_v17 = vadd.f32 %v18150_v30, %v21865_v52  ;;  %v11436_v20 = vpop.f32.mrb[33].mxu0 }
 0x4ab   : > { %v12205_v36 = vadd.f32 %v12204_v60, %v22295_v24  ;;  %v18327_v57 = vadd.f32 %v11436_v20, %v21867_v54 }
 0x4ac   : > { %v22309_v28 = vadd.f32 %v18326_v17, %v22061_v61 }
 0x4ad   : > { %v12206_v44 = vadd.f32 %v12205_v36, %v22299_v42  ;;  %v22305_v38 = vadd.f32 %v18327_v57, %v22061_v61  ;;  %v18153_v53 = vpop.f32.mrb[34].mxu0 }
 0x4ae   : > { %v18328_v55 = vadd.f32 %v18153_v53, %v21877_v6  ;;  %v11446_v49 = vpop.f32.mrb[35].mxu0 }
 0x4af   : > { %v12207_v52 = vadd.f32 %v12206_v44, %v22305_v38  ;;  %v18329_v19 = vadd.f32 %v11446_v49, %v21879_v1 }
 0x4b0   : > { %v22319_v57 = vadd.f32 %v18328_v55, %v22061_v61 }
 0x4b1   : > { %v12208_v60 = vadd.f32 %v12207_v52, %v22309_v28  ;;  %v22315_v54 = vadd.f32 %v18329_v19, %v22061_v61  ;;  %v18156_v30 = vpop.f32.mrb[36].mxu0 }
 0x4b2   : > { %v18330_v20 = vadd.f32 %v18156_v30, %v21889_v31  ;;  %v11456_v36 = vpop.f32.mrb[37].mxu0 }
 0x4b3   : > { %v12209_v6 = vadd.f32 %v12208_v60, %v22315_v54  ;;  %v18331_v17 = vadd.f32 %v11456_v36, %v21891_v35 }
 0x4b4   : > { %v22329_v19 = vadd.f32 %v18330_v20, %v22061_v61 }
 0x4b5   : > { %v12210_v44 = vadd.f32 %v12209_v6, %v22319_v57  ;;  %v22325_v1 = vadd.f32 %v18331_v17, %v22061_v61  ;;  %v18159_v53 = vpop.f32.mrb[38].mxu0 }
 0x4b6   : > { %v18332_v49 = vadd.f32 %v18159_v53, %v21901_v15  ;;  %v11466_v52 = vpop.f32.mrb[39].mxu0  ;;  %25308 = vst [vmem:[#allocation17_spill] sm:$0xff] %v22329_v19 }
 0x4b7   : > { %25307 = vst [vmem:[#allocation16_spill] sm:$0xff] %v22325_v1  ;;  %v12211_v31 = vadd.f32 %v12210_v44, %v22325_v1  ;;  %v18333_v55 = vadd.f32 %v11466_v52, %v21903_v18 }
 0x4b8   : > { %v22339_v17 = vadd.f32 %v18332_v49, %v22061_v61 }
 0x4b9   : > { %v12212_v60 = vadd.f32 %v12211_v31, %v22329_v19  ;;  %v22335_v35 = vadd.f32 %v18333_v55, %v22061_v61  ;;  %v18162_v30 = vpop.f32.mrb[40].mxu0 }
 0x4ba   : > { %v18334_v36 = vadd.f32 %v18162_v30, %v21913_v41  ;;  %v11476_v6 = vpop.f32.mrb[41].mxu0  ;;  %25310 = vst [vmem:[#allocation19_spill] sm:$0xff] %v22339_v17 }
 0x4bb   : > { %25309 = vst [vmem:[#allocation18_spill] sm:$0xff] %v22335_v35  ;;  %v12213_v15 = vadd.f32 %v12212_v60, %v22335_v35  ;;  %v18335_v20 = vadd.f32 %v11476_v6, %v21915_v26 }
 0x4bc   : > { %v22349_v55 = vadd.f32 %v18334_v36, %v22061_v61 }
 0x4bd   : > { %v12214_v44 = vadd.f32 %v12213_v15, %v22339_v17  ;;  %v22345_v18 = vadd.f32 %v18335_v20, %v22061_v61  ;;  %v18165_v53 = vpop.f32.mrb[42].mxu0 }
 0x4be   : > { %v18336_v52 = vadd.f32 %v18165_v53, %v21925_v4  ;;  %v11486_v31 = vpop.f32.mrb[43].mxu0  ;;  %25312 = vst [vmem:[#allocation21_spill] sm:$0xff] %v22349_v55 }
 0x4bf   : > { %25311 = vst [vmem:[#allocation20_spill] sm:$0xff] %v22345_v18  ;;  %v12215_v41 = vadd.f32 %v12214_v44, %v22345_v18  ;;  %v18337_v49 = vadd.f32 %v11486_v31, %v21927_v48 }
 0x4c0   : > { %v22359_v20 = vadd.f32 %v18336_v52, %v22061_v61 }
 0x4c1   : > { %v12216_v60 = vadd.f32 %v12215_v41, %v22349_v55  ;;  %v22355_v26 = vadd.f32 %v18337_v49, %v22061_v61  ;;  %v18168_v30 = vpop.f32.mrb[44].mxu0 }
 0x4c2   : > { %v18338_v6 = vadd.f32 %v18168_v30, %v21937_v11  ;;  %v11496_v15 = vpop.f32.mrb[45].mxu0  ;;  %25314 = vst [vmem:[#allocation23_spill] sm:$0xff] %v22359_v20 }
 0x4c3   : > { %25313 = vst [vmem:[#allocation22_spill] sm:$0xff] %v22355_v26  ;;  %v12217_v4 = vadd.f32 %v12216_v60, %v22355_v26  ;;  %v18339_v36 = vadd.f32 %v11496_v15, %v21939_v21 }
 0x4c4   : > { %v22369_v49 = vadd.f32 %v18338_v6, %v22061_v61 }
 0x4c5   : > { %v12218_v44 = vadd.f32 %v12217_v4, %v22359_v20  ;;  %v22365_v48 = vadd.f32 %v18339_v36, %v22061_v61  ;;  %v18171_v53 = vpop.f32.mrb[46].mxu0 }
 0x4c6   : > { %v18340_v31 = vadd.f32 %v18171_v53, %v21949_v63  ;;  %v11506_v41 = vpop.f32.mrb[47].mxu0  ;;  %25316 = vst [vmem:[#allocation25_spill] sm:$0xff] %v22369_v49 }
 0x4c7   : > { %25315 = vst [vmem:[#allocation24_spill] sm:$0xff] %v22365_v48  ;;  %v12219_v11 = vadd.f32 %v12218_v44, %v22365_v48  ;;  %v18341_v52 = vadd.f32 %v11506_v41, %v21951_v3 }
 0x4c8   : > { %v22379_v36 = vadd.f32 %v18340_v31, %v22061_v61  ;;  %v25321_v31 = vld [vmem:[#allocation2_spill] sm:$0xff] }
 0x4c9   : > { %v12220_v60 = vadd.f32 %v12219_v11, %v22369_v49  ;;  %v22375_v21 = vadd.f32 %v18341_v52, %v22061_v61  ;;  %v18174_v30 = vpop.f32.mrb[48].mxu0 }
 0x4ca   : > { %v18342_v15 = vadd.f32 %v18174_v30, %v21961_v32  ;;  %v11516_v4 = vpop.f32.mrb[49].mxu0  ;;  %25318 = vst [vmem:[#allocation27_spill] sm:$0xff] %v22379_v36 }
 0x4cb   : > { %25317 = vst [vmem:[#allocation26_spill] sm:$0xff] %v22375_v21  ;;  %v12221_v63 = vadd.f32 %v12220_v60, %v22375_v21  ;;  %v18343_v6 = vadd.f32 %v11516_v4, %v21963_v34 }
 0x4cc   : > { %v22389_v52 = vadd.f32 %v18342_v15, %v22061_v61  ;;  %v25325_v15 = vld [vmem:[#allocation4_spill] sm:$0xff] }
 0x4cd   : > { %v12222_v44 = vadd.f32 %v12221_v63, %v22379_v36  ;;  %v22385_v3 = vadd.f32 %v18343_v6, %v22061_v61  ;;  %v18177_v53 = vpop.f32.mrb[50].mxu0  ;;  %v25323_v63 = vld [vmem:[#allocation3_spill] sm:$0xff] }
 0x4ce   : > { %v18344_v41 = vadd.f32 %v18177_v53, %v21973_v0  ;;  %v11526_v11 = vpop.f32.mrb[51].mxu0  ;;  %25320 = vst [vmem:[#allocation29_spill] sm:$0xff] %v22389_v52 }
 0x4cf   : > { %25319 = vst [vmem:[#allocation28_spill] sm:$0xff] %v22385_v3  ;;  %v12223_v32 = vadd.f32 %v12222_v44, %v22385_v3  ;;  %v18345_v30 = vadd.f32 %v11526_v11, %v25321_v31  ;;  %v25327_v31 = vld [vmem:[#allocation5_spill] sm:$0xff] }
 0x4d0   : > { %v22399_v21 = vadd.f32 %v18344_v41, %v22061_v61  ;;  %v25329_v41 = vld [vmem:[#allocation6_spill] sm:$0xff] }
 0x4d1   : > { %v12224_v60 = vadd.f32 %v12223_v32, %v22389_v52  ;;  %v22395_v34 = vadd.f32 %v18345_v30, %v22061_v61  ;;  %v18180_v4 = vpop.f32.mrb[52].mxu0 }
 0x4d2   : > { %v18346_v6 = vadd.f32 %v18180_v4, %v25323_v63  ;;  %v11536_v36 = vpop.f32.mrb[53].mxu0  ;;  %25324 = vst [vmem:[#allocation3_spill] sm:$0xff] %v22399_v21 }
 0x4d3   : > { %25322 = vst [vmem:[#allocation2_spill] sm:$0xff] %v22395_v34  ;;  %v12225_v0 = vadd.f32 %v12224_v60, %v22395_v34  ;;  %v18347_v53 = vadd.f32 %v11536_v36, %v25325_v15  ;;  %v25331_v15 = vld [vmem:[#allocation7_spill] sm:$0xff] }
 0x4d4   : > { %v22409_v3 = vadd.f32 %v18346_v6, %v22061_v61  ;;  %v25333_v6 = vld [vmem:[#allocation8_spill] sm:$0xff] }
 0x4d5   : > { %v12226_v44 = vadd.f32 %v12225_v0, %v22399_v21  ;;  %v22405_v11 = vadd.f32 %v18347_v53, %v22061_v61  ;;  %v18183_v32 = vpop.f32.mrb[54].mxu0 }
 0x4d6   : > { %v18348_v30 = vadd.f32 %v18183_v32, %v25327_v31  ;;  %v11546_v52 = vpop.f32.mrb[55].mxu0  ;;  %25328 = vst [vmem:[#allocation5_spill] sm:$0xff] %v22409_v3 }
 0x4d7   : > { %25326 = vst [vmem:[#allocation4_spill] sm:$0xff] %v22405_v11  ;;  %v12227_v4 = vadd.f32 %v12226_v44, %v22405_v11  ;;  %v18349_v63 = vadd.f32 %v11546_v52, %v25329_v41  ;;  %v25335_v41 = vld [vmem:[#allocation9_spill] sm:$0xff] }
 0x4d8   : > { %v22419_v34 = vadd.f32 %v18348_v30, %v22061_v61  ;;  %v25337_v30 = vld [vmem:[#allocation10_spill] sm:$0xff] }
 0x4d9   : > { %v12228_v60 = vadd.f32 %v12227_v4, %v22409_v3  ;;  %v22415_v36 = vadd.f32 %v18349_v63, %v22061_v61  ;;  %v18186_v0 = vpop.f32.mrb[56].mxu0 }
 0x4da   : > { %v18350_v53 = vadd.f32 %v18186_v0, %v25331_v15  ;;  %v11556_v21 = vpop.f32.mrb[57].mxu0  ;;  %25332 = vst [vmem:[#allocation7_spill] sm:$0xff] %v22419_v34 }
 0x4db   : > { %25330 = vst [vmem:[#allocation6_spill] sm:$0xff] %v22415_v36  ;;  %v12229_v32 = vadd.f32 %v12228_v60, %v22415_v36  ;;  %v18351_v31 = vadd.f32 %v11556_v21, %v25333_v6  ;;  %v25339_v6 = vld [vmem:[#allocation11_spill] sm:$0xff] }
 0x4dc   : > { %v22429_v11 = vadd.f32 %v18350_v53, %v22061_v61  ;;  %v25341_v53 = vld [vmem:[#allocation12_spill] sm:$0xff] }
 0x4dd   : > { %v12230_v44 = vadd.f32 %v12229_v32, %v22419_v34  ;;  %v22425_v52 = vadd.f32 %v18351_v31, %v22061_v61  ;;  %v18189_v4 = vpop.f32.mrb[58].mxu0 }
 0x4de   : > { %v18352_v63 = vadd.f32 %v18189_v4, %v25335_v41  ;;  %v11566_v3 = vpop.f32.mrb[59].mxu0  ;;  %25336 = vst [vmem:[#allocation9_spill] sm:$0xff] %v22429_v11 }
 0x4df   : > { %25334 = vst [vmem:[#allocation8_spill] sm:$0xff] %v22425_v52  ;;  %v12231_v0 = vadd.f32 %v12230_v44, %v22425_v52  ;;  %v18353_v15 = vadd.f32 %v11566_v3, %v25337_v30  ;;  %v25343_v30 = vld [vmem:[#allocation13_spill] sm:$0xff] }
 0x4e0   : > { %v22439_v36 = vadd.f32 %v18352_v63, %v22061_v61  ;;  %v25345_v63 = vld [vmem:[#allocation14_spill] sm:$0xff] }
 0x4e1   : > { %v12232_v60 = vadd.f32 %v12231_v0, %v22429_v11  ;;  %v22435_v21 = vadd.f32 %v18353_v15, %v22061_v61  ;;  %v18192_v32 = vpop.f32.mrb[60].mxu0 }
 0x4e2   : > { %v18354_v31 = vadd.f32 %v18192_v32, %v25339_v6  ;;  %v11576_v34 = vpop.f32.mrb[61].mxu0  ;;  %25340 = vst [vmem:[#allocation11_spill] sm:$0xff] %v22439_v36 }
 0x4e3   : > { %25338 = vst [vmem:[#allocation10_spill] sm:$0xff] %v22435_v21  ;;  %v12233_v4 = vadd.f32 %v12232_v60, %v22435_v21  ;;  %v18355_v41 = vadd.f32 %v11576_v34, %v25341_v53 }
 0x4e4   : > { %v22449_v52 = vadd.f32 %v18354_v31, %v22061_v61 }
 0x4e5   : > { %v12234_v44 = vadd.f32 %v12233_v4, %v22439_v36  ;;  %v22445_v3 = vadd.f32 %v18355_v41, %v22061_v61  ;;  %v18195_v0 = vpop.f32.mrb[62].mxu0 }
 0x4e6   : > { %v18356_v15 = vadd.f32 %v18195_v0, %v25343_v30  ;;  %v11586_v11 = vpop.f32.mrb[63].mxu0  ;;  %25344 = vst [vmem:[#allocation13_spill] sm:$0xff] %v22449_v52 }
 0x4e7   : > { %25342 = vst [vmem:[#allocation12_spill] sm:$0xff] %v22445_v3  ;;  %v12235_v32 = vadd.f32 %v12234_v44, %v22445_v3  ;;  %v18357_v6 = vadd.f32 %v11586_v11, %v25345_v63 }
 0x4e8   : > { %v22458_v0 = vadd.f32 %v18356_v15, %v22061_v61 }
 0x4e9   : > { %v12236_v60 = vadd.f32 %v12235_v32, %v22449_v52  ;;  %v22455_v34 = vadd.f32 %v18357_v6, %v22061_v61  ;;  %v17422_v4 = vpop.f32.mrb[64].mxu1  ;;  %v18198_v53 = vpop.f32.mrb[64].mxu0 }
 0x4ea   : > { %v18358_v41 = vadd.f32 %v18198_v53, %v17422_v4  ;;  %v6207_v36 = vpop.f32.mrb[65].mxu1  ;;  %v11596_v21 = vpop.f32.mrb[65].mxu0  ;;  %25347 = vst [vmem:[#allocation30_spill] sm:$0xff] %v22458_v0 }
 0x4eb   : > { %25346 = vst [vmem:[#allocation14_spill] sm:$0xff] %v22455_v34  ;;  %v12237_v31 = vadd.f32 %v12236_v60, %v22455_v34  ;;  %v18359_v30 = vadd.f32 %v11596_v21, %v6207_v36 }
 0x4ec   : > { %v22466_v4 = vadd.f32 %v18358_v41, %v22061_v61 }
 0x4ed   : > { %v12238_v44 = vadd.f32 %v12237_v31, %v22458_v0  ;;  %v22463_v11 = vadd.f32 %v18359_v30, %v22061_v61  ;;  %v17425_v32 = vpop.f32.mrb[66].mxu1  ;;  %v18201_v63 = vpop.f32.mrb[66].mxu0 }
 0x4ee   : > { %v18360_v6 = vadd.f32 %v18201_v63, %v17425_v32  ;;  %v6217_v52 = vpop.f32.mrb[67].mxu1  ;;  %v11606_v3 = vpop.f32.mrb[67].mxu0  ;;  %25349 = vst [vmem:[#allocation32_spill] sm:$0xff] %v22466_v4 }
 0x4ef   : > { %25348 = vst [vmem:[#allocation31_spill] sm:$0xff] %v22463_v11  ;;  %v12239_v53 = vadd.f32 %v12238_v44, %v22463_v11  ;;  %v18361_v15 = vadd.f32 %v11606_v3, %v6217_v52 }
 0x4f0   : > { %v22474_v32 = vadd.f32 %v18360_v6, %v22061_v61 }
 0x4f1   : > { %v12240_v49 = vadd.f32 %v12239_v53, %v22466_v4  ;;  %v22471_v36 = vadd.f32 %v18361_v15, %v22061_v61  ;;  %v17428_v21 = vpop.f32.mrb[68].mxu1  ;;  %v18204_v60 = vpop.f32.mrb[68].mxu0 }
 0x4f2   : > { %v18362_v31 = vadd.f32 %v18204_v60, %v17428_v21  ;;  %v6227_v30 = vpop.f32.mrb[69].mxu1  ;;  %v11616_v0 = vpop.f32.mrb[69].mxu0  ;;  %25351 = vst [vmem:[#allocation34_spill] sm:$0xff] %v22474_v32 }
 0x4f3   : > { %25350 = vst [vmem:[#allocation33_spill] sm:$0xff] %v22471_v36  ;;  %v12241_v63 = vadd.f32 %v12240_v49, %v22471_v36  ;;  %v18363_v41 = vadd.f32 %v11616_v0, %v6227_v30 }
 0x4f4   : > { %v22482_v21 = vadd.f32 %v18362_v31, %v22061_v61 }
 0x4f5   : > { %v12242_v34 = vadd.f32 %v12241_v63, %v22474_v32  ;;  %v22479_v52 = vadd.f32 %v18363_v41, %v22061_v61  ;;  %v17431_v3 = vpop.f32.mrb[70].mxu1  ;;  %v18207_v44 = vpop.f32.mrb[70].mxu0 }
 0x4f6   : > { %v18364_v53 = vadd.f32 %v18207_v44, %v17431_v3  ;;  %v6237_v15 = vpop.f32.mrb[71].mxu1  ;;  %v11626_v4 = vpop.f32.mrb[71].mxu0  ;;  %25353 = vst [vmem:[#allocation36_spill] sm:$0xff] %v22482_v21 }
 0x4f7   : > { %25352 = vst [vmem:[#allocation35_spill] sm:$0xff] %v22479_v52  ;;  %v12243_v60 = vadd.f32 %v12242_v34, %v22479_v52  ;;  %v18365_v6 = vadd.f32 %v11626_v4, %v6237_v15 }
 0x4f8   : > { %v22490_v3 = vadd.f32 %v18364_v53, %v22061_v61 }
 0x4f9   : > { %v22486_v11 = vadd.f32 %v18365_v6, %v22061_v61  ;;  %v12244_v49 = vadd.f32 %v12243_v60, %v22482_v21  ;;  %v17434_v0 = vpop.f32.mrb[72].mxu1  ;;  %v18210_v30 = vpop.f32.mrb[72].mxu0 }
 0x4fa   : > { %v18366_v63 = vadd.f32 %v18210_v30, %v17434_v0  ;;  %v6247_v41 = vpop.f32.mrb[73].mxu1  ;;  %v11636_v32 = vpop.f32.mrb[73].mxu0  ;;  %25355 = vst [vmem:[#allocation38_spill] sm:$0xff] %v22490_v3 }
 0x4fb   : > { %25354 = vst [vmem:[#allocation37_spill] sm:$0xff] %v22486_v11  ;;  %v12245_v44 = vadd.f32 %v12244_v49, %v22486_v11  ;;  %v18367_v31 = vadd.f32 %v11636_v32, %v6247_v41 }
 0x4fc   : > { %v22498_v0 = vadd.f32 %v18366_v63, %v22061_v61 }
 0x4fd   : > { %v22494_v36 = vadd.f32 %v18367_v31, %v22061_v61  ;;  %v12246_v34 = vadd.f32 %v12245_v44, %v22490_v3  ;;  %v17437_v4 = vpop.f32.mrb[74].mxu1  ;;  %v18213_v15 = vpop.f32.mrb[74].mxu0 }
 0x4fe   : > { %v18368_v6 = vadd.f32 %v18213_v15, %v17437_v4  ;;  %v6257_v60 = vpop.f32.mrb[75].mxu1  ;;  %v11646_v21 = vpop.f32.mrb[75].mxu0  ;;  %25357 = vst [vmem:[#allocation40_spill] sm:$0xff] %v22498_v0 }
 0x4ff   : > { %25356 = vst [vmem:[#allocation39_spill] sm:$0xff] %v22494_v36  ;;  %v12247_v30 = vadd.f32 %v12246_v34, %v22494_v36  ;;  %v18369_v53 = vadd.f32 %v11646_v21, %v6257_v60 }
 0x500   : > { %v22506_v4 = vadd.f32 %v18368_v6, %v22061_v61 }
 0x501   : > { %v22502_v52 = vadd.f32 %v18369_v53, %v22061_v61  ;;  %v12248_v32 = vadd.f32 %v12247_v30, %v22498_v0  ;;  %v17440_v49 = vpop.f32.mrb[76].mxu1  ;;  %v18216_v41 = vpop.f32.mrb[76].mxu0 }
 0x502   : > { %v18370_v31 = vadd.f32 %v18216_v41, %v17440_v49  ;;  %v6267_v44 = vpop.f32.mrb[77].mxu1  ;;  %v11656_v3 = vpop.f32.mrb[77].mxu0  ;;  %25359 = vst [vmem:[#allocation42_spill] sm:$0xff] %v22506_v4 }
 0x503   : > { %25358 = vst [vmem:[#allocation41_spill] sm:$0xff] %v22502_v52  ;;  %v12249_v15 = vadd.f32 %v12248_v32, %v22502_v52  ;;  %v18371_v63 = vadd.f32 %v11656_v3, %v6267_v44 }
 0x504   : > { %v22514_v49 = vadd.f32 %v18370_v31, %v22061_v61 }
 0x505   : > { %v22510_v11 = vadd.f32 %v18371_v63, %v22061_v61  ;;  %v12250_v21 = vadd.f32 %v12249_v15, %v22506_v4  ;;  %v17443_v34 = vpop.f32.mrb[78].mxu1  ;;  %v18219_v60 = vpop.f32.mrb[78].mxu0 }
 0x506   : > { %v18372_v53 = vadd.f32 %v18219_v60, %v17443_v34  ;;  %v6277_v30 = vpop.f32.mrb[79].mxu1  ;;  %v11666_v0 = vpop.f32.mrb[79].mxu0  ;;  %25361 = vst [vmem:[#allocation44_spill] sm:$0xff] %v22514_v49 }
 0x507   : > { %25360 = vst [vmem:[#allocation43_spill] sm:$0xff] %v22510_v11  ;;  %v12251_v41 = vadd.f32 %v12250_v21, %v22510_v11  ;;  %v18373_v6 = vadd.f32 %v11666_v0, %v6277_v30 }
 0x508   : > { %v22522_v34 = vadd.f32 %v18372_v53, %v22061_v61 }
 0x509   : > { %v22518_v36 = vadd.f32 %v18373_v6, %v22061_v61  ;;  %v12252_v3 = vadd.f32 %v12251_v41, %v22514_v49  ;;  %v17446_v32 = vpop.f32.mrb[80].mxu1  ;;  %v18222_v44 = vpop.f32.mrb[80].mxu0 }
 0x50a   : > { %v18374_v63 = vadd.f32 %v18222_v44, %v17446_v32  ;;  %v6287_v15 = vpop.f32.mrb[81].mxu1  ;;  %v11676_v4 = vpop.f32.mrb[81].mxu0  ;;  %25363 = vst [vmem:[#allocation46_spill] sm:$0xff] %v22522_v34 }
 0x50b   : > { %25362 = vst [vmem:[#allocation45_spill] sm:$0xff] %v22518_v36  ;;  %v12253_v60 = vadd.f32 %v12252_v3, %v22518_v36  ;;  %v18375_v31 = vadd.f32 %v11676_v4, %v6287_v15 }
 0x50c   : > { %v22530_v32 = vadd.f32 %v18374_v63, %v22061_v61 }
 0x50d   : > { %v22526_v52 = vadd.f32 %v18375_v31, %v22061_v61  ;;  %v12254_v0 = vadd.f32 %v12253_v60, %v22522_v34  ;;  %v17449_v21 = vpop.f32.mrb[82].mxu1  ;;  %v18225_v30 = vpop.f32.mrb[82].mxu0 }
 0x50e   : > { %v18376_v6 = vadd.f32 %v18225_v30, %v17449_v21  ;;  %v6297_v41 = vpop.f32.mrb[83].mxu1  ;;  %v11686_v49 = vpop.f32.mrb[83].mxu0  ;;  %25365 = vst [vmem:[#allocation48_spill] sm:$0xff] %v22530_v32 }
 0x50f   : > { %25364 = vst [vmem:[#allocation47_spill] sm:$0xff] %v22526_v52  ;;  %v12255_v44 = vadd.f32 %v12254_v0, %v22526_v52  ;;  %v18377_v53 = vadd.f32 %v11686_v49, %v6297_v41 }
 0x510   : > { %v22538_v21 = vadd.f32 %v18376_v6, %v22061_v61 }
 0x511   : > { %v22534_v11 = vadd.f32 %v18377_v53, %v22061_v61  ;;  %v12256_v4 = vadd.f32 %v12255_v44, %v22530_v32  ;;  %v17452_v3 = vpop.f32.mrb[84].mxu1  ;;  %v18228_v15 = vpop.f32.mrb[84].mxu0 }
 0x512   : > { %v18378_v31 = vadd.f32 %v18228_v15, %v17452_v3  ;;  %v6307_v60 = vpop.f32.mrb[85].mxu1  ;;  %v11696_v34 = vpop.f32.mrb[85].mxu0  ;;  %25367 = vst [vmem:[#allocation50_spill] sm:$0xff] %v22538_v21 }
 0x513   : > { %25366 = vst [vmem:[#allocation49_spill] sm:$0xff] %v22534_v11  ;;  %v12257_v30 = vadd.f32 %v12256_v4, %v22534_v11  ;;  %v18379_v63 = vadd.f32 %v11696_v34, %v6307_v60 }
 0x514   : > { %v22546_v3 = vadd.f32 %v18378_v31, %v22061_v61 }
 0x515   : > { %v22542_v36 = vadd.f32 %v18379_v63, %v22061_v61  ;;  %v12258_v49 = vadd.f32 %v12257_v30, %v22538_v21  ;;  %v17455_v0 = vpop.f32.mrb[86].mxu1  ;;  %v18231_v41 = vpop.f32.mrb[86].mxu0 }
 0x516   : > { %v18380_v53 = vadd.f32 %v18231_v41, %v17455_v0  ;;  %v6317_v44 = vpop.f32.mrb[87].mxu1  ;;  %v11706_v32 = vpop.f32.mrb[87].mxu0  ;;  %25369 = vst [vmem:[#allocation52_spill] sm:$0xff] %v22546_v3 }
 0x517   : > { %25368 = vst [vmem:[#allocation51_spill] sm:$0xff] %v22542_v36  ;;  %v12259_v15 = vadd.f32 %v12258_v49, %v22542_v36  ;;  %v18381_v6 = vadd.f32 %v11706_v32, %v6317_v44 }
 0x518   : > { %v22554_v0 = vadd.f32 %v18380_v53, %v22061_v61 }
 0x519   : > { %v22550_v52 = vadd.f32 %v18381_v6, %v22061_v61  ;;  %v12260_v34 = vadd.f32 %v12259_v15, %v22546_v3  ;;  %v17458_v4 = vpop.f32.mrb[88].mxu1  ;;  %v18234_v60 = vpop.f32.mrb[88].mxu0 }
 0x51a   : > { %v18382_v63 = vadd.f32 %v18234_v60, %v17458_v4  ;;  %v6327_v30 = vpop.f32.mrb[89].mxu1  ;;  %v11716_v21 = vpop.f32.mrb[89].mxu0  ;;  %25371 = vst [vmem:[#allocation54_spill] sm:$0xff] %v22554_v0 }
 0x51b   : > { %25370 = vst [vmem:[#allocation53_spill] sm:$0xff] %v22550_v52  ;;  %v12261_v41 = vadd.f32 %v12260_v34, %v22550_v52  ;;  %v18383_v31 = vadd.f32 %v11716_v21, %v6327_v30 }
 0x51c   : > { %v22562_v4 = vadd.f32 %v18382_v63, %v22061_v61 }
 0x51d   : > { %v22558_v11 = vadd.f32 %v18383_v31, %v22061_v61  ;;  %v12262_v32 = vadd.f32 %v12261_v41, %v22554_v0  ;;  %v17461_v49 = vpop.f32.mrb[90].mxu1  ;;  %v18237_v44 = vpop.f32.mrb[90].mxu0 }
 0x51e   : > { %v18384_v6 = vadd.f32 %v18237_v44, %v17461_v49  ;;  %v6337_v15 = vpop.f32.mrb[91].mxu1  ;;  %v11726_v3 = vpop.f32.mrb[91].mxu0  ;;  %25373 = vst [vmem:[#allocation56_spill] sm:$0xff] %v22562_v4 }
 0x51f   : > { %25372 = vst [vmem:[#allocation55_spill] sm:$0xff] %v22558_v11  ;;  %v12263_v60 = vadd.f32 %v12262_v32, %v22558_v11  ;;  %v18385_v53 = vadd.f32 %v11726_v3, %v6337_v15 }
 0x520   : > { %v22570_v49 = vadd.f32 %v18384_v6, %v22061_v61 }
 0x521   : > { %v22566_v36 = vadd.f32 %v18385_v53, %v22061_v61  ;;  %v12264_v21 = vadd.f32 %v12263_v60, %v22562_v4  ;;  %v17464_v34 = vpop.f32.mrb[92].mxu1  ;;  %v18240_v30 = vpop.f32.mrb[92].mxu0 }
 0x522   : > { %v18386_v31 = vadd.f32 %v18240_v30, %v17464_v34  ;;  %v6347_v41 = vpop.f32.mrb[93].mxu1  ;;  %v11736_v0 = vpop.f32.mrb[93].mxu0  ;;  %25375 = vst [vmem:[#allocation58_spill] sm:$0xff] %v22570_v49 }
 0x523   : > { %25374 = vst [vmem:[#allocation57_spill] sm:$0xff] %v22566_v36  ;;  %v12265_v44 = vadd.f32 %v12264_v21, %v22566_v36  ;;  %v18387_v63 = vadd.f32 %v11736_v0, %v6347_v41 }
 0x524   : > { %v22578_v34 = vadd.f32 %v18386_v31, %v22061_v61 }
 0x525   : > { %v22574_v52 = vadd.f32 %v18387_v63, %v22061_v61  ;;  %v12266_v3 = vadd.f32 %v12265_v44, %v22570_v49  ;;  %v17467_v32 = vpop.f32.mrb[94].mxu1  ;;  %v18243_v15 = vpop.f32.mrb[94].mxu0 }
 0x526   : > { %v18388_v53 = vadd.f32 %v18243_v15, %v17467_v32  ;;  %v6357_v60 = vpop.f32.mrb[95].mxu1  ;;  %v11746_v4 = vpop.f32.mrb[95].mxu0  ;;  %25377 = vst [vmem:[#allocation60_spill] sm:$0xff] %v22578_v34 }
 0x527   : > { %25376 = vst [vmem:[#allocation59_spill] sm:$0xff] %v22574_v52  ;;  %v12267_v30 = vadd.f32 %v12266_v3, %v22574_v52  ;;  %v18389_v6 = vadd.f32 %v11746_v4, %v6357_v60 }
 0x528   : > { %v22586_v32 = vadd.f32 %v18388_v53, %v22061_v61 }
 0x529   : > { %v22582_v11 = vadd.f32 %v18389_v6, %v22061_v61  ;;  %v12268_v0 = vadd.f32 %v12267_v30, %v22578_v34  ;;  %v17470_v21 = vpop.f32.mrb[96].mxu1  ;;  %v18246_v41 = vpop.f32.mrb[96].mxu0 }
 0x52a   : > { %v18390_v63 = vadd.f32 %v18246_v41, %v17470_v21  ;;  %v6367_v44 = vpop.f32.mrb[97].mxu1  ;;  %v11756_v49 = vpop.f32.mrb[97].mxu0  ;;  %25379 = vst [vmem:[#allocation62_spill] sm:$0xff] %v22586_v32 }
 0x52b   : > { %25378 = vst [vmem:[#allocation61_spill] sm:$0xff] %v22582_v11  ;;  %v12269_v15 = vadd.f32 %v12268_v0, %v22582_v11  ;;  %v18391_v31 = vadd.f32 %v11756_v49, %v6367_v44 }
 0x52c   : > { %v22594_v21 = vadd.f32 %v18390_v63, %v22061_v61 }
 0x52d   : > { %v22590_v36 = vadd.f32 %v18391_v31, %v22061_v61  ;;  %v12270_v4 = vadd.f32 %v12269_v15, %v22586_v32  ;;  %v17473_v3 = vpop.f32.mrb[98].mxu1  ;;  %v18249_v60 = vpop.f32.mrb[98].mxu0 }
 0x52e   : > { %v18392_v6 = vadd.f32 %v18249_v60, %v17473_v3  ;;  %v6377_v30 = vpop.f32.mrb[99].mxu1  ;;  %v11766_v34 = vpop.f32.mrb[99].mxu0  ;;  %25381 = vst [vmem:[#allocation64_spill] sm:$0xff] %v22594_v21  ;;  %v22604_v3 = vld [vmem:[%s25127_s2] ss:$0 sm:$0xff] }
 0x52f   : > { %25380 = vst [vmem:[#allocation63_spill] sm:$0xff] %v22590_v36  ;;  %v12271_v41 = vadd.f32 %v12270_v4, %v22590_v36  ;;  %v18393_v53 = vadd.f32 %v11766_v34, %v6377_v30 }
 0x530   : > { %v22607_v63 = vadd.f32 %v22604_v3, %v18392_v6 }
 0x531   : > { %v22598_v52 = vadd.f32 %v18393_v53, %v22061_v61  ;;  %v12272_v49 = vadd.f32 %v12271_v41, %v22594_v21  ;;  %v17476_v0 = vpop.f32.mrb[100].mxu1  ;;  %v18252_v44 = vpop.f32.mrb[100].mxu0 }
 0x532   : > { %v18394_v31 = vadd.f32 %v18252_v44, %v17476_v0  ;;  %v6387_v15 = vpop.f32.mrb[101].mxu1  ;;  %v11776_v32 = vpop.f32.mrb[101].mxu0  ;;  %25383 = vst [vmem:[#allocation66_spill] sm:$0xff] %v22607_v63 }
 0x533   : > { %25382 = vst [vmem:[#allocation65_spill] sm:$0xff] %v22598_v52  ;;  %v12273_v34 = vadd.f32 %v12272_v49, %v22598_v52  ;;  %v18395_v4 = vadd.f32 %v11776_v32, %v6387_v15 }
 0x534   : > { %v22615_v21 = vadd.f32 %v22604_v3, %v18394_v31 }
 0x535   : > { %v22611_v61 = vadd.f32 %v22604_v3, %v18395_v4  ;;  %v12274_v60 = vadd.f32 %v12273_v34, %v22607_v63  ;;  %v17479_v30 = vpop.f32.mrb[102].mxu1  ;;  %v18255_v41 = vpop.f32.mrb[102].mxu0 }
 0x536   : > { %v18396_v53 = vadd.f32 %v18255_v41, %v17479_v30  ;;  %v6397_v0 = vpop.f32.mrb[103].mxu1  ;;  %v11786_v44 = vpop.f32.mrb[103].mxu0  ;;  %25385 = vst [vmem:[#allocation68_spill] sm:$0xff] %v22615_v21 }
 0x537   : > { %25384 = vst [vmem:[#allocation67_spill] sm:$0xff] %v22611_v61  ;;  %v12275_v36 = vadd.f32 %v12274_v60, %v22611_v61  ;;  %v18397_v6 = vadd.f32 %v11786_v44, %v6397_v0 }
 0x538   : > { %v22623_v30 = vadd.f32 %v22604_v3, %v18396_v53 }
 0x539   : > { %v22619_v11 = vadd.f32 %v22604_v3, %v18397_v6  ;;  %v12276_v32 = vadd.f32 %v12275_v36, %v22615_v21  ;;  %v17482_v49 = vpop.f32.mrb[104].mxu1  ;;  %v18258_v15 = vpop.f32.mrb[104].mxu0 }
 0x53a   : > { %v18398_v4 = vadd.f32 %v18258_v15, %v17482_v49  ;;  %v6407_v34 = vpop.f32.mrb[105].mxu1  ;;  %v11796_v63 = vpop.f32.mrb[105].mxu0  ;;  %25387 = vst [vmem:[#allocation70_spill] sm:$0xff] %v22623_v30 }
 0x53b   : > { %25386 = vst [vmem:[#allocation69_spill] sm:$0xff] %v22619_v11  ;;  %v12277_v41 = vadd.f32 %v12276_v32, %v22619_v11  ;;  %v18399_v31 = vadd.f32 %v11796_v63, %v6407_v34 }
 0x53c   : > { %v22631_v49 = vadd.f32 %v22604_v3, %v18398_v4 }
 0x53d   : > { %v22627_v52 = vadd.f32 %v22604_v3, %v18399_v31  ;;  %v12278_v60 = vadd.f32 %v12277_v41, %v22623_v30  ;;  %v17485_v0 = vpop.f32.mrb[106].mxu1  ;;  %v18261_v44 = vpop.f32.mrb[106].mxu0 }
 0x53e   : > { %v18400_v6 = vadd.f32 %v18261_v44, %v17485_v0  ;;  %v6417_v36 = vpop.f32.mrb[107].mxu1  ;;  %v11806_v21 = vpop.f32.mrb[107].mxu0  ;;  %25389 = vst [vmem:[#allocation72_spill] sm:$0xff] %v22631_v49 }
 0x53f   : > { %25388 = vst [vmem:[#allocation71_spill] sm:$0xff] %v22627_v52  ;;  %v12279_v15 = vadd.f32 %v12278_v60, %v22627_v52  ;;  %v18401_v53 = vadd.f32 %v11806_v21, %v6417_v36 }
 0x540   : > { %v22639_v0 = vadd.f32 %v22604_v3, %v18400_v6 }
 0x541   : > { %v22635_v61 = vadd.f32 %v22604_v3, %v18401_v53  ;;  %v12280_v63 = vadd.f32 %v12279_v15, %v22631_v49  ;;  %v17488_v32 = vpop.f32.mrb[108].mxu1  ;;  %v18264_v34 = vpop.f32.mrb[108].mxu0 }
 0x542   : > { %v18402_v31 = vadd.f32 %v18264_v34, %v17488_v32  ;;  %v6427_v41 = vpop.f32.mrb[109].mxu1  ;;  %v11816_v30 = vpop.f32.mrb[109].mxu0  ;;  %25391 = vst [vmem:[#allocation74_spill] sm:$0xff] %v22639_v0 }
 0x543   : > { %25390 = vst [vmem:[#allocation73_spill] sm:$0xff] %v22635_v61  ;;  %v12281_v44 = vadd.f32 %v12280_v63, %v22635_v61  ;;  %v18403_v4 = vadd.f32 %v11816_v30, %v6427_v41 }
 0x544   : > { %v22647_v32 = vadd.f32 %v22604_v3, %v18402_v31 }
 0x545   : > { %v22643_v11 = vadd.f32 %v22604_v3, %v18403_v4  ;;  %v12282_v21 = vadd.f32 %v12281_v44, %v22639_v0  ;;  %v17491_v60 = vpop.f32.mrb[110].mxu1  ;;  %v18267_v36 = vpop.f32.mrb[110].mxu0 }
 0x546   : > { %v18404_v53 = vadd.f32 %v18267_v36, %v17491_v60  ;;  %v6437_v15 = vpop.f32.mrb[111].mxu1  ;;  %v11826_v49 = vpop.f32.mrb[111].mxu0  ;;  %25393 = vst [vmem:[#allocation76_spill] sm:$0xff] %v22647_v32 }
 0x547   : > { %25392 = vst [vmem:[#allocation75_spill] sm:$0xff] %v22643_v11  ;;  %v12283_v34 = vadd.f32 %v12282_v21, %v22643_v11  ;;  %v18405_v6 = vadd.f32 %v11826_v49, %v6437_v15 }
 0x548   : > { %v22655_v60 = vadd.f32 %v22604_v3, %v18404_v53 }
 0x549   : > { %v22651_v52 = vadd.f32 %v22604_v3, %v18405_v6  ;;  %v12284_v30 = vadd.f32 %v12283_v34, %v22647_v32  ;;  %v17494_v63 = vpop.f32.mrb[112].mxu1  ;;  %v18270_v41 = vpop.f32.mrb[112].mxu0 }
 0x54a   : > { %v18406_v4 = vadd.f32 %v18270_v41, %v17494_v63  ;;  %v6447_v44 = vpop.f32.mrb[113].mxu1  ;;  %v11836_v0 = vpop.f32.mrb[113].mxu0  ;;  %25395 = vst [vmem:[#allocation78_spill] sm:$0xff] %v22655_v60 }
 0x54b   : > { %25394 = vst [vmem:[#allocation77_spill] sm:$0xff] %v22651_v52  ;;  %v12285_v36 = vadd.f32 %v12284_v30, %v22651_v52  ;;  %v18407_v31 = vadd.f32 %v11836_v0, %v6447_v44 }
 0x54c   : > { %v22663_v63 = vadd.f32 %v22604_v3, %v18406_v4 }
 0x54d   : > { %v22659_v61 = vadd.f32 %v22604_v3, %v18407_v31  ;;  %v12286_v49 = vadd.f32 %v12285_v36, %v22655_v60  ;;  %v17497_v21 = vpop.f32.mrb[114].mxu1  ;;  %v18273_v15 = vpop.f32.mrb[114].mxu0 }
 0x54e   : > { %v18408_v6 = vadd.f32 %v18273_v15, %v17497_v21  ;;  %v6457_v34 = vpop.f32.mrb[115].mxu1  ;;  %v11846_v32 = vpop.f32.mrb[115].mxu0  ;;  %25397 = vst [vmem:[#allocation80_spill] sm:$0xff] %v22663_v63 }
 0x54f   : > { %25396 = vst [vmem:[#allocation79_spill] sm:$0xff] %v22659_v61  ;;  %v12287_v41 = vadd.f32 %v12286_v49, %v22659_v61  ;;  %v18409_v53 = vadd.f32 %v11846_v32, %v6457_v34 }
 0x550   : > { %v22671_v21 = vadd.f32 %v22604_v3, %v18408_v6 }
 0x551   : > { %v22667_v11 = vadd.f32 %v22604_v3, %v18409_v53  ;;  %v12288_v0 = vadd.f32 %v12287_v41, %v22663_v63  ;;  %v17500_v30 = vpop.f32.mrb[116].mxu1  ;;  %v18276_v44 = vpop.f32.mrb[116].mxu0 }
 0x552   : > { %v18410_v31 = vadd.f32 %v18276_v44, %v17500_v30  ;;  %v6467_v36 = vpop.f32.mrb[117].mxu1  ;;  %v11856_v60 = vpop.f32.mrb[117].mxu0  ;;  %25399 = vst [vmem:[#allocation82_spill] sm:$0xff] %v22671_v21 }
 0x553   : > { %25398 = vst [vmem:[#allocation81_spill] sm:$0xff] %v22667_v11  ;;  %v12289_v15 = vadd.f32 %v12288_v0, %v22667_v11  ;;  %v18411_v4 = vadd.f32 %v11856_v60, %v6467_v36 }
 0x554   : > { %v22679_v30 = vadd.f32 %v22604_v3, %v18410_v31 }
 0x555   : > { %v22675_v52 = vadd.f32 %v22604_v3, %v18411_v4  ;;  %v12290_v32 = vadd.f32 %v12289_v15, %v22671_v21  ;;  %v17503_v49 = vpop.f32.mrb[118].mxu1  ;;  %v18279_v34 = vpop.f32.mrb[118].mxu0 }
 0x556   : > { %v18412_v53 = vadd.f32 %v18279_v34, %v17503_v49  ;;  %v6477_v41 = vpop.f32.mrb[119].mxu1  ;;  %v11866_v63 = vpop.f32.mrb[119].mxu0  ;;  %25401 = vst [vmem:[#allocation84_spill] sm:$0xff] %v22679_v30 }
 0x557   : > { %25400 = vst [vmem:[#allocation83_spill] sm:$0xff] %v22675_v52  ;;  %v12291_v44 = vadd.f32 %v12290_v32, %v22675_v52  ;;  %v18413_v6 = vadd.f32 %v11866_v63, %v6477_v41 }
 0x558   : > { %v12167_v21 = vadd.f32 %v22604_v3, %v18412_v53 }
 0x559   : > { %v12166_v61 = vadd.f32 %v22604_v3, %v18413_v6  ;;  %v12292_v60 = vadd.f32 %v12291_v44, %v22679_v30  ;;  %v17506_v0 = vpop.f32.mrb[120].mxu1  ;;  %v18282_v36 = vpop.f32.mrb[120].mxu0 }
 0x55a   : > { %v18414_v4 = vadd.f32 %v18282_v36, %v17506_v0  ;;  %v6487_v11 = vpop.f32.mrb[121].mxu1  ;;  %v11876_v15 = vpop.f32.mrb[121].mxu0 }
 0x55b   : > { %v12293_v49 = vadd.f32 %v12292_v60, %v12166_v61  ;;  %v18415_v34 = vadd.f32 %v11876_v15, %v6487_v11 }
 0x55c   : > { %v12169_v6 = vadd.f32 %v22604_v3, %v18414_v4 }
 0x55d   : > { %v12168_v48 = vadd.f32 %v22604_v3, %v18415_v34  ;;  %v12294_v31 = vadd.f32 %v12293_v49, %v12167_v21  ;;  %v17509_v20 = vpop.f32.mrb[122].mxu1  ;;  %v18285_v26 = vpop.f32.mrb[122].mxu0 }
 0x55e   : > { %v18416_v32 = vadd.f32 %v18285_v26, %v17509_v20  ;;  %v6497_v63 = vpop.f32.mrb[123].mxu1  ;;  %v11886_v41 = vpop.f32.mrb[123].mxu0 }
 0x55f   : > { %v12295_v44 = vadd.f32 %v12294_v31, %v12168_v48  ;;  %v18417_v30 = vadd.f32 %v11886_v41, %v6497_v63 }
 0x560   : > { %v12171_v15 = vadd.f32 %v22604_v3, %v18416_v32 }
 0x561   : > { %v12170_v0 = vadd.f32 %v22604_v3, %v18417_v30  ;;  %v12296_v36 = vadd.f32 %v12295_v44, %v12169_v6  ;;  %v17512_v52 = vpop.f32.mrb[124].mxu1  ;;  %v18288_v55 = vpop.f32.mrb[124].mxu0 }
 0x562   : > { %v18418_v53 = vadd.f32 %v18288_v55, %v17512_v52  ;;  %v6507_v60 = vpop.f32.mrb[125].mxu1  ;;  %v11896_v11 = vpop.f32.mrb[125].mxu0 }
 0x563   : > { %v12297_v49 = vadd.f32 %v12296_v36, %v12170_v0  ;;  %v18419_v34 = vadd.f32 %v11896_v11, %v6507_v60 }
 0x564   : > { %v12173_v30 = vadd.f32 %v22604_v3, %v18418_v53 }
 0x565   : > { %v12172_v26 = vadd.f32 %v22604_v3, %v18419_v34  ;;  %v12298_v20 = vadd.f32 %v12297_v49, %v12171_v15  ;;  %v17515_v18 = vpop.f32.mrb[126].mxu1  ;;  %v18291_v17 = vpop.f32.mrb[126].mxu0 }
 0x566   : > { %v18420_v4 = vadd.f32 %v18291_v17, %v17515_v18  ;;  %v6517_v31 = vpop.f32.mrb[127].mxu1  ;;  %v11906_v63 = vpop.f32.mrb[127].mxu0 }
 0x567   : > { %v12299_v41 = vadd.f32 %v12298_v20, %v12172_v26  ;;  %v18421_v44 = vadd.f32 %v11906_v63, %v6517_v31 }
 0x568   : > { %v12175_v35 = vadd.f32 %v22604_v3, %v18420_v4 }
 0x569   : > { %v12174_v55 = vadd.f32 %v22604_v3, %v18421_v44  ;;  %v12300_v52 = vadd.f32 %v12299_v41, %v12173_v30 }
 0x56b   : > { %v12301_v32 = vadd.f32 %v12300_v52, %v12174_v55 }
 0x56d   : > { %v12302_v36 = vadd.f32 %v12301_v32, %v12175_v35 }
 0x56f   : > { %v12303_v60 = vrot.slane %v12302_v36, 4 }
 0x571   : > { %v12304_v11 = vadd.f32 %v12303_v60, %v12302_v36 }
 0x573   : > { %v12305_v34 = vrot.slane %v12304_v11, 2 }
 0x575   : > { %v12306_v49 = vadd.f32 %v12305_v34, %v12304_v11 }
 0x577   : > { %v12307_v19 = vrot.slane %v12306_v49, 1 }
 0x579   : > { %v12308_v1 = vadd.f32 %v12307_v19, %v12306_v49 }
 0x57b   : > { %v22693_v17 = vmul.f32 0.0009765625, %v12308_v1 }
 0x57d   : > { %v22696_v18 = vsub.f32 %v12166_v61, %v22693_v17  ;;  %v22699_v53 = vsub.f32 %v12167_v21, %v22693_v17  ;;  %v22702_v20 = vsub.f32 %v12168_v48, %v22693_v17  ;;  %v22705_v3 = vsub.f32 %v12169_v6, %v22693_v17  ;;  %v25406_v6 = vld [vmem:[#allocation15_spill] sm:$0xff] }
 0x57e   : > { %v22708_v4 = vsub.f32 %v12170_v0, %v22693_v17  ;;  %v22711_v31 = vsub.f32 %v12171_v15, %v22693_v17  ;;  %v22714_v1 = vsub.f32 %v12172_v26, %v22693_v17  ;;  %v22717_v19 = vsub.f32 %v12173_v30, %v22693_v17 }
 0x57f   : > { %v22720_v61 = vsub.f32 %v12174_v55, %v22693_v17  ;;  %v22723_v48 = vsub.f32 %v12175_v35, %v22693_v17  ;;  %v22727_v21 = vsub.f32 %v22076_v25, %v22693_v17  ;;  %v22731_v0 = vsub.f32 %v25406_v6, %v22693_v17 }
 0x580   : > { %25402 = vst [vmem:[#allocation85_spill] sm:$0xff] %v22708_v4  ;;  %25403 = vst [vmem:[#allocation86_spill] sm:$0xff] %v22711_v31  ;;  %v22735_v15 = vsub.f32 %v22091_v46, %v22693_v17  ;;  %v22743_v35 = vsub.f32 %v22097_v58, %v22693_v17  ;;  %v22747_v25 = vsub.f32 %v22109_v9, %v22693_v17 }
 0x581   : > { %25404 = vst [vmem:[#allocation87_spill] sm:$0xff] %v22714_v1  ;;  %25405 = vst [vmem:[#allocation88_spill] sm:$0xff] %v22717_v19  ;;  %v12439_v26 = vmul.f32 %v22727_v21, %v22727_v21  ;;  %v12440_v63 = vmul.f32 %v22731_v0, %v22731_v0  ;;  %v22753_v46 = vsub.f32 %v22115_v2, %v22693_v17 }
 0x582   : > { %v12441_v30 = vmul.f32 %v22735_v15, %v22735_v15  ;;  %v12442_v44 = vmul.f32 %v22743_v35, %v22743_v35  ;;  %v22759_v58 = vsub.f32 %v22127_v27, %v22693_v17  ;;  %v12443_v9 = vmul.f32 %v22747_v25, %v22747_v25 }
 0x583   : > { %v12567_v41 = vadd.f32 %v12440_v63, %v12439_v26  ;;  %v22765_v32 = vsub.f32 %v22133_v5, %v22693_v17  ;;  %v12444_v2 = vmul.f32 %v22753_v46, %v22753_v46  ;;  %v22771_v60 = vsub.f32 %v22145_v51, %v22693_v17 }
 0x584   : > { %v12445_v27 = vmul.f32 %v22759_v58, %v22759_v58  ;;  %v22777_v34 = vsub.f32 %v22151_v43, %v22693_v17  ;;  %v22783_v6 = vsub.f32 %v22163_v12, %v22693_v17  ;;  %v22789_v63 = vsub.f32 %v22169_v10, %v22693_v17 }
 0x585   : > { %v12568_v55 = vadd.f32 %v12567_v41, %v12441_v30  ;;  %v12446_v5 = vmul.f32 %v22765_v32, %v22765_v32  ;;  %v12447_v51 = vmul.f32 %v22771_v60, %v22771_v60  ;;  %v22795_v41 = vsub.f32 %v22181_v37, %v22693_v17 }
 0x586   : > { %v12448_v43 = vmul.f32 %v22777_v34, %v22777_v34  ;;  %v12449_v12 = vmul.f32 %v22783_v6, %v22783_v6  ;;  %v12450_v10 = vmul.f32 %v22789_v63, %v22789_v63 }
 0x587   : > { %v12569_v52 = vadd.f32 %v12568_v55, %v12442_v44  ;;  %v22801_v55 = vsub.f32 %v22187_v13, %v22693_v17  ;;  %v12451_v37 = vmul.f32 %v22795_v41, %v22795_v41 }
 0x589   : > { %v12570_v36 = vadd.f32 %v12569_v52, %v12443_v9  ;;  %v22807_v52 = vsub.f32 %v22199_v14, %v22693_v17  ;;  %v12452_v13 = vmul.f32 %v22801_v55, %v22801_v55 }
 0x58b   : > { %v12571_v11 = vadd.f32 %v12570_v36, %v12444_v2  ;;  %v22813_v36 = vsub.f32 %v22205_v23, %v22693_v17  ;;  %v12453_v14 = vmul.f32 %v22807_v52, %v22807_v52 }
 0x58d   : > { %v12572_v49 = vadd.f32 %v12571_v11, %v12445_v27  ;;  %v22819_v11 = vsub.f32 %v22217_v7, %v22693_v17  ;;  %v12454_v23 = vmul.f32 %v22813_v36, %v22813_v36 }
 0x58f   : > { %v12573_v26 = vadd.f32 %v12572_v49, %v12446_v5  ;;  %v22825_v49 = vsub.f32 %v22223_v40, %v22693_v17  ;;  %v12455_v7 = vmul.f32 %v22819_v11, %v22819_v11 }
 0x591   : > { %v12574_v30 = vadd.f32 %v12573_v26, %v12447_v51  ;;  %v22831_v26 = vsub.f32 %v22233_v39, %v22693_v17  ;;  %v12456_v40 = vmul.f32 %v22825_v49, %v22825_v49 }
 0x593   : > { %v12575_v44 = vadd.f32 %v12574_v30, %v12448_v43  ;;  %v22837_v30 = vsub.f32 %v22239_v62, %v22693_v17  ;;  %v12457_v39 = vmul.f32 %v22831_v26, %v22831_v26 }
 0x595   : > { %v12576_v9 = vadd.f32 %v12575_v44, %v12449_v12  ;;  %v22843_v44 = vsub.f32 %v22245_v50, %v22693_v17  ;;  %v12458_v62 = vmul.f32 %v22837_v30, %v22837_v30 }
 0x597   : > { %v12577_v2 = vadd.f32 %v12576_v9, %v12450_v10  ;;  %v22849_v9 = vsub.f32 %v22249_v56, %v22693_v17  ;;  %v12459_v50 = vmul.f32 %v22843_v44, %v22843_v44 }
 0x599   : > { %v12578_v27 = vadd.f32 %v12577_v2, %v12451_v37  ;;  %v22855_v2 = vsub.f32 %v22255_v16, %v22693_v17  ;;  %v12460_v56 = vmul.f32 %v22849_v9, %v22849_v9 }
 0x59b   : > { %v12579_v5 = vadd.f32 %v12578_v27, %v12452_v13  ;;  %v22861_v27 = vsub.f32 %v22259_v45, %v22693_v17  ;;  %v12461_v16 = vmul.f32 %v22855_v2, %v22855_v2 }
 0x59d   : > { %v12580_v51 = vadd.f32 %v12579_v5, %v12453_v14  ;;  %v22867_v5 = vsub.f32 %v22265_v8, %v22693_v17  ;;  %v12462_v45 = vmul.f32 %v22861_v27, %v22861_v27 }
 0x59f   : > { %v12581_v43 = vadd.f32 %v12580_v51, %v12454_v23  ;;  %v22873_v51 = vsub.f32 %v22269_v47, %v22693_v17  ;;  %v12463_v8 = vmul.f32 %v22867_v5, %v22867_v5 }
 0x5a1   : > { %v12582_v12 = vadd.f32 %v12581_v43, %v12455_v7  ;;  %v22879_v43 = vsub.f32 %v22275_v59, %v22693_v17  ;;  %v12464_v47 = vmul.f32 %v22873_v51, %v22873_v51 }
 0x5a3   : > { %v12583_v10 = vadd.f32 %v12582_v12, %v12456_v40  ;;  %v22885_v12 = vsub.f32 %v22279_v29, %v22693_v17  ;;  %v12465_v59 = vmul.f32 %v22879_v43, %v22879_v43 }
 0x5a5   : > { %v12584_v37 = vadd.f32 %v12583_v10, %v12457_v39  ;;  %v22891_v10 = vsub.f32 %v22285_v22, %v22693_v17  ;;  %v12466_v29 = vmul.f32 %v22885_v12, %v22885_v12 }
 0x5a7   : > { %v12585_v13 = vadd.f32 %v12584_v37, %v12458_v62  ;;  %v22897_v37 = vsub.f32 %v22289_v33, %v22693_v17  ;;  %v12467_v22 = vmul.f32 %v22891_v10, %v22891_v10 }
 0x5a9   : > { %v12586_v14 = vadd.f32 %v12585_v13, %v12459_v50  ;;  %v22903_v13 = vsub.f32 %v22295_v24, %v22693_v17  ;;  %v12468_v33 = vmul.f32 %v22897_v37, %v22897_v37 }
 0x5ab   : > { %v12587_v23 = vadd.f32 %v12586_v14, %v12460_v56  ;;  %v22909_v14 = vsub.f32 %v22299_v42, %v22693_v17  ;;  %v12469_v24 = vmul.f32 %v22903_v13, %v22903_v13 }
 0x5ad   : > { %v12588_v7 = vadd.f32 %v12587_v23, %v12461_v16  ;;  %v22915_v23 = vsub.f32 %v22305_v38, %v22693_v17  ;;  %v12470_v42 = vmul.f32 %v22909_v14, %v22909_v14 }
 0x5af   : > { %v12589_v40 = vadd.f32 %v12588_v7, %v12462_v45  ;;  %v22921_v7 = vsub.f32 %v22309_v28, %v22693_v17  ;;  %v12471_v38 = vmul.f32 %v22915_v23, %v22915_v23 }
 0x5b1   : > { %v12590_v39 = vadd.f32 %v12589_v40, %v12463_v8  ;;  %v22927_v40 = vsub.f32 %v22315_v54, %v22693_v17  ;;  %v12472_v28 = vmul.f32 %v22921_v7, %v22921_v7 }
 0x5b3   : > { %v12591_v62 = vadd.f32 %v12590_v39, %v12464_v47  ;;  %v22933_v39 = vsub.f32 %v22319_v57, %v22693_v17  ;;  %v12473_v54 = vmul.f32 %v22927_v40, %v22927_v40 }
 0x5b5   : > { %v12592_v50 = vadd.f32 %v12591_v62, %v12465_v59  ;;  %v25407_v62 = vld [vmem:[#allocation16_spill] sm:$0xff]  ;;  %v12474_v57 = vmul.f32 %v22933_v39, %v22933_v39 }
 0x5b7   : > { %v12593_v56 = vadd.f32 %v12592_v50, %v12466_v29  ;;  %v22939_v29 = vsub.f32 %v25407_v62, %v22693_v17 }
 0x5b9   : > { %v12594_v16 = vadd.f32 %v12593_v56, %v12467_v22  ;;  %v25408_v22 = vld [vmem:[#allocation17_spill] sm:$0xff] }
 0x5ba   : > { %v22945_v56 = vsub.f32 %v25408_v22, %v22693_v17  ;;  %v25416_v22 = vld [vmem:[#allocation21_spill] sm:$0xff] }
 0x5bb   : > { %v12595_v45 = vadd.f32 %v12594_v16, %v12468_v33  ;;  %v25410_v16 = vld [vmem:[#allocation18_spill] sm:$0xff] }
 0x5bc   : > { %25409 = vst [vmem:[#allocation15_spill] sm:$0xff] %v22945_v56 }
 0x5bd   : > { %v12596_v8 = vadd.f32 %v12595_v45, %v12469_v24  ;;  %v22951_v24 = vsub.f32 %v25410_v16, %v22693_v17  ;;  %v12475_v45 = vmul.f32 %v22939_v29, %v22939_v29  ;;  %v22969_v16 = vsub.f32 %v25416_v22, %v22693_v17  ;;  %v25422_v22 = vld [vmem:[#allocation24_spill] sm:$0xff] }
 0x5bf   : > { %v12597_v47 = vadd.f32 %v12596_v8, %v12470_v42  ;;  %25411 = vst [vmem:[#allocation16_spill] sm:$0xff] %v22951_v24  ;;  %v25412_v8 = vld [vmem:[#allocation19_spill] sm:$0xff] }
 0x5c0   : > { %25417 = vst [vmem:[#allocation19_spill] sm:$0xff] %v22969_v16 }
 0x5c1   : > { %v12598_v59 = vadd.f32 %v12597_v47, %v12471_v38  ;;  %v22957_v38 = vsub.f32 %v25412_v8, %v22693_v17  ;;  %v12476_v47 = vmul.f32 %v22945_v56, %v22945_v56  ;;  %v25418_v8 = vld [vmem:[#allocation22_spill] sm:$0xff] }
 0x5c2   : > { %v22975_v56 = vsub.f32 %v25418_v8, %v22693_v17  ;;  %v25424_v8 = vld [vmem:[#allocation25_spill] sm:$0xff] }
 0x5c3   : > { %v12599_v50 = vadd.f32 %v12598_v59, %v12472_v28  ;;  %25413 = vst [vmem:[#allocation17_spill] sm:$0xff] %v22957_v38  ;;  %v25414_v59 = vld [vmem:[#allocation20_spill] sm:$0xff] }
 0x5c4   : > { %v22963_v62 = vsub.f32 %v25414_v59, %v22693_v17  ;;  %25419 = vst [vmem:[#allocation20_spill] sm:$0xff] %v22975_v56  ;;  %v25420_v59 = vld [vmem:[#allocation23_spill] sm:$0xff] }
 0x5c5   : > { %v12600_v33 = vadd.f32 %v12599_v50, %v12473_v54  ;;  %v12477_v54 = vmul.f32 %v22951_v24, %v22951_v24  ;;  %v22981_v24 = vsub.f32 %v25420_v59, %v22693_v17  ;;  %v25426_v59 = vld [vmem:[#allocation26_spill] sm:$0xff] }
 0x5c6   : > { %25415 = vst [vmem:[#allocation18_spill] sm:$0xff] %v22963_v62 }
 0x5c7   : > { %v12601_v42 = vadd.f32 %v12600_v33, %v12474_v57  ;;  %v12478_v57 = vmul.f32 %v22957_v38, %v22957_v38  ;;  %25421 = vst [vmem:[#allocation21_spill] sm:$0xff] %v22981_v24  ;;  %v22987_v38 = vsub.f32 %v25422_v22, %v22693_v17  ;;  %v25428_v22 = vld [vmem:[#allocation27_spill] sm:$0xff] }
 0x5c9   : > { %v12602_v28 = vadd.f32 %v12601_v42, %v12475_v45  ;;  %v12479_v45 = vmul.f32 %v22963_v62, %v22963_v62  ;;  %25423 = vst [vmem:[#allocation22_spill] sm:$0xff] %v22987_v38  ;;  %v22993_v62 = vsub.f32 %v25424_v8, %v22693_v17  ;;  %v25430_v8 = vld [vmem:[#allocation28_spill] sm:$0xff] }
 0x5cb   : > { %v12603_v50 = vadd.f32 %v12602_v28, %v12476_v47  ;;  %v12480_v47 = vmul.f32 %v22969_v16, %v22969_v16  ;;  %25425 = vst [vmem:[#allocation23_spill] sm:$0xff] %v22993_v62  ;;  %v22999_v16 = vsub.f32 %v25426_v59, %v22693_v17  ;;  %v25432_v59 = vld [vmem:[#allocation29_spill] sm:$0xff] }
 0x5cd   : > { %v12604_v33 = vadd.f32 %v12603_v50, %v12477_v54  ;;  %v12481_v54 = vmul.f32 %v22975_v56, %v22975_v56  ;;  %25427 = vst [vmem:[#allocation24_spill] sm:$0xff] %v22999_v16  ;;  %v23005_v56 = vsub.f32 %v25428_v22, %v22693_v17  ;;  %v25434_v22 = vld [vmem:[#allocation2_spill] sm:$0xff] }
 0x5cf   : > { %v12605_v42 = vadd.f32 %v12604_v33, %v12478_v57  ;;  %v12482_v57 = vmul.f32 %v22981_v24, %v22981_v24  ;;  %25429 = vst [vmem:[#allocation25_spill] sm:$0xff] %v23005_v56  ;;  %v23011_v24 = vsub.f32 %v25430_v8, %v22693_v17  ;;  %v25436_v8 = vld [vmem:[#allocation3_spill] sm:$0xff] }
 0x5d1   : > { %v12606_v28 = vadd.f32 %v12605_v42, %v12479_v45  ;;  %v12483_v45 = vmul.f32 %v22987_v38, %v22987_v38  ;;  %25431 = vst [vmem:[#allocation26_spill] sm:$0xff] %v23011_v24  ;;  %v23017_v38 = vsub.f32 %v25432_v59, %v22693_v17  ;;  %v25438_v59 = vld [vmem:[#allocation4_spill] sm:$0xff] }
 0x5d3   : > { %v12607_v50 = vadd.f32 %v12606_v28, %v12480_v47  ;;  %v12484_v47 = vmul.f32 %v22993_v62, %v22993_v62  ;;  %25433 = vst [vmem:[#allocation27_spill] sm:$0xff] %v23017_v38  ;;  %v23023_v62 = vsub.f32 %v25434_v22, %v22693_v17  ;;  %v25440_v22 = vld [vmem:[#allocation5_spill] sm:$0xff] }
 0x5d5   : > { %v12608_v33 = vadd.f32 %v12607_v50, %v12481_v54  ;;  %v12485_v54 = vmul.f32 %v22999_v16, %v22999_v16  ;;  %25435 = vst [vmem:[#allocation28_spill] sm:$0xff] %v23023_v62  ;;  %v23029_v16 = vsub.f32 %v25436_v8, %v22693_v17  ;;  %v25442_v8 = vld [vmem:[#allocation6_spill] sm:$0xff] }
 0x5d7   : > { %v12609_v42 = vadd.f32 %v12608_v33, %v12482_v57  ;;  %v12486_v57 = vmul.f32 %v23005_v56, %v23005_v56  ;;  %25437 = vst [vmem:[#allocation29_spill] sm:$0xff] %v23029_v16  ;;  %v23035_v56 = vsub.f32 %v25438_v59, %v22693_v17  ;;  %v25444_v59 = vld [vmem:[#allocation7_spill] sm:$0xff] }
 0x5d9   : > { %v12610_v28 = vadd.f32 %v12609_v42, %v12483_v45  ;;  %v12487_v45 = vmul.f32 %v23011_v24, %v23011_v24  ;;  %25439 = vst [vmem:[#allocation2_spill] sm:$0xff] %v23035_v56  ;;  %v23041_v24 = vsub.f32 %v25440_v22, %v22693_v17  ;;  %v25446_v22 = vld [vmem:[#allocation8_spill] sm:$0xff] }
 0x5db   : > { %v12611_v50 = vadd.f32 %v12610_v28, %v12484_v47  ;;  %v12488_v47 = vmul.f32 %v23017_v38, %v23017_v38  ;;  %25441 = vst [vmem:[#allocation3_spill] sm:$0xff] %v23041_v24  ;;  %v23047_v38 = vsub.f32 %v25442_v8, %v22693_v17  ;;  %v25448_v8 = vld [vmem:[#allocation9_spill] sm:$0xff] }
 0x5dd   : > { %v12612_v33 = vadd.f32 %v12611_v50, %v12485_v54  ;;  %v12489_v54 = vmul.f32 %v23023_v62, %v23023_v62  ;;  %25443 = vst [vmem:[#allocation4_spill] sm:$0xff] %v23047_v38  ;;  %v23053_v62 = vsub.f32 %v25444_v59, %v22693_v17  ;;  %v25450_v59 = vld [vmem:[#allocation10_spill] sm:$0xff] }
 0x5df   : > { %v12613_v42 = vadd.f32 %v12612_v33, %v12486_v57  ;;  %v12490_v57 = vmul.f32 %v23029_v16, %v23029_v16  ;;  %25445 = vst [vmem:[#allocation5_spill] sm:$0xff] %v23053_v62  ;;  %v23059_v16 = vsub.f32 %v25446_v22, %v22693_v17  ;;  %v25452_v22 = vld [vmem:[#allocation11_spill] sm:$0xff] }
 0x5e1   : > { %v12614_v28 = vadd.f32 %v12613_v42, %v12487_v45  ;;  %v12491_v45 = vmul.f32 %v23035_v56, %v23035_v56  ;;  %25447 = vst [vmem:[#allocation6_spill] sm:$0xff] %v23059_v16  ;;  %v23065_v56 = vsub.f32 %v25448_v8, %v22693_v17  ;;  %v25454_v8 = vld [vmem:[#allocation12_spill] sm:$0xff] }
 0x5e3   : > { %v12615_v50 = vadd.f32 %v12614_v28, %v12488_v47  ;;  %v12492_v47 = vmul.f32 %v23041_v24, %v23041_v24  ;;  %25449 = vst [vmem:[#allocation7_spill] sm:$0xff] %v23065_v56  ;;  %v23071_v24 = vsub.f32 %v25450_v59, %v22693_v17  ;;  %v25456_v59 = vld [vmem:[#allocation13_spill] sm:$0xff] }
 0x5e5   : > { %v12616_v33 = vadd.f32 %v12615_v50, %v12489_v54  ;;  %v12493_v54 = vmul.f32 %v23047_v38, %v23047_v38  ;;  %25451 = vst [vmem:[#allocation8_spill] sm:$0xff] %v23071_v24  ;;  %v23077_v38 = vsub.f32 %v25452_v22, %v22693_v17  ;;  %v25458_v22 = vld [vmem:[#allocation14_spill] sm:$0xff] }
 0x5e7   : > { %v12617_v42 = vadd.f32 %v12616_v33, %v12490_v57  ;;  %v12494_v57 = vmul.f32 %v23053_v62, %v23053_v62  ;;  %25453 = vst [vmem:[#allocation9_spill] sm:$0xff] %v23077_v38  ;;  %v23083_v62 = vsub.f32 %v25454_v8, %v22693_v17  ;;  %v25460_v8 = vld [vmem:[#allocation30_spill] sm:$0xff] }
 0x5e9   : > { %v12618_v28 = vadd.f32 %v12617_v42, %v12491_v45  ;;  %v12495_v45 = vmul.f32 %v23059_v16, %v23059_v16  ;;  %25455 = vst [vmem:[#allocation10_spill] sm:$0xff] %v23083_v62  ;;  %v23089_v16 = vsub.f32 %v25456_v59, %v22693_v17  ;;  %v25462_v59 = vld [vmem:[#allocation31_spill] sm:$0xff] }
 0x5eb   : > { %v12619_v50 = vadd.f32 %v12618_v28, %v12492_v47  ;;  %v12496_v47 = vmul.f32 %v23065_v56, %v23065_v56  ;;  %25457 = vst [vmem:[#allocation11_spill] sm:$0xff] %v23089_v16  ;;  %v23095_v56 = vsub.f32 %v25458_v22, %v22693_v17  ;;  %v25464_v22 = vld [vmem:[#allocation32_spill] sm:$0xff] }
 0x5ed   : > { %v12620_v33 = vadd.f32 %v12619_v50, %v12493_v54  ;;  %v12497_v54 = vmul.f32 %v23071_v24, %v23071_v24  ;;  %25459 = vst [vmem:[#allocation12_spill] sm:$0xff] %v23095_v56  ;;  %v23101_v24 = vsub.f32 %v25460_v8, %v22693_v17  ;;  %v25466_v8 = vld [vmem:[#allocation33_spill] sm:$0xff] }
 0x5ef   : > { %v12621_v42 = vadd.f32 %v12620_v33, %v12494_v57  ;;  %v12498_v57 = vmul.f32 %v23077_v38, %v23077_v38  ;;  %25461 = vst [vmem:[#allocation13_spill] sm:$0xff] %v23101_v24  ;;  %v23107_v38 = vsub.f32 %v25462_v59, %v22693_v17  ;;  %v25468_v59 = vld [vmem:[#allocation34_spill] sm:$0xff] }
 0x5f1   : > { %v12622_v28 = vadd.f32 %v12621_v42, %v12495_v45  ;;  %v12499_v45 = vmul.f32 %v23083_v62, %v23083_v62  ;;  %25463 = vst [vmem:[#allocation14_spill] sm:$0xff] %v23107_v38  ;;  %v23113_v62 = vsub.f32 %v25464_v22, %v22693_v17  ;;  %v25470_v22 = vld [vmem:[#allocation35_spill] sm:$0xff] }
 0x5f3   : > { %v12623_v50 = vadd.f32 %v12622_v28, %v12496_v47  ;;  %v12500_v47 = vmul.f32 %v23089_v16, %v23089_v16  ;;  %25465 = vst [vmem:[#allocation30_spill] sm:$0xff] %v23113_v62  ;;  %v23119_v16 = vsub.f32 %v25466_v8, %v22693_v17  ;;  %v25472_v8 = vld [vmem:[#allocation36_spill] sm:$0xff] }
 0x5f5   : > { %v12624_v33 = vadd.f32 %v12623_v50, %v12497_v54  ;;  %v12501_v54 = vmul.f32 %v23095_v56, %v23095_v56  ;;  %25467 = vst [vmem:[#allocation31_spill] sm:$0xff] %v23119_v16  ;;  %v23125_v56 = vsub.f32 %v25468_v59, %v22693_v17  ;;  %v25474_v59 = vld [vmem:[#allocation37_spill] sm:$0xff] }
 0x5f7   : > { %v12625_v42 = vadd.f32 %v12624_v33, %v12498_v57  ;;  %v12502_v57 = vmul.f32 %v23101_v24, %v23101_v24  ;;  %25469 = vst [vmem:[#allocation32_spill] sm:$0xff] %v23125_v56  ;;  %v23131_v24 = vsub.f32 %v25470_v22, %v22693_v17  ;;  %v25476_v22 = vld [vmem:[#allocation38_spill] sm:$0xff] }
 0x5f9   : > { %v12626_v28 = vadd.f32 %v12625_v42, %v12499_v45  ;;  %v12503_v45 = vmul.f32 %v23107_v38, %v23107_v38  ;;  %25471 = vst [vmem:[#allocation33_spill] sm:$0xff] %v23131_v24  ;;  %v23137_v38 = vsub.f32 %v25472_v8, %v22693_v17  ;;  %v25478_v8 = vld [vmem:[#allocation39_spill] sm:$0xff] }
 0x5fb   : > { %v12627_v50 = vadd.f32 %v12626_v28, %v12500_v47  ;;  %v12504_v47 = vmul.f32 %v23113_v62, %v23113_v62  ;;  %25473 = vst [vmem:[#allocation34_spill] sm:$0xff] %v23137_v38  ;;  %v23143_v62 = vsub.f32 %v25474_v59, %v22693_v17  ;;  %v25480_v59 = vld [vmem:[#allocation40_spill] sm:$0xff] }
 0x5fd   : > { %v12628_v33 = vadd.f32 %v12627_v50, %v12501_v54  ;;  %v12505_v54 = vmul.f32 %v23119_v16, %v23119_v16  ;;  %25475 = vst [vmem:[#allocation35_spill] sm:$0xff] %v23143_v62  ;;  %v23149_v16 = vsub.f32 %v25476_v22, %v22693_v17  ;;  %v25482_v22 = vld [vmem:[#allocation41_spill] sm:$0xff] }
 0x5ff   : > { %v12629_v42 = vadd.f32 %v12628_v33, %v12502_v57  ;;  %v12506_v57 = vmul.f32 %v23125_v56, %v23125_v56  ;;  %25477 = vst [vmem:[#allocation36_spill] sm:$0xff] %v23149_v16  ;;  %v23155_v56 = vsub.f32 %v25478_v8, %v22693_v17  ;;  %v25484_v8 = vld [vmem:[#allocation42_spill] sm:$0xff] }
 0x601   : > { %v12630_v28 = vadd.f32 %v12629_v42, %v12503_v45  ;;  %v12507_v45 = vmul.f32 %v23131_v24, %v23131_v24  ;;  %25479 = vst [vmem:[#allocation37_spill] sm:$0xff] %v23155_v56  ;;  %v23161_v24 = vsub.f32 %v25480_v59, %v22693_v17  ;;  %v25486_v59 = vld [vmem:[#allocation43_spill] sm:$0xff] }
 0x603   : > { %v12631_v50 = vadd.f32 %v12630_v28, %v12504_v47  ;;  %v12508_v47 = vmul.f32 %v23137_v38, %v23137_v38  ;;  %25481 = vst [vmem:[#allocation38_spill] sm:$0xff] %v23161_v24  ;;  %v23167_v38 = vsub.f32 %v25482_v22, %v22693_v17  ;;  %v25488_v22 = vld [vmem:[#allocation44_spill] sm:$0xff] }
 0x605   : > { %v12632_v33 = vadd.f32 %v12631_v50, %v12505_v54  ;;  %v12509_v54 = vmul.f32 %v23143_v62, %v23143_v62  ;;  %25483 = vst [vmem:[#allocation39_spill] sm:$0xff] %v23167_v38  ;;  %v23173_v62 = vsub.f32 %v25484_v8, %v22693_v17  ;;  %v25490_v8 = vld [vmem:[#allocation45_spill] sm:$0xff] }
 0x607   : > { %v12633_v42 = vadd.f32 %v12632_v33, %v12506_v57  ;;  %v12510_v57 = vmul.f32 %v23149_v16, %v23149_v16  ;;  %25485 = vst [vmem:[#allocation40_spill] sm:$0xff] %v23173_v62  ;;  %v23179_v16 = vsub.f32 %v25486_v59, %v22693_v17  ;;  %v25492_v59 = vld [vmem:[#allocation46_spill] sm:$0xff] }
 0x609   : > { %v12634_v28 = vadd.f32 %v12633_v42, %v12507_v45  ;;  %v12511_v45 = vmul.f32 %v23155_v56, %v23155_v56  ;;  %25487 = vst [vmem:[#allocation41_spill] sm:$0xff] %v23179_v16  ;;  %v23185_v56 = vsub.f32 %v25488_v22, %v22693_v17  ;;  %v25494_v22 = vld [vmem:[#allocation47_spill] sm:$0xff] }
 0x60b   : > { %v12635_v50 = vadd.f32 %v12634_v28, %v12508_v47  ;;  %v12512_v47 = vmul.f32 %v23161_v24, %v23161_v24  ;;  %25489 = vst [vmem:[#allocation42_spill] sm:$0xff] %v23185_v56  ;;  %v23191_v24 = vsub.f32 %v25490_v8, %v22693_v17  ;;  %v25496_v8 = vld [vmem:[#allocation48_spill] sm:$0xff] }
 0x60d   : > { %v12636_v33 = vadd.f32 %v12635_v50, %v12509_v54  ;;  %v12513_v54 = vmul.f32 %v23167_v38, %v23167_v38  ;;  %25491 = vst [vmem:[#allocation43_spill] sm:$0xff] %v23191_v24  ;;  %v23197_v38 = vsub.f32 %v25492_v59, %v22693_v17  ;;  %v25498_v59 = vld [vmem:[#allocation49_spill] sm:$0xff] }
 0x60f   : > { %v12637_v42 = vadd.f32 %v12636_v33, %v12510_v57  ;;  %v12514_v57 = vmul.f32 %v23173_v62, %v23173_v62  ;;  %25493 = vst [vmem:[#allocation44_spill] sm:$0xff] %v23197_v38  ;;  %v23203_v62 = vsub.f32 %v25494_v22, %v22693_v17  ;;  %v25500_v22 = vld [vmem:[#allocation50_spill] sm:$0xff] }
 0x611   : > { %v12638_v28 = vadd.f32 %v12637_v42, %v12511_v45  ;;  %v12515_v45 = vmul.f32 %v23179_v16, %v23179_v16  ;;  %25495 = vst [vmem:[#allocation45_spill] sm:$0xff] %v23203_v62  ;;  %v23209_v16 = vsub.f32 %v25496_v8, %v22693_v17  ;;  %v25502_v8 = vld [vmem:[#allocation51_spill] sm:$0xff] }
 0x613   : > { %v12639_v50 = vadd.f32 %v12638_v28, %v12512_v47  ;;  %v12516_v47 = vmul.f32 %v23185_v56, %v23185_v56  ;;  %25497 = vst [vmem:[#allocation46_spill] sm:$0xff] %v23209_v16  ;;  %v23215_v56 = vsub.f32 %v25498_v59, %v22693_v17  ;;  %v25504_v59 = vld [vmem:[#allocation52_spill] sm:$0xff] }
 0x615   : > { %v12640_v33 = vadd.f32 %v12639_v50, %v12513_v54  ;;  %v12517_v54 = vmul.f32 %v23191_v24, %v23191_v24  ;;  %25499 = vst [vmem:[#allocation47_spill] sm:$0xff] %v23215_v56  ;;  %v23221_v24 = vsub.f32 %v25500_v22, %v22693_v17  ;;  %v25506_v22 = vld [vmem:[#allocation53_spill] sm:$0xff] }
 0x617   : > { %v12641_v42 = vadd.f32 %v12640_v33, %v12514_v57  ;;  %v12518_v57 = vmul.f32 %v23197_v38, %v23197_v38  ;;  %25501 = vst [vmem:[#allocation48_spill] sm:$0xff] %v23221_v24  ;;  %v23227_v38 = vsub.f32 %v25502_v8, %v22693_v17  ;;  %v25508_v8 = vld [vmem:[#allocation54_spill] sm:$0xff] }
 0x619   : > { %v12642_v28 = vadd.f32 %v12641_v42, %v12515_v45  ;;  %v12519_v45 = vmul.f32 %v23203_v62, %v23203_v62  ;;  %25503 = vst [vmem:[#allocation49_spill] sm:$0xff] %v23227_v38  ;;  %v23233_v62 = vsub.f32 %v25504_v59, %v22693_v17  ;;  %v25510_v59 = vld [vmem:[#allocation55_spill] sm:$0xff] }
 0x61b   : > { %v12643_v50 = vadd.f32 %v12642_v28, %v12516_v47  ;;  %v12520_v47 = vmul.f32 %v23209_v16, %v23209_v16  ;;  %25505 = vst [vmem:[#allocation50_spill] sm:$0xff] %v23233_v62  ;;  %v23239_v16 = vsub.f32 %v25506_v22, %v22693_v17  ;;  %v25512_v22 = vld [vmem:[#allocation56_spill] sm:$0xff] }
 0x61d   : > { %v12644_v33 = vadd.f32 %v12643_v50, %v12517_v54  ;;  %v12521_v54 = vmul.f32 %v23215_v56, %v23215_v56  ;;  %25507 = vst [vmem:[#allocation51_spill] sm:$0xff] %v23239_v16  ;;  %v23245_v56 = vsub.f32 %v25508_v8, %v22693_v17  ;;  %v25514_v8 = vld [vmem:[#allocation57_spill] sm:$0xff] }
 0x61f   : > { %v12645_v42 = vadd.f32 %v12644_v33, %v12518_v57  ;;  %v12522_v57 = vmul.f32 %v23221_v24, %v23221_v24  ;;  %25509 = vst [vmem:[#allocation52_spill] sm:$0xff] %v23245_v56  ;;  %v23251_v24 = vsub.f32 %v25510_v59, %v22693_v17  ;;  %v25516_v59 = vld [vmem:[#allocation58_spill] sm:$0xff] }
 0x621   : > { %v12646_v28 = vadd.f32 %v12645_v42, %v12519_v45  ;;  %v12523_v45 = vmul.f32 %v23227_v38, %v23227_v38  ;;  %25511 = vst [vmem:[#allocation53_spill] sm:$0xff] %v23251_v24  ;;  %v23257_v38 = vsub.f32 %v25512_v22, %v22693_v17  ;;  %v25518_v22 = vld [vmem:[#allocation59_spill] sm:$0xff] }
 0x623   : > { %v12647_v50 = vadd.f32 %v12646_v28, %v12520_v47  ;;  %v12524_v47 = vmul.f32 %v23233_v62, %v23233_v62  ;;  %25513 = vst [vmem:[#allocation54_spill] sm:$0xff] %v23257_v38  ;;  %v23263_v62 = vsub.f32 %v25514_v8, %v22693_v17  ;;  %v25520_v8 = vld [vmem:[#allocation60_spill] sm:$0xff] }
 0x625   : > { %v12648_v33 = vadd.f32 %v12647_v50, %v12521_v54  ;;  %v12525_v54 = vmul.f32 %v23239_v16, %v23239_v16  ;;  %25515 = vst [vmem:[#allocation55_spill] sm:$0xff] %v23263_v62  ;;  %v23269_v16 = vsub.f32 %v25516_v59, %v22693_v17  ;;  %v25522_v59 = vld [vmem:[#allocation61_spill] sm:$0xff] }
 0x627   : > { %v12649_v42 = vadd.f32 %v12648_v33, %v12522_v57  ;;  %v12526_v57 = vmul.f32 %v23245_v56, %v23245_v56  ;;  %25517 = vst [vmem:[#allocation56_spill] sm:$0xff] %v23269_v16  ;;  %v23275_v56 = vsub.f32 %v25518_v22, %v22693_v17  ;;  %v25524_v22 = vld [vmem:[#allocation62_spill] sm:$0xff] }
 0x629   : > { %v12650_v28 = vadd.f32 %v12649_v42, %v12523_v45  ;;  %v12527_v45 = vmul.f32 %v23251_v24, %v23251_v24  ;;  %25519 = vst [vmem:[#allocation57_spill] sm:$0xff] %v23275_v56  ;;  %v23281_v24 = vsub.f32 %v25520_v8, %v22693_v17  ;;  %v25526_v8 = vld [vmem:[#allocation63_spill] sm:$0xff] }
 0x62b   : > { %v12651_v50 = vadd.f32 %v12650_v28, %v12524_v47  ;;  %v12528_v47 = vmul.f32 %v23257_v38, %v23257_v38  ;;  %25521 = vst [vmem:[#allocation58_spill] sm:$0xff] %v23281_v24  ;;  %v23287_v38 = vsub.f32 %v25522_v59, %v22693_v17  ;;  %v25528_v59 = vld [vmem:[#allocation64_spill] sm:$0xff] }
 0x62d   : > { %v12652_v33 = vadd.f32 %v12651_v50, %v12525_v54  ;;  %v12529_v54 = vmul.f32 %v23263_v62, %v23263_v62  ;;  %25523 = vst [vmem:[#allocation59_spill] sm:$0xff] %v23287_v38  ;;  %v23293_v62 = vsub.f32 %v25524_v22, %v22693_v17  ;;  %v25530_v22 = vld [vmem:[#allocation65_spill] sm:$0xff] }
 0x62f   : > { %v12653_v42 = vadd.f32 %v12652_v33, %v12526_v57  ;;  %v12530_v57 = vmul.f32 %v23269_v16, %v23269_v16  ;;  %25525 = vst [vmem:[#allocation60_spill] sm:$0xff] %v23293_v62  ;;  %v23299_v16 = vsub.f32 %v25526_v8, %v22693_v17  ;;  %v25532_v8 = vld [vmem:[#allocation66_spill] sm:$0xff] }
 0x631   : > { %v12654_v28 = vadd.f32 %v12653_v42, %v12527_v45  ;;  %v12531_v45 = vmul.f32 %v23275_v56, %v23275_v56  ;;  %25527 = vst [vmem:[#allocation61_spill] sm:$0xff] %v23299_v16  ;;  %v23305_v56 = vsub.f32 %v25528_v59, %v22693_v17  ;;  %v25534_v59 = vld [vmem:[#allocation67_spill] sm:$0xff] }
 0x633   : > { %v12655_v50 = vadd.f32 %v12654_v28, %v12528_v47  ;;  %v12532_v47 = vmul.f32 %v23281_v24, %v23281_v24  ;;  %25529 = vst [vmem:[#allocation62_spill] sm:$0xff] %v23305_v56  ;;  %v23311_v24 = vsub.f32 %v25530_v22, %v22693_v17  ;;  %v25536_v22 = vld [vmem:[#allocation68_spill] sm:$0xff] }
 0x635   : > { %v12656_v33 = vadd.f32 %v12655_v50, %v12529_v54  ;;  %v12533_v54 = vmul.f32 %v23287_v38, %v23287_v38  ;;  %25531 = vst [vmem:[#allocation63_spill] sm:$0xff] %v23311_v24  ;;  %v23317_v38 = vsub.f32 %v25532_v8, %v22693_v17  ;;  %v25538_v8 = vld [vmem:[#allocation69_spill] sm:$0xff] }
 0x637   : > { %v12657_v42 = vadd.f32 %v12656_v33, %v12530_v57  ;;  %v12534_v57 = vmul.f32 %v23293_v62, %v23293_v62  ;;  %25533 = vst [vmem:[#allocation64_spill] sm:$0xff] %v23317_v38  ;;  %v23323_v62 = vsub.f32 %v25534_v59, %v22693_v17  ;;  %v25540_v59 = vld [vmem:[#allocation70_spill] sm:$0xff] }
 0x639   : > { %v12658_v28 = vadd.f32 %v12657_v42, %v12531_v45  ;;  %v12535_v45 = vmul.f32 %v23299_v16, %v23299_v16  ;;  %25535 = vst [vmem:[#allocation65_spill] sm:$0xff] %v23323_v62  ;;  %v23329_v16 = vsub.f32 %v25536_v22, %v22693_v17  ;;  %v25542_v22 = vld [vmem:[#allocation71_spill] sm:$0xff] }
 0x63b   : > { %v12659_v50 = vadd.f32 %v12658_v28, %v12532_v47  ;;  %v12536_v47 = vmul.f32 %v23305_v56, %v23305_v56  ;;  %25537 = vst [vmem:[#allocation66_spill] sm:$0xff] %v23329_v16  ;;  %v23335_v56 = vsub.f32 %v25538_v8, %v22693_v17  ;;  %v25544_v8 = vld [vmem:[#allocation72_spill] sm:$0xff] }
 0x63d   : > { %v12660_v33 = vadd.f32 %v12659_v50, %v12533_v54  ;;  %v12537_v54 = vmul.f32 %v23311_v24, %v23311_v24  ;;  %25539 = vst [vmem:[#allocation67_spill] sm:$0xff] %v23335_v56  ;;  %v23341_v24 = vsub.f32 %v25540_v59, %v22693_v17  ;;  %v25546_v59 = vld [vmem:[#allocation73_spill] sm:$0xff] }
 0x63f   : > { %v12661_v42 = vadd.f32 %v12660_v33, %v12534_v57  ;;  %v12538_v57 = vmul.f32 %v23317_v38, %v23317_v38  ;;  %25541 = vst [vmem:[#allocation68_spill] sm:$0xff] %v23341_v24  ;;  %v23347_v38 = vsub.f32 %v25542_v22, %v22693_v17  ;;  %v25548_v22 = vld [vmem:[#allocation74_spill] sm:$0xff] }
 0x641   : > { %v12662_v28 = vadd.f32 %v12661_v42, %v12535_v45  ;;  %v12539_v45 = vmul.f32 %v23323_v62, %v23323_v62  ;;  %25543 = vst [vmem:[#allocation69_spill] sm:$0xff] %v23347_v38  ;;  %v23353_v62 = vsub.f32 %v25544_v8, %v22693_v17  ;;  %v25550_v8 = vld [vmem:[#allocation75_spill] sm:$0xff] }
 0x643   : > { %v12663_v50 = vadd.f32 %v12662_v28, %v12536_v47  ;;  %v12540_v47 = vmul.f32 %v23329_v16, %v23329_v16  ;;  %25545 = vst [vmem:[#allocation70_spill] sm:$0xff] %v23353_v62  ;;  %v23359_v16 = vsub.f32 %v25546_v59, %v22693_v17  ;;  %v25552_v59 = vld [vmem:[#allocation76_spill] sm:$0xff] }
 0x645   : > { %v12664_v33 = vadd.f32 %v12663_v50, %v12537_v54  ;;  %v12541_v54 = vmul.f32 %v23335_v56, %v23335_v56  ;;  %25547 = vst [vmem:[#allocation71_spill] sm:$0xff] %v23359_v16  ;;  %v23365_v56 = vsub.f32 %v25548_v22, %v22693_v17  ;;  %v25554_v22 = vld [vmem:[#allocation77_spill] sm:$0xff] }
 0x647   : > { %v12665_v42 = vadd.f32 %v12664_v33, %v12538_v57  ;;  %v12542_v57 = vmul.f32 %v23341_v24, %v23341_v24  ;;  %25549 = vst [vmem:[#allocation72_spill] sm:$0xff] %v23365_v56  ;;  %v23371_v24 = vsub.f32 %v25550_v8, %v22693_v17  ;;  %v25556_v8 = vld [vmem:[#allocation78_spill] sm:$0xff] }
 0x649   : > { %v12666_v28 = vadd.f32 %v12665_v42, %v12539_v45  ;;  %v12543_v45 = vmul.f32 %v23347_v38, %v23347_v38  ;;  %25551 = vst [vmem:[#allocation73_spill] sm:$0xff] %v23371_v24  ;;  %v23377_v38 = vsub.f32 %v25552_v59, %v22693_v17  ;;  %v25558_v59 = vld [vmem:[#allocation79_spill] sm:$0xff] }
 0x64b   : > { %v12667_v50 = vadd.f32 %v12666_v28, %v12540_v47  ;;  %v12544_v47 = vmul.f32 %v23353_v62, %v23353_v62  ;;  %25553 = vst [vmem:[#allocation74_spill] sm:$0xff] %v23377_v38  ;;  %v23383_v62 = vsub.f32 %v25554_v22, %v22693_v17  ;;  %v25560_v22 = vld [vmem:[#allocation80_spill] sm:$0xff] }
 0x64d   : > { %v12668_v33 = vadd.f32 %v12667_v50, %v12541_v54  ;;  %v12545_v54 = vmul.f32 %v23359_v16, %v23359_v16  ;;  %25555 = vst [vmem:[#allocation75_spill] sm:$0xff] %v23383_v62  ;;  %v23389_v16 = vsub.f32 %v25556_v8, %v22693_v17  ;;  %v25561_v8 = vld [vmem:[#allocation81_spill] sm:$0xff] }
 0x64f   : > { %v12669_v42 = vadd.f32 %v12668_v33, %v12542_v57  ;;  %v12546_v57 = vmul.f32 %v23365_v56, %v23365_v56  ;;  %25557 = vst [vmem:[#allocation76_spill] sm:$0xff] %v23389_v16  ;;  %v23395_v56 = vsub.f32 %v25558_v59, %v22693_v17  ;;  %v25563_v59 = vld [vmem:[#allocation82_spill] sm:$0xff] }
 0x651   : > { %v12670_v28 = vadd.f32 %v12669_v42, %v12543_v45  ;;  %v12547_v45 = vmul.f32 %v23371_v24, %v23371_v24  ;;  %25559 = vst [vmem:[#allocation77_spill] sm:$0xff] %v23395_v56  ;;  %v23401_v24 = vsub.f32 %v25560_v22, %v22693_v17  ;;  %v25564_v22 = vld [vmem:[#allocation83_spill] sm:$0xff] }
 0x653   : > { %v12671_v50 = vadd.f32 %v12670_v28, %v12544_v47  ;;  %v12548_v47 = vmul.f32 %v23377_v38, %v23377_v38  ;;  %v23407_v38 = vsub.f32 %v25561_v8, %v22693_v17  ;;  %v25565_v8 = vld [vmem:[#allocation84_spill] sm:$0xff] }
 0x655   : > { %v12672_v33 = vadd.f32 %v12671_v50, %v12545_v54  ;;  %v12549_v54 = vmul.f32 %v23383_v62, %v23383_v62  ;;  %25562 = vst [vmem:[#allocation78_spill] sm:$0xff] %v23407_v38  ;;  %v23413_v62 = vsub.f32 %v25563_v59, %v22693_v17 }
 0x657   : > { %v12673_v42 = vadd.f32 %v12672_v33, %v12546_v57  ;;  %v12550_v57 = vmul.f32 %v23389_v16, %v23389_v16  ;;  %v23419_v16 = vsub.f32 %v25564_v22, %v22693_v17 }
 0x659   : > { %v12674_v28 = vadd.f32 %v12673_v42, %v12547_v45  ;;  %v12551_v45 = vmul.f32 %v23395_v56, %v23395_v56  ;;  %v23425_v56 = vsub.f32 %v25565_v8, %v22693_v17  ;;  %v12555_v59 = vmul.f32 %v23419_v16, %v23419_v16 }
 0x65a   : > { %v12558_v17 = vmul.f32 %v22699_v53, %v22699_v53  ;;  %v12559_v8 = vmul.f32 %v22702_v20, %v22702_v20 }
 0x65b   : > { %v12675_v50 = vadd.f32 %v12674_v28, %v12548_v47  ;;  %v12552_v47 = vmul.f32 %v23401_v24, %v23401_v24 }
 0x65d   : > { %v12676_v33 = vadd.f32 %v12675_v50, %v12549_v54  ;;  %v12553_v54 = vmul.f32 %v23407_v38, %v23407_v38  ;;  %v12557_v38 = vmul.f32 %v22696_v18, %v22696_v18 }
 0x65f   : > { %v12677_v42 = vadd.f32 %v12676_v33, %v12550_v57  ;;  %v12554_v57 = vmul.f32 %v23413_v62, %v23413_v62 }
 0x661   : > { %v12678_v28 = vadd.f32 %v12677_v42, %v12551_v45  ;;  %v12556_v42 = vmul.f32 %v23425_v56, %v23425_v56 }
 0x663   : > { %v12679_v50 = vadd.f32 %v12678_v28, %v12552_v47 }
 0x665   : > { %v12680_v33 = vadd.f32 %v12679_v50, %v12553_v54  ;;  %v12560_v50 = vmul.f32 %v22705_v3, %v22705_v3 }
 0x667   : > { %v12681_v45 = vadd.f32 %v12680_v33, %v12554_v57  ;;  %v12561_v33 = vmul.f32 %v22708_v4, %v22708_v4 }
 0x669   : > { %v12682_v22 = vadd.f32 %v12681_v45, %v12555_v59  ;;  %v12562_v45 = vmul.f32 %v22711_v31, %v22711_v31 }
 0x66b   : > { %v12683_v47 = vadd.f32 %v12682_v22, %v12556_v42 }
 0x66d   : > { %v12684_v28 = vadd.f32 %v12683_v47, %v12557_v38  ;;  %v12563_v38 = vmul.f32 %v22714_v1, %v22714_v1 }
 0x66f   : > { %v12685_v54 = vadd.f32 %v12684_v28, %v12558_v17  ;;  %v12564_v17 = vmul.f32 %v22717_v19, %v22717_v19 }
 0x671   : > { %v12686_v57 = vadd.f32 %v12685_v54, %v12559_v8  ;;  %v12565_v8 = vmul.f32 %v22720_v61, %v22720_v61 }
 0x673   : > { %v12687_v59 = vadd.f32 %v12686_v57, %v12560_v50  ;;  %v12566_v50 = vmul.f32 %v22723_v48, %v22723_v48 }
 0x675   : > { %v12688_v42 = vadd.f32 %v12687_v59, %v12561_v33 }
 0x677   : > { %v12689_v22 = vadd.f32 %v12688_v42, %v12562_v45 }
 0x679   : > { %v12690_v47 = vadd.f32 %v12689_v22, %v12563_v38 }
 0x67b   : > { %v12691_v28 = vadd.f32 %v12690_v47, %v12564_v17 }
 0x67d   : > { %v12692_v54 = vadd.f32 %v12691_v28, %v12565_v8  ;;  %v25566_v28 = vld [vmem:[#allocation15_spill] sm:$0xff]  ;;  %v25567_v8 = vld [vmem:[#allocation16_spill] sm:$0xff] }
 0x67f   : > { %v12693_v57 = vadd.f32 %v12692_v54, %v12566_v50  ;;  %v25568_v54 = vld [vmem:[#allocation17_spill] sm:$0xff]  ;;  %v25569_v50 = vld [vmem:[#allocation18_spill] sm:$0xff] }
 0x681   : > { %v12694_v4 = vrot.slane %v12693_v57, 4 }
 0x683   : > { %v12695_v31 = vadd.f32 %v12694_v4, %v12693_v57  ;;  %v25570_v57 = vld [vmem:[#allocation19_spill] sm:$0xff] }
 0x685   : > { %v12696_v33 = vrot.slane %v12695_v31, 2 }
 0x687   : > { %v12697_v59 = vadd.f32 %v12696_v33, %v12695_v31  ;;  %v25571_v33 = vld [vmem:[#allocation20_spill] sm:$0xff] }
 0x689   : > { %v12698_v45 = vrot.slane %v12697_v59, 1 }
 0x68b   : > { %v12699_v42 = vadd.f32 %v12698_v45, %v12697_v59  ;;  %v25573_v45 = vld [vmem:[#allocation21_spill] sm:$0xff] }
 0x68d   : > { %v12700_v1 = vmul.f32 0.0009765625, %v12699_v42 }
 0x68f   : > { %v12701_v22 = vmax.f32 %v12700_v1, 0.0 }
 0x691   : > { %v12702_v38 = vadd.f32 1e-05, %v12701_v22  ;;  %v25575_v22 = vld [vmem:[#allocation22_spill] sm:$0xff] }
 0x693   : > { %19327 = vrsqrt.f32 %v12702_v38 }
 0x69d   : > { %v23453_v19 = vpop.eup %19327 }
 0x69e   : > { %v23457_v47 = vmul.f32 %v23453_v19, %v22727_v21  ;;  %v23461_v17 = vmul.f32 %v23453_v19, %v22731_v0  ;;  %v23465_v4 = vmul.f32 %v23453_v19, %v22735_v15  ;;  %v23469_v31 = vmul.f32 %v23453_v19, %v22743_v35 }
 0x69f   : > { %v23473_v1 = vmul.f32 %v23453_v19, %v22747_v25  ;;  %v23477_v21 = vmul.f32 %v23453_v19, %v22753_v46  ;;  %v23481_v0 = vmul.f32 %v23453_v19, %v22759_v58  ;;  %v23485_v15 = vmul.f32 %v23453_v19, %v22765_v32 }
 0x6a0   : > { %v23489_v35 = vmul.f32 %v23453_v19, %v22771_v60  ;;  %v23493_v25 = vmul.f32 %v23453_v19, %v22777_v34  ;;  %v23497_v46 = vmul.f32 %v23453_v19, %v22783_v6  ;;  %v23501_v58 = vmul.f32 %v23453_v19, %v22789_v63 }
 0x6a1   : > { %v23505_v32 = vmul.f32 %v23453_v19, %v22795_v41  ;;  %v23509_v60 = vmul.f32 %v23453_v19, %v22801_v55  ;;  %v23513_v34 = vmul.f32 %v23453_v19, %v22807_v52  ;;  %v23517_v6 = vmul.f32 %v23453_v19, %v22813_v36 }
 0x6a2   : > { %v23521_v63 = vmul.f32 %v23453_v19, %v22819_v11  ;;  %v23525_v41 = vmul.f32 %v23453_v19, %v22825_v49  ;;  %v23529_v55 = vmul.f32 %v23453_v19, %v22831_v26  ;;  %v23533_v52 = vmul.f32 %v23453_v19, %v22837_v30 }
 0x6a3   : > { %v23537_v36 = vmul.f32 %v23453_v19, %v22843_v44  ;;  %v23541_v11 = vmul.f32 %v23453_v19, %v22849_v9  ;;  %v23545_v49 = vmul.f32 %v23453_v19, %v22855_v2  ;;  %v23549_v26 = vmul.f32 %v23453_v19, %v22861_v27 }
 0x6a4   : > { %v23553_v30 = vmul.f32 %v23453_v19, %v22867_v5  ;;  %v23557_v44 = vmul.f32 %v23453_v19, %v22873_v51  ;;  %v23561_v9 = vmul.f32 %v23453_v19, %v22879_v43  ;;  %v23565_v2 = vmul.f32 %v23453_v19, %v22885_v12 }
 0x6a5   : > { %v23569_v27 = vmul.f32 %v23453_v19, %v22891_v10  ;;  %v23573_v5 = vmul.f32 %v23453_v19, %v22897_v37  ;;  %v23577_v51 = vmul.f32 %v23453_v19, %v22903_v13  ;;  %v23581_v43 = vmul.f32 %v23453_v19, %v22909_v14 }
 0x6a6   : > { %v23585_v12 = vmul.f32 %v23453_v19, %v22915_v23  ;;  %v23589_v10 = vmul.f32 %v23453_v19, %v22921_v7  ;;  %v23593_v37 = vmul.f32 %v23453_v19, %v22927_v40  ;;  %v23597_v13 = vmul.f32 %v23453_v19, %v22933_v39 }
 0x6a7   : > { %v23601_v14 = vmul.f32 %v23453_v19, %v22939_v29  ;;  %v23605_v23 = vmul.f32 %v23453_v19, %v25566_v28  ;;  %v23609_v7 = vmul.f32 %v23453_v19, %v25567_v8  ;;  %v23613_v40 = vmul.f32 %v23453_v19, %v25568_v54  ;;  %v25577_v28 = vld [vmem:[#allocation23_spill] sm:$0xff]  ;;  %v25579_v54 = vld [vmem:[#allocation24_spill] sm:$0xff] }
 0x6a8   : > { %v23617_v39 = vmul.f32 %v23453_v19, %v25569_v50  ;;  %v23621_v29 = vmul.f32 %v23453_v19, %v25570_v57  ;;  %v23625_v59 = vmul.f32 %v23453_v19, %v25571_v33  ;;  %v23629_v42 = vmul.f32 %v23453_v19, %v25573_v45  ;;  %v25581_v57 = vld [vmem:[#allocation25_spill] sm:$0xff] }
 0x6a9   : > { %v23633_v38 = vmul.f32 %v23453_v19, %v25575_v22  ;;  %v23637_v8 = vmul.f32 %v23453_v19, %v25577_v28  ;;  %v23641_v50 = vmul.f32 %v23453_v19, %v25579_v54  ;;  %v23645_v33 = vmul.f32 %v23453_v19, %v25581_v57 }
 0x6aa   : > { %25572 = vst [vmem:[#allocation79_spill] sm:$0xff] %v23625_v59  ;;  %25574 = vst [vmem:[#allocation80_spill] sm:$0xff] %v23629_v42  ;;  %v25583_v59 = vld [vmem:[#allocation26_spill] sm:$0xff]  ;;  %v25585_v42 = vld [vmem:[#allocation27_spill] sm:$0xff] }
 0x6ab   : > { %25576 = vst [vmem:[#allocation81_spill] sm:$0xff] %v23633_v38  ;;  %25578 = vst [vmem:[#allocation82_spill] sm:$0xff] %v23637_v8  ;;  %v23649_v45 = vmul.f32 %v23453_v19, %v25583_v59  ;;  %v23653_v22 = vmul.f32 %v23453_v19, %v25585_v42  ;;  %v25587_v38 = vld [vmem:[#allocation28_spill] sm:$0xff]  ;;  %v25589_v8 = vld [vmem:[#allocation29_spill] sm:$0xff] }
 0x6ac   : > { %25580 = vst [vmem:[#allocation83_spill] sm:$0xff] %v23641_v50  ;;  %25582 = vst [vmem:[#allocation84_spill] sm:$0xff] %v23645_v33  ;;  %v23657_v28 = vmul.f32 %v23453_v19, %v25587_v38  ;;  %v23661_v54 = vmul.f32 %v23453_v19, %v25589_v8  ;;  %v25591_v50 = vld [vmem:[#allocation2_spill] sm:$0xff]  ;;  %v25593_v33 = vld [vmem:[#allocation3_spill] sm:$0xff] }
 0x6ad   : > { %25584 = vst [vmem:[#allocation15_spill] sm:$0xff] %v23649_v45  ;;  %25586 = vst [vmem:[#allocation16_spill] sm:$0xff] %v23653_v22  ;;  %v23665_v57 = vmul.f32 %v23453_v19, %v25591_v50  ;;  %v23669_v59 = vmul.f32 %v23453_v19, %v25593_v33  ;;  %v25595_v45 = vld [vmem:[#allocation4_spill] sm:$0xff]  ;;  %v25597_v22 = vld [vmem:[#allocation5_spill] sm:$0xff] }
 0x6ae   : > { %25588 = vst [vmem:[#allocation17_spill] sm:$0xff] %v23657_v28  ;;  %25590 = vst [vmem:[#allocation18_spill] sm:$0xff] %v23661_v54  ;;  %v23673_v42 = vmul.f32 %v23453_v19, %v25595_v45  ;;  %v23677_v38 = vmul.f32 %v23453_v19, %v25597_v22  ;;  %v25599_v28 = vld [vmem:[#allocation6_spill] sm:$0xff]  ;;  %v25601_v54 = vld [vmem:[#allocation7_spill] sm:$0xff] }
 0x6af   : > { %25592 = vst [vmem:[#allocation19_spill] sm:$0xff] %v23665_v57  ;;  %25594 = vst [vmem:[#allocation20_spill] sm:$0xff] %v23669_v59  ;;  %v23681_v8 = vmul.f32 %v23453_v19, %v25599_v28  ;;  %v23685_v50 = vmul.f32 %v23453_v19, %v25601_v54  ;;  %v25603_v57 = vld [vmem:[#allocation8_spill] sm:$0xff]  ;;  %v25605_v59 = vld [vmem:[#allocation9_spill] sm:$0xff] }
 0x6b0   : > { %25596 = vst [vmem:[#allocation21_spill] sm:$0xff] %v23673_v42  ;;  %25598 = vst [vmem:[#allocation22_spill] sm:$0xff] %v23677_v38  ;;  %v23689_v33 = vmul.f32 %v23453_v19, %v25603_v57  ;;  %v23693_v45 = vmul.f32 %v23453_v19, %v25605_v59  ;;  %v25607_v42 = vld [vmem:[#allocation10_spill] sm:$0xff]  ;;  %v25609_v38 = vld [vmem:[#allocation11_spill] sm:$0xff] }
 0x6b1   : > { %25600 = vst [vmem:[#allocation23_spill] sm:$0xff] %v23681_v8  ;;  %25602 = vst [vmem:[#allocation24_spill] sm:$0xff] %v23685_v50  ;;  %v23697_v22 = vmul.f32 %v23453_v19, %v25607_v42  ;;  %v23701_v28 = vmul.f32 %v23453_v19, %v25609_v38  ;;  %v25611_v8 = vld [vmem:[#allocation12_spill] sm:$0xff]  ;;  %v25613_v50 = vld [vmem:[#allocation13_spill] sm:$0xff] }
 0x6b2   : > { %25604 = vst [vmem:[#allocation25_spill] sm:$0xff] %v23689_v33  ;;  %25606 = vst [vmem:[#allocation26_spill] sm:$0xff] %v23693_v45  ;;  %v23705_v54 = vmul.f32 %v23453_v19, %v25611_v8  ;;  %v23709_v57 = vmul.f32 %v23453_v19, %v25613_v50  ;;  %v25615_v33 = vld [vmem:[#allocation14_spill] sm:$0xff] }
 0x6b3   : > { %25608 = vst [vmem:[#allocation27_spill] sm:$0xff] %v23697_v22  ;;  %25610 = vst [vmem:[#allocation28_spill] sm:$0xff] %v23701_v28  ;;  %v23713_v59 = vmul.f32 %v23453_v19, %v25615_v33  ;;  %v25617_v45 = vld [vmem:[#allocation30_spill] sm:$0xff]  ;;  %v25619_v22 = vld [vmem:[#allocation31_spill] sm:$0xff] }
 0x6b4   : > { %25612 = vst [vmem:[#allocation29_spill] sm:$0xff] %v23705_v54  ;;  %25614 = vst [vmem:[#allocation2_spill] sm:$0xff] %v23709_v57  ;;  %v23717_v42 = vmul.f32 %v23453_v19, %v25617_v45  ;;  %v23721_v38 = vmul.f32 %v23453_v19, %v25619_v22  ;;  %v25621_v28 = vld [vmem:[#allocation32_spill] sm:$0xff]  ;;  %v25623_v54 = vld [vmem:[#allocation33_spill] sm:$0xff] }
 0x6b5   : > { %25616 = vst [vmem:[#allocation3_spill] sm:$0xff] %v23713_v59  ;;  %v23725_v8 = vmul.f32 %v23453_v19, %v25621_v28  ;;  %v23729_v50 = vmul.f32 %v23453_v19, %v25623_v54  ;;  %v25625_v57 = vld [vmem:[#allocation34_spill] sm:$0xff]  ;;  %v25627_v59 = vld [vmem:[#allocation35_spill] sm:$0xff] }
 0x6b6   : > { %25618 = vst [vmem:[#allocation4_spill] sm:$0xff] %v23717_v42  ;;  %25620 = vst [vmem:[#allocation5_spill] sm:$0xff] %v23721_v38  ;;  %v23733_v33 = vmul.f32 %v23453_v19, %v25625_v57  ;;  %v23737_v45 = vmul.f32 %v23453_v19, %v25627_v59  ;;  %v25629_v42 = vld [vmem:[#allocation36_spill] sm:$0xff]  ;;  %v25631_v38 = vld [vmem:[#allocation37_spill] sm:$0xff] }
 0x6b7   : > { %25622 = vst [vmem:[#allocation6_spill] sm:$0xff] %v23725_v8  ;;  %25624 = vst [vmem:[#allocation7_spill] sm:$0xff] %v23729_v50  ;;  %v23741_v22 = vmul.f32 %v23453_v19, %v25629_v42  ;;  %v23745_v28 = vmul.f32 %v23453_v19, %v25631_v38  ;;  %v25633_v8 = vld [vmem:[#allocation38_spill] sm:$0xff]  ;;  %v25635_v50 = vld [vmem:[#allocation39_spill] sm:$0xff] }
 0x6b8   : > { %25626 = vst [vmem:[#allocation8_spill] sm:$0xff] %v23733_v33  ;;  %25628 = vst [vmem:[#allocation9_spill] sm:$0xff] %v23737_v45  ;;  %v23749_v54 = vmul.f32 %v23453_v19, %v25633_v8  ;;  %v23753_v57 = vmul.f32 %v23453_v19, %v25635_v50  ;;  %v25637_v33 = vld [vmem:[#allocation40_spill] sm:$0xff]  ;;  %v25639_v45 = vld [vmem:[#allocation41_spill] sm:$0xff] }
 0x6b9   : > { %25630 = vst [vmem:[#allocation10_spill] sm:$0xff] %v23741_v22  ;;  %25632 = vst [vmem:[#allocation11_spill] sm:$0xff] %v23745_v28  ;;  %v23757_v59 = vmul.f32 %v23453_v19, %v25637_v33  ;;  %v23761_v42 = vmul.f32 %v23453_v19, %v25639_v45  ;;  %v25641_v22 = vld [vmem:[#allocation42_spill] sm:$0xff]  ;;  %v25643_v28 = vld [vmem:[#allocation43_spill] sm:$0xff] }
 0x6ba   : > { %25634 = vst [vmem:[#allocation12_spill] sm:$0xff] %v23749_v54  ;;  %25636 = vst [vmem:[#allocation13_spill] sm:$0xff] %v23753_v57  ;;  %v23765_v38 = vmul.f32 %v23453_v19, %v25641_v22  ;;  %v23769_v8 = vmul.f32 %v23453_v19, %v25643_v28  ;;  %v25645_v54 = vld [vmem:[#allocation44_spill] sm:$0xff]  ;;  %v25647_v57 = vld [vmem:[#allocation45_spill] sm:$0xff] }
 0x6bb   : > { %25638 = vst [vmem:[#allocation14_spill] sm:$0xff] %v23757_v59  ;;  %25640 = vst [vmem:[#allocation30_spill] sm:$0xff] %v23761_v42  ;;  %v23773_v50 = vmul.f32 %v23453_v19, %v25645_v54  ;;  %v23777_v33 = vmul.f32 %v23453_v19, %v25647_v57  ;;  %v25649_v59 = vld [vmem:[#allocation46_spill] sm:$0xff]  ;;  %v25651_v42 = vld [vmem:[#allocation47_spill] sm:$0xff] }
 0x6bc   : > { %25642 = vst [vmem:[#allocation31_spill] sm:$0xff] %v23765_v38  ;;  %25644 = vst [vmem:[#allocation32_spill] sm:$0xff] %v23769_v8  ;;  %v23781_v45 = vmul.f32 %v23453_v19, %v25649_v59  ;;  %v23785_v22 = vmul.f32 %v23453_v19, %v25651_v42  ;;  %v25653_v38 = vld [vmem:[#allocation48_spill] sm:$0xff]  ;;  %v25655_v8 = vld [vmem:[#allocation49_spill] sm:$0xff] }
 0x6bd   : > { %25646 = vst [vmem:[#allocation33_spill] sm:$0xff] %v23773_v50  ;;  %25648 = vst [vmem:[#allocation34_spill] sm:$0xff] %v23777_v33  ;;  %v23789_v28 = vmul.f32 %v23453_v19, %v25653_v38  ;;  %v23793_v54 = vmul.f32 %v23453_v19, %v25655_v8  ;;  %v25657_v50 = vld [vmem:[#allocation50_spill] sm:$0xff]  ;;  %v25659_v33 = vld [vmem:[#allocation51_spill] sm:$0xff] }
 0x6be   : > { %25650 = vst [vmem:[#allocation35_spill] sm:$0xff] %v23781_v45  ;;  %25652 = vst [vmem:[#allocation36_spill] sm:$0xff] %v23785_v22  ;;  %v23797_v57 = vmul.f32 %v23453_v19, %v25657_v50  ;;  %v23801_v59 = vmul.f32 %v23453_v19, %v25659_v33  ;;  %v25661_v45 = vld [vmem:[#allocation52_spill] sm:$0xff]  ;;  %v25663_v22 = vld [vmem:[#allocation53_spill] sm:$0xff] }
 0x6bf   : > { %25654 = vst [vmem:[#allocation37_spill] sm:$0xff] %v23789_v28  ;;  %25656 = vst [vmem:[#allocation38_spill] sm:$0xff] %v23793_v54  ;;  %v23805_v42 = vmul.f32 %v23453_v19, %v25661_v45  ;;  %v23809_v38 = vmul.f32 %v23453_v19, %v25663_v22  ;;  %v25665_v28 = vld [vmem:[#allocation54_spill] sm:$0xff]  ;;  %v25667_v54 = vld [vmem:[#allocation55_spill] sm:$0xff] }
 0x6c0   : > { %25658 = vst [vmem:[#allocation39_spill] sm:$0xff] %v23797_v57  ;;  %25660 = vst [vmem:[#allocation40_spill] sm:$0xff] %v23801_v59  ;;  %v23813_v8 = vmul.f32 %v23453_v19, %v25665_v28  ;;  %v23817_v50 = vmul.f32 %v23453_v19, %v25667_v54  ;;  %v25669_v57 = vld [vmem:[#allocation56_spill] sm:$0xff]  ;;  %v25671_v59 = vld [vmem:[#allocation57_spill] sm:$0xff] }
 0x6c1   : > { %25662 = vst [vmem:[#allocation41_spill] sm:$0xff] %v23805_v42  ;;  %25664 = vst [vmem:[#allocation42_spill] sm:$0xff] %v23809_v38  ;;  %v23821_v33 = vmul.f32 %v23453_v19, %v25669_v57  ;;  %v23825_v45 = vmul.f32 %v23453_v19, %v25671_v59  ;;  %v25673_v42 = vld [vmem:[#allocation58_spill] sm:$0xff]  ;;  %v25675_v38 = vld [vmem:[#allocation59_spill] sm:$0xff] }
 0x6c2   : > { %25666 = vst [vmem:[#allocation43_spill] sm:$0xff] %v23813_v8  ;;  %25668 = vst [vmem:[#allocation44_spill] sm:$0xff] %v23817_v50  ;;  %v23829_v22 = vmul.f32 %v23453_v19, %v25673_v42  ;;  %v23833_v28 = vmul.f32 %v23453_v19, %v25675_v38  ;;  %v25677_v8 = vld [vmem:[#allocation60_spill] sm:$0xff]  ;;  %v25679_v50 = vld [vmem:[#allocation61_spill] sm:$0xff] }
 0x6c3   : > { %25670 = vst [vmem:[#allocation45_spill] sm:$0xff] %v23821_v33  ;;  %25672 = vst [vmem:[#allocation46_spill] sm:$0xff] %v23825_v45  ;;  %v23837_v54 = vmul.f32 %v23453_v19, %v25677_v8  ;;  %v23841_v57 = vmul.f32 %v23453_v19, %v25679_v50  ;;  %v25681_v33 = vld [vmem:[#allocation62_spill] sm:$0xff]  ;;  %v25683_v45 = vld [vmem:[#allocation63_spill] sm:$0xff] }
 0x6c4   : > { %25674 = vst [vmem:[#allocation47_spill] sm:$0xff] %v23829_v22  ;;  %25676 = vst [vmem:[#allocation48_spill] sm:$0xff] %v23833_v28  ;;  %v23845_v59 = vmul.f32 %v23453_v19, %v25681_v33  ;;  %v23849_v42 = vmul.f32 %v23453_v19, %v25683_v45  ;;  %v25685_v22 = vld [vmem:[#allocation64_spill] sm:$0xff]  ;;  %v25687_v28 = vld [vmem:[#allocation65_spill] sm:$0xff] }
 0x6c5   : > { %25678 = vst [vmem:[#allocation49_spill] sm:$0xff] %v23837_v54  ;;  %25680 = vst [vmem:[#allocation50_spill] sm:$0xff] %v23841_v57  ;;  %v23853_v38 = vmul.f32 %v23453_v19, %v25685_v22  ;;  %v23857_v8 = vmul.f32 %v23453_v19, %v25687_v28  ;;  %v25689_v54 = vld [vmem:[#allocation66_spill] sm:$0xff]  ;;  %v25691_v57 = vld [vmem:[#allocation67_spill] sm:$0xff] }
 0x6c6   : > { %25682 = vst [vmem:[#allocation51_spill] sm:$0xff] %v23845_v59  ;;  %25684 = vst [vmem:[#allocation52_spill] sm:$0xff] %v23849_v42  ;;  %v23861_v50 = vmul.f32 %v23453_v19, %v25689_v54  ;;  %v23865_v33 = vmul.f32 %v23453_v19, %v25691_v57  ;;  %v25693_v59 = vld [vmem:[#allocation68_spill] sm:$0xff]  ;;  %v25695_v42 = vld [vmem:[#allocation69_spill] sm:$0xff] }
 0x6c7   : > { %25686 = vst [vmem:[#allocation53_spill] sm:$0xff] %v23853_v38  ;;  %25688 = vst [vmem:[#allocation54_spill] sm:$0xff] %v23857_v8  ;;  %v23869_v45 = vmul.f32 %v23453_v19, %v25693_v59  ;;  %v23873_v22 = vmul.f32 %v23453_v19, %v25695_v42  ;;  %v25697_v38 = vld [vmem:[#allocation70_spill] sm:$0xff]  ;;  %v25699_v8 = vld [vmem:[#allocation71_spill] sm:$0xff] }
 0x6c8   : > { %25690 = vst [vmem:[#allocation55_spill] sm:$0xff] %v23861_v50  ;;  %25692 = vst [vmem:[#allocation56_spill] sm:$0xff] %v23865_v33  ;;  %v23877_v28 = vmul.f32 %v23453_v19, %v25697_v38  ;;  %v23881_v54 = vmul.f32 %v23453_v19, %v25699_v8  ;;  %v25701_v50 = vld [vmem:[#allocation72_spill] sm:$0xff]  ;;  %v25702_v33 = vld [vmem:[#allocation73_spill] sm:$0xff] }
 0x6c9   : > { %25694 = vst [vmem:[#allocation57_spill] sm:$0xff] %v23869_v45  ;;  %25696 = vst [vmem:[#allocation58_spill] sm:$0xff] %v23873_v22  ;;  %v23885_v57 = vmul.f32 %v23453_v19, %v25701_v50  ;;  %v23889_v59 = vmul.f32 %v23453_v19, %v25702_v33  ;;  %v25704_v45 = vld [vmem:[#allocation74_spill] sm:$0xff]  ;;  %v25705_v22 = vld [vmem:[#allocation75_spill] sm:$0xff]  ;;  %v23909_v33 = vmul.f32 %v23453_v19, %v23401_v24 }
 0x6ca   : > { %25698 = vst [vmem:[#allocation59_spill] sm:$0xff] %v23877_v28  ;;  %25700 = vst [vmem:[#allocation60_spill] sm:$0xff] %v23881_v54  ;;  %v23893_v42 = vmul.f32 %v23453_v19, %v25704_v45  ;;  %v23897_v38 = vmul.f32 %v23453_v19, %v25705_v22  ;;  %v25706_v28 = vld [vmem:[#allocation76_spill] sm:$0xff]  ;;  %v25707_v54 = vld [vmem:[#allocation77_spill] sm:$0xff]  ;;  %v23917_v22 = vmul.f32 %v23453_v19, %v23413_v62 }
 0x6cb   : > { %25703 = vst [vmem:[#allocation61_spill] sm:$0xff] %v23889_v59  ;;  %v23901_v8 = vmul.f32 %v23453_v19, %v25706_v28  ;;  %v23905_v50 = vmul.f32 %v23453_v19, %v25707_v54  ;;  %v25708_v59 = vld [vmem:[#allocation78_spill] sm:$0xff]  ;;  %v23921_v28 = vmul.f32 %v23453_v19, %v23419_v16  ;;  %v23925_v54 = vmul.f32 %v23453_v19, %v23425_v56 }
 0x6cc   : > { %v23913_v45 = vmul.f32 %v23453_v19, %v25708_v59  ;;  %25709 = vst [vmem:[#allocation62_spill] sm:$0xff] %v23917_v22  ;;  %v23929_v24 = vmul.f32 %v23453_v19, %v22696_v18  ;;  %v23933_v59 = vmul.f32 %v23453_v19, %v22699_v53  ;;  %v23938_v62 = vld [vmem:[%s25127_s2 + $0x1] ss:$0 sm:$0xff]  ;;  %v23942_v16 = vmul.f32 %v23453_v19, %v22702_v20  ;;  %v25717_v22 = vld [vmem:[#allocation88_spill] sm:$0xff] }
 0x6cd   : > { %25710 = vst [vmem:[#allocation63_spill] sm:$0xff] %v23921_v28  ;;  %25711 = vst [vmem:[#allocation64_spill] sm:$0xff] %v23925_v54  ;;  %v23946_v56 = vmul.f32 %v23453_v19, %v22705_v3  ;;  %v25714_v54 = vld [vmem:[#allocation85_spill] sm:$0xff]  ;;  %v23962_v20 = vmul.f32 %v23453_v19, %v25717_v22  ;;  %v23966_v3 = vmul.f32 %v23453_v19, %v22720_v61 }
 0x6ce   : > { %25712 = vst [vmem:[#allocation65_spill] sm:$0xff] %v23929_v24  ;;  %25713 = vst [vmem:[#allocation66_spill] sm:$0xff] %v23933_v59  ;;  %v23950_v18 = vmul.f32 %v23453_v19, %v25714_v54  ;;  %v25715_v24 = vld [vmem:[#allocation86_spill] sm:$0xff]  ;;  %v25716_v59 = vld [vmem:[#allocation87_spill] sm:$0xff]  ;;  %v23970_v54 = vmul.f32 %v23453_v19, %v22723_v48  ;;  %v23982_v22 = vmul.f32 %v23938_v62, %v23465_v4 }
 0x6cf   : > { %v23954_v53 = vmul.f32 %v23453_v19, %v25715_v24  ;;  %v23958_v28 = vmul.f32 %v23453_v19, %v25716_v59  ;;  %v23974_v24 = vmul.f32 %v23938_v62, %v23457_v47  ;;  %v23978_v59 = vmul.f32 %v23938_v62, %v23461_v17 }
 0x6d0   : > { %v23986_v61 = vmul.f32 %v23938_v62, %v23469_v31  ;;  %v23990_v19 = vmul.f32 %v23938_v62, %v23473_v1  ;;  %v23994_v48 = vmul.f32 %v23938_v62, %v23477_v21  ;;  %v23998_v47 = vmul.f32 %v23938_v62, %v23481_v0 }
 0x6d1   : > { %v24002_v17 = vmul.f32 %v23938_v62, %v23485_v15  ;;  %v24006_v4 = vmul.f32 %v23938_v62, %v23489_v35  ;;  %v24010_v31 = vmul.f32 %v23938_v62, %v23493_v25  ;;  %v24014_v1 = vmul.f32 %v23938_v62, %v23497_v46 }
 0x6d2   : > { %v24018_v21 = vmul.f32 %v23938_v62, %v23501_v58  ;;  %v24022_v0 = vmul.f32 %v23938_v62, %v23505_v32  ;;  %v24026_v15 = vmul.f32 %v23938_v62, %v23509_v60  ;;  %v24030_v35 = vmul.f32 %v23938_v62, %v23513_v34 }
 0x6d3   : > { %v24034_v25 = vmul.f32 %v23938_v62, %v23517_v6  ;;  %v24038_v46 = vmul.f32 %v23938_v62, %v23521_v63  ;;  %v24042_v58 = vmul.f32 %v23938_v62, %v23525_v41  ;;  %v24046_v32 = vmul.f32 %v23938_v62, %v23529_v55 }
 0x6d4   : > { %v24050_v60 = vmul.f32 %v23938_v62, %v23533_v52  ;;  %v24054_v34 = vmul.f32 %v23938_v62, %v23537_v36  ;;  %v24058_v6 = vmul.f32 %v23938_v62, %v23541_v11  ;;  %v24062_v63 = vmul.f32 %v23938_v62, %v23545_v49 }
 0x6d5   : > { %v24066_v41 = vmul.f32 %v23938_v62, %v23549_v26  ;;  %v24070_v55 = vmul.f32 %v23938_v62, %v23553_v30  ;;  %v24074_v52 = vmul.f32 %v23938_v62, %v23557_v44  ;;  %v24078_v36 = vmul.f32 %v23938_v62, %v23561_v9 }
 0x6d6   : > { %v24082_v11 = vmul.f32 %v23938_v62, %v23565_v2  ;;  %v24086_v49 = vmul.f32 %v23938_v62, %v23569_v27  ;;  %v24090_v26 = vmul.f32 %v23938_v62, %v23573_v5  ;;  %v24094_v30 = vmul.f32 %v23938_v62, %v23577_v51 }
 0x6d7   : > { %v24098_v44 = vmul.f32 %v23938_v62, %v23581_v43  ;;  %v24102_v9 = vmul.f32 %v23938_v62, %v23585_v12  ;;  %v24106_v2 = vmul.f32 %v23938_v62, %v23589_v10  ;;  %v24110_v27 = vmul.f32 %v23938_v62, %v23593_v37 }
 0x6d8   : > { %v24114_v5 = vmul.f32 %v23938_v62, %v23597_v13  ;;  %v24118_v51 = vmul.f32 %v23938_v62, %v23601_v14  ;;  %v24122_v43 = vmul.f32 %v23938_v62, %v23605_v23  ;;  %v24126_v12 = vmul.f32 %v23938_v62, %v23609_v7  ;;  %v25723_v14 = vld [vmem:[#allocation79_spill] sm:$0xff] }
 0x6d9   : > { %v24130_v10 = vmul.f32 %v23938_v62, %v23613_v40  ;;  %v24134_v37 = vmul.f32 %v23938_v62, %v23617_v39  ;;  %v24138_v13 = vmul.f32 %v23938_v62, %v23621_v29  ;;  %v24142_v23 = vmul.f32 %v23938_v62, %v25723_v14 }
 0x6da   : > { %25718 = vst [vmem:[#allocation67_spill] sm:$0xff] %v24122_v43  ;;  %25719 = vst [vmem:[#allocation68_spill] sm:$0xff] %v24126_v12  ;;  %v25725_v43 = vld [vmem:[#allocation80_spill] sm:$0xff]  ;;  %v25727_v12 = vld [vmem:[#allocation81_spill] sm:$0xff] }
 0x6db   : > { %25720 = vst [vmem:[#allocation69_spill] sm:$0xff] %v24130_v10  ;;  %25721 = vst [vmem:[#allocation70_spill] sm:$0xff] %v24134_v37  ;;  %v24146_v7 = vmul.f32 %v23938_v62, %v25725_v43  ;;  %v24150_v40 = vmul.f32 %v23938_v62, %v25727_v12  ;;  %v25729_v10 = vld [vmem:[#allocation82_spill] sm:$0xff]  ;;  %v25731_v37 = vld [vmem:[#allocation83_spill] sm:$0xff] }
 0x6dc   : > { %25722 = vst [vmem:[#allocation71_spill] sm:$0xff] %v24138_v13  ;;  %25724 = vst [vmem:[#allocation72_spill] sm:$0xff] %v24142_v23  ;;  %v24154_v39 = vmul.f32 %v23938_v62, %v25729_v10  ;;  %v24158_v29 = vmul.f32 %v23938_v62, %v25731_v37  ;;  %v25733_v13 = vld [vmem:[#allocation84_spill] sm:$0xff]  ;;  %v25735_v23 = vld [vmem:[#allocation15_spill] sm:$0xff] }
 0x6dd   : > { %25726 = vst [vmem:[#allocation73_spill] sm:$0xff] %v24146_v7  ;;  %25728 = vst [vmem:[#allocation74_spill] sm:$0xff] %v24150_v40  ;;  %v24162_v14 = vmul.f32 %v23938_v62, %v25733_v13  ;;  %v24166_v43 = vmul.f32 %v23938_v62, %v25735_v23  ;;  %v25737_v7 = vld [vmem:[#allocation16_spill] sm:$0xff]  ;;  %v25739_v40 = vld [vmem:[#allocation17_spill] sm:$0xff] }
 0x6de   : > { %25730 = vst [vmem:[#allocation75_spill] sm:$0xff] %v24154_v39  ;;  %25732 = vst [vmem:[#allocation76_spill] sm:$0xff] %v24158_v29  ;;  %v24170_v12 = vmul.f32 %v23938_v62, %v25737_v7  ;;  %v24174_v10 = vmul.f32 %v23938_v62, %v25739_v40  ;;  %v25741_v39 = vld [vmem:[#allocation18_spill] sm:$0xff]  ;;  %v25743_v29 = vld [vmem:[#allocation19_spill] sm:$0xff] }
 0x6df   : > { %25734 = vst [vmem:[#allocation77_spill] sm:$0xff] %v24162_v14  ;;  %25736 = vst [vmem:[#allocation78_spill] sm:$0xff] %v24166_v43  ;;  %v24178_v37 = vmul.f32 %v23938_v62, %v25741_v39  ;;  %v24182_v13 = vmul.f32 %v23938_v62, %v25743_v29  ;;  %v25745_v14 = vld [vmem:[#allocation20_spill] sm:$0xff]  ;;  %v25747_v43 = vld [vmem:[#allocation21_spill] sm:$0xff] }
 0x6e0   : > { %25738 = vst [vmem:[#allocation85_spill] sm:$0xff] %v24170_v12  ;;  %25740 = vst [vmem:[#allocation86_spill] sm:$0xff] %v24174_v10  ;;  %v24186_v23 = vmul.f32 %v23938_v62, %v25745_v14  ;;  %v24190_v7 = vmul.f32 %v23938_v62, %v25747_v43  ;;  %v25749_v12 = vld [vmem:[#allocation22_spill] sm:$0xff]  ;;  %v25751_v10 = vld [vmem:[#allocation23_spill] sm:$0xff] }
 0x6e1   : > { %25742 = vst [vmem:[#allocation87_spill] sm:$0xff] %v24178_v37  ;;  %25744 = vst [vmem:[#allocation88_spill] sm:$0xff] %v24182_v13  ;;  %v24194_v40 = vmul.f32 %v23938_v62, %v25749_v12  ;;  %v24198_v39 = vmul.f32 %v23938_v62, %v25751_v10  ;;  %v25753_v37 = vld [vmem:[#allocation24_spill] sm:$0xff]  ;;  %v25755_v13 = vld [vmem:[#allocation25_spill] sm:$0xff] }
 0x6e2   : > { %25746 = vst [vmem:[#allocation79_spill] sm:$0xff] %v24186_v23  ;;  %25748 = vst [vmem:[#allocation80_spill] sm:$0xff] %v24190_v7  ;;  %v24202_v29 = vmul.f32 %v23938_v62, %v25753_v37  ;;  %v24206_v14 = vmul.f32 %v23938_v62, %v25755_v13  ;;  %v25757_v23 = vld [vmem:[#allocation26_spill] sm:$0xff]  ;;  %v25759_v7 = vld [vmem:[#allocation27_spill] sm:$0xff] }
 0x6e3   : > { %25750 = vst [vmem:[#allocation81_spill] sm:$0xff] %v24194_v40  ;;  %25752 = vst [vmem:[#allocation82_spill] sm:$0xff] %v24198_v39  ;;  %v24210_v43 = vmul.f32 %v23938_v62, %v25757_v23  ;;  %v24214_v12 = vmul.f32 %v23938_v62, %v25759_v7  ;;  %v25761_v40 = vld [vmem:[#allocation28_spill] sm:$0xff]  ;;  %v25763_v39 = vld [vmem:[#allocation29_spill] sm:$0xff] }
 0x6e4   : > { %25754 = vst [vmem:[#allocation83_spill] sm:$0xff] %v24202_v29  ;;  %25756 = vst [vmem:[#allocation84_spill] sm:$0xff] %v24206_v14  ;;  %v24218_v10 = vmul.f32 %v23938_v62, %v25761_v40  ;;  %v24222_v37 = vmul.f32 %v23938_v62, %v25763_v39  ;;  %v25765_v29 = vld [vmem:[#allocation2_spill] sm:$0xff]  ;;  %v25767_v14 = vld [vmem:[#allocation3_spill] sm:$0xff] }
 0x6e5   : > { %25758 = vst [vmem:[#allocation15_spill] sm:$0xff] %v24210_v43  ;;  %25760 = vst [vmem:[#allocation16_spill] sm:$0xff] %v24214_v12  ;;  %v24226_v13 = vmul.f32 %v23938_v62, %v25765_v29  ;;  %v24230_v23 = vmul.f32 %v23938_v62, %v25767_v14  ;;  %v25769_v43 = vld [vmem:[#allocation4_spill] sm:$0xff]  ;;  %v25771_v12 = vld [vmem:[#allocation5_spill] sm:$0xff] }
 0x6e6   : > { %25762 = vst [vmem:[#allocation17_spill] sm:$0xff] %v24218_v10  ;;  %25764 = vst [vmem:[#allocation18_spill] sm:$0xff] %v24222_v37  ;;  %v24234_v7 = vmul.f32 %v23938_v62, %v25769_v43  ;;  %v24238_v40 = vmul.f32 %v23938_v62, %v25771_v12  ;;  %v25773_v10 = vld [vmem:[#allocation6_spill] sm:$0xff]  ;;  %v25775_v37 = vld [vmem:[#allocation7_spill] sm:$0xff] }
 0x6e7   : > { %25766 = vst [vmem:[#allocation19_spill] sm:$0xff] %v24226_v13  ;;  %25768 = vst [vmem:[#allocation20_spill] sm:$0xff] %v24230_v23  ;;  %v24242_v39 = vmul.f32 %v23938_v62, %v25773_v10  ;;  %v24246_v29 = vmul.f32 %v23938_v62, %v25775_v37  ;;  %v25777_v13 = vld [vmem:[#allocation8_spill] sm:$0xff]  ;;  %v25779_v23 = vld [vmem:[#allocation9_spill] sm:$0xff] }
 0x6e8   : > { %25770 = vst [vmem:[#allocation21_spill] sm:$0xff] %v24234_v7  ;;  %25772 = vst [vmem:[#allocation22_spill] sm:$0xff] %v24238_v40  ;;  %v24250_v14 = vmul.f32 %v23938_v62, %v25777_v13  ;;  %v24254_v43 = vmul.f32 %v23938_v62, %v25779_v23  ;;  %v25781_v7 = vld [vmem:[#allocation10_spill] sm:$0xff]  ;;  %v25783_v40 = vld [vmem:[#allocation11_spill] sm:$0xff] }
 0x6e9   : > { %25774 = vst [vmem:[#allocation23_spill] sm:$0xff] %v24242_v39  ;;  %25776 = vst [vmem:[#allocation24_spill] sm:$0xff] %v24246_v29  ;;  %v24258_v12 = vmul.f32 %v23938_v62, %v25781_v7  ;;  %v24262_v10 = vmul.f32 %v23938_v62, %v25783_v40  ;;  %v25785_v39 = vld [vmem:[#allocation12_spill] sm:$0xff]  ;;  %v25787_v29 = vld [vmem:[#allocation13_spill] sm:$0xff] }
 0x6ea   : > { %25778 = vst [vmem:[#allocation25_spill] sm:$0xff] %v24250_v14  ;;  %25780 = vst [vmem:[#allocation26_spill] sm:$0xff] %v24254_v43  ;;  %v24266_v37 = vmul.f32 %v23938_v62, %v25785_v39  ;;  %v24270_v13 = vmul.f32 %v23938_v62, %v25787_v29  ;;  %v25789_v14 = vld [vmem:[#allocation14_spill] sm:$0xff] }
 0x6eb   : > { %25782 = vst [vmem:[#allocation27_spill] sm:$0xff] %v24258_v12  ;;  %25784 = vst [vmem:[#allocation28_spill] sm:$0xff] %v24262_v10  ;;  %v24274_v23 = vmul.f32 %v23938_v62, %v25789_v14  ;;  %v25791_v43 = vld [vmem:[#allocation30_spill] sm:$0xff]  ;;  %v25793_v12 = vld [vmem:[#allocation31_spill] sm:$0xff] }
 0x6ec   : > { %25786 = vst [vmem:[#allocation29_spill] sm:$0xff] %v24266_v37  ;;  %25788 = vst [vmem:[#allocation2_spill] sm:$0xff] %v24270_v13  ;;  %v24278_v7 = vmul.f32 %v23938_v62, %v25791_v43  ;;  %v24282_v40 = vmul.f32 %v23938_v62, %v25793_v12  ;;  %v25795_v10 = vld [vmem:[#allocation32_spill] sm:$0xff]  ;;  %v25797_v37 = vld [vmem:[#allocation33_spill] sm:$0xff] }
 0x6ed   : > { %25790 = vst [vmem:[#allocation3_spill] sm:$0xff] %v24274_v23  ;;  %v24286_v39 = vmul.f32 %v23938_v62, %v25795_v10  ;;  %v24290_v29 = vmul.f32 %v23938_v62, %v25797_v37  ;;  %v25799_v13 = vld [vmem:[#allocation34_spill] sm:$0xff]  ;;  %v25801_v23 = vld [vmem:[#allocation35_spill] sm:$0xff] }
 0x6ee   : > { %25792 = vst [vmem:[#allocation4_spill] sm:$0xff] %v24278_v7  ;;  %25794 = vst [vmem:[#allocation5_spill] sm:$0xff] %v24282_v40  ;;  %v24294_v14 = vmul.f32 %v23938_v62, %v25799_v13  ;;  %v24298_v43 = vmul.f32 %v23938_v62, %v25801_v23  ;;  %v25803_v7 = vld [vmem:[#allocation36_spill] sm:$0xff]  ;;  %v25805_v40 = vld [vmem:[#allocation37_spill] sm:$0xff] }
 0x6ef   : > { %25796 = vst [vmem:[#allocation6_spill] sm:$0xff] %v24286_v39  ;;  %25798 = vst [vmem:[#allocation7_spill] sm:$0xff] %v24290_v29  ;;  %v24302_v12 = vmul.f32 %v23938_v62, %v25803_v7  ;;  %v24306_v10 = vmul.f32 %v23938_v62, %v25805_v40  ;;  %v25807_v39 = vld [vmem:[#allocation38_spill] sm:$0xff]  ;;  %v25809_v29 = vld [vmem:[#allocation39_spill] sm:$0xff] }
 0x6f0   : > { %25800 = vst [vmem:[#allocation8_spill] sm:$0xff] %v24294_v14  ;;  %25802 = vst [vmem:[#allocation9_spill] sm:$0xff] %v24298_v43  ;;  %v24310_v37 = vmul.f32 %v23938_v62, %v25807_v39  ;;  %v24314_v13 = vmul.f32 %v23938_v62, %v25809_v29  ;;  %v25811_v14 = vld [vmem:[#allocation40_spill] sm:$0xff]  ;;  %v25813_v43 = vld [vmem:[#allocation41_spill] sm:$0xff] }
 0x6f1   : > { %25804 = vst [vmem:[#allocation10_spill] sm:$0xff] %v24302_v12  ;;  %25806 = vst [vmem:[#allocation11_spill] sm:$0xff] %v24306_v10  ;;  %v24318_v23 = vmul.f32 %v23938_v62, %v25811_v14  ;;  %v24322_v7 = vmul.f32 %v23938_v62, %v25813_v43  ;;  %v25815_v12 = vld [vmem:[#allocation42_spill] sm:$0xff]  ;;  %v25817_v10 = vld [vmem:[#allocation43_spill] sm:$0xff] }
 0x6f2   : > { %25808 = vst [vmem:[#allocation12_spill] sm:$0xff] %v24310_v37  ;;  %25810 = vst [vmem:[#allocation13_spill] sm:$0xff] %v24314_v13  ;;  %v24326_v40 = vmul.f32 %v23938_v62, %v25815_v12  ;;  %v24330_v39 = vmul.f32 %v23938_v62, %v25817_v10  ;;  %v25819_v37 = vld [vmem:[#allocation44_spill] sm:$0xff]  ;;  %v25821_v13 = vld [vmem:[#allocation45_spill] sm:$0xff] }
 0x6f3   : > { %25812 = vst [vmem:[#allocation14_spill] sm:$0xff] %v24318_v23  ;;  %25814 = vst [vmem:[#allocation30_spill] sm:$0xff] %v24322_v7  ;;  %v24334_v29 = vmul.f32 %v23938_v62, %v25819_v37  ;;  %v24338_v14 = vmul.f32 %v23938_v62, %v25821_v13  ;;  %v25823_v23 = vld [vmem:[#allocation46_spill] sm:$0xff]  ;;  %v25825_v7 = vld [vmem:[#allocation47_spill] sm:$0xff] }
 0x6f4   : > { %25816 = vst [vmem:[#allocation31_spill] sm:$0xff] %v24326_v40  ;;  %25818 = vst [vmem:[#allocation32_spill] sm:$0xff] %v24330_v39  ;;  %v24342_v43 = vmul.f32 %v23938_v62, %v25823_v23  ;;  %v24346_v12 = vmul.f32 %v23938_v62, %v25825_v7  ;;  %v25827_v40 = vld [vmem:[#allocation48_spill] sm:$0xff]  ;;  %v25829_v39 = vld [vmem:[#allocation49_spill] sm:$0xff] }
 0x6f5   : > { %25820 = vst [vmem:[#allocation33_spill] sm:$0xff] %v24334_v29  ;;  %25822 = vst [vmem:[#allocation34_spill] sm:$0xff] %v24338_v14  ;;  %v24350_v10 = vmul.f32 %v23938_v62, %v25827_v40  ;;  %v24354_v37 = vmul.f32 %v23938_v62, %v25829_v39  ;;  %v25831_v29 = vld [vmem:[#allocation50_spill] sm:$0xff]  ;;  %v25833_v14 = vld [vmem:[#allocation51_spill] sm:$0xff] }
 0x6f6   : > { %25824 = vst [vmem:[#allocation35_spill] sm:$0xff] %v24342_v43  ;;  %25826 = vst [vmem:[#allocation36_spill] sm:$0xff] %v24346_v12  ;;  %v24358_v13 = vmul.f32 %v23938_v62, %v25831_v29  ;;  %v24362_v23 = vmul.f32 %v23938_v62, %v25833_v14  ;;  %v25835_v43 = vld [vmem:[#allocation52_spill] sm:$0xff]  ;;  %v25837_v12 = vld [vmem:[#allocation53_spill] sm:$0xff] }
 0x6f7   : > { %25828 = vst [vmem:[#allocation37_spill] sm:$0xff] %v24350_v10  ;;  %25830 = vst [vmem:[#allocation38_spill] sm:$0xff] %v24354_v37  ;;  %v24366_v7 = vmul.f32 %v23938_v62, %v25835_v43  ;;  %v24370_v40 = vmul.f32 %v23938_v62, %v25837_v12  ;;  %v25839_v10 = vld [vmem:[#allocation54_spill] sm:$0xff]  ;;  %v25841_v37 = vld [vmem:[#allocation55_spill] sm:$0xff] }
 0x6f8   : > { %25832 = vst [vmem:[#allocation39_spill] sm:$0xff] %v24358_v13  ;;  %25834 = vst [vmem:[#allocation40_spill] sm:$0xff] %v24362_v23  ;;  %v24374_v39 = vmul.f32 %v23938_v62, %v25839_v10  ;;  %v24378_v29 = vmul.f32 %v23938_v62, %v25841_v37  ;;  %v25842_v13 = vld [vmem:[#allocation56_spill] sm:$0xff]  ;;  %v25844_v23 = vld [vmem:[#allocation57_spill] sm:$0xff] }
 0x6f9   : > { %25836 = vst [vmem:[#allocation41_spill] sm:$0xff] %v24366_v7  ;;  %25838 = vst [vmem:[#allocation42_spill] sm:$0xff] %v24370_v40  ;;  %v24382_v14 = vmul.f32 %v23938_v62, %v25842_v13  ;;  %v24386_v43 = vmul.f32 %v23938_v62, %v25844_v23  ;;  %v25845_v7 = vld [vmem:[#allocation58_spill] sm:$0xff]  ;;  %v25846_v40 = vld [vmem:[#allocation59_spill] sm:$0xff]  ;;  %v24402_v13 = vmul.f32 %v23938_v62, %v23885_v57 }
 0x6fa   : > { %25840 = vst [vmem:[#allocation43_spill] sm:$0xff] %v24374_v39  ;;  %v24390_v12 = vmul.f32 %v23938_v62, %v25845_v7  ;;  %v24394_v10 = vmul.f32 %v23938_v62, %v25846_v40  ;;  %v25847_v39 = vld [vmem:[#allocation60_spill] sm:$0xff]  ;;  %v24410_v7 = vmul.f32 %v23938_v62, %v23893_v42  ;;  %v24414_v40 = vmul.f32 %v23938_v62, %v23897_v38 }
 0x6fb   : > { %25843 = vst [vmem:[#allocation44_spill] sm:$0xff] %v24382_v14  ;;  %v24398_v37 = vmul.f32 %v23938_v62, %v25847_v39  ;;  %v25848_v14 = vld [vmem:[#allocation61_spill] sm:$0xff]  ;;  %v24418_v39 = vmul.f32 %v23938_v62, %v23901_v8  ;;  %v24422_v57 = vmul.f32 %v23938_v62, %v23905_v50  ;;  %v24430_v42 = vmul.f32 %v23938_v62, %v23913_v45 }
 0x6fc   : > { %v24406_v23 = vmul.f32 %v23938_v62, %v25848_v14  ;;  %25849 = vst [vmem:[#allocation45_spill] sm:$0xff] %v24410_v7  ;;  %25850 = vst [vmem:[#allocation46_spill] sm:$0xff] %v24414_v40  ;;  %v24426_v14 = vmul.f32 %v23938_v62, %v23909_v33  ;;  %v25854_v7 = vld [vmem:[#allocation62_spill] sm:$0xff]  ;;  %v25855_v40 = vld [vmem:[#allocation63_spill] sm:$0xff] }
 0x6fd   : > { %25851 = vst [vmem:[#allocation47_spill] sm:$0xff] %v24418_v39  ;;  %25852 = vst [vmem:[#allocation48_spill] sm:$0xff] %v24422_v57  ;;  %v24434_v38 = vmul.f32 %v23938_v62, %v25854_v7  ;;  %v24438_v8 = vmul.f32 %v23938_v62, %v25855_v40  ;;  %v25856_v39 = vld [vmem:[#allocation64_spill] sm:$0xff]  ;;  %v25857_v57 = vld [vmem:[#allocation65_spill] sm:$0xff]  ;;  %v24459_v40 = vmul.f32 %v23938_v62, %v23942_v16 }
 0x6fe   : > { %25853 = vst [vmem:[#allocation49_spill] sm:$0xff] %v24426_v14  ;;  %v24442_v50 = vmul.f32 %v23938_v62, %v25856_v39  ;;  %v24446_v33 = vmul.f32 %v23938_v62, %v25857_v57  ;;  %v25858_v14 = vld [vmem:[#allocation66_spill] sm:$0xff]  ;;  %v24463_v39 = vmul.f32 %v23938_v62, %v23946_v56  ;;  %v24467_v57 = vmul.f32 %v23938_v62, %v23950_v18 }
 0x6ff   : > { %v24450_v45 = vmul.f32 %v23938_v62, %v25858_v14  ;;  %v24455_v7 = vld [vmem:[%s25127_s2 + $0x2] ss:$0 sm:$0xff]  ;;  %v24471_v14 = vmul.f32 %v23938_v62, %v23954_v53  ;;  %v24479_v16 = vmul.f32 %v23938_v62, %v23962_v20  ;;  %v24483_v56 = vmul.f32 %v23938_v62, %v23966_v3 }
 0x700   : > { %v24487_v18 = vmul.f32 %v23938_v62, %v23970_v54  ;;  %v24491_v53 = vadd.f32 %v24455_v7, %v23974_v24  ;;  %v24499_v20 = vadd.f32 %v24455_v7, %v23982_v22  ;;  %v24503_v3 = vadd.f32 %v24455_v7, %v23986_v61 }
 0x701   : > { %25859 = vst [vmem:[#allocation50_spill] sm:$0xff] %v24450_v45  ;;  %v24475_v45 = vmul.f32 %v23938_v62, %v23958_v28  ;;  %v24495_v28 = vadd.f32 %v24455_v7, %v23978_v59  ;;  %v24507_v62 = vadd.f32 %v24455_v7, %v23990_v19  ;;  %v24511_v54 = vadd.f32 %v24455_v7, %v23994_v48 }
 0x702   : > { %v24515_v24 = vadd.f32 %v24455_v7, %v23998_v47  ;;  %v24519_v59 = vadd.f32 %v24455_v7, %v24002_v17  ;;  %v24523_v22 = vadd.f32 %v24455_v7, %v24006_v4  ;;  %v24527_v61 = vadd.f32 %v24455_v7, %v24010_v31 }
 0x703   : > { %v24531_v19 = vadd.f32 %v24455_v7, %v24014_v1  ;;  %v24535_v48 = vadd.f32 %v24455_v7, %v24018_v21  ;;  %v24539_v47 = vadd.f32 %v24455_v7, %v24022_v0  ;;  %v24543_v17 = vadd.f32 %v24455_v7, %v24026_v15 }
 0x704   : > { %v24547_v4 = vadd.f32 %v24455_v7, %v24030_v35  ;;  %v24551_v31 = vadd.f32 %v24455_v7, %v24034_v25  ;;  %v24555_v1 = vadd.f32 %v24455_v7, %v24038_v46  ;;  %v24559_v21 = vadd.f32 %v24455_v7, %v24042_v58 }
 0x705   : > { %25860 = vst [vmem:[#allocation51_spill] sm:$0xff] %v24531_v19  ;;  %25861 = vst [vmem:[#allocation52_spill] sm:$0xff] %v24535_v48  ;;  %v24563_v0 = vadd.f32 %v24455_v7, %v24046_v32  ;;  %v24567_v15 = vadd.f32 %v24455_v7, %v24050_v60  ;;  %v24571_v35 = vadd.f32 %v24455_v7, %v24054_v34  ;;  %v25951_v48 = vld [vmem:[#allocation7_spill] sm:$0xff]  ;;  %v25988_v19 = vld [vmem:[#allocation42_spill] sm:$0xff] }
 0x706   : > { %25862 = vst [vmem:[#allocation53_spill] sm:$0xff] %v24539_v47  ;;  %25863 = vst [vmem:[#allocation54_spill] sm:$0xff] %v24543_v17  ;;  %v24575_v25 = vadd.f32 %v24455_v7, %v24058_v6  ;;  %v24579_v46 = vadd.f32 %v24455_v7, %v24062_v63  ;;  %v24583_v58 = vadd.f32 %v24455_v7, %v24066_v41  ;;  %v25943_v17 = vld [vmem:[#allocation3_spill] sm:$0xff]  ;;  %v25947_v47 = vld [vmem:[#allocation5_spill] sm:$0xff] }
 0x707   : > { %25864 = vst [vmem:[#allocation55_spill] sm:$0xff] %v24547_v4  ;;  %25865 = vst [vmem:[#allocation56_spill] sm:$0xff] %v24551_v31  ;;  %v24587_v32 = vadd.f32 %v24455_v7, %v24070_v55  ;;  %v24591_v60 = vadd.f32 %v24455_v7, %v24074_v52  ;;  %v24595_v34 = vadd.f32 %v24455_v7, %v24078_v36  ;;  %v25938_v31 = vld [vmem:[#allocation27_spill] sm:$0xff]  ;;  %v25940_v4 = vld [vmem:[#allocation29_spill] sm:$0xff] }
 0x708   : > { %25866 = vst [vmem:[#allocation57_spill] sm:$0xff] %v24555_v1  ;;  %25867 = vst [vmem:[#allocation58_spill] sm:$0xff] %v24559_v21  ;;  %v24599_v6 = vadd.f32 %v24455_v7, %v24082_v11  ;;  %v24603_v63 = vadd.f32 %v24455_v7, %v24086_v49  ;;  %v24607_v41 = vadd.f32 %v24455_v7, %v24090_v26  ;;  %v25907_v21 = vld [vmem:[#allocation88_spill] sm:$0xff]  ;;  %v25909_v1 = vld [vmem:[#allocation79_spill] sm:$0xff] }
 0x709   : > { %25868 = vst [vmem:[#allocation59_spill] sm:$0xff] %v24563_v0  ;;  %25869 = vst [vmem:[#allocation60_spill] sm:$0xff] %v24567_v15  ;;  %v24611_v55 = vadd.f32 %v24455_v7, %v24094_v30  ;;  %v24615_v52 = vadd.f32 %v24455_v7, %v24098_v44  ;;  %v24619_v36 = vadd.f32 %v24455_v7, %v24102_v9  ;;  %v25882_v44 = vld [vmem:[#allocation67_spill] sm:$0xff]  ;;  %v25903_v15 = vld [vmem:[#allocation86_spill] sm:$0xff] }
 0x70a   : > { %25870 = vst [vmem:[#allocation61_spill] sm:$0xff] %v24571_v35  ;;  %25871 = vst [vmem:[#allocation62_spill] sm:$0xff] %v24575_v25  ;;  %v24623_v11 = vadd.f32 %v24455_v7, %v24106_v2  ;;  %v24627_v49 = vadd.f32 %v24455_v7, %v24110_v27  ;;  %v24631_v26 = vadd.f32 %v24455_v7, %v24114_v5  ;;  %v25899_v25 = vld [vmem:[#allocation78_spill] sm:$0xff]  ;;  %v25901_v35 = vld [vmem:[#allocation85_spill] sm:$0xff] }
 0x70b   : > { %25872 = vst [vmem:[#allocation63_spill] sm:$0xff] %v24579_v46  ;;  %25873 = vst [vmem:[#allocation64_spill] sm:$0xff] %v24583_v58  ;;  %v24635_v30 = vadd.f32 %v24455_v7, %v24118_v51  ;;  %v24639_v9 = vadd.f32 %v24455_v7, %v25882_v44  ;;  %v25895_v58 = vld [vmem:[#allocation76_spill] sm:$0xff]  ;;  %v25897_v46 = vld [vmem:[#allocation77_spill] sm:$0xff] }
 0x70c   : > { %25874 = vst [vmem:[#allocation65_spill] sm:$0xff] %v24587_v32  ;;  %25875 = vst [vmem:[#allocation66_spill] sm:$0xff] %v24591_v60  ;;  %v25891_v60 = vld [vmem:[#allocation74_spill] sm:$0xff]  ;;  %v25893_v32 = vld [vmem:[#allocation75_spill] sm:$0xff] }
 0x70d   : > { %25876 = vst [vmem:[#allocation89_spill] sm:$0xff] %v24595_v34  ;;  %25877 = vst [vmem:[#allocation90_spill] sm:$0xff] %v24599_v6  ;;  %v25887_v6 = vld [vmem:[#allocation72_spill] sm:$0xff]  ;;  %v25889_v34 = vld [vmem:[#allocation73_spill] sm:$0xff] }
 0x70e   : > { %25878 = vst [vmem:[#allocation91_spill] sm:$0xff] %v24603_v63  ;;  %25879 = vst [vmem:[#allocation92_spill] sm:$0xff] %v24607_v41  ;;  %v25885_v41 = vld [vmem:[#allocation70_spill] sm:$0xff]  ;;  %v25886_v63 = vld [vmem:[#allocation71_spill] sm:$0xff]  ;;  %v24659_v44 = vadd.f32 %v24455_v7, %v25887_v6  ;;  %v24679_v6 = vadd.f32 %v24455_v7, %v25897_v46  ;;  %v24699_v46 = vadd.f32 %v24455_v7, %v25907_v21 }
 0x70f   : > { %25880 = vst [vmem:[#allocation93_spill] sm:$0xff] %v24611_v55  ;;  %25881 = vst [vmem:[#allocation94_spill] sm:$0xff] %v24615_v52  ;;  %v25883_v52 = vld [vmem:[#allocation68_spill] sm:$0xff]  ;;  %v25884_v55 = vld [vmem:[#allocation69_spill] sm:$0xff]  ;;  %v24651_v5 = vadd.f32 %v24455_v7, %v25885_v41  ;;  %v24655_v51 = vadd.f32 %v24455_v7, %v25886_v63  ;;  %v24671_v41 = vadd.f32 %v24455_v7, %v25893_v32 }
 0x710   : > { %v24643_v2 = vadd.f32 %v24455_v7, %v25883_v52  ;;  %v24647_v27 = vadd.f32 %v24455_v7, %v25884_v55  ;;  %25888 = vst [vmem:[#allocation67_spill] sm:$0xff] %v24659_v44  ;;  %v24663_v52 = vadd.f32 %v24455_v7, %v25889_v34  ;;  %v24667_v55 = vadd.f32 %v24455_v7, %v25891_v60  ;;  %v25905_v0 = vld [vmem:[#allocation87_spill] sm:$0xff] }
 0x711   : > { %25894 = vst [vmem:[#allocation70_spill] sm:$0xff] %v24671_v41  ;;  %v24675_v63 = vadd.f32 %v24455_v7, %v25895_v58  ;;  %25898 = vst [vmem:[#allocation72_spill] sm:$0xff] %v24679_v6  ;;  %v24683_v34 = vadd.f32 %v24455_v7, %v25899_v25  ;;  %v24687_v60 = vadd.f32 %v24455_v7, %v25901_v35  ;;  %v25937_v6 = vld [vmem:[#allocation26_spill] sm:$0xff] }
 0x712   : > { %25890 = vst [vmem:[#allocation68_spill] sm:$0xff] %v24663_v52  ;;  %25892 = vst [vmem:[#allocation69_spill] sm:$0xff] %v24667_v55  ;;  %v24691_v32 = vadd.f32 %v24455_v7, %v25903_v15  ;;  %v24695_v58 = vadd.f32 %v24455_v7, %v25905_v0  ;;  %v24703_v25 = vadd.f32 %v24455_v7, %v25909_v1  ;;  %v25941_v41 = vld [vmem:[#allocation2_spill] sm:$0xff]  ;;  %v25945_v55 = vld [vmem:[#allocation4_spill] sm:$0xff] }
 0x713   : > { %25896 = vst [vmem:[#allocation71_spill] sm:$0xff] %v24675_v63  ;;  %25900 = vst [vmem:[#allocation73_spill] sm:$0xff] %v24683_v34  ;;  %v25911_v34 = vld [vmem:[#allocation80_spill] sm:$0xff]  ;;  %v25949_v52 = vld [vmem:[#allocation6_spill] sm:$0xff] }
 0x714   : > { %25902 = vst [vmem:[#allocation74_spill] sm:$0xff] %v24687_v60  ;;  %25904 = vst [vmem:[#allocation75_spill] sm:$0xff] %v24691_v32  ;;  %v24707_v35 = vadd.f32 %v24455_v7, %v25911_v34  ;;  %v25913_v60 = vld [vmem:[#allocation81_spill] sm:$0xff]  ;;  %v25915_v32 = vld [vmem:[#allocation82_spill] sm:$0xff] }
 0x715   : > { %25906 = vst [vmem:[#allocation76_spill] sm:$0xff] %v24695_v58  ;;  %25908 = vst [vmem:[#allocation77_spill] sm:$0xff] %v24699_v46  ;;  %v24711_v15 = vadd.f32 %v24455_v7, %v25913_v60  ;;  %v24715_v0 = vadd.f32 %v24455_v7, %v25915_v32  ;;  %v25917_v58 = vld [vmem:[#allocation83_spill] sm:$0xff]  ;;  %v25919_v46 = vld [vmem:[#allocation84_spill] sm:$0xff] }
 0x716   : > { %25910 = vst [vmem:[#allocation78_spill] sm:$0xff] %v24703_v25  ;;  %25912 = vst [vmem:[#allocation85_spill] sm:$0xff] %v24707_v35  ;;  %v24719_v21 = vadd.f32 %v24455_v7, %v25917_v58  ;;  %v24723_v1 = vadd.f32 %v24455_v7, %v25919_v46  ;;  %v25921_v25 = vld [vmem:[#allocation15_spill] sm:$0xff]  ;;  %v25923_v35 = vld [vmem:[#allocation16_spill] sm:$0xff] }
 0x717   : > { %25914 = vst [vmem:[#allocation86_spill] sm:$0xff] %v24711_v15  ;;  %25916 = vst [vmem:[#allocation87_spill] sm:$0xff] %v24715_v0  ;;  %v24727_v34 = vadd.f32 %v24455_v7, %v25921_v25  ;;  %v24731_v60 = vadd.f32 %v24455_v7, %v25923_v35  ;;  %v25925_v15 = vld [vmem:[#allocation17_spill] sm:$0xff]  ;;  %v25927_v0 = vld [vmem:[#allocation18_spill] sm:$0xff] }
 0x718   : > { %25918 = vst [vmem:[#allocation88_spill] sm:$0xff] %v24719_v21  ;;  %25920 = vst [vmem:[#allocation79_spill] sm:$0xff] %v24723_v1  ;;  %v24735_v32 = vadd.f32 %v24455_v7, %v25925_v15  ;;  %v24739_v58 = vadd.f32 %v24455_v7, %v25927_v0  ;;  %v25929_v21 = vld [vmem:[#allocation19_spill] sm:$0xff]  ;;  %v25931_v1 = vld [vmem:[#allocation20_spill] sm:$0xff] }
 0x719   : > { %25922 = vst [vmem:[#allocation80_spill] sm:$0xff] %v24727_v34  ;;  %25924 = vst [vmem:[#allocation81_spill] sm:$0xff] %v24731_v60  ;;  %v24743_v46 = vadd.f32 %v24455_v7, %v25929_v21  ;;  %v24747_v25 = vadd.f32 %v24455_v7, %v25931_v1  ;;  %v25932_v34 = vld [vmem:[#allocation21_spill] sm:$0xff]  ;;  %v25933_v60 = vld [vmem:[#allocation22_spill] sm:$0xff] }
 0x71a   : > { %25926 = vst [vmem:[#allocation82_spill] sm:$0xff] %v24735_v32  ;;  %25928 = vst [vmem:[#allocation83_spill] sm:$0xff] %v24739_v58  ;;  %v24751_v35 = vadd.f32 %v24455_v7, %v25932_v34  ;;  %v24755_v15 = vadd.f32 %v24455_v7, %v25933_v60  ;;  %v25934_v32 = vld [vmem:[#allocation23_spill] sm:$0xff]  ;;  %v25935_v58 = vld [vmem:[#allocation24_spill] sm:$0xff]  ;;  %v24771_v34 = vadd.f32 %v24455_v7, %v25937_v6 }
 0x71b   : > { %25930 = vst [vmem:[#allocation84_spill] sm:$0xff] %v24743_v46  ;;  %v24759_v0 = vadd.f32 %v24455_v7, %v25934_v32  ;;  %v24763_v21 = vadd.f32 %v24455_v7, %v25935_v58  ;;  %v25936_v46 = vld [vmem:[#allocation25_spill] sm:$0xff]  ;;  %v24775_v60 = vadd.f32 %v24455_v7, %v25938_v31  ;;  %v25939_v63 = vld [vmem:[#allocation28_spill] sm:$0xff]  ;;  %v24783_v58 = vadd.f32 %v24455_v7, %v25940_v4 }
 0x71c   : > { %v24767_v1 = vadd.f32 %v24455_v7, %v25936_v46  ;;  %v24779_v32 = vadd.f32 %v24455_v7, %v25939_v63  ;;  %v24787_v46 = vadd.f32 %v24455_v7, %v25941_v41  ;;  %v24791_v6 = vadd.f32 %v24455_v7, %v25943_v17 }
 0x71d   : > { %v24795_v31 = vadd.f32 %v24455_v7, %v25945_v55  ;;  %v24799_v63 = vadd.f32 %v24455_v7, %v25947_v47  ;;  %v24803_v4 = vadd.f32 %v24455_v7, %v25949_v52  ;;  %v24807_v41 = vadd.f32 %v24455_v7, %v25951_v48 }
 0x71e   : > { %25942 = vst [vmem:[#allocation15_spill] sm:$0xff] %v24787_v46  ;;  %25944 = vst [vmem:[#allocation16_spill] sm:$0xff] %v24791_v6  ;;  %v25953_v46 = vld [vmem:[#allocation8_spill] sm:$0xff]  ;;  %v25955_v6 = vld [vmem:[#allocation9_spill] sm:$0xff] }
 0x71f   : > { %25946 = vst [vmem:[#allocation17_spill] sm:$0xff] %v24795_v31  ;;  %25948 = vst [vmem:[#allocation18_spill] sm:$0xff] %v24799_v63  ;;  %v24811_v17 = vadd.f32 %v24455_v7, %v25953_v46  ;;  %v24815_v55 = vadd.f32 %v24455_v7, %v25955_v6  ;;  %v25957_v31 = vld [vmem:[#allocation10_spill] sm:$0xff]  ;;  %v25959_v63 = vld [vmem:[#allocation11_spill] sm:$0xff] }
 0x720   : > { %25950 = vst [vmem:[#allocation19_spill] sm:$0xff] %v24803_v4  ;;  %25952 = vst [vmem:[#allocation20_spill] sm:$0xff] %v24807_v41  ;;  %v24819_v47 = vadd.f32 %v24455_v7, %v25957_v31  ;;  %v24823_v52 = vadd.f32 %v24455_v7, %v25959_v63  ;;  %v25961_v4 = vld [vmem:[#allocation12_spill] sm:$0xff]  ;;  %v25963_v41 = vld [vmem:[#allocation13_spill] sm:$0xff] }
 0x721   : > { %25954 = vst [vmem:[#allocation21_spill] sm:$0xff] %v24811_v17  ;;  %25956 = vst [vmem:[#allocation22_spill] sm:$0xff] %v24815_v55  ;;  %v24827_v48 = vadd.f32 %v24455_v7, %v25961_v4  ;;  %v24831_v46 = vadd.f32 %v24455_v7, %v25963_v41  ;;  %v25965_v17 = vld [vmem:[#allocation14_spill] sm:$0xff] }
 0x722   : > { %25958 = vst [vmem:[#allocation23_spill] sm:$0xff] %v24819_v47  ;;  %25960 = vst [vmem:[#allocation24_spill] sm:$0xff] %v24823_v52  ;;  %v24835_v6 = vadd.f32 %v24455_v7, %v25965_v17  ;;  %v25967_v55 = vld [vmem:[#allocation30_spill] sm:$0xff]  ;;  %v25969_v47 = vld [vmem:[#allocation31_spill] sm:$0xff] }
 0x723   : > { %25962 = vst [vmem:[#allocation25_spill] sm:$0xff] %v24827_v48  ;;  %25964 = vst [vmem:[#allocation26_spill] sm:$0xff] %v24831_v46  ;;  %v24839_v31 = vadd.f32 %v24455_v7, %v25967_v55  ;;  %v24843_v63 = vadd.f32 %v24455_v7, %v25969_v47  ;;  %v25971_v52 = vld [vmem:[#allocation32_spill] sm:$0xff]  ;;  %v25973_v48 = vld [vmem:[#allocation33_spill] sm:$0xff] }
 0x724   : > { %25966 = vst [vmem:[#allocation27_spill] sm:$0xff] %v24835_v6  ;;  %v24847_v4 = vadd.f32 %v24455_v7, %v25971_v52  ;;  %v24851_v41 = vadd.f32 %v24455_v7, %v25973_v48  ;;  %v25975_v46 = vld [vmem:[#allocation34_spill] sm:$0xff]  ;;  %v25977_v6 = vld [vmem:[#allocation35_spill] sm:$0xff] }
 0x725   : > { %25968 = vst [vmem:[#allocation28_spill] sm:$0xff] %v24839_v31  ;;  %25970 = vst [vmem:[#allocation29_spill] sm:$0xff] %v24843_v63  ;;  %v24855_v17 = vadd.f32 %v24455_v7, %v25975_v46  ;;  %v24859_v55 = vadd.f32 %v24455_v7, %v25977_v6  ;;  %v25979_v31 = vld [vmem:[#allocation36_spill] sm:$0xff]  ;;  %v25981_v63 = vld [vmem:[#allocation37_spill] sm:$0xff] }
 0x726   : > { %25972 = vst [vmem:[#allocation2_spill] sm:$0xff] %v24847_v4  ;;  %25974 = vst [vmem:[#allocation3_spill] sm:$0xff] %v24851_v41  ;;  %v24863_v47 = vadd.f32 %v24455_v7, %v25979_v31  ;;  %v24867_v52 = vadd.f32 %v24455_v7, %v25981_v63  ;;  %v25983_v4 = vld [vmem:[#allocation38_spill] sm:$0xff]  ;;  %v25985_v41 = vld [vmem:[#allocation39_spill] sm:$0xff]  ;;  %v13069_v31 = vadd.f32 %v24455_v7, %v25988_v19 }
 0x727   : > { %25976 = vst [vmem:[#allocation4_spill] sm:$0xff] %v24855_v17  ;;  %25978 = vst [vmem:[#allocation5_spill] sm:$0xff] %v24859_v55  ;;  %v24871_v48 = vadd.f32 %v24455_v7, %v25983_v4  ;;  %v13066_v46 = vadd.f32 %v24455_v7, %v25985_v41  ;;  %v25986_v17 = vld [vmem:[#allocation40_spill] sm:$0xff]  ;;  %v25987_v6 = vld [vmem:[#allocation41_spill] sm:$0xff]  ;;  %v24887_v4 = vadd.f32 %v24455_v7, %v24378_v29 }
 0x728   : > { %25980 = vst [vmem:[#allocation6_spill] sm:$0xff] %v24863_v47  ;;  %25982 = vst [vmem:[#allocation7_spill] sm:$0xff] %v24867_v52  ;;  %v13067_v44 = vadd.f32 %v24455_v7, %v25986_v17  ;;  %v13068_v55 = vadd.f32 %v24455_v7, %v25987_v6  ;;  %v25989_v47 = vld [vmem:[#allocation43_spill] sm:$0xff]  ;;  %v24895_v17 = vadd.f32 %v24455_v7, %v24386_v43  ;;  %v25995_v52 = vld [vmem:[#allocation46_spill] sm:$0xff] }
 0x729   : > { %25984 = vst [vmem:[#allocation8_spill] sm:$0xff] %v24871_v48  ;;  %v24883_v63 = vadd.f32 %v24455_v7, %v25989_v47  ;;  %v25990_v48 = vld [vmem:[#allocation44_spill] sm:$0xff]  ;;  %v24899_v6 = vadd.f32 %v24455_v7, %v24390_v12  ;;  %v24903_v19 = vadd.f32 %v24455_v7, %v24394_v10  ;;  %v24907_v29 = vadd.f32 %v24455_v7, %v24398_v37 }
 0x72a   : > { %v24891_v41 = vadd.f32 %v24455_v7, %v25990_v48  ;;  %v24911_v47 = vadd.f32 %v24455_v7, %v24402_v13  ;;  %v24915_v43 = vadd.f32 %v24455_v7, %v24406_v23  ;;  %v25994_v48 = vld [vmem:[#allocation45_spill] sm:$0xff]  ;;  %v24923_v10 = vadd.f32 %v24455_v7, %v25995_v52 }
 0x72b   : > { %25991 = vst [vmem:[#allocation9_spill] sm:$0xff] %v24903_v19  ;;  %25992 = vst [vmem:[#allocation10_spill] sm:$0xff] %v24907_v29  ;;  %v24919_v12 = vadd.f32 %v24455_v7, %v25994_v48  ;;  %v25996_v19 = vld [vmem:[#allocation47_spill] sm:$0xff]  ;;  %v25997_v29 = vld [vmem:[#allocation48_spill] sm:$0xff]  ;;  %v24939_v48 = vadd.f32 %v24455_v7, %v24430_v42  ;;  %v24943_v52 = vadd.f32 %v24455_v7, %v24434_v38  ;;  %v13099_v38 = vmax.f32 %v24495_v28, 0.0 }
 0x72c   : > { %25993 = vst [vmem:[#allocation11_spill] sm:$0xff] %v24911_v47  ;;  %v24927_v37 = vadd.f32 %v24455_v7, %v25996_v19  ;;  %v24931_v13 = vadd.f32 %v24455_v7, %v25997_v29  ;;  %v25999_v47 = vld [vmem:[#allocation49_spill] sm:$0xff]  ;;  %v24947_v19 = vadd.f32 %v24455_v7, %v24438_v8  ;;  %v24951_v29 = vadd.f32 %v24455_v7, %v24442_v50 }
 0x72d   : > { %v24935_v23 = vadd.f32 %v24455_v7, %v25999_v47  ;;  %26001 = vst [vmem:[#allocation14_spill] sm:$0xff] %v24939_v48  ;;  %26002 = vst [vmem:[#allocation30_spill] sm:$0xff] %v24943_v52  ;;  %v24955_v47 = vadd.f32 %v24455_v7, %v24446_v33  ;;  %v13098_v48 = vmax.f32 %v24491_v53, 0.0  ;;  %v13130_v52 = vmax.f32 %v24619_v36, 0.0 }
 0x72e   : > { %25998 = vst [vmem:[#allocation12_spill] sm:$0xff] %v24931_v13  ;;  %26003 = vst [vmem:[#allocation31_spill] sm:$0xff] %v24947_v19  ;;  %v13131_v8 = vmax.f32 %v24623_v11, 0.0  ;;  %v13162_v19 = vmax.f32 %v24747_v25, 0.0  ;;  %v13163_v50 = vmax.f32 %v24751_v35, 0.0  ;;  %v13195_v13 = vmax.f32 %v13067_v44, 0.0 }
 0x72f   : > { %26000 = vst [vmem:[#allocation13_spill] sm:$0xff] %v24935_v23  ;;  %26004 = vst [vmem:[#allocation32_spill] sm:$0xff] %v24951_v29  ;;  %v26005_v23 = vld [vmem:[#allocation50_spill] sm:$0xff]  ;;  %v13194_v29 = vmax.f32 %v13066_v46, 0.0  ;;  %v24969_v33 = vadd.f32 %v24455_v7, %v24459_v40  ;;  %v24977_v53 = vadd.f32 %v24455_v7, %v24467_v57  ;;  %v24981_v28 = vadd.f32 %v24455_v7, %v24471_v14 }
 0x730   : > { %v24959_v42 = vadd.f32 %v24455_v7, %v26005_v23  ;;  %v24973_v23 = vadd.f32 %v24455_v7, %v24463_v39  ;;  %v24985_v36 = vadd.f32 %v24455_v7, %v24475_v45  ;;  %v24989_v40 = vadd.f32 %v24455_v7, %v24479_v16 }
 0x731   : > { %v24993_v39 = vadd.f32 %v24455_v7, %v24483_v56  ;;  %v24997_v57 = vadd.f32 %v24455_v7, %v24487_v18  ;;  %v13100_v11 = vmax.f32 %v24499_v20, 0.0  ;;  %v13132_v14 = vmax.f32 %v24627_v49, 0.0 }
 0x732   : > { %26006 = vst [vmem:[#allocation33_spill] sm:$0xff] %v24985_v36  ;;  %26007 = vst [vmem:[#allocation34_spill] sm:$0xff] %v24989_v40  ;;  %v13164_v44 = vmax.f32 %v24755_v15, 0.0  ;;  %v13196_v45 = vmax.f32 %v13068_v55, 0.0  ;;  %v13226_v25 = vadd.f32 %v13099_v38, %v13098_v48  ;;  %v13263_v35 = vadd.f32 %v13131_v8, %v13130_v52 }
 0x733   : > { %26008 = vst [vmem:[#allocation35_spill] sm:$0xff] %v24993_v39  ;;  %26009 = vst [vmem:[#allocation36_spill] sm:$0xff] %v24997_v57  ;;  %v13300_v46 = vadd.f32 %v13163_v50, %v13162_v19  ;;  %v13337_v16 = vadd.f32 %v13195_v13, %v13194_v29  ;;  %v13101_v40 = vmax.f32 %v24503_v3, 0.0  ;;  %v13133_v56 = vmax.f32 %v24631_v26, 0.0 }
 0x734   : > { %v13165_v39 = vmax.f32 %v24759_v0, 0.0  ;;  %v13197_v36 = vmax.f32 %v13069_v31, 0.0  ;;  %v13227_v7 = vadd.f32 %v13226_v25, %v13100_v11  ;;  %v13264_v18 = vadd.f32 %v13263_v35, %v13132_v14 }
 0x735   : > { %v13301_v57 = vadd.f32 %v13300_v46, %v13164_v44  ;;  %v13338_v20 = vadd.f32 %v13337_v16, %v13196_v45  ;;  %v13102_v49 = vmax.f32 %v24507_v62, 0.0  ;;  %v13134_v15 = vmax.f32 %v24635_v30, 0.0 }
 0x736   : > { %v13166_v55 = vmax.f32 %v24763_v21, 0.0  ;;  %v13198_v48 = vmax.f32 %v24883_v63, 0.0  ;;  %v13228_v13 = vadd.f32 %v13227_v7, %v13101_v40  ;;  %v13265_v52 = vadd.f32 %v13264_v18, %v13133_v56  ;;  %v26010_v56 = vld [vmem:[#allocation9_spill] sm:$0xff] }
 0x737   : > { %v13302_v3 = vadd.f32 %v13301_v57, %v13165_v39  ;;  %v13339_v19 = vadd.f32 %v13338_v20, %v13197_v36  ;;  %v13103_v26 = vmax.f32 %v24511_v54, 0.0  ;;  %v13135_v0 = vmax.f32 %v24639_v9, 0.0 }
 0x738   : > { %v13167_v31 = vmax.f32 %v24767_v1, 0.0  ;;  %v13199_v29 = vmax.f32 %v24887_v4, 0.0  ;;  %v13229_v38 = vadd.f32 %v13228_v13, %v13102_v49  ;;  %v13266_v62 = vadd.f32 %v13265_v52, %v13134_v15  ;;  %v26011_v49 = vld [vmem:[#allocation51_spill] sm:$0xff]  ;;  %v26014_v13 = vld [vmem:[#allocation10_spill] sm:$0xff] }
 0x739   : > { %v13303_v8 = vadd.f32 %v13302_v3, %v13166_v55  ;;  %v13340_v30 = vadd.f32 %v13339_v19, %v13198_v48  ;;  %v13104_v21 = vmax.f32 %v24515_v24, 0.0  ;;  %v13136_v63 = vmax.f32 %v24643_v2, 0.0  ;;  %v26012_v15 = vld [vmem:[#allocation67_spill] sm:$0xff] }
 0x73a   : > { %v13168_v50 = vmax.f32 %v24771_v34, 0.0  ;;  %v13200_v36 = vmax.f32 %v24891_v41, 0.0  ;;  %v13230_v40 = vadd.f32 %v13229_v38, %v13103_v26  ;;  %v13267_v54 = vadd.f32 %v13266_v62, %v13135_v0  ;;  %v26013_v55 = vld [vmem:[#allocation15_spill] sm:$0xff]  ;;  %v26015_v26 = vld [vmem:[#allocation52_spill] sm:$0xff] }
 0x73b   : > { %v13304_v39 = vadd.f32 %v13303_v8, %v13167_v31  ;;  %v13341_v9 = vadd.f32 %v13340_v30, %v13199_v29  ;;  %v13105_v1 = vmax.f32 %v24519_v59, 0.0  ;;  %v13137_v4 = vmax.f32 %v24647_v27, 0.0  ;;  %v26016_v0 = vld [vmem:[#allocation68_spill] sm:$0xff]  ;;  %v26018_v62 = vld [vmem:[#allocation11_spill] sm:$0xff] }
 0x73c   : > { %v13169_v57 = vmax.f32 %v24775_v60, 0.0  ;;  %v13201_v11 = vmax.f32 %v24895_v17, 0.0  ;;  %v13231_v14 = vadd.f32 %v13230_v40, %v13104_v21  ;;  %v13268_v24 = vadd.f32 %v13267_v54, %v13136_v63  ;;  %v26017_v29 = vld [vmem:[#allocation16_spill] sm:$0xff]  ;;  %v26020_v54 = vld [vmem:[#allocation69_spill] sm:$0xff] }
 0x73d   : > { %v13305_v44 = vadd.f32 %v13304_v39, %v13168_v50  ;;  %v13342_v2 = vadd.f32 %v13341_v9, %v13200_v36  ;;  %v13106_v34 = vmax.f32 %v24523_v22, 0.0  ;;  %v13138_v41 = vmax.f32 %v24651_v5, 0.0  ;;  %v26019_v36 = vld [vmem:[#allocation53_spill] sm:$0xff] }
 0x73e   : > { %v13170_v45 = vmax.f32 %v24779_v32, 0.0  ;;  %v13202_v25 = vmax.f32 %v24899_v6, 0.0  ;;  %v13232_v35 = vadd.f32 %v13231_v14, %v13105_v1  ;;  %v13269_v59 = vadd.f32 %v13268_v24, %v13137_v4  ;;  %v26021_v9 = vld [vmem:[#allocation17_spill] sm:$0xff] }
 0x73f   : > { %v13306_v46 = vadd.f32 %v13305_v44, %v13169_v57  ;;  %v13343_v27 = vadd.f32 %v13342_v2, %v13201_v11  ;;  %v13107_v60 = vmax.f32 %v24527_v61, 0.0  ;;  %v13139_v17 = vmax.f32 %v24655_v51, 0.0  ;;  %v26022_v44 = vld [vmem:[#allocation54_spill] sm:$0xff] }
 0x740   : > { %v13171_v16 = vmax.f32 %v24783_v58, 0.0  ;;  %v13203_v7 = vmax.f32 %v26010_v56, 0.0  ;;  %v13233_v18 = vadd.f32 %v13232_v35, %v13106_v34  ;;  %v13270_v22 = vadd.f32 %v13269_v59, %v13138_v41  ;;  %v26023_v34 = vld [vmem:[#allocation70_spill] sm:$0xff]  ;;  %v26026_v56 = vld [vmem:[#allocation71_spill] sm:$0xff] }
 0x741   : > { %v13307_v20 = vadd.f32 %v13306_v46, %v13170_v45  ;;  %v13344_v5 = vadd.f32 %v13343_v27, %v13202_v25  ;;  %v13108_v32 = vmax.f32 %v26011_v49, 0.0  ;;  %v13140_v6 = vmax.f32 %v26012_v15, 0.0  ;;  %v26024_v45 = vld [vmem:[#allocation18_spill] sm:$0xff]  ;;  %v26028_v15 = vld [vmem:[#allocation56_spill] sm:$0xff] }
 0x742   : > { %v13172_v48 = vmax.f32 %v26013_v55, 0.0  ;;  %v13204_v52 = vmax.f32 %v26014_v13, 0.0  ;;  %v13234_v3 = vadd.f32 %v13233_v18, %v13107_v60  ;;  %v13271_v61 = vadd.f32 %v13270_v22, %v13139_v17  ;;  %v26025_v17 = vld [vmem:[#allocation55_spill] sm:$0xff]  ;;  %v26029_v55 = vld [vmem:[#allocation72_spill] sm:$0xff] }
 0x743   : > { %v13308_v19 = vadd.f32 %v13307_v20, %v13171_v16  ;;  %v13345_v51 = vadd.f32 %v13344_v5, %v13203_v7  ;;  %v13109_v58 = vmax.f32 %v26015_v26, 0.0  ;;  %v13141_v31 = vmax.f32 %v26016_v0, 0.0  ;;  %v26027_v7 = vld [vmem:[#allocation19_spill] sm:$0xff]  ;;  %v26031_v26 = vld [vmem:[#allocation57_spill] sm:$0xff] }
 0x744   : > { %v13173_v38 = vmax.f32 %v26017_v29, 0.0  ;;  %v13205_v8 = vmax.f32 %v26018_v62, 0.0  ;;  %v13235_v30 = vadd.f32 %v13234_v3, %v13108_v32  ;;  %v13272_v21 = vadd.f32 %v13271_v61, %v13140_v6  ;;  %v26032_v0 = vld [vmem:[#allocation73_spill] sm:$0xff] }
 0x745   : > { %v13309_v63 = vadd.f32 %v13308_v19, %v13172_v48  ;;  %v13346_v50 = vadd.f32 %v13345_v51, %v13204_v52  ;;  %v13110_v40 = vmax.f32 %v26019_v36, 0.0  ;;  %v13142_v39 = vmax.f32 %v26020_v54, 0.0  ;;  %v26030_v48 = vld [vmem:[#allocation20_spill] sm:$0xff]  ;;  %v26037_v54 = vld [vmem:[#allocation22_spill] sm:$0xff] }
 0x746   : > { %v13174_v1 = vmax.f32 %v26021_v9, 0.0  ;;  %v13206_v4 = vmax.f32 %v24915_v43, 0.0  ;;  %v13236_v57 = vadd.f32 %v13235_v30, %v13109_v58  ;;  %v13273_v11 = vadd.f32 %v13272_v21, %v13141_v31  ;;  %v26033_v31 = vld [vmem:[#allocation21_spill] sm:$0xff] }
 0x747   : > { %v13310_v14 = vadd.f32 %v13309_v63, %v13173_v38  ;;  %v13347_v24 = vadd.f32 %v13346_v50, %v13205_v8  ;;  %v13111_v2 = vmax.f32 %v26022_v44, 0.0  ;;  %v13143_v41 = vmax.f32 %v26023_v34, 0.0  ;;  %v26034_v38 = vld [vmem:[#allocation12_spill] sm:$0xff]  ;;  %v26035_v50 = vld [vmem:[#allocation58_spill] sm:$0xff]  ;;  %v26038_v9 = vld [vmem:[#allocation13_spill] sm:$0xff] }
 0x748   : > { %v13175_v25 = vmax.f32 %v26024_v45, 0.0  ;;  %v13207_v35 = vmax.f32 %v24919_v12, 0.0  ;;  %v13237_v59 = vadd.f32 %v13236_v57, %v13110_v40  ;;  %v13274_v46 = vadd.f32 %v13273_v11, %v13142_v39  ;;  %v26036_v40 = vld [vmem:[#allocation74_spill] sm:$0xff] }
 0x749   : > { %v13311_v27 = vadd.f32 %v13310_v14, %v13174_v1  ;;  %v13348_v60 = vadd.f32 %v13347_v24, %v13206_v4  ;;  %v13112_v16 = vmax.f32 %v26025_v17, 0.0  ;;  %v13144_v43 = vmax.f32 %v26026_v56, 0.0  ;;  %v26039_v24 = vld [vmem:[#allocation59_spill] sm:$0xff]  ;;  %v26043_v17 = vld [vmem:[#allocation60_spill] sm:$0xff] }
 0x74a   : > { %v13176_v18 = vmax.f32 %v26027_v7, 0.0  ;;  %v13208_v22 = vmax.f32 %v24923_v10, 0.0  ;;  %v13238_v20 = vadd.f32 %v13237_v59, %v13111_v2  ;;  %v13275_v5 = vadd.f32 %v13274_v46, %v13143_v41  ;;  %v26040_v2 = vld [vmem:[#allocation75_spill] sm:$0xff]  ;;  %v26044_v56 = vld [vmem:[#allocation76_spill] sm:$0xff] }
 0x74b   : > { %v13312_v49 = vadd.f32 %v13311_v27, %v13175_v25  ;;  %v13349_v32 = vadd.f32 %v13348_v60, %v13207_v35  ;;  %v13113_v6 = vmax.f32 %v26028_v15, 0.0  ;;  %v13145_v12 = vmax.f32 %v26029_v55, 0.0  ;;  %v26041_v41 = vld [vmem:[#allocation23_spill] sm:$0xff]  ;;  %v26042_v25 = vld [vmem:[#allocation14_spill] sm:$0xff]  ;;  %v26045_v7 = vld [vmem:[#allocation24_spill] sm:$0xff] }
 0x74c   : > { %v13177_v13 = vmax.f32 %v26030_v48, 0.0  ;;  %v13209_v52 = vmax.f32 %v24927_v37, 0.0  ;;  %v13239_v3 = vadd.f32 %v13238_v20, %v13112_v16  ;;  %v13276_v61 = vadd.f32 %v13275_v5, %v13144_v43 }
 0x74d   : > { %v13313_v19 = vadd.f32 %v13312_v49, %v13176_v18  ;;  %v13350_v51 = vadd.f32 %v13349_v32, %v13208_v22  ;;  %v13114_v58 = vmax.f32 %v26031_v26, 0.0  ;;  %v13146_v10 = vmax.f32 %v26032_v0, 0.0  ;;  %v26046_v22 = vld [vmem:[#allocation30_spill] sm:$0xff] }
 0x74e   : > { %v13178_v29 = vmax.f32 %v26033_v31, 0.0  ;;  %v13210_v62 = vmax.f32 %v26034_v38, 0.0  ;;  %v13240_v8 = vadd.f32 %v13239_v3, %v13113_v6  ;;  %v13277_v30 = vadd.f32 %v13276_v61, %v13145_v12  ;;  %v26047_v6 = vld [vmem:[#allocation61_spill] sm:$0xff]  ;;  %v26050_v3 = vld [vmem:[#allocation31_spill] sm:$0xff]  ;;  %v26051_v0 = vld [vmem:[#allocation62_spill] sm:$0xff] }
 0x74f   : > { %v13314_v21 = vadd.f32 %v13313_v19, %v13177_v13  ;;  %v13351_v63 = vadd.f32 %v13350_v51, %v13209_v52  ;;  %v13115_v36 = vmax.f32 %v26035_v50, 0.0  ;;  %v13147_v37 = vmax.f32 %v26036_v40, 0.0  ;;  %v26048_v12 = vld [vmem:[#allocation77_spill] sm:$0xff]  ;;  %v26052_v31 = vld [vmem:[#allocation78_spill] sm:$0xff]  ;;  %v26055_v40 = vld [vmem:[#allocation63_spill] sm:$0xff] }
 0x750   : > { %v13179_v39 = vmax.f32 %v26037_v54, 0.0  ;;  %v13211_v1 = vmax.f32 %v26038_v9, 0.0  ;;  %v13241_v4 = vadd.f32 %v13240_v8, %v13114_v58  ;;  %v13278_v57 = vadd.f32 %v13277_v30, %v13146_v10  ;;  %v26049_v13 = vld [vmem:[#allocation25_spill] sm:$0xff]  ;;  %v26053_v38 = vld [vmem:[#allocation26_spill] sm:$0xff]  ;;  %v26054_v8 = vld [vmem:[#allocation32_spill] sm:$0xff] }
 0x751   : > { %v13315_v11 = vadd.f32 %v13314_v21, %v13178_v29  ;;  %v13352_v14 = vadd.f32 %v13351_v63, %v13210_v62  ;;  %v13116_v44 = vmax.f32 %v26039_v24, 0.0  ;;  %v13148_v34 = vmax.f32 %v26040_v2, 0.0  ;;  %v26056_v54 = vld [vmem:[#allocation85_spill] sm:$0xff]  ;;  %v26057_v9 = vld [vmem:[#allocation27_spill] sm:$0xff] }
 0x752   : > { %v13180_v45 = vmax.f32 %v26041_v41, 0.0  ;;  %v13212_v35 = vmax.f32 %v26042_v25, 0.0  ;;  %v13242_v59 = vadd.f32 %v13241_v4, %v13115_v36  ;;  %v13279_v46 = vadd.f32 %v13278_v57, %v13147_v37 }
 0x753   : > { %v13316_v27 = vadd.f32 %v13315_v11, %v13179_v39  ;;  %v13353_v60 = vadd.f32 %v13352_v14, %v13211_v1  ;;  %v13117_v16 = vmax.f32 %v26043_v17, 0.0  ;;  %v13149_v43 = vmax.f32 %v26044_v56, 0.0  ;;  %v26061_v17 = vld [vmem:[#allocation65_spill] sm:$0xff]  ;;  %v26062_v56 = vld [vmem:[#allocation87_spill] sm:$0xff] }
 0x754   : > { %v13181_v18 = vmax.f32 %v26045_v7, 0.0  ;;  %v13213_v20 = vmax.f32 %v26046_v22, 0.0  ;;  %v13243_v5 = vadd.f32 %v13242_v59, %v13116_v44  ;;  %v13280_v49 = vadd.f32 %v13279_v46, %v13148_v34  ;;  %v26058_v44 = vld [vmem:[#allocation64_spill] sm:$0xff]  ;;  %v26059_v34 = vld [vmem:[#allocation86_spill] sm:$0xff] }
 0x755   : > { %v13317_v32 = vadd.f32 %v13316_v27, %v13180_v45  ;;  %v13354_v15 = vadd.f32 %v13353_v60, %v13212_v35  ;;  %v13118_v55 = vmax.f32 %v26047_v6, 0.0  ;;  %v13150_v48 = vmax.f32 %v26048_v12, 0.0  ;;  %v26060_v45 = vld [vmem:[#allocation28_spill] sm:$0xff] }
 0x756   : > { %v13182_v52 = vmax.f32 %v26049_v13, 0.0  ;;  %v13214_v61 = vmax.f32 %v26050_v3, 0.0  ;;  %v13244_v19 = vadd.f32 %v13243_v5, %v13117_v16  ;;  %v13281_v51 = vadd.f32 %v13280_v49, %v13149_v43  ;;  %v26063_v43 = vld [vmem:[#allocation29_spill] sm:$0xff]  ;;  %v26065_v6 = vld [vmem:[#allocation88_spill] sm:$0xff] }
 0x757   : > { %v13318_v26 = vadd.f32 %v13317_v32, %v13181_v18  ;;  %v13355_v58 = vadd.f32 %v13354_v15, %v13213_v20  ;;  %v13119_v10 = vmax.f32 %v26051_v0, 0.0  ;;  %v13151_v29 = vmax.f32 %v26052_v31, 0.0  ;;  %v26064_v32 = vld [vmem:[#allocation66_spill] sm:$0xff] }
 0x758   : > { %v13183_v62 = vmax.f32 %v26053_v38, 0.0  ;;  %v13215_v30 = vmax.f32 %v26054_v8, 0.0  ;;  %v13245_v21 = vadd.f32 %v13244_v19, %v13118_v55  ;;  %v13282_v63 = vadd.f32 %v13281_v51, %v13150_v48  ;;  %v26066_v55 = vld [vmem:[#allocation2_spill] sm:$0xff]  ;;  %v26067_v19 = vld [vmem:[#allocation89_spill] sm:$0xff] }
 0x759   : > { %v13319_v50 = vadd.f32 %v13318_v26, %v13182_v52  ;;  %v13356_v36 = vadd.f32 %v13355_v58, %v13214_v61  ;;  %v13120_v37 = vmax.f32 %v26055_v40, 0.0  ;;  %v13152_v39 = vmax.f32 %v26056_v54, 0.0  ;;  %v26068_v26 = vld [vmem:[#allocation79_spill] sm:$0xff]  ;;  %v26070_v8 = vld [vmem:[#allocation90_spill] sm:$0xff] }
 0x75a   : > { %v13184_v1 = vmax.f32 %v26057_v9, 0.0  ;;  %v13216_v4 = vmax.f32 %v24955_v47, 0.0  ;;  %v13246_v57 = vadd.f32 %v13245_v21, %v13119_v10  ;;  %v13283_v11 = vadd.f32 %v13282_v63, %v13151_v29  ;;  %v26069_v58 = vld [vmem:[#allocation3_spill] sm:$0xff]  ;;  %v26071_v21 = vld [vmem:[#allocation80_spill] sm:$0xff] }
 0x75b   : > { %v13320_v14 = vadd.f32 %v13319_v50, %v13183_v62  ;;  %v13357_v24 = vadd.f32 %v13356_v36, %v13215_v30  ;;  %v13121_v2 = vmax.f32 %v26058_v44, 0.0  ;;  %v13153_v41 = vmax.f32 %v26059_v34, 0.0  ;;  %v26072_v63 = vld [vmem:[#allocation4_spill] sm:$0xff]  ;;  %v26073_v9 = vld [vmem:[#allocation91_spill] sm:$0xff] }
 0x75c   : > { %v13185_v25 = vmax.f32 %v26060_v45, 0.0  ;;  %v13217_v35 = vmax.f32 %v24959_v42, 0.0  ;;  %v13247_v59 = vadd.f32 %v13246_v57, %v13120_v37  ;;  %v13284_v46 = vadd.f32 %v13283_v11, %v13152_v39  ;;  %v26075_v57 = vld [vmem:[#allocation5_spill] sm:$0xff]  ;;  %v26077_v45 = vld [vmem:[#allocation92_spill] sm:$0xff] }
 0x75d   : > { %v13321_v27 = vadd.f32 %v13320_v14, %v13184_v1  ;;  %v13358_v60 = vadd.f32 %v13357_v24, %v13216_v4  ;;  %v13122_v16 = vmax.f32 %v26061_v17, 0.0  ;;  %v13154_v47 = vmax.f32 %v26062_v56, 0.0  ;;  %v26074_v4 = vld [vmem:[#allocation81_spill] sm:$0xff] }
 0x75e   : > { %v13186_v7 = vmax.f32 %v26063_v43, 0.0  ;;  %v13218_v18 = vmax.f32 %v24969_v33, 0.0  ;;  %v13248_v22 = vadd.f32 %v13247_v59, %v13121_v2  ;;  %v13285_v20 = vadd.f32 %v13284_v46, %v13153_v41  ;;  %v26076_v14 = vld [vmem:[#allocation33_spill] sm:$0xff]  ;;  %v26079_v59 = vld [vmem:[#allocation6_spill] sm:$0xff] }
 0x75f   : > { %v13322_v5 = vadd.f32 %v13321_v27, %v13185_v25  ;;  %v13359_v49 = vadd.f32 %v13358_v60, %v13217_v35  ;;  %v13123_v15 = vmax.f32 %v26064_v32, 0.0  ;;  %v13155_v42 = vmax.f32 %v26065_v6, 0.0  ;;  %v26078_v35 = vld [vmem:[#allocation82_spill] sm:$0xff]  ;;  %v26081_v43 = vld [vmem:[#allocation93_spill] sm:$0xff] }
 0x760   : > { %v13187_v12 = vmax.f32 %v26066_v55, 0.0  ;;  %v13219_v48 = vmax.f32 %v24973_v23, 0.0  ;;  %v13249_v13 = vadd.f32 %v13248_v22, %v13122_v16  ;;  %v13286_v52 = vadd.f32 %v13285_v20, %v13154_v47  ;;  %v26080_v27 = vld [vmem:[#allocation34_spill] sm:$0xff]  ;;  %v26083_v20 = vld [vmem:[#allocation7_spill] sm:$0xff] }
 0x761   : > { %v13323_v3 = vadd.f32 %v13322_v5, %v13186_v7  ;;  %v13360_v61 = vadd.f32 %v13359_v49, %v13218_v18  ;;  %v13124_v51 = vmax.f32 %v26067_v19, 0.0  ;;  %v13156_v33 = vmax.f32 %v26068_v26, 0.0  ;;  %v26082_v18 = vld [vmem:[#allocation83_spill] sm:$0xff]  ;;  %v26088_v19 = vld [vmem:[#allocation36_spill] sm:$0xff] }
 0x762   : > { %v13188_v0 = vmax.f32 %v26069_v58, 0.0  ;;  %v13220_v10 = vmax.f32 %v24977_v53, 0.0  ;;  %v13250_v31 = vadd.f32 %v13249_v13, %v13123_v15  ;;  %v13287_v29 = vadd.f32 %v13286_v52, %v13155_v42  ;;  %v26084_v49 = vld [vmem:[#allocation35_spill] sm:$0xff]  ;;  %v26086_v13 = vld [vmem:[#allocation84_spill] sm:$0xff] }
 0x763   : > { %v13324_v38 = vadd.f32 %v13323_v3, %v13187_v12  ;;  %v13361_v62 = vadd.f32 %v13360_v61, %v13219_v48  ;;  %v13125_v30 = vmax.f32 %v26070_v8, 0.0  ;;  %v13157_v23 = vmax.f32 %v26071_v21, 0.0  ;;  %v26085_v12 = vld [vmem:[#allocation94_spill] sm:$0xff]  ;;  %v26087_v3 = vld [vmem:[#allocation8_spill] sm:$0xff] }
 0x764   : > { %v13189_v50 = vmax.f32 %v26072_v63, 0.0  ;;  %v13221_v36 = vmax.f32 %v24981_v28, 0.0  ;;  %v13251_v40 = vadd.f32 %v13250_v31, %v13124_v51  ;;  %v13288_v37 = vadd.f32 %v13287_v29, %v13156_v33 }
 0x765   : > { %v13325_v54 = vadd.f32 %v13324_v38, %v13188_v0  ;;  %v13362_v39 = vadd.f32 %v13361_v62, %v13220_v10  ;;  %v13126_v1 = vmax.f32 %v26073_v9, 0.0  ;;  %v13158_v53 = vmax.f32 %v26074_v4, 0.0 }
 0x766   : > { %v13190_v11 = vmax.f32 %v26075_v57, 0.0  ;;  %v13222_v24 = vmax.f32 %v26076_v14, 0.0  ;;  %v13252_v44 = vadd.f32 %v13251_v40, %v13125_v30  ;;  %v13289_v2 = vadd.f32 %v13288_v37, %v13157_v23 }
 0x767   : > { %v13326_v34 = vadd.f32 %v13325_v54, %v13189_v50  ;;  %v13363_v41 = vadd.f32 %v13362_v39, %v13221_v36  ;;  %v13127_v25 = vmax.f32 %v26077_v45, 0.0  ;;  %v13159_v28 = vmax.f32 %v26078_v35, 0.0 }
 0x768   : > { %v13191_v46 = vmax.f32 %v26079_v59, 0.0  ;;  %v13223_v60 = vmax.f32 %v26080_v27, 0.0  ;;  %v13253_v17 = vadd.f32 %v13252_v44, %v13126_v1  ;;  %v13290_v16 = vadd.f32 %v13289_v2, %v13158_v53 }
 0x769   : > { %v13327_v56 = vadd.f32 %v13326_v34, %v13190_v11  ;;  %v13364_v47 = vadd.f32 %v13363_v41, %v13222_v24  ;;  %v13128_v7 = vmax.f32 %v26081_v43, 0.0  ;;  %v13160_v22 = vmax.f32 %v26082_v18, 0.0 }
 0x76a   : > { %v13192_v5 = vmax.f32 %v26083_v20, 0.0  ;;  %v13224_v32 = vmax.f32 %v26084_v49, 0.0  ;;  %v13254_v15 = vadd.f32 %v13253_v17, %v13127_v25  ;;  %v13291_v6 = vadd.f32 %v13290_v16, %v13159_v28 }
 0x76b   : > { %v13328_v42 = vadd.f32 %v13327_v56, %v13191_v46  ;;  %v13365_v55 = vadd.f32 %v13364_v47, %v13223_v60  ;;  %v13129_v48 = vmax.f32 %v26085_v12, 0.0  ;;  %v13161_v52 = vmax.f32 %v26086_v13, 0.0 }
 0x76c   : > { %v13193_v61 = vmax.f32 %v26087_v3, 0.0  ;;  %v13225_v51 = vmax.f32 %v26088_v19, 0.0  ;;  %v13255_v26 = vadd.f32 %v13254_v15, %v13128_v7  ;;  %v13292_v33 = vadd.f32 %v13291_v6, %v13160_v22 }
 0x76d   : > { %v13329_v58 = vadd.f32 %v13328_v42, %v13192_v5  ;;  %v13366_v0 = vadd.f32 %v13365_v55, %v13224_v32 }
 0x76e   : > { %v13256_v10 = vadd.f32 %v13255_v26, %v13129_v48  ;;  %v13293_v31 = vadd.f32 %v13292_v33, %v13161_v52 }
 0x76f   : > { %v13330_v29 = vadd.f32 %v13329_v58, %v13193_v61  ;;  %v13367_v38 = vadd.f32 %v13366_v0, %v13225_v51 }
 0x770   : > { %v13257_v62 = vrot.slane %v13256_v10, 4  ;;  %v13294_v8 = vrot.slane %v13293_v31, 4 }
 0x771   : > { %v13331_v30 = vrot.slane %v13330_v29, 4  ;;  %v13368_v21 = vrot.slane %v13367_v38, 4 }
 0x772   : > { %v13258_v23 = vadd.f32 %v13257_v62, %v13256_v10  ;;  %v13295_v63 = vadd.f32 %v13294_v8, %v13293_v31 }
 0x773   : > { %v13332_v50 = vadd.f32 %v13331_v30, %v13330_v29  ;;  %v13369_v36 = vadd.f32 %v13368_v21, %v13367_v38 }
 0x774   : > { %v13259_v40 = vrot.slane %v13258_v23, 2  ;;  %v13296_v37 = vrot.slane %v13295_v63, 2 }
 0x775   : > { %v13333_v54 = vrot.slane %v13332_v50, 2  ;;  %v13370_v39 = vrot.slane %v13369_v36, 2 }
 0x776   : > { %v13260_v9 = vadd.f32 %v13259_v40, %v13258_v23  ;;  %v13297_v1 = vadd.f32 %v13296_v37, %v13295_v63 }
 0x777   : > { %v13334_v4 = vadd.f32 %v13333_v54, %v13332_v50  ;;  %v13371_v53 = vadd.f32 %v13370_v39, %v13369_v36 }
 0x778   : > { %v13261_v57 = vrot.slane %v13260_v9, 1  ;;  %v13298_v11 = vrot.slane %v13297_v1, 1 }
 0x779   : > { %v13335_v14 = vrot.slane %v13334_v4, 1  ;;  %v13372_v24 = vrot.slane %v13371_v53, 1 }
 0x77a   : > { %v13262_v44 = vadd.f32 %v13261_v57, %v13260_v9  ;;  %v13299_v2 = vadd.f32 %v13298_v11, %v13297_v1 }
 0x77b   : > { %v13336_v34 = vadd.f32 %v13335_v14, %v13334_v4  ;;  %v13373_v41 = vadd.f32 %v13372_v24, %v13371_v53 }
 0x77c   : > { %v13375_v45 = vmul.f32 0.00390625, %v13262_v44  ;;  %v13376_v25 = vmul.f32 0.00390625, %v13299_v2 }
 0x77d   : > { %v13377_v35 = vmul.f32 0.00390625, %v13336_v34  ;;  %v13378_v28 = vmul.f32 0.00390625, %v13373_v41 }
 0x77e   : > { %v13384_v59 = vsel %vm13383_vm1, %v13376_v25, %v13375_v45 }
 0x77f   : > { %v13386_v46 = vsel %vm13385_vm2, %v13377_v35, %v13384_v59 }
 0x780   : > { %v13388_v27 = vsel %vm13387_vm3, %v13378_v28, %v13386_v46 }
 0x781   : > { %13390 = vst [vmem:[%s173_s25] sm:$0xf] %v13388_v27 }
 0x782 PF: > { %s13_s12 = sadd.s32 1, %s19337_s12  }
 0x783   : > { %p10_p5 = scmp.ge.s32.totalorder %s13_s12, 4  }
 0x785   :  { %12 = sbr.rel (!%p10_p5) target bundleno = 1 (0x1), region = 72 }

</bundles_post_ra>
